<compile_context>
chip_gen: v7x
topology: tpu7x:2x2x1
jax: 0.10.0
libtpu: 0.0.40
codegen_flags: <defaults>
</compile_context>

<pallas_src>
import functools

import jax
import jax.numpy as jnp
from jax.experimental import pallas as pl
from jax.experimental.pallas import tpu as pltpu

# ---- hyperparameters (match the module) ----
n_embed = 384
n_head = 6
head_size = n_embed // n_head      # 64
n_layer = 6
block_size = 256
vocab_size = 65                    # e.g. tiny-shakespeare char vocab
VOCAB_PAD = 128                    # lm-head padded to a lane-dense width

_VMEM_LIMIT = 48 * 1024 * 1024     # < v7x 64 MiB physical; well under v5e/v6e 128 MiB


# ---------------- per-layer body (pure values, traced once) ----------------

def _layernorm(x, g, b):
    # x: (T, C) f32; g, b: (1, C) f32. Returns bf16 (MXU input).
    mean = jnp.mean(x, axis=-1, keepdims=True)
    var = jnp.mean((x - mean) ** 2, axis=-1, keepdims=True)
    xn = (x - mean) * jax.lax.rsqrt(var + 1e-5)
    return (xn * g + b).astype(jnp.bfloat16)


def _transformer_layer(x, ln1_g, ln1_b, w_qkv, w_proj, b_proj,
                       ln2_g, ln2_b, w_fc1, b_fc1, w_fc2, b_fc2, *, T, scale):
    """x: (T, C) f32 residual stream. Returns the updated (T, C) f32 stream."""
    # --- LN1 + fused QKV projection ---
    xn = _layernorm(x, ln1_g, ln1_b)                                   # (T, C) bf16
    qkv = jnp.dot(xn, w_qkv, preferred_element_type=jnp.float32)       # (T, 3C) f32
    qkv = qkv.astype(jnp.bfloat16)

    # --- causal attention, all heads; normalize AFTER the PV matmul ---
    row = jax.lax.broadcasted_iota(jnp.int32, (T, T), 0)
    col = jax.lax.broadcasted_iota(jnp.int32, (T, T), 1)
    causal = col <= row
    head_outs = []
    # TODO(synk): 64-lane head slices / 6-way concat cause minor lane relayouts;
    #             pack heads in 128-lane pairs if attention ever dominates (long T).
    for h in range(n_head):
        q = qkv[:, h * head_size:(h + 1) * head_size]
        k = qkv[:, n_embed + h * head_size: n_embed + (h + 1) * head_size]
        v = qkv[:, 2 * n_embed + h * head_size: 2 * n_embed + (h + 1) * head_size]
        s = jax.lax.dot_general(q, k, (((1,), (1,)), ((), ())),
                                preferred_element_type=jnp.float32) * scale
        s = jnp.where(causal, s, -1e30)                    # finite sentinel mask
        s = s - jnp.max(s, axis=-1, keepdims=True)
        p = jnp.exp(s)                                      # unnormalized probs
        l_sum = jnp.sum(p, axis=-1, keepdims=True)          # (T, 1)
        acc = jnp.dot(p.astype(jnp.bfloat16), v,
                      preferred_element_type=jnp.float32)   # (T, 64) f32
        head_outs.append(acc * pl.reciprocal(l_sum, approx=True))
    attn = jnp.concatenate(head_outs, axis=-1).astype(jnp.bfloat16)    # (T, C)

    # --- output projection + bias + residual (f32) ---
    y = jnp.dot(attn, w_proj, preferred_element_type=jnp.float32) + b_proj
    x = x + y

    # --- LN2 + FFN (intermediate never leaves VMEM) + residual ---
    xn2 = _layernorm(x, ln2_g, ln2_b)
    h1 = jnp.dot(xn2, w_fc1, preferred_element_type=jnp.float32) + b_fc1
    h1 = jnp.maximum(h1, 0.0).astype(jnp.bfloat16)
    y2 = jnp.dot(h1, w_fc2, preferred_element_type=jnp.float32) + b_fc2
    return x + y2


# ---------------- fused whole-model kernel ----------------

def _gpt_forward_kernel(x_ref,
                        ln1_g_ref, ln1_b_ref, w_qkv_ref, w_proj_ref, b_proj_ref,
                        ln2_g_ref, ln2_b_ref, w_fc1_ref, b_fc1_ref, w_fc2_ref,
                        b_fc2_ref, w_lm_ref, b_lm_ref,
                        logits_ref,
                        x_scr,
                        *, T, scale):
    layer = pl.program_id(1)
    n_layers = pl.num_programs(1)

    # Load the embedded tokens for this batch element once (layer 0 only).
    @pl.when(layer == 0)
    def _():
        x_scr[...] = x_ref[...].astype(jnp.float32)

    x = _transformer_layer(
        x_scr[...],
        ln1_g_ref[0], ln1_b_ref[0],
        w_qkv_ref[0], w_proj_ref[0], b_proj_ref[0],
        ln2_g_ref[0], ln2_b_ref[0],
        w_fc1_ref[0], b_fc1_ref[0], w_fc2_ref[0], b_fc2_ref[0],
        T=T, scale=scale)
    x_scr[...] = x

    # Final layer: lm head (padded vocab) fused in; only HBM activation write.
    # NOTE: reference module's ln_f is a tuple and never applied in forward.
    @pl.when(layer == n_layers - 1)
    def _():
        xb = x.astype(jnp.bfloat16)
        logits_ref[...] = (jnp.dot(xb, w_lm_ref[...],
                                   preferred_element_type=jnp.float32)
                           + b_lm_ref[...])


def gpt_forward(x2d, params, B, T):
    M, C = x2d.shape
    scale = float(n_embed) ** -0.5     # reference Head.forward uses C = n_embed

    vec = lambda n: pl.BlockSpec((1, 1, n), lambda b, l: (l, 0, 0))     # per-layer vectors
    mat = lambda r, c: pl.BlockSpec((1, r, c), lambda b, l: (l, 0, 0))  # per-layer matrices

    return pl.pallas_call(
        functools.partial(_gpt_forward_kernel, T=T, scale=scale),
        out_shape=jax.ShapeDtypeStruct((M, VOCAB_PAD), jnp.float32),
        grid=(B, n_layer),
        in_specs=[
            pl.BlockSpec((T, C), lambda b, l: (b, 0)),           # embedded tokens
            vec(C), vec(C),                                       # ln1 gamma/beta
            mat(C, 3 * C),                                        # w_qkv
            mat(C, C),                                            # w_proj
            vec(C),                                               # b_proj
            vec(C), vec(C),                                       # ln2 gamma/beta
            mat(C, 4 * C),                                        # w_fc1
            vec(4 * C),                                           # b_fc1
            mat(4 * C, C),                                        # w_fc2
            vec(C),                                               # b_fc2
            pl.BlockSpec((C, VOCAB_PAD), lambda b, l: (0, 0)),    # lm head weight
            pl.BlockSpec((1, VOCAB_PAD), lambda b, l: (0, 0)),    # lm head bias
        ],
        out_specs=pl.BlockSpec((T, VOCAB_PAD), lambda b, l: (b, 0)),
        scratch_shapes=[pltpu.VMEM((T, n_embed), jnp.float32)],   # residual stream
        compiler_params=pltpu.CompilerParams(
            dimension_semantics=("parallel", "arbitrary"),
            vmem_limit_bytes=_VMEM_LIMIT),
    )(x2d,
      params["ln1_g"], params["ln1_b"], params["w_qkv"], params["w_proj"],
      params["b_proj"], params["ln2_g"], params["ln2_b"], params["w_fc1"],
      params["b_fc1"], params["w_fc2"], params["b_fc2"],
      params["w_lm_pad"], params["b_lm_pad"])


# ---------------- parameters (stacked per-layer along a leading axis) ----------------

def init_params(key):
    ks = jax.random.split(key, 4 + n_layer)

    def nrm(k, shape, dtype=jnp.bfloat16, s=0.02):
        return (s * jax.random.normal(k, shape, dtype=jnp.float32)).astype(dtype)

    w_lm = nrm(ks[2], (n_embed, vocab_size))
    w_lm_pad = jnp.zeros((n_embed, VOCAB_PAD), jnp.bfloat16).at[:, :vocab_size].set(w_lm)

    w_qkv, w_proj, w_fc1, w_fc2 = [], [], [], []
    for l in range(n_layer):
        bk = jax.random.split(ks[4 + l], 6)
        # Fused QKV weight: columns [q | k | v], each (C, C); head h of q is
        # columns h*64:(h+1)*64 of the q slab (and similarly for k, v).
        w_qkv.append(jnp.concatenate([nrm(bk[0], (n_embed, n_embed)),
                                      nrm(bk[1], (n_embed, n_embed)),
                                      nrm(bk[2], (n_embed, n_embed))], axis=1))
        w_proj.append(nrm(bk[3], (n_embed, n_embed)))
        w_fc1.append(nrm(bk[4], (n_embed, 4 * n_embed)))
        w_fc2.append(nrm(bk[5], (4 * n_embed, n_embed)))

    L, C = n_layer, n_embed
    return {
        "tok_emb": nrm(ks[0], (vocab_size, n_embed)),             # bf16 embedding tables
        "pos_emb": nrm(ks[1], (block_size, n_embed)),
        "ln1_g": jnp.ones((L, 1, C), jnp.float32),
        "ln1_b": jnp.zeros((L, 1, C), jnp.float32),
        "ln2_g": jnp.ones((L, 1, C), jnp.float32),
        "ln2_b": jnp.zeros((L, 1, C), jnp.float32),
        "w_qkv": jnp.stack(w_qkv),                                # (L, C, 3C) bf16
        "w_proj": jnp.stack(w_proj),                              # (L, C, C)  bf16
        "b_proj": jnp.zeros((L, 1, C), jnp.float32),
        "w_fc1": jnp.stack(w_fc1),                                # (L, C, 4C) bf16
        "b_fc1": jnp.zeros((L, 1, 4 * C), jnp.float32),
        "w_fc2": jnp.stack(w_fc2),                                # (L, 4C, C) bf16
        "b_fc2": jnp.zeros((L, 1, C), jnp.float32),
        "w_lm_pad": w_lm_pad,                                     # (C, 128) bf16
        "b_lm_pad": jnp.zeros((1, VOCAB_PAD), jnp.float32),
    }


# ---------------- forward (embedding gather in XLA, everything else in Pallas) ----------------

@jax.jit
def bigram_forward(params, idx):
    B, T = idx.shape
    assert T <= block_size
    assert B == 1 or T % 8 == 0, "sequence block requires T % 8 == 0 when B > 1"
    # bf16 gather + positional add (half the HBM traffic of the previous f32 path).
    tok_emb = jnp.take(params["tok_emb"], idx, axis=0)             # (B, T, C) bf16
    x = tok_emb + params["pos_emb"][:T][None, :, :]
    x2d = x.reshape(B * T, n_embed)
    logits = gpt_forward(x2d, params, B, T)                        # (B*T, 128) f32
    return logits[:, :vocab_size].reshape(B, T, vocab_size)


if __name__ == "__main__":
    key = jax.random.PRNGKey(0)
    pkey, ikey = jax.random.split(key)
    params = init_params(pkey)

    B, T = 2, 64   # small shapes; T multiple of 8, <= block_size
    idx = jax.random.randint(ikey, (B, T), 0, vocab_size, dtype=jnp.int32)

    logits = bigram_forward(params, idx)
    jax.block_until_ready(logits)
    assert logits.shape == (B, T, vocab_size)
    assert logits.dtype == jnp.float32
    assert bool(jnp.all(jnp.isfinite(logits)))
    print("KERNEL_OK")
</pallas_src>

<mosaic_0001>
module attributes {stable_mosaic.version = 11 : i64} {
  func.func @_gpt_forward_kernel(%arg0: i32, %arg1: i32, %arg2: memref<64x384xbf16, #tpu.memory_space<vmem>>, %arg3: memref<1x1x384xf32, #tpu.memory_space<vmem>>, %arg4: memref<1x1x384xf32, #tpu.memory_space<vmem>>, %arg5: memref<1x384x1152xbf16, #tpu.memory_space<vmem>>, %arg6: memref<1x384x384xbf16, #tpu.memory_space<vmem>>, %arg7: memref<1x1x384xf32, #tpu.memory_space<vmem>>, %arg8: memref<1x1x384xf32, #tpu.memory_space<vmem>>, %arg9: memref<1x1x384xf32, #tpu.memory_space<vmem>>, %arg10: memref<1x384x1536xbf16, #tpu.memory_space<vmem>>, %arg11: memref<1x1x1536xf32, #tpu.memory_space<vmem>>, %arg12: memref<1x1536x384xbf16, #tpu.memory_space<vmem>>, %arg13: memref<1x1x384xf32, #tpu.memory_space<vmem>>, %arg14: memref<384x128xbf16, #tpu.memory_space<vmem>>, %arg15: memref<1x128xf32, #tpu.memory_space<vmem>>, %arg16: memref<64x128xf32, #tpu.memory_space<vmem>>, %arg17: memref<64x384xf32, #tpu.memory_space<vmem>>) attributes {dimension_semantics = [#tpu.dimension_semantics<parallel>, #tpu.dimension_semantics<arbitrary>], iteration_bounds = array<i64: 2, 6>, scalar_prefetch = 0 : i64, scratch_operands = 1 : i64, tpu.core_type = #tpu.core_type<tc>, window_params = [{transform_indices = @transform_0, window_bounds = array<i64: 64, 384>}, {transform_indices = @transform_1, window_bounds = array<i64: 1, 1, 384>}, {transform_indices = @transform_2, window_bounds = array<i64: 1, 1, 384>}, {transform_indices = @transform_3, window_bounds = array<i64: 1, 384, 1152>}, {transform_indices = @transform_4, window_bounds = array<i64: 1, 384, 384>}, {transform_indices = @transform_5, window_bounds = array<i64: 1, 1, 384>}, {transform_indices = @transform_6, window_bounds = array<i64: 1, 1, 384>}, {transform_indices = @transform_7, window_bounds = array<i64: 1, 1, 384>}, {transform_indices = @transform_8, window_bounds = array<i64: 1, 384, 1536>}, {transform_indices = @transform_9, window_bounds = array<i64: 1, 1, 1536>}, {transform_indices = @transform_10, window_bounds = array<i64: 1, 1536, 384>}, {transform_indices = @transform_11, window_bounds = array<i64: 1, 1, 384>}, {pipeline_mode = #tpu.pipeline_mode<synchronous>, transform_indices = @transform_12, window_bounds = array<i64: 384, 128>}, {pipeline_mode = #tpu.pipeline_mode<synchronous>, transform_indices = @transform_13, window_bounds = array<i64: 1, 128>}, {transform_indices = @transform_14, window_bounds = array<i64: 64, 128>}]} {
    %c0_i32 = arith.constant 0 : i32
    %0 = arith.cmpi eq, %arg1, %c0_i32 : i32
    %1 = arith.extui %0 : i1 to i32
    %c0_i32_0 = arith.constant 0 : i32
    %2 = arith.cmpi ne, %1, %c0_i32_0 : i32
    scf.if %2 {
      %c0_88 = arith.constant 0 : index
      %c0_89 = arith.constant 0 : index
      %217 = vector.load %arg2[%c0_88, %c0_89] : memref<64x384xbf16, #tpu.memory_space<vmem>>, vector<64x384xbf16>
      %218 = arith.extf %217 : vector<64x384xbf16> to vector<64x384xf32>
      %c0_90 = arith.constant 0 : index
      %c0_91 = arith.constant 0 : index
      %219 = vector.load %arg17[%c0_90, %c0_91] : memref<64x384xf32, #tpu.memory_space<vmem>>, vector<64x384xf32>
      tpu.vector_store %arg17[%c0_90, %c0_91], %218 {strides = array<i32>} : memref<64x384xf32, #tpu.memory_space<vmem>>, vector<64x384xf32>,
    } else {
    }
    %c0 = arith.constant 0 : index
    %c0_1 = arith.constant 0 : index
    %3 = vector.load %arg17[%c0, %c0_1] : memref<64x384xf32, #tpu.memory_space<vmem>>, vector<64x384xf32>
    %c0_2 = arith.constant 0 : index
    %c0_3 = arith.constant 0 : index
    %c0_4 = arith.constant 0 : index
    %4 = vector.load %arg3[%c0_2, %c0_3, %c0_4] : memref<1x1x384xf32, #tpu.memory_space<vmem>>, vector<1x1x384xf32>
    %5 = vector.shape_cast %4 : vector<1x1x384xf32> to vector<1x384xf32>
    %c0_5 = arith.constant 0 : index
    %c0_6 = arith.constant 0 : index
    %c0_7 = arith.constant 0 : index
    %6 = vector.load %arg4[%c0_5, %c0_6, %c0_7] : memref<1x1x384xf32, #tpu.memory_space<vmem>>, vector<1x1x384xf32>
    %7 = vector.shape_cast %6 : vector<1x1x384xf32> to vector<1x384xf32>
    %c0_8 = arith.constant 0 : index
    %c0_9 = arith.constant 0 : index
    %c0_10 = arith.constant 0 : index
    %8 = vector.load %arg5[%c0_8, %c0_9, %c0_10] : memref<1x384x1152xbf16, #tpu.memory_space<vmem>>, vector<1x384x1152xbf16>
    %9 = vector.shape_cast %8 : vector<1x384x1152xbf16> to vector<384x1152xbf16>
    %c0_11 = arith.constant 0 : index
    %c0_12 = arith.constant 0 : index
    %c0_13 = arith.constant 0 : index
    %10 = vector.load %arg6[%c0_11, %c0_12, %c0_13] : memref<1x384x384xbf16, #tpu.memory_space<vmem>>, vector<1x384x384xbf16>
    %11 = vector.shape_cast %10 : vector<1x384x384xbf16> to vector<384x384xbf16>
    %c0_14 = arith.constant 0 : index
    %c0_15 = arith.constant 0 : index
    %c0_16 = arith.constant 0 : index
    %12 = vector.load %arg7[%c0_14, %c0_15, %c0_16] : memref<1x1x384xf32, #tpu.memory_space<vmem>>, vector<1x1x384xf32>
    %13 = vector.shape_cast %12 : vector<1x1x384xf32> to vector<1x384xf32>
    %c0_17 = arith.constant 0 : index
    %c0_18 = arith.constant 0 : index
    %c0_19 = arith.constant 0 : index
    %14 = vector.load %arg8[%c0_17, %c0_18, %c0_19] : memref<1x1x384xf32, #tpu.memory_space<vmem>>, vector<1x1x384xf32>
    %15 = vector.shape_cast %14 : vector<1x1x384xf32> to vector<1x384xf32>
    %c0_20 = arith.constant 0 : index
    %c0_21 = arith.constant 0 : index
    %c0_22 = arith.constant 0 : index
    %16 = vector.load %arg9[%c0_20, %c0_21, %c0_22] : memref<1x1x384xf32, #tpu.memory_space<vmem>>, vector<1x1x384xf32>
    %17 = vector.shape_cast %16 : vector<1x1x384xf32> to vector<1x384xf32>
    %c0_23 = arith.constant 0 : index
    %c0_24 = arith.constant 0 : index
    %c0_25 = arith.constant 0 : index
    %18 = vector.load %arg10[%c0_23, %c0_24, %c0_25] : memref<1x384x1536xbf16, #tpu.memory_space<vmem>>, vector<1x384x1536xbf16>
    %19 = vector.shape_cast %18 : vector<1x384x1536xbf16> to vector<384x1536xbf16>
    %c0_26 = arith.constant 0 : index
    %c0_27 = arith.constant 0 : index
    %c0_28 = arith.constant 0 : index
    %20 = vector.load %arg11[%c0_26, %c0_27, %c0_28] : memref<1x1x1536xf32, #tpu.memory_space<vmem>>, vector<1x1x1536xf32>
    %21 = vector.shape_cast %20 : vector<1x1x1536xf32> to vector<1x1536xf32>
    %c0_29 = arith.constant 0 : index
    %c0_30 = arith.constant 0 : index
    %c0_31 = arith.constant 0 : index
    %22 = vector.load %arg12[%c0_29, %c0_30, %c0_31] : memref<1x1536x384xbf16, #tpu.memory_space<vmem>>, vector<1x1536x384xbf16>
    %23 = vector.shape_cast %22 : vector<1x1536x384xbf16> to vector<1536x384xbf16>
    %c0_32 = arith.constant 0 : index
    %c0_33 = arith.constant 0 : index
    %c0_34 = arith.constant 0 : index
    %24 = vector.load %arg13[%c0_32, %c0_33, %c0_34] : memref<1x1x384xf32, #tpu.memory_space<vmem>>, vector<1x1x384xf32>
    %25 = vector.shape_cast %24 : vector<1x1x384xf32> to vector<1x384xf32>
    %cst = arith.constant dense<0.000000e+00> : vector<64xf32>
    %26 = vector.multi_reduction <add>, %3, %cst [1] : vector<64x384xf32> to vector<64xf32>
    %27 = vector.shape_cast %26 : vector<64xf32> to vector<64x1xf32>
    %cst_35 = arith.constant 3.840000e+02 : f32
    %28 = vector.broadcast %cst_35 : f32 to vector<64x1xf32>
    %29 = arith.divf %27, %28 : vector<64x1xf32>
    %30 = vector.broadcast %29 : vector<64x1xf32> to vector<64x384xf32>
    %31 = arith.subf %3, %30 : vector<64x384xf32>
    %32 = arith.mulf %31, %31 : vector<64x384xf32>
    %cst_36 = arith.constant dense<0.000000e+00> : vector<64xf32>
    %33 = vector.multi_reduction <add>, %32, %cst_36 [1] : vector<64x384xf32> to vector<64xf32>
    %34 = vector.shape_cast %33 : vector<64xf32> to vector<64x1xf32>
    %cst_37 = arith.constant 3.840000e+02 : f32
    %35 = vector.broadcast %cst_37 : f32 to vector<64x1xf32>
    %36 = arith.divf %34, %35 : vector<64x1xf32>
    %37 = vector.broadcast %29 : vector<64x1xf32> to vector<64x384xf32>
    %38 = arith.subf %3, %37 : vector<64x384xf32>
    %cst_38 = arith.constant 9.99999974E-6 : f32
    %39 = vector.broadcast %cst_38 : f32 to vector<64x1xf32>
    %40 = arith.addf %36, %39 : vector<64x1xf32>
    %41 = math.rsqrt %40 : vector<64x1xf32>
    %42 = vector.broadcast %41 : vector<64x1xf32> to vector<64x384xf32>
    %43 = arith.mulf %38, %42 : vector<64x384xf32>
    %44 = vector.broadcast %5 : vector<1x384xf32> to vector<64x384xf32>
    %45 = arith.mulf %43, %44 : vector<64x384xf32>
    %46 = vector.broadcast %7 : vector<1x384xf32> to vector<64x384xf32>
    %47 = arith.addf %45, %46 : vector<64x384xf32>
    %48 = arith.truncf %47 : vector<64x384xf32> to vector<64x384xbf16>
    %cst_39 = arith.constant dense<0.000000e+00> : vector<64x1152xf32>
    %49 = tpu.matmul %48, %9, %cst_39 {dimension_numbers = #tpu.dot_dimension_numbers<[1], [0], [0], [1], [0, 0, 1, 1], [], []>} : vector<64x384xbf16>, vector<384x1152xbf16>, vector<64x1152xf32> -> vector<64x1152xf32>
    %50 = arith.truncf %49 : vector<64x1152xf32> to vector<64x1152xbf16>
    %51 = tpu.iota {dimensions = array<i32: 0>} : vector<64x64xi32>
    %52 = tpu.iota {dimensions = array<i32: 1>} : vector<64x64xi32>
    %53 = arith.cmpi sle, %52, %51 : vector<64x64xi32>
    %54 = vector.extract_strided_slice %50 {offsets = [0, 0], sizes = [64, 64], strides = [1, 1]} : vector<64x1152xbf16> to vector<64x64xbf16>
    %55 = vector.extract_strided_slice %50 {offsets = [0, 384], sizes = [64, 64], strides = [1, 1]} : vector<64x1152xbf16> to vector<64x64xbf16>
    %56 = vector.extract_strided_slice %50 {offsets = [0, 768], sizes = [64, 64], strides = [1, 1]} : vector<64x1152xbf16> to vector<64x64xbf16>
    %cst_40 = arith.constant dense<0.000000e+00> : vector<64x64xf32>
    %57 = tpu.matmul %54, %55, %cst_40 {dimension_numbers = #tpu.dot_dimension_numbers<[1], [1], [0], [0], [0, 0, 1, 0], [], []>} : vector<64x64xbf16>, vector<64x64xbf16>, vector<64x64xf32> -> vector<64x64xf32>
    %cst_41 = arith.constant 0.0510310382 : f32
    %58 = vector.broadcast %cst_41 : f32 to vector<64x64xf32>
    %59 = arith.mulf %57, %58 : vector<64x64xf32>
    %cst_42 = arith.constant -1.000000e+30 : f32
    %60 = vector.broadcast %cst_42 : f32 to vector<64x64xf32>
    %61 = arith.select %53, %59, %60 : vector<64x64xi1>, vector<64x64xf32>
    %cst_43 = arith.constant dense<0xFF800000> : vector<64xf32>
    %62 = vector.multi_reduction <maximumf>, %61, %cst_43 [1] : vector<64x64xf32> to vector<64xf32>
    %63 = vector.shape_cast %62 : vector<64xf32> to vector<64x1xf32>
    %64 = vector.broadcast %63 : vector<64x1xf32> to vector<64x64xf32>
    %65 = arith.subf %61, %64 : vector<64x64xf32>
    %66 = math.exp %65 : vector<64x64xf32>
    %cst_44 = arith.constant dense<0.000000e+00> : vector<64xf32>
    %67 = vector.multi_reduction <add>, %66, %cst_44 [1] : vector<64x64xf32> to vector<64xf32>
    %68 = vector.shape_cast %67 : vector<64xf32> to vector<64x1xf32>
    %69 = arith.truncf %66 : vector<64x64xf32> to vector<64x64xbf16>
    %cst_45 = arith.constant dense<0.000000e+00> : vector<64x64xf32>
    %70 = tpu.matmul %69, %56, %cst_45 {dimension_numbers = #tpu.dot_dimension_numbers<[1], [0], [0], [1], [0, 0, 1, 1], [], []>} : vector<64x64xbf16>, vector<64x64xbf16>, vector<64x64xf32> -> vector<64x64xf32>
    %71 = tpu.reciprocal %68 {approx = true} : vector<64x1xf32> -> vector<64x1xf32>
    %72 = vector.broadcast %71 : vector<64x1xf32> to vector<64x64xf32>
    %73 = arith.mulf %70, %72 : vector<64x64xf32>
    %74 = vector.extract_strided_slice %50 {offsets = [0, 64], sizes = [64, 64], strides = [1, 1]} : vector<64x1152xbf16> to vector<64x64xbf16>
    %75 = vector.extract_strided_slice %50 {offsets = [0, 448], sizes = [64, 64], strides = [1, 1]} : vector<64x1152xbf16> to vector<64x64xbf16>
    %76 = vector.extract_strided_slice %50 {offsets = [0, 832], sizes = [64, 64], strides = [1, 1]} : vector<64x1152xbf16> to vector<64x64xbf16>
    %cst_46 = arith.constant dense<0.000000e+00> : vector<64x64xf32>
    %77 = tpu.matmul %74, %75, %cst_46 {dimension_numbers = #tpu.dot_dimension_numbers<[1], [1], [0], [0], [0, 0, 1, 0], [], []>} : vector<64x64xbf16>, vector<64x64xbf16>, vector<64x64xf32> -> vector<64x64xf32>
    %cst_47 = arith.constant 0.0510310382 : f32
    %78 = vector.broadcast %cst_47 : f32 to vector<64x64xf32>
    %79 = arith.mulf %77, %78 : vector<64x64xf32>
    %cst_48 = arith.constant -1.000000e+30 : f32
    %80 = vector.broadcast %cst_48 : f32 to vector<64x64xf32>
    %81 = arith.select %53, %79, %80 : vector<64x64xi1>, vector<64x64xf32>
    %cst_49 = arith.constant dense<0xFF800000> : vector<64xf32>
    %82 = vector.multi_reduction <maximumf>, %81, %cst_49 [1] : vector<64x64xf32> to vector<64xf32>
    %83 = vector.shape_cast %82 : vector<64xf32> to vector<64x1xf32>
    %84 = vector.broadcast %83 : vector<64x1xf32> to vector<64x64xf32>
    %85 = arith.subf %81, %84 : vector<64x64xf32>
    %86 = math.exp %85 : vector<64x64xf32>
    %cst_50 = arith.constant dense<0.000000e+00> : vector<64xf32>
    %87 = vector.multi_reduction <add>, %86, %cst_50 [1] : vector<64x64xf32> to vector<64xf32>
    %88 = vector.shape_cast %87 : vector<64xf32> to vector<64x1xf32>
    %89 = arith.truncf %86 : vector<64x64xf32> to vector<64x64xbf16>
    %cst_51 = arith.constant dense<0.000000e+00> : vector<64x64xf32>
    %90 = tpu.matmul %89, %76, %cst_51 {dimension_numbers = #tpu.dot_dimension_numbers<[1], [0], [0], [1], [0, 0, 1, 1], [], []>} : vector<64x64xbf16>, vector<64x64xbf16>, vector<64x64xf32> -> vector<64x64xf32>
    %91 = tpu.reciprocal %88 {approx = true} : vector<64x1xf32> -> vector<64x1xf32>
    %92 = vector.broadcast %91 : vector<64x1xf32> to vector<64x64xf32>
    %93 = arith.mulf %90, %92 : vector<64x64xf32>
    %94 = vector.extract_strided_slice %50 {offsets = [0, 128], sizes = [64, 64], strides = [1, 1]} : vector<64x1152xbf16> to vector<64x64xbf16>
    %95 = vector.extract_strided_slice %50 {offsets = [0, 512], sizes = [64, 64], strides = [1, 1]} : vector<64x1152xbf16> to vector<64x64xbf16>
    %96 = vector.extract_strided_slice %50 {offsets = [0, 896], sizes = [64, 64], strides = [1, 1]} : vector<64x1152xbf16> to vector<64x64xbf16>
    %cst_52 = arith.constant dense<0.000000e+00> : vector<64x64xf32>
    %97 = tpu.matmul %94, %95, %cst_52 {dimension_numbers = #tpu.dot_dimension_numbers<[1], [1], [0], [0], [0, 0, 1, 0], [], []>} : vector<64x64xbf16>, vector<64x64xbf16>, vector<64x64xf32> -> vector<64x64xf32>
    %cst_53 = arith.constant 0.0510310382 : f32
    %98 = vector.broadcast %cst_53 : f32 to vector<64x64xf32>
    %99 = arith.mulf %97, %98 : vector<64x64xf32>
    %cst_54 = arith.constant -1.000000e+30 : f32
    %100 = vector.broadcast %cst_54 : f32 to vector<64x64xf32>
    %101 = arith.select %53, %99, %100 : vector<64x64xi1>, vector<64x64xf32>
    %cst_55 = arith.constant dense<0xFF800000> : vector<64xf32>
    %102 = vector.multi_reduction <maximumf>, %101, %cst_55 [1] : vector<64x64xf32> to vector<64xf32>
    %103 = vector.shape_cast %102 : vector<64xf32> to vector<64x1xf32>
    %104 = vector.broadcast %103 : vector<64x1xf32> to vector<64x64xf32>
    %105 = arith.subf %101, %104 : vector<64x64xf32>
    %106 = math.exp %105 : vector<64x64xf32>
    %cst_56 = arith.constant dense<0.000000e+00> : vector<64xf32>
    %107 = vector.multi_reduction <add>, %106, %cst_56 [1] : vector<64x64xf32> to vector<64xf32>
    %108 = vector.shape_cast %107 : vector<64xf32> to vector<64x1xf32>
    %109 = arith.truncf %106 : vector<64x64xf32> to vector<64x64xbf16>
    %cst_57 = arith.constant dense<0.000000e+00> : vector<64x64xf32>
    %110 = tpu.matmul %109, %96, %cst_57 {dimension_numbers = #tpu.dot_dimension_numbers<[1], [0], [0], [1], [0, 0, 1, 1], [], []>} : vector<64x64xbf16>, vector<64x64xbf16>, vector<64x64xf32> -> vector<64x64xf32>
    %111 = tpu.reciprocal %108 {approx = true} : vector<64x1xf32> -> vector<64x1xf32>
    %112 = vector.broadcast %111 : vector<64x1xf32> to vector<64x64xf32>
    %113 = arith.mulf %110, %112 : vector<64x64xf32>
    %114 = vector.extract_strided_slice %50 {offsets = [0, 192], sizes = [64, 64], strides = [1, 1]} : vector<64x1152xbf16> to vector<64x64xbf16>
    %115 = vector.extract_strided_slice %50 {offsets = [0, 576], sizes = [64, 64], strides = [1, 1]} : vector<64x1152xbf16> to vector<64x64xbf16>
    %116 = vector.extract_strided_slice %50 {offsets = [0, 960], sizes = [64, 64], strides = [1, 1]} : vector<64x1152xbf16> to vector<64x64xbf16>
    %cst_58 = arith.constant dense<0.000000e+00> : vector<64x64xf32>
    %117 = tpu.matmul %114, %115, %cst_58 {dimension_numbers = #tpu.dot_dimension_numbers<[1], [1], [0], [0], [0, 0, 1, 0], [], []>} : vector<64x64xbf16>, vector<64x64xbf16>, vector<64x64xf32> -> vector<64x64xf32>
    %cst_59 = arith.constant 0.0510310382 : f32
    %118 = vector.broadcast %cst_59 : f32 to vector<64x64xf32>
    %119 = arith.mulf %117, %118 : vector<64x64xf32>
    %cst_60 = arith.constant -1.000000e+30 : f32
    %120 = vector.broadcast %cst_60 : f32 to vector<64x64xf32>
    %121 = arith.select %53, %119, %120 : vector<64x64xi1>, vector<64x64xf32>
    %cst_61 = arith.constant dense<0xFF800000> : vector<64xf32>
    %122 = vector.multi_reduction <maximumf>, %121, %cst_61 [1] : vector<64x64xf32> to vector<64xf32>
    %123 = vector.shape_cast %122 : vector<64xf32> to vector<64x1xf32>
    %124 = vector.broadcast %123 : vector<64x1xf32> to vector<64x64xf32>
    %125 = arith.subf %121, %124 : vector<64x64xf32>
    %126 = math.exp %125 : vector<64x64xf32>
    %cst_62 = arith.constant dense<0.000000e+00> : vector<64xf32>
    %127 = vector.multi_reduction <add>, %126, %cst_62 [1] : vector<64x64xf32> to vector<64xf32>
    %128 = vector.shape_cast %127 : vector<64xf32> to vector<64x1xf32>
    %129 = arith.truncf %126 : vector<64x64xf32> to vector<64x64xbf16>
    %cst_63 = arith.constant dense<0.000000e+00> : vector<64x64xf32>
    %130 = tpu.matmul %129, %116, %cst_63 {dimension_numbers = #tpu.dot_dimension_numbers<[1], [0], [0], [1], [0, 0, 1, 1], [], []>} : vector<64x64xbf16>, vector<64x64xbf16>, vector<64x64xf32> -> vector<64x64xf32>
    %131 = tpu.reciprocal %128 {approx = true} : vector<64x1xf32> -> vector<64x1xf32>
    %132 = vector.broadcast %131 : vector<64x1xf32> to vector<64x64xf32>
    %133 = arith.mulf %130, %132 : vector<64x64xf32>
    %134 = vector.extract_strided_slice %50 {offsets = [0, 256], sizes = [64, 64], strides = [1, 1]} : vector<64x1152xbf16> to vector<64x64xbf16>
    %135 = vector.extract_strided_slice %50 {offsets = [0, 640], sizes = [64, 64], strides = [1, 1]} : vector<64x1152xbf16> to vector<64x64xbf16>
    %136 = vector.extract_strided_slice %50 {offsets = [0, 1024], sizes = [64, 64], strides = [1, 1]} : vector<64x1152xbf16> to vector<64x64xbf16>
    %cst_64 = arith.constant dense<0.000000e+00> : vector<64x64xf32>
    %137 = tpu.matmul %134, %135, %cst_64 {dimension_numbers = #tpu.dot_dimension_numbers<[1], [1], [0], [0], [0, 0, 1, 0], [], []>} : vector<64x64xbf16>, vector<64x64xbf16>, vector<64x64xf32> -> vector<64x64xf32>
    %cst_65 = arith.constant 0.0510310382 : f32
    %138 = vector.broadcast %cst_65 : f32 to vector<64x64xf32>
    %139 = arith.mulf %137, %138 : vector<64x64xf32>
    %cst_66 = arith.constant -1.000000e+30 : f32
    %140 = vector.broadcast %cst_66 : f32 to vector<64x64xf32>
    %141 = arith.select %53, %139, %140 : vector<64x64xi1>, vector<64x64xf32>
    %cst_67 = arith.constant dense<0xFF800000> : vector<64xf32>
    %142 = vector.multi_reduction <maximumf>, %141, %cst_67 [1] : vector<64x64xf32> to vector<64xf32>
    %143 = vector.shape_cast %142 : vector<64xf32> to vector<64x1xf32>
    %144 = vector.broadcast %143 : vector<64x1xf32> to vector<64x64xf32>
    %145 = arith.subf %141, %144 : vector<64x64xf32>
    %146 = math.exp %145 : vector<64x64xf32>
    %cst_68 = arith.constant dense<0.000000e+00> : vector<64xf32>
    %147 = vector.multi_reduction <add>, %146, %cst_68 [1] : vector<64x64xf32> to vector<64xf32>
    %148 = vector.shape_cast %147 : vector<64xf32> to vector<64x1xf32>
    %149 = arith.truncf %146 : vector<64x64xf32> to vector<64x64xbf16>
    %cst_69 = arith.constant dense<0.000000e+00> : vector<64x64xf32>
    %150 = tpu.matmul %149, %136, %cst_69 {dimension_numbers = #tpu.dot_dimension_numbers<[1], [0], [0], [1], [0, 0, 1, 1], [], []>} : vector<64x64xbf16>, vector<64x64xbf16>, vector<64x64xf32> -> vector<64x64xf32>
    %151 = tpu.reciprocal %148 {approx = true} : vector<64x1xf32> -> vector<64x1xf32>
    %152 = vector.broadcast %151 : vector<64x1xf32> to vector<64x64xf32>
    %153 = arith.mulf %150, %152 : vector<64x64xf32>
    %154 = vector.extract_strided_slice %50 {offsets = [0, 320], sizes = [64, 64], strides = [1, 1]} : vector<64x1152xbf16> to vector<64x64xbf16>
    %155 = vector.extract_strided_slice %50 {offsets = [0, 704], sizes = [64, 64], strides = [1, 1]} : vector<64x1152xbf16> to vector<64x64xbf16>
    %156 = vector.extract_strided_slice %50 {offsets = [0, 1088], sizes = [64, 64], strides = [1, 1]} : vector<64x1152xbf16> to vector<64x64xbf16>
    %cst_70 = arith.constant dense<0.000000e+00> : vector<64x64xf32>
    %157 = tpu.matmul %154, %155, %cst_70 {dimension_numbers = #tpu.dot_dimension_numbers<[1], [1], [0], [0], [0, 0, 1, 0], [], []>} : vector<64x64xbf16>, vector<64x64xbf16>, vector<64x64xf32> -> vector<64x64xf32>
    %cst_71 = arith.constant 0.0510310382 : f32
    %158 = vector.broadcast %cst_71 : f32 to vector<64x64xf32>
    %159 = arith.mulf %157, %158 : vector<64x64xf32>
    %cst_72 = arith.constant -1.000000e+30 : f32
    %160 = vector.broadcast %cst_72 : f32 to vector<64x64xf32>
    %161 = arith.select %53, %159, %160 : vector<64x64xi1>, vector<64x64xf32>
    %cst_73 = arith.constant dense<0xFF800000> : vector<64xf32>
    %162 = vector.multi_reduction <maximumf>, %161, %cst_73 [1] : vector<64x64xf32> to vector<64xf32>
    %163 = vector.shape_cast %162 : vector<64xf32> to vector<64x1xf32>
    %164 = vector.broadcast %163 : vector<64x1xf32> to vector<64x64xf32>
    %165 = arith.subf %161, %164 : vector<64x64xf32>
    %166 = math.exp %165 : vector<64x64xf32>
    %cst_74 = arith.constant dense<0.000000e+00> : vector<64xf32>
    %167 = vector.multi_reduction <add>, %166, %cst_74 [1] : vector<64x64xf32> to vector<64xf32>
    %168 = vector.shape_cast %167 : vector<64xf32> to vector<64x1xf32>
    %169 = arith.truncf %166 : vector<64x64xf32> to vector<64x64xbf16>
    %cst_75 = arith.constant dense<0.000000e+00> : vector<64x64xf32>
    %170 = tpu.matmul %169, %156, %cst_75 {dimension_numbers = #tpu.dot_dimension_numbers<[1], [0], [0], [1], [0, 0, 1, 1], [], []>} : vector<64x64xbf16>, vector<64x64xbf16>, vector<64x64xf32> -> vector<64x64xf32>
    %171 = tpu.reciprocal %168 {approx = true} : vector<64x1xf32> -> vector<64x1xf32>
    %172 = vector.broadcast %171 : vector<64x1xf32> to vector<64x64xf32>
    %173 = arith.mulf %170, %172 : vector<64x64xf32>
    %174 = tpu.concatenate %73, %93, %113, %133, %153, %173 in 1 : vector<64x64xf32>, vector<64x64xf32>, vector<64x64xf32>, vector<64x64xf32>, vector<64x64xf32>, vector<64x64xf32> -> vector<64x384xf32>
    %175 = arith.truncf %174 : vector<64x384xf32> to vector<64x384xbf16>
    %cst_76 = arith.constant dense<0.000000e+00> : vector<64x384xf32>
    %176 = tpu.matmul %175, %11, %cst_76 {dimension_numbers = #tpu.dot_dimension_numbers<[1], [0], [0], [1], [0, 0, 1, 1], [], []>} : vector<64x384xbf16>, vector<384x384xbf16>, vector<64x384xf32> -> vector<64x384xf32>
    %177 = vector.broadcast %13 : vector<1x384xf32> to vector<64x384xf32>
    %178 = arith.addf %176, %177 : vector<64x384xf32>
    %179 = arith.addf %3, %178 : vector<64x384xf32>
    %cst_77 = arith.constant dense<0.000000e+00> : vector<64xf32>
    %180 = vector.multi_reduction <add>, %179, %cst_77 [1] : vector<64x384xf32> to vector<64xf32>
    %181 = vector.shape_cast %180 : vector<64xf32> to vector<64x1xf32>
    %cst_78 = arith.constant 3.840000e+02 : f32
    %182 = vector.broadcast %cst_78 : f32 to vector<64x1xf32>
    %183 = arith.divf %181, %182 : vector<64x1xf32>
    %184 = vector.broadcast %183 : vector<64x1xf32> to vector<64x384xf32>
    %185 = arith.subf %179, %184 : vector<64x384xf32>
    %186 = arith.mulf %185, %185 : vector<64x384xf32>
    %cst_79 = arith.constant dense<0.000000e+00> : vector<64xf32>
    %187 = vector.multi_reduction <add>, %186, %cst_79 [1] : vector<64x384xf32> to vector<64xf32>
    %188 = vector.shape_cast %187 : vector<64xf32> to vector<64x1xf32>
    %cst_80 = arith.constant 3.840000e+02 : f32
    %189 = vector.broadcast %cst_80 : f32 to vector<64x1xf32>
    %190 = arith.divf %188, %189 : vector<64x1xf32>
    %191 = vector.broadcast %183 : vector<64x1xf32> to vector<64x384xf32>
    %192 = arith.subf %179, %191 : vector<64x384xf32>
    %cst_81 = arith.constant 9.99999974E-6 : f32
    %193 = vector.broadcast %cst_81 : f32 to vector<64x1xf32>
    %194 = arith.addf %190, %193 : vector<64x1xf32>
    %195 = math.rsqrt %194 : vector<64x1xf32>
    %196 = vector.broadcast %195 : vector<64x1xf32> to vector<64x384xf32>
    %197 = arith.mulf %192, %196 : vector<64x384xf32>
    %198 = vector.broadcast %15 : vector<1x384xf32> to vector<64x384xf32>
    %199 = arith.mulf %197, %198 : vector<64x384xf32>
    %200 = vector.broadcast %17 : vector<1x384xf32> to vector<64x384xf32>
    %201 = arith.addf %199, %200 : vector<64x384xf32>
    %202 = arith.truncf %201 : vector<64x384xf32> to vector<64x384xbf16>
    %cst_82 = arith.constant dense<0.000000e+00> : vector<64x1536xf32>
    %203 = tpu.matmul %202, %19, %cst_82 {dimension_numbers = #tpu.dot_dimension_numbers<[1], [0], [0], [1], [0, 0, 1, 1], [], []>} : vector<64x384xbf16>, vector<384x1536xbf16>, vector<64x1536xf32> -> vector<64x1536xf32>
    %204 = vector.broadcast %21 : vector<1x1536xf32> to vector<64x1536xf32>
    %205 = arith.addf %203, %204 : vector<64x1536xf32>
    %cst_83 = arith.constant 0.000000e+00 : f32
    %206 = vector.broadcast %cst_83 : f32 to vector<64x1536xf32>
    %207 = arith.maximumf %205, %206 : vector<64x1536xf32>
    %208 = arith.truncf %207 : vector<64x1536xf32> to vector<64x1536xbf16>
    %cst_84 = arith.constant dense<0.000000e+00> : vector<64x384xf32>
    %209 = tpu.matmul %208, %23, %cst_84 {dimension_numbers = #tpu.dot_dimension_numbers<[1], [0], [0], [1], [0, 0, 1, 1], [], []>} : vector<64x1536xbf16>, vector<1536x384xbf16>, vector<64x384xf32> -> vector<64x384xf32>
    %210 = vector.broadcast %25 : vector<1x384xf32> to vector<64x384xf32>
    %211 = arith.addf %209, %210 : vector<64x384xf32>
    %212 = arith.addf %179, %211 : vector<64x384xf32>
    %c0_85 = arith.constant 0 : index
    %c0_86 = arith.constant 0 : index
    %213 = vector.load %arg17[%c0_85, %c0_86] : memref<64x384xf32, #tpu.memory_space<vmem>>, vector<64x384xf32>
    tpu.vector_store %arg17[%c0_85, %c0_86], %212 {strides = array<i32>} : memref<64x384xf32, #tpu.memory_space<vmem>>, vector<64x384xf32>,
    %c5_i32 = arith.constant 5 : i32
    %214 = arith.cmpi eq, %arg1, %c5_i32 : i32
    %215 = arith.extui %214 : i1 to i32
    %c0_i32_87 = arith.constant 0 : i32
    %216 = arith.cmpi ne, %215, %c0_i32_87 : i32
    scf.if %216 {
      %217 = arith.truncf %212 : vector<64x384xf32> to vector<64x384xbf16>
      %c0_88 = arith.constant 0 : index
      %c0_89 = arith.constant 0 : index
      %218 = vector.load %arg14[%c0_88, %c0_89] : memref<384x128xbf16, #tpu.memory_space<vmem>>, vector<384x128xbf16>
      %cst_90 = arith.constant dense<0.000000e+00> : vector<64x128xf32>
      %219 = tpu.matmul %217, %218, %cst_90 {dimension_numbers = #tpu.dot_dimension_numbers<[1], [0], [0], [1], [0, 0, 1, 1], [], []>} : vector<64x384xbf16>, vector<384x128xbf16>, vector<64x128xf32> -> vector<64x128xf32>
      %c0_91 = arith.constant 0 : index
      %c0_92 = arith.constant 0 : index
      %220 = vector.load %arg15[%c0_91, %c0_92] : memref<1x128xf32, #tpu.memory_space<vmem>>, vector<1x128xf32>
      %221 = vector.broadcast %220 : vector<1x128xf32> to vector<64x128xf32>
      %222 = arith.addf %219, %221 : vector<64x128xf32>
      %c0_93 = arith.constant 0 : index
      %c0_94 = arith.constant 0 : index
      %223 = vector.load %arg16[%c0_93, %c0_94] : memref<64x128xf32, #tpu.memory_space<vmem>>, vector<64x128xf32>
      tpu.vector_store %arg16[%c0_93, %c0_94], %222 {strides = array<i32>} : memref<64x128xf32, #tpu.memory_space<vmem>>, vector<64x128xf32>,
    } else {
    }
    return
  }
  func.func @transform_0(%arg0: i32, %arg1: i32) -> (i32, i32) {
    %c0_i32 = arith.constant 0 : i32
    %c0_i32_0 = arith.constant 0 : i32
    return %arg0, %c0_i32 : i32, i32
  }
  func.func @transform_1(%arg0: i32, %arg1: i32) -> (i32, i32, i32) {
    %c0_i32 = arith.constant 0 : i32
    %c0_i32_0 = arith.constant 0 : i32
    %c0_i32_1 = arith.constant 0 : i32
    return %arg1, %c0_i32, %c0_i32_0 : i32, i32, i32
  }
  func.func @transform_2(%arg0: i32, %arg1: i32) -> (i32, i32, i32) {
    %c0_i32 = arith.constant 0 : i32
    %c0_i32_0 = arith.constant 0 : i32
    %c0_i32_1 = arith.constant 0 : i32
    return %arg1, %c0_i32, %c0_i32_0 : i32, i32, i32
  }
  func.func @transform_3(%arg0: i32, %arg1: i32) -> (i32, i32, i32) {
    %c0_i32 = arith.constant 0 : i32
    %c0_i32_0 = arith.constant 0 : i32
    %c0_i32_1 = arith.constant 0 : i32
    return %arg1, %c0_i32, %c0_i32_0 : i32, i32, i32
  }
  func.func @transform_4(%arg0: i32, %arg1: i32) -> (i32, i32, i32) {
    %c0_i32 = arith.constant 0 : i32
    %c0_i32_0 = arith.constant 0 : i32
    %c0_i32_1 = arith.constant 0 : i32
    return %arg1, %c0_i32, %c0_i32_0 : i32, i32, i32
  }
  func.func @transform_5(%arg0: i32, %arg1: i32) -> (i32, i32, i32) {
    %c0_i32 = arith.constant 0 : i32
    %c0_i32_0 = arith.constant 0 : i32
    %c0_i32_1 = arith.constant 0 : i32
    return %arg1, %c0_i32, %c0_i32_0 : i32, i32, i32
  }
  func.func @transform_6(%arg0: i32, %arg1: i32) -> (i32, i32, i32) {
    %c0_i32 = arith.constant 0 : i32
    %c0_i32_0 = arith.constant 0 : i32
    %c0_i32_1 = arith.constant 0 : i32
    return %arg1, %c0_i32, %c0_i32_0 : i32, i32, i32
  }
  func.func @transform_7(%arg0: i32, %arg1: i32) -> (i32, i32, i32) {
    %c0_i32 = arith.constant 0 : i32
    %c0_i32_0 = arith.constant 0 : i32
    %c0_i32_1 = arith.constant 0 : i32
    return %arg1, %c0_i32, %c0_i32_0 : i32, i32, i32
  }
  func.func @transform_8(%arg0: i32, %arg1: i32) -> (i32, i32, i32) {
    %c0_i32 = arith.constant 0 : i32
    %c0_i32_0 = arith.constant 0 : i32
    %c0_i32_1 = arith.constant 0 : i32
    return %arg1, %c0_i32, %c0_i32_0 : i32, i32, i32
  }
  func.func @transform_9(%arg0: i32, %arg1: i32) -> (i32, i32, i32) {
    %c0_i32 = arith.constant 0 : i32
    %c0_i32_0 = arith.constant 0 : i32
    %c0_i32_1 = arith.constant 0 : i32
    return %arg1, %c0_i32, %c0_i32_0 : i32, i32, i32
  }
  func.func @transform_10(%arg0: i32, %arg1: i32) -> (i32, i32, i32) {
    %c0_i32 = arith.constant 0 : i32
    %c0_i32_0 = arith.constant 0 : i32
    %c0_i32_1 = arith.constant 0 : i32
    return %arg1, %c0_i32, %c0_i32_0 : i32, i32, i32
  }
  func.func @transform_11(%arg0: i32, %arg1: i32) -> (i32, i32, i32) {
    %c0_i32 = arith.constant 0 : i32
    %c0_i32_0 = arith.constant 0 : i32
    %c0_i32_1 = arith.constant 0 : i32
    return %arg1, %c0_i32, %c0_i32_0 : i32, i32, i32
  }
  func.func @transform_12(%arg0: i32, %arg1: i32) -> (i32, i32) {
    %c0_i32 = arith.constant 0 : i32
    %c0_i32_0 = arith.constant 0 : i32
    %c0_i32_1 = arith.constant 0 : i32
    return %c0_i32, %c0_i32_0 : i32, i32
  }
  func.func @transform_13(%arg0: i32, %arg1: i32) -> (i32, i32) {
    %c0_i32 = arith.constant 0 : i32
    %c0_i32_0 = arith.constant 0 : i32
    %c0_i32_1 = arith.constant 0 : i32
    return %c0_i32, %c0_i32_0 : i32, i32
  }
  func.func @transform_14(%arg0: i32, %arg1: i32) -> (i32, i32) {
    %c0_i32 = arith.constant 0 : i32
    %c0_i32_0 = arith.constant 0 : i32
    return %arg0, %c0_i32 : i32, i32
  }
}

</mosaic_0001>

<bundles_post_ra>
// kernel: bigram_forward.1
= control target key start
LH: loop header
LB: loop body
LE: loop exit
PB: predicated region body
PF: predicated region fallthrough
CT: control target
= control target key end

     0   :  { %s21287_s0 = inlined_call_operand.vmem [shape: bf16[128,384], index: 0, kind: input, shape index: {}]   ;;  %s21288_s1 = inlined_call_operand.hbm [shape: f32[6,1,384], index: 1, kind: input, shape index: {}]   ;;  %s21289_s2 = inlined_call_operand.hbm [shape: f32[6,1,384], index: 2, kind: input, shape index: {}]   ;;  %s21290_s3 = inlined_call_operand.hbm [shape: bf16[6,384,1152], index: 3, kind: input, shape index: {}]   ;;  %s21291_s4 = inlined_call_operand.hbm [shape: bf16[6,384,384], index: 4, kind: input, shape index: {}]   ;;  %s21292_s5 = inlined_call_operand.hbm [shape: f32[6,1,384], index: 5, kind: input, shape index: {}]   ;;  %s21293_s6 = inlined_call_operand.hbm [shape: f32[6,1,384], index: 6, kind: input, shape index: {}]   ;;  %s21294_s7 = inlined_call_operand.hbm [shape: f32[6,1,384], index: 7, kind: input, shape index: {}]   ;;  %s21295_s8 = inlined_call_operand.hbm [shape: bf16[6,384,1536], index: 8, kind: input, shape index: {}]   ;;  %s21296_s9 = inlined_call_operand.hbm [shape: f32[6,1,1536], index: 9, kind: input, shape index: {}]   ;;  %s21297_s10 = inlined_call_operand.hbm [shape: bf16[6,1536,384], index: 10, kind: input, shape index: {}]   ;;  %s21298_s11 = inlined_call_operand.hbm [shape: f32[6,1,384], index: 11, kind: input, shape index: {}]   ;;  %s21299_s12 = inlined_call_operand.hbm [shape: bf16[384,128], index: 12, kind: input, shape index: {}]   ;;  %s21300_s13 = inlined_call_operand.hbm [shape: f32[1,128], index: 13, kind: input, shape index: {}]   ;;  %s21301_s14 = inlined_call_operand.hbm [shape: f32[128,128], index: 14, kind: output, shape index: {}]  }
   0x1   :  { %21365 = sst [smem:[#allocation92_spill]] %s21287_s0 }
   0x2   :  { %21366 = sst [smem:[#allocation93_spill]] %s21288_s1 }
   0x3   :  { %21367 = sst [smem:[#allocation94_spill]] %s21289_s2 }
   0x4   :  { %21368 = sst [smem:[#allocation95_spill]] %s21291_s4 }
   0x5   :  { %21369 = sst [smem:[#allocation96_spill]] %s21293_s6 }
   0x6   :  { %21370 = sst [smem:[#allocation97_spill]] %s21296_s9 }
   0x7   :  { %21371 = sst [smem:[#allocation98_spill]] %s21298_s11 }
   0x8   :  { %21372 = sst [smem:[#allocation99_spill]] %s21301_s14 }
   0x9   :  { %19 = vsyncpa [#allocation4], 0 }
   0xa   :  { %21 = vsyncpa [#allocation4 + $0x1], 0 }
   0xb   :  { %22 = vsyncpa [#allocation7], 0 }
   0xc   :  { %24 = vsyncpa [#allocation7 + $0x1], 0 }
   0xd   :  { %25 = vsyncpa [#allocation10], 0 }
   0xe   :  { %27 = vsyncpa [#allocation10 + $0x1], 0 }
   0xf   :  { %28 = vsyncpa [#allocation13], 0 }
  0x10   :  { %30 = vsyncpa [#allocation13 + $0x1], 0 }
  0x11   :  { %31 = vsyncpa [#allocation16], 0 }
  0x12   :  { %33 = vsyncpa [#allocation16 + $0x1], 0 }
  0x13   :  { %34 = vsyncpa [#allocation19], 0 }
  0x14   :  { %36 = vsyncpa [#allocation19 + $0x1], 0 }
  0x15   :  { %37 = vsyncpa [#allocation22], 0 }
  0x16   :  { %38 = vsyncpa [#allocation5], 0 }
  0x17   :  { %40 = vsyncpa [#allocation5 + $0x1], 0  ;;  %s17223_s29 = smov 0   ;;  %s17225_s30 = smov 0  }
  0x18   :  { %s17227_s15 = smov 0   ;;  %s17229_s16 = smov 0  }
  0x19   :  { %s17231_s17 = smov 0   ;;  %s17233_s18 = smov 0  }
  0x1a   :  { %s17235_s19 = smov 0   ;;  %s17237_s20 = smov 0  }
  0x1b   :  { %s17239_s21 = smov 0   ;;  %s17241_s22 = smov 0  }
  0x1c   :  { %s17243_s23 = smov 0  }
  0x1d LB: > { %21373 = sst [smem:[#allocation33_spill]] %s17080_s29  ;;  %s17277_s24 = sadd.s32 4294967295, %s17120_s23   ;;  %s17120_s23 = sphi %s17243_s23, %s46_s23   ;;  %s17116_s22 = sphi %s17241_s22, %s21574_s22   ;;  %s17112_s21 = sphi %s17239_s21, %s21576_s21   ;;  %s17108_s20 = sphi %s17237_s20, %s21572_s20   ;;  %s17104_s19 = sphi %s17235_s19, %s21575_s19   ;;  %s17100_s18 = sphi %s17233_s18, %s21571_s18   ;;  %s17096_s17 = sphi %s17231_s17, %s21570_s17   ;;  %s17092_s16 = sphi %s17229_s16, %s21569_s16   ;;  %s17088_s15 = sphi %s17227_s15, %s21568_s15   ;;  %s17084_s30 = sphi %s17225_s30, %s21567_s30   ;;  %s17080_s29 = sphi %s17223_s29, %s21566_s29  }
  0x1e   : > { %21374 = sst [smem:[#allocation34_spill]] %s17084_s30  ;;  %s12670_s25 = sadd.s32 4294967294, %s17120_s23  }
  0x1f   : > { %21375 = sst [smem:[#allocation35_spill]] %s17088_s15  ;;  %s55_s26 = sadd.s32 1, %s17112_s21 }
  0x20   : > { %21376 = sst [smem:[#allocation36_spill]] %s17096_s17  ;;  %s58_s27 = sadd.s32 1, %s17116_s22 }
  0x21   : > { %21377 = sst [smem:[#allocation37_spill]] %s17100_s18  ;;  %p56_p0 = scmp.ge.s32.totalorder %s55_s26, 6 }
  0x22   : > { %21378 = sst [smem:[#allocation38_spill]] %s17104_s19  ;;  %s91_s28 = sadd.s32 1, %s17100_s18 }
  0x23   : > { %21379 = sst [smem:[#allocation39_spill]] %s17108_s20  ;;  %p98_p1 = scmp.ne.s32.totalorder %s17100_s18, %s17096_s17 }
  0x24   : > { %21380 = sst [smem:[#allocation40_spill]] %s17116_s22  ;;  %p99_p2 = scmp.eq.s32.totalorder %s17120_s23, 0 }
  0x25   : > { %21381 = sst [smem:[#allocation41_spill]] %s17277_s24  ;;  %s21578_s26 = smov (%p56_p0, %s55_s26), 0 }
  0x26   : > { %21382 = sst [smem:[#allocation42_spill]] %s21578_s26  ;;  %s21580_s27 = smov (!%p56_p0, %s58_s27), %s17116_s22 }
  0x27   : > { %s88_s14 = ssub.s32 %s17112_s21, %s21578_s26  ;;  %p17291_p3 = por %p99_p2, %p98_p1 }
  0x28   : > { %p60_p4 = scmp.ge.s32.totalorder %s21580_s27, 2  ;;  %p89_p5 = scmp.eq.s32.totalorder %s88_s14, 0 }
  0x29   : > { %p104_p6 = scmp.ne.s32.totalorder %s17096_s17, %s17092_s16  ;;  %p21315_p7 = scmp.eq.s32.totalorder %s17277_s24, 0 }
  0x2a   : > { %s21582_s27 = smov (%p60_p4, %s21580_s27), 0  ;;  %s419_s11 = sadd.s32 1, %s17088_s15 }
  0x2b   : > { %21384 = sst [smem:[#allocation43_spill]] %s21582_s27  ;;  %p17304_p8 = por %p21315_p7, %p104_p6 }
  0x2c   : > { %s17300_s0 = scalar_select %p89_p5, %s17100_s18, %s91_s28  }
  0x2d   : > { %s21386_s26 = scalar_select %p17304_p8, 1, 0 }
  0x2e   : > { %21385 = sst [smem:[#allocation44_spill]] %s17300_s0  ;;  %s416_s20 = ssub.s32 %s17116_s22, %s21582_s27 }
  0x2f   : > { %21387 = sst [smem:[#allocation45_spill]] %s21386_s26  ;;  %p417_p9 = scmp.eq.s32.totalorder %s416_s20, 0 }
  0x30   : > { %p429_p10 = scmp.ne.s32.totalorder %s17088_s15, %s17084_s30  ;;  %p430_p11 = scmp.eq.s32.totalorder %s17277_s24, 11 }
  0x31   : > { %s17315_s14 = scalar_select %p417_p9, %s17088_s15, %s419_s11  }
  0x32   : > { %p17317_p12 = por %p430_p11, %p429_p10  ;;  %p435_p13 = scmp.ne.s32.totalorder %s17084_s30, %s17080_s29 }
  0x33   : > { %21388 = sst [smem:[#allocation46_spill]] %s17315_s14  ;;  %p436_p0 = scmp.eq.s32.totalorder %s12670_s25, 11 }
  0x34   : > { %s21389_s16 = scalar_select %p17317_p12, 1, 0 }
  0x35   : > { %p12671_p1 = scmp.ge.s32.totalorder %s17120_s23, 1  ;;  %p443_p2 = scmp.lt.s32.totalorder %s17120_s23, 13 }
  0x36   : > { %21390 = sst [smem:[#allocation47_spill]] %s21389_s16  ;;  %p17325_p4 = por %p436_p0, %p435_p13 }
  0x37   : > { %p17329_p5 = pnand %p12671_p1, %p443_p2  ;;  %s17122_s11 = smov [#allocation21]  }
  0x38   : > { %s21391_s20 = scalar_select %p17325_p4, 1, 0 }
  0x39   : > { %s21393_s28 = scalar_select %p17329_p5, 1, 0 }
  0x3a   : > { %21392 = sst [smem:[#allocation48_spill]] %s21391_s20  ;;  %s455_s27 = sshll.u32 %s17122_s11, 4  ;;  %s17333_s27 = int_to_ptr.vmem [resolvable:$true] %s455_s27 }
  0x3b   : > { %21394 = sst [smem:[#allocation49_spill]] %s21393_s28  ;;  %p14861_p6 = pneg %p17329_p5 }
  0x3c   : > { %p14908_p9 = scmp.lt.s32.totalorder %s17120_s23, 12  ;;  %s17345_s22 = sand.u32 1, %s17100_s18  }
  0x3d   : > { %p17340_p10 = pnand %p14861_p6, %p21315_p7  ;;  %s17354_s11 = smul.u32 3, %s17345_s22 }
  0x3e   : > { %p17349_p11 = pnand %p14908_p9, %p17291_p3  ;;  %s17357_s14 = smul.u32 48, %s17112_s21 }
  0x3f   : > { %s21395_s25 = scalar_select %p17340_p10, 1, 0 }
  0x40   : > { %s21396_s0 = scalar_select %p17349_p11, 1, 0 }
  0x41   : > { %s16588_s29 = scalar_lea.hbm %s21299_s12, 3072  ;;  %p21325_p0 = pneg %p17340_p10 }
  0x42   : > { %p16589_p13 = scmp.ne.s32.totalorder %s21299_s12, %s16588_s29  ;;  %p16595_p2 = scmp.lt.u32.totalorder %s16588_s29, %s21299_s12 }
  0x44   : > { %p16591_p3 = pnand %p21325_p0, %p16589_p13 }
  0x46   : > { %p16592_p1 = pneg %p16591_p3 }
  0x48   : > { %p16597_p6 = pnand %p16595_p2, %p16592_p1 }
  0x4a   : > { %16600 = shalt.err (!%p16597_p6)
}
  0x4b   : > { %s16601_s15 = scalar_lea.vmem %s17333_s27, 3072  ;;  %p16609_p12 = scmp.lt.s32.totalorder %s17333_s27, %s17333_s27 }
  0x4c   : > { %p16602_p9 = scmp.ne.s32.totalorder %s17333_s27, %s16601_s15  ;;  %p16610_p13 = scmp.lt.s32.totalorder %s16601_s15, %s16601_s15 }
  0x4e   : > { %p16604_p7 = pnand %p16602_p9, %p21325_p0  ;;  %p16611_p3 = por %p16610_p13, %p16609_p12 }
  0x50   : > { %p16605_p4 = pneg %p16604_p7 }
  0x52   : > { %p16612_p8 = pnand %p16611_p3, %p16605_p4 }
  0x54   : > { %16615 = shalt.err (!%p16612_p8)
}
  0x55   : > { %s17123_s30 = smov 64   ;;  %s17124_s29 = smov 4  }
  0x56   : > { %14864 = dma.hbm_to_vmem [thread:$0]  (!%p17340_p10), %s21299_s12, 3072, %s17333_s27, [#allocation22], %s17123_s30, %s17123_s30, %s17124_s29  }
  0x57   : > { %s17387_s20 = sand.u32 1, %s17120_s23   ;;  %s21397_s2 = sld [smem:[#allocation94_spill]] }
  0x58   : > { %s513_s26 = scalar_lea.vmem [#allocation6], %s17354_s11  ;;  %s21329_s28 = scalar_lea.sflag [#allocation7], %s17387_s20 }
  0x59   : > { %s521_s17 = sshll.u32 %s513_s26, 4  ;;  %p17403_p8 = pneg %p17349_p11  ;;  %s17396_s17 = int_to_ptr.vmem [resolvable:$true] %s521_s17 }
  0x5b   : > { %s21398_s27 = scalar_select %p17403_p8, 1, 0 }
  0x5d   : > { %s17393_s24 = scalar_lea.hbm %s21397_s2, %s17357_s14  ;;  %s16621_s18 = scalar_lea.hbm %s21397_s2, 288 }
  0x5e   : > { %s16616_s9 = scalar_lea.hbm %s17393_s24, 48  ;;  %p16622_p1 = scmp.lt.u32.totalorder %s17393_s24, %s21397_s2 }
  0x5f   : > { %p16617_p7 = scmp.ne.s32.totalorder %s17393_s24, %s16616_s9  ;;  %p16623_p2 = scmp.lt.u32.totalorder %s16621_s18, %s16616_s9 }
  0x60   : > { %p16625_p9 = scmp.lt.u32.totalorder %s16616_s9, %s17393_s24 }
  0x61   : > { %p16619_p12 = pnand %p17403_p8, %p16617_p7  ;;  %p16624_p6 = por %p16623_p2, %p16622_p1 }
  0x63   : > { %p16620_p4 = pneg %p16619_p12  ;;  %p16626_p13 = por %p16625_p9, %p16624_p6 }
  0x65   : > { %p16627_p3 = pnand %p16626_p13, %p16620_p4 }
  0x67   : > { %16630 = shalt.err (!%p16627_p3)
}
  0x68   : > { %s16631_s19 = scalar_lea.vmem %s17396_s17, 48  ;;  %s17125_s15 = smov [#allocation6]  }
  0x69   : > { %p16632_p7 = scmp.ne.s32.totalorder %s17396_s17, %s16631_s19  ;;  %s16636_s30 = sshll.u32 %s17125_s15, 4  ;;  %s16637_s30 = int_to_ptr.vmem [resolvable:$false] %s16636_s30 }
  0x6a   : > { %s16638_s29 = scalar_lea.vmem %s16637_s30, 96  ;;  %p16639_p5 = scmp.lt.s32.totalorder %s17396_s17, %s16637_s30 }
  0x6b   : > { %p16634_p12 = pnand %p16632_p7, %p17403_p8  ;;  %p16640_p10 = scmp.lt.s32.totalorder %s16638_s29, %s16631_s19 }
  0x6d   : > { %p16635_p0 = pneg %p16634_p12  ;;  %p16641_p1 = por %p16640_p10, %p16639_p5 }
  0x6f   : > { %p16642_p2 = pnand %p16641_p1, %p16635_p0 }
  0x71   : > { %16645 = shalt.err (!%p16642_p2)
}
  0x72   : > { %14874 = dma.hbm_to_vmem [thread:$0]  (!%p17349_p11), %s17393_s24, 48, %s17396_s17, %s21329_s28  }
  0x73   : > { %s14807_s9 = smul.u32 576, %s17345_s22  ;;  %s21399_s4 = sld [smem:[#allocation95_spill]] }
  0x74   : > { %s14808_s18 = smul.u32 9216, %s17112_s21  ;;  %s21330_s29 = scalar_lea.sflag [#allocation10], %s17387_s20 }
  0x75   : > { %s553_s15 = scalar_lea.vmem [#allocation9], %s14807_s9 }
  0x76   : > { %s560_s30 = sshll.u32 %s553_s15, 4  ;;  %s17435_s30 = int_to_ptr.vmem [resolvable:$true] %s560_s30 }
  0x79   : > { %s17433_s19 = scalar_lea.hbm %s21399_s4, %s14808_s18  ;;  %s16651_s16 = scalar_lea.hbm %s21399_s4, 55296 }
  0x7a   : > { %s16646_s2 = scalar_lea.hbm %s17433_s19, 9216  ;;  %p16652_p4 = scmp.lt.u32.totalorder %s17433_s19, %s21399_s4 }
  0x7b   : > { %p16647_p5 = scmp.ne.s32.totalorder %s17433_s19, %s16646_s2  ;;  %p16653_p6 = scmp.lt.u32.totalorder %s16651_s16, %s16646_s2 }
  0x7c   : > { %p16655_p13 = scmp.lt.u32.totalorder %s16646_s2, %s17433_s19 }
  0x7d   : > { %p16649_p10 = pnand %p16647_p5, %p17403_p8  ;;  %p16654_p9 = por %p16653_p6, %p16652_p4 }
  0x7f   : > { %p16650_p0 = pneg %p16649_p10  ;;  %p16656_p3 = por %p16655_p13, %p16654_p9 }
  0x81   : > { %p16657_p7 = pnand %p16656_p3, %p16650_p0 }
  0x83   : > { %16660 = shalt.err (!%p16657_p7)
}
  0x84   : > { %s16661_s9 = scalar_lea.vmem %s17435_s30, 9216  ;;  %s17126_s15 = smov [#allocation9]  }
  0x85   : > { %p16662_p12 = scmp.ne.s32.totalorder %s17435_s30, %s16661_s9  ;;  %s16666_s17 = sshll.u32 %s17126_s15, 4  ;;  %s16667_s17 = int_to_ptr.vmem [resolvable:$false] %s16666_s17 }
  0x86   : > { %s16668_s24 = scalar_lea.vmem %s16667_s17, 18432  ;;  %p16669_p5 = scmp.lt.s32.totalorder %s17435_s30, %s16667_s17 }
  0x87   : > { %p16664_p1 = pnand %p16662_p12, %p17403_p8  ;;  %p16670_p10 = scmp.lt.s32.totalorder %s16668_s24, %s16661_s9 }
  0x89   : > { %p16665_p2 = pneg %p16664_p1  ;;  %p16671_p4 = por %p16670_p10, %p16669_p5 }
  0x8b   : > { %p16672_p6 = pnand %p16671_p4, %p16665_p2 }
  0x8d   : > { %16675 = shalt.err (!%p16672_p6)
}
  0x8e   : > { %s21331_s2 = smov 192   ;;  %s21335_s16 = smov 12  }
  0x8f   : > { %14880 = dma.hbm_to_vmem [thread:$0]  (!%p17349_p11), %s17433_s19, 9216, %s17435_s30, %s21330_s29, %s21331_s2, %s21331_s2, %s21335_s16  }
  0x90   : > { %s21400_s6 = sld [smem:[#allocation96_spill]]  ;;  %s593_s15 = scalar_lea.vmem [#allocation12], %s17354_s11 }
  0x91   : > { %s601_s17 = sshll.u32 %s593_s15, 4  ;;  %s21334_s24 = scalar_lea.sflag [#allocation13], %s17387_s20  ;;  %s602_s17 = int_to_ptr.vmem [resolvable:$true] %s601_s17 }
  0x96   : > { %s17468_s9 = scalar_lea.hbm %s21400_s6, %s17357_s14  ;;  %s16681_s30 = scalar_lea.hbm %s21400_s6, 288 }
  0x97   : > { %s16676_s28 = scalar_lea.hbm %s17468_s9, 48  ;;  %p16682_p3 = scmp.lt.u32.totalorder %s17468_s9, %s21400_s6 }
  0x98   : > { %p16677_p0 = scmp.ne.s32.totalorder %s17468_s9, %s16676_s28  ;;  %p16683_p7 = scmp.lt.u32.totalorder %s16681_s30, %s16676_s28 }
  0x99   : > { %p16685_p1 = scmp.lt.u32.totalorder %s16676_s28, %s17468_s9 }
  0x9a   : > { %p16679_p9 = pnand %p16677_p0, %p17403_p8  ;;  %p16684_p12 = por %p16683_p7, %p16682_p3 }
  0x9c   : > { %p16680_p13 = pneg %p16679_p9  ;;  %p16686_p2 = por %p16685_p1, %p16684_p12 }
  0x9e   : > { %p16687_p5 = pnand %p16686_p2, %p16680_p13 }
  0xa0   : > { %16690 = shalt.err (!%p16687_p5)
}
  0xa1   : > { %s16691_s15 = scalar_lea.vmem %s602_s17, 48  ;;  %s17129_s29 = smov [#allocation12]  }
  0xa2   : > { %p16692_p10 = scmp.ne.s32.totalorder %s602_s17, %s16691_s15  ;;  %s16696_s2 = sshll.u32 %s17129_s29, 4  ;;  %s16697_s2 = int_to_ptr.vmem [resolvable:$false] %s16696_s2 }
  0xa3   : > { %s16698_s4 = scalar_lea.vmem %s16697_s2, 96  ;;  %p16699_p0 = scmp.lt.s32.totalorder %s602_s17, %s16697_s2 }
  0xa4   : > { %p16694_p4 = pnand %p16692_p10, %p17403_p8  ;;  %p16700_p9 = scmp.lt.s32.totalorder %s16698_s4, %s16691_s15 }
  0xa6   : > { %p16695_p6 = pneg %p16694_p4  ;;  %p16701_p11 = por %p16700_p9, %p16699_p0 }
  0xa8   : > { %p16702_p3 = pnand %p16701_p11, %p16695_p6 }
  0xaa   : > { %16705 = shalt.err (!%p16702_p3)
}
  0xab   : > { %p21401_p7 = scmp.ne.s32.totalorder %s21396_s0, 0  ;;  %s14815_s28 = smul.u32 2304, %s17345_s22 }
  0xac   : > { %s14816_s29 = smul.u32 36864, %s17112_s21  ;;  %s21336_s15 = scalar_lea.sflag [#allocation16], %s17387_s20 }
  0xad   : > { %14886 = dma.hbm_to_vmem [thread:$0]  (!%p21401_p7), %s17468_s9, 48, %s602_s17, %s21334_s24  }
  0xae   : > { %s17498_s30 = scalar_lea.hbm %s21295_s8, %s14816_s29  ;;  %s631_s18 = scalar_lea.vmem [#allocation15], %s14815_s28 }
  0xaf   : > { %s638_s26 = sshll.u32 %s631_s18, 4  ;;  %s16706_s4 = scalar_lea.hbm %s17498_s30, 36864  ;;  %s17502_s26 = int_to_ptr.vmem [resolvable:$true] %s638_s26 }
  0xb0   : > { %p16707_p11 = scmp.ne.s32.totalorder %s17498_s30, %s16706_s4  ;;  %s16711_s2 = scalar_lea.hbm %s21295_s8, 221184 }
  0xb1   : > { %p16712_p1 = scmp.lt.u32.totalorder %s17498_s30, %s21295_s8  ;;  %p16713_p2 = scmp.lt.u32.totalorder %s16711_s2, %s16706_s4 }
  0xb2   : > { %p16709_p13 = pnand %p16707_p11, %p17403_p8  ;;  %p16715_p10 = scmp.lt.u32.totalorder %s16706_s4, %s17498_s30 }
  0xb3   : > { %p16714_p5 = por %p16713_p2, %p16712_p1 }
  0xb4   : > { %p16710_p12 = pneg %p16709_p13 }
  0xb5   : > { %p16716_p4 = por %p16715_p10, %p16714_p5 }
  0xb7   : > { %p16717_p6 = pnand %p16716_p4, %p16710_p12 }
  0xb9   : > { %16720 = shalt.err (!%p16717_p6)
}
  0xba   : > { %s16721_s18 = scalar_lea.vmem %s17502_s26, 36864  ;;  %s17130_s9 = smov [#allocation15]  }
  0xbb   : > { %p16722_p0 = scmp.ne.s32.totalorder %s17502_s26, %s16721_s18  ;;  %s16726_s17 = sshll.u32 %s17130_s9, 4  ;;  %s16727_s17 = int_to_ptr.vmem [resolvable:$false] %s16726_s17 }
  0xbc   : > { %s16728_s24 = scalar_lea.vmem %s16727_s17, 73728  ;;  %p16729_p11 = scmp.lt.s32.totalorder %s17502_s26, %s16727_s17 }
  0xbd   : > { %p16724_p9 = pnand %p16722_p0, %p17403_p8  ;;  %p16730_p13 = scmp.lt.s32.totalorder %s16728_s24, %s16721_s18 }
  0xbf   : > { %p16725_p3 = pneg %p16724_p9  ;;  %p16731_p1 = por %p16730_p13, %p16729_p11 }
  0xc1   : > { %p16732_p2 = pnand %p16731_p1, %p16725_p3 }
  0xc3   : > { %16735 = shalt.err (!%p16732_p2)
}
  0xc4   : > { %s17131_s4 = smov 768   ;;  %s17132_s2 = smov 48  }
  0xc5   : > { %14892 = dma.hbm_to_vmem [thread:$0]  (!%p21401_p7), %s17498_s30, 36864, %s17502_s26, %s21336_s15, %s17131_s4, %s17131_s4, %s17132_s2  }
  0xc6   : > { %s17533_s18 = scalar_lea.hbm %s21297_s10, %s14816_s29  ;;  %s671_s17 = scalar_lea.vmem [#allocation18], %s14815_s28 }
  0xc7   : > { %s678_s24 = sshll.u32 %s671_s17, 4  ;;  %s21341_s16 = scalar_lea.sflag [#allocation19], %s17387_s20  ;;  %s17537_s24 = int_to_ptr.vmem [resolvable:$true] %s678_s24 }
  0xc8   : > { %s16736_s6 = scalar_lea.hbm %s17533_s18, 36864  ;;  %s16741_s29 = scalar_lea.hbm %s21297_s10, 221184 }
  0xc9   : > { %p16737_p12 = scmp.ne.s32.totalorder %s17533_s18, %s16736_s6  ;;  %p16742_p4 = scmp.lt.u32.totalorder %s17533_s18, %s21297_s10 }
  0xca   : > { %p16743_p6 = scmp.lt.u32.totalorder %s16741_s29, %s16736_s6  ;;  %p16745_p9 = scmp.lt.u32.totalorder %s16736_s6, %s17533_s18 }
  0xcb   : > { %p16739_p5 = pnand %p16737_p12, %p17403_p8 }
  0xcc   : > { %p16744_p0 = por %p16743_p6, %p16742_p4 }
  0xcd   : > { %p16740_p10 = pneg %p16739_p5 }
  0xce   : > { %p16746_p3 = por %p16745_p9, %p16744_p0 }
  0xd0   : > { %p16747_p11 = pnand %p16746_p3, %p16740_p10 }
  0xd2   : > { %16750 = shalt.err (!%p16747_p11)
}
  0xd3   : > { %s16751_s28 = scalar_lea.vmem %s17537_s24, 36864  ;;  %s17133_s19 = smov [#allocation18]  }
  0xd4   : > { %p16752_p13 = scmp.ne.s32.totalorder %s17537_s24, %s16751_s28  ;;  %s16756_s9 = sshll.u32 %s17133_s19, 4  ;;  %s16757_s9 = int_to_ptr.vmem [resolvable:$false] %s16756_s9 }
  0xd5   : > { %s16758_s17 = scalar_lea.vmem %s16757_s9, 73728  ;;  %p16759_p12 = scmp.lt.s32.totalorder %s17537_s24, %s16757_s9 }
  0xd6   : > { %p16754_p1 = pnand %p16752_p13, %p17403_p8  ;;  %p16760_p5 = scmp.lt.s32.totalorder %s16758_s17, %s16751_s28 }
  0xd8   : > { %p16755_p2 = pneg %p16754_p1  ;;  %p16761_p4 = por %p16760_p5, %p16759_p12 }
  0xda   : > { %p16762_p6 = pnand %p16761_p4, %p16755_p2 }
  0xdc   : > { %16765 = shalt.err (!%p16762_p6)
}
  0xdd   : > { %s21402_s6 = smov 12   ;;  %s21403_s30 = smov 192  }
  0xde   : > { %14898 = dma.hbm_to_vmem [thread:$0]  (!%p21401_p7), %s17533_s18, 36864, %s17537_s24, %s21341_s16, %s21403_s30, %s21403_s30, %s21402_s6  }
  0xdf   : > { %s17134_s26 = smov [#allocation23]   ;;  %s16766_s28 = scalar_lea.hbm %s21300_s13, 16 }
  0xe0   : > { %s469_s29 = sshll.u32 %s17134_s26, 4  ;;  %p16767_p10 = scmp.ne.s32.totalorder %s21300_s13, %s16766_s28  ;;  %s470_s29 = int_to_ptr.vmem [resolvable:$true] %s469_s29 }
  0xe1   : > { %p21404_p0 = scmp.ne.s32.totalorder %s21395_s25, 0  ;;  %p16773_p13 = scmp.lt.u32.totalorder %s16766_s28, %s21300_s13 }
  0xe3   : > { %p21405_p9 = pneg %p21404_p0 }
  0xe5   : > { %p16769_p3 = pnand %p16767_p10, %p21405_p9 }
  0xe7   : > { %p16770_p11 = pneg %p16769_p3 }
  0xe9   : > { %p16775_p1 = pnand %p16773_p13, %p16770_p11 }
  0xeb   : > { %16778 = shalt.err (!%p16775_p1)
}
  0xec   : > { %s16779_s18 = scalar_lea.vmem %s470_s29, 16  ;;  %p21406_p12 = pmov %p21405_p9 }
  0xed   : > { %p16780_p2 = scmp.ne.s32.totalorder %s470_s29, %s16779_s18  ;;  %s16786_s24 = scalar_lea.vmem %s470_s29, 32 }
  0xee   : > { %p16787_p6 = scmp.lt.s32.totalorder %s470_s29, %s470_s29  ;;  %p16788_p7 = scmp.lt.s32.totalorder %s16786_s24, %s16779_s18 }
  0xef   : > { %p16782_p5 = pnand %p16780_p2, %p21406_p12 }
  0xf0   : > { %p16789_p8 = por %p16788_p7, %p16787_p6 }
  0xf1   : > { %p16783_p4 = pneg %p16782_p5 }
  0xf3   : > { %p16790_p9 = pnand %p16789_p8, %p16783_p4 }
  0xf5   : > { %16793 = shalt.err (!%p16790_p9)
}
  0xf6   : > { %14867 = dma.hbm_to_vmem [thread:$0]  (!%p21404_p0), %s21300_s13, 16, %s470_s29, [#allocation22]  }
  0xf7   : > { %s21407_s1 = sld [smem:[#allocation93_spill]]  ;;  %s494_s2 = scalar_lea.vmem [#allocation3], %s17354_s11 }
  0xf8   : > { %s502_s25 = sshll.u32 %s494_s2, 4  ;;  %s14805_s28 = smul.u32 1728, %s17345_s22  ;;  %s17593_s25 = int_to_ptr.vmem [resolvable:$true] %s502_s25 }
  0xf9   : > { %s491_s19 = scalar_lea.sflag [#allocation4], %s17345_s22  ;;  %p21408_p7 = scmp.ne.s32.totalorder %s21398_s27, 0 }
  0xfd   : > { %s17590_s4 = scalar_lea.hbm %s21407_s1, %s17357_s14  ;;  %s16799_s18 = scalar_lea.hbm %s21407_s1, 288 }
  0xfe   : > { %s16794_s9 = scalar_lea.hbm %s17590_s4, 48  ;;  %p16800_p3 = scmp.lt.u32.totalorder %s17590_s4, %s21407_s1 }
  0xff   : > { %p16795_p8 = scmp.ne.s32.totalorder %s17590_s4, %s16794_s9  ;;  %p16801_p11 = scmp.lt.u32.totalorder %s16799_s18, %s16794_s9 }
 0x100   : > { %p16803_p1 = scmp.lt.u32.totalorder %s16794_s9, %s17590_s4 }
 0x101   : > { %p16797_p10 = pnand %p16795_p8, %p21408_p7  ;;  %p16802_p13 = por %p16801_p11, %p16800_p3 }
 0x103   : > { %p16798_p0 = pneg %p16797_p10  ;;  %p16804_p2 = por %p16803_p1, %p16802_p13 }
 0x105   : > { %p16805_p12 = pnand %p16804_p2, %p16798_p0 }
 0x107   : > { %16808 = shalt.err (!%p16805_p12)
}
 0x108   : > { %s16809_s15 = scalar_lea.vmem %s17593_s25, 48  ;;  %s17135_s30 = smov [#allocation3]  }
 0x109   : > { %p16810_p5 = scmp.ne.s32.totalorder %s17593_s25, %s16809_s15  ;;  %s16814_s26 = sshll.u32 %s17135_s30, 4  ;;  %s16815_s26 = int_to_ptr.vmem [resolvable:$false] %s16814_s26 }
 0x10a   : > { %s16816_s2 = scalar_lea.vmem %s16815_s26, 96  ;;  %p16817_p9 = scmp.lt.s32.totalorder %s17593_s25, %s16815_s26 }
 0x10b   : > { %p16812_p4 = pnand %p16810_p5, %p21408_p7  ;;  %p16818_p8 = scmp.lt.s32.totalorder %s16816_s2, %s16809_s15 }
 0x10d   : > { %p16813_p6 = pneg %p16812_p4  ;;  %p16819_p10 = por %p16818_p8, %p16817_p9 }
 0x10f   : > { %p16820_p3 = pnand %p16819_p10, %p16813_p6 }
 0x111   : > { %16823 = shalt.err (!%p16820_p3)
}
 0x112   : > { %p21409_p0 = scmp.ne.s32.totalorder %s21396_s0, 0  ;;  %s14806_s9 = smul.u32 27648, %s17112_s21 }
 0x113   : > { %s532_s29 = scalar_lea.vmem [#allocation8], %s14805_s28  ;;  %s16829_s28 = scalar_lea.hbm %s21290_s3, 165888 }
 0x114   : > { %14871 = dma.hbm_to_vmem [thread:$0]  (!%p21409_p0), %s17590_s4, 48, %s17593_s25, %s491_s19  }
 0x115   : > { %s539_s17 = sshll.u32 %s532_s29, 4  ;;  %s17624_s6 = scalar_lea.hbm %s21290_s3, %s14806_s9  ;;  %s17626_s17 = int_to_ptr.vmem [resolvable:$true] %s539_s17 }
 0x116   : > { %s16824_s15 = scalar_lea.hbm %s17624_s6, 27648  ;;  %p16830_p2 = scmp.lt.u32.totalorder %s17624_s6, %s21290_s3 }
 0x117   : > { %p16825_p11 = scmp.ne.s32.totalorder %s17624_s6, %s16824_s15  ;;  %p16831_p12 = scmp.lt.u32.totalorder %s16829_s28, %s16824_s15 }
 0x118   : > { %p16833_p4 = scmp.lt.u32.totalorder %s16824_s15, %s17624_s6 }
 0x119   : > { %p16827_p13 = pnand %p16825_p11, %p21408_p7  ;;  %p16832_p5 = por %p16831_p12, %p16830_p2 }
 0x11b   : > { %p16828_p1 = pneg %p16827_p13  ;;  %p16834_p6 = por %p16833_p4, %p16832_p5 }
 0x11d   : > { %p16835_p9 = pnand %p16834_p6, %p16828_p1 }
 0x11f   : > { %16838 = shalt.err (!%p16835_p9)
}
 0x120   : > { %s16839_s26 = scalar_lea.vmem %s17626_s17, 27648  ;;  %s17136_s2 = smov [#allocation8]  }
 0x121   : > { %p16840_p8 = scmp.ne.s32.totalorder %s17626_s17, %s16839_s26  ;;  %s16844_s9 = sshll.u32 %s17136_s2, 4  ;;  %s16845_s9 = int_to_ptr.vmem [resolvable:$false] %s16844_s9 }
 0x122   : > { %s16846_s29 = scalar_lea.vmem %s16845_s9, 55296  ;;  %p16847_p11 = scmp.lt.s32.totalorder %s17626_s17, %s16845_s9 }
 0x123   : > { %p16842_p10 = pnand %p16840_p8, %p21408_p7  ;;  %p16848_p13 = scmp.lt.s32.totalorder %s16846_s29, %s16839_s26 }
 0x125   : > { %p16843_p3 = pneg %p16842_p10  ;;  %p16849_p2 = por %p16848_p13, %p16847_p11 }
 0x127   : > { %p16850_p12 = pnand %p16849_p2, %p16843_p3 }
 0x129   : > { %16853 = shalt.err (!%p16850_p12)
}
 0x12a   : > { %s17137_s18 = smov 576   ;;  %s17138_s24 = smov 36  }
 0x12b   : > { %s21410_s15 = scalar_lea.sflag [#allocation7], %s17387_s20  ;;  %s17655_s28 = scalar_lea.hbm %s21292_s5, %s17357_s14 }
 0x12c   : > { %14877 = dma.hbm_to_vmem [thread:$0]  (!%p21409_p0), %s17624_s6, 27648, %s17626_s17, %s21410_s15, %s17137_s18, %s17137_s18, %s17138_s24  }
 0x12d   : > { %s574_s19 = scalar_lea.vmem [#allocation11], %s17354_s11  ;;  %s16854_s26 = scalar_lea.hbm %s17655_s28, 48 }
 0x12e   : > { %s582_s30 = sshll.u32 %s574_s19, 4  ;;  %p16855_p1 = scmp.ne.s32.totalorder %s17655_s28, %s16854_s26  ;;  %s583_s30 = int_to_ptr.vmem [resolvable:$true] %s582_s30 }
 0x12f   : > { %s16859_s17 = scalar_lea.hbm %s21292_s5, 288  ;;  %p16860_p6 = scmp.lt.u32.totalorder %s17655_s28, %s21292_s5 }
 0x130   : > { %p16857_p5 = pnand %p16855_p1, %p21408_p7  ;;  %p16861_p9 = scmp.lt.u32.totalorder %s16859_s17, %s16854_s26 }
 0x131   : > { %p16863_p10 = scmp.lt.u32.totalorder %s16854_s26, %s17655_s28 }
 0x132   : > { %p16858_p4 = pneg %p16857_p5  ;;  %p16862_p8 = por %p16861_p9, %p16860_p6 }
 0x134   : > { %p16864_p3 = por %p16863_p10, %p16862_p8 }
 0x136   : > { %p16865_p11 = pnand %p16864_p3, %p16858_p4 }
 0x138   : > { %16868 = shalt.err (!%p16865_p11)
}
 0x139   : > { %s16869_s18 = scalar_lea.vmem %s583_s30, 48  ;;  %s17139_s24 = smov [#allocation11]  }
 0x13a   : > { %p16870_p13 = scmp.ne.s32.totalorder %s583_s30, %s16869_s18  ;;  %s16874_s15 = sshll.u32 %s17139_s24, 4  ;;  %s16875_s15 = int_to_ptr.vmem [resolvable:$false] %s16874_s15 }
 0x13b   : > { %s16876_s4 = scalar_lea.vmem %s16875_s15, 96  ;;  %p16877_p1 = scmp.lt.s32.totalorder %s583_s30, %s16875_s15 }
 0x13c   : > { %p16872_p2 = pnand %p16870_p13, %p21408_p7  ;;  %p16878_p5 = scmp.lt.s32.totalorder %s16876_s4, %s16869_s18 }
 0x13e   : > { %p16873_p12 = pneg %p16872_p2  ;;  %p16879_p0 = por %p16878_p5, %p16877_p1 }
 0x140   : > { %p16880_p6 = pnand %p16879_p0, %p16873_p12 }
 0x142   : > { %16883 = shalt.err (!%p16880_p6)
}
 0x143   : > { %p21411_p9 = scmp.ne.s32.totalorder %s21396_s0, 0  ;;  %s21412_s25 = scalar_lea.sflag [#allocation10], %s17387_s20 }
 0x144   : > { %s17681_s2 = scalar_lea.hbm %s21294_s7, %s17357_s14  ;;  %s612_s9 = scalar_lea.vmem [#allocation14], %s17354_s11 }
 0x145   : > { %14883 = dma.hbm_to_vmem [thread:$0]  (!%p21411_p9), %s17655_s28, 48, %s583_s30, %s21412_s25  }
 0x146   : > { %s620_s17 = sshll.u32 %s612_s9, 4  ;;  %s14817_s6 = smul.u32 12, %s17345_s22  ;;  %s621_s17 = int_to_ptr.vmem [resolvable:$true] %s620_s17 }
 0x147   : > { %s16884_s29 = scalar_lea.hbm %s17681_s2, 48  ;;  %s16889_s30 = scalar_lea.hbm %s21294_s7, 288 }
 0x148   : > { %p16885_p0 = scmp.ne.s32.totalorder %s17681_s2, %s16884_s29  ;;  %p16890_p10 = scmp.lt.u32.totalorder %s17681_s2, %s21294_s7 }
 0x149   : > { %p16891_p3 = scmp.lt.u32.totalorder %s16889_s30, %s16884_s29  ;;  %p16893_p13 = scmp.lt.u32.totalorder %s16884_s29, %s17681_s2 }
 0x14a   : > { %p16887_p4 = pnand %p16885_p0, %p21408_p7 }
 0x14b   : > { %p16892_p11 = por %p16891_p3, %p16890_p10 }
 0x14c   : > { %p16888_p8 = pneg %p16887_p4 }
 0x14d   : > { %p16894_p2 = por %p16893_p13, %p16892_p11 }
 0x14f   : > { %p16895_p12 = pnand %p16894_p2, %p16888_p8 }
 0x151   : > { %16898 = shalt.err (!%p16895_p12)
}
 0x152   : > { %s16899_s22 = scalar_lea.vmem %s621_s17, 48  ;;  %s17140_s4 = smov [#allocation14]  }
 0x153   : > { %p16900_p1 = scmp.ne.s32.totalorder %s621_s17, %s16899_s22  ;;  %s16904_s25 = sshll.u32 %s17140_s4, 4  ;;  %s16905_s25 = int_to_ptr.vmem [resolvable:$false] %s16904_s25 }
 0x154   : > { %s16906_s19 = scalar_lea.vmem %s16905_s25, 96  ;;  %p16907_p0 = scmp.lt.s32.totalorder %s621_s17, %s16905_s25 }
 0x155   : > { %p16902_p5 = pnand %p16900_p1, %p21408_p7  ;;  %p16908_p4 = scmp.lt.s32.totalorder %s16906_s19, %s16899_s22 }
 0x157   : > { %p16903_p6 = pneg %p16902_p5  ;;  %p16909_p9 = por %p16908_p4, %p16907_p0 }
 0x159   : > { %p16910_p3 = pnand %p16909_p9, %p16903_p6 }
 0x15b   : > { %16913 = shalt.err (!%p16910_p3)
}
 0x15c   : > { %p21413_p10 = scmp.ne.s32.totalorder %s21396_s0, 0  ;;  %s21414_s26 = scalar_lea.sflag [#allocation13], %s17387_s20 }
 0x15d   : > { %s14818_s9 = smul.u32 192, %s17112_s21  ;;  %s652_s29 = scalar_lea.vmem [#allocation17], %s14817_s6 }
 0x15e   : > { %14889 = dma.hbm_to_vmem [thread:$0]  (!%p21413_p10), %s17681_s2, 48, %s621_s17, %s21414_s26  }
 0x15f   : > { %s660_s18 = sshll.u32 %s652_s29, 4  ;;  %s21415_s24 = sld [smem:[#allocation97_spill]]  ;;  %s661_s18 = int_to_ptr.vmem [resolvable:$true] %s660_s18 }
 0x165   : > { %s658_s15 = scalar_lea.hbm %s21415_s24, %s14818_s9  ;;  %s16919_s19 = scalar_lea.hbm %s21415_s24, 1152 }
 0x166   : > { %s16914_s22 = scalar_lea.hbm %s658_s15, 192  ;;  %p16920_p13 = scmp.lt.u32.totalorder %s658_s15, %s21415_s24 }
 0x167   : > { %p16915_p8 = scmp.ne.s32.totalorder %s658_s15, %s16914_s22  ;;  %p16921_p2 = scmp.lt.u32.totalorder %s16919_s19, %s16914_s22 }
 0x168   : > { %p16923_p1 = scmp.lt.u32.totalorder %s16914_s22, %s658_s15 }
 0x169   : > { %p16917_p9 = pnand %p16915_p8, %p21408_p7  ;;  %p16922_p12 = por %p16921_p2, %p16920_p13 }
 0x16b   : > { %p16918_p11 = pneg %p16917_p9  ;;  %p16924_p5 = por %p16923_p1, %p16922_p12 }
 0x16d   : > { %p16925_p6 = pnand %p16924_p5, %p16918_p11 }
 0x16f   : > { %16928 = shalt.err (!%p16925_p6)
}
 0x170   : > { %s16929_s2 = scalar_lea.vmem %s661_s18, 192  ;;  %s17141_s17 = smov [#allocation17]  }
 0x171   : > { %p16930_p0 = scmp.ne.s32.totalorder %s661_s18, %s16929_s2  ;;  %s16934_s6 = sshll.u32 %s17141_s17, 4  ;;  %s16935_s6 = int_to_ptr.vmem [resolvable:$false] %s16934_s6 }
 0x172   : > { %s16936_s26 = scalar_lea.vmem %s16935_s6, 384  ;;  %p16937_p8 = scmp.lt.s32.totalorder %s661_s18, %s16935_s6 }
 0x173   : > { %p16932_p4 = pnand %p16930_p0, %p21408_p7  ;;  %p16938_p9 = scmp.lt.s32.totalorder %s16936_s26, %s16929_s2 }
 0x175   : > { %p16933_p3 = pneg %p16932_p4  ;;  %p16939_p10 = por %p16938_p9, %p16937_p8 }
 0x177   : > { %p16940_p2 = pnand %p16939_p10, %p16933_p3 }
 0x179   : > { %16943 = shalt.err (!%p16940_p2)
}
 0x17a   : > { %p21416_p13 = scmp.ne.s32.totalorder %s21396_s0, 0  ;;  %s21417_s1 = scalar_lea.sflag [#allocation16], %s17387_s20 }
 0x17b   : > { %s21418_s29 = sld [smem:[#allocation98_spill]]  ;;  %s692_s22 = scalar_lea.vmem [#allocation20], %s17354_s11 }
 0x17c   : > { %14895 = dma.hbm_to_vmem [thread:$0]  (!%p21416_p13), %s658_s15, 192, %s661_s18, %s21417_s1  }
 0x17d   : > { %s700_s4 = sshll.u32 %s692_s22, 4  ;;  %s701_s4 = int_to_ptr.vmem [resolvable:$true] %s700_s4 }
 0x181   : > { %s21419_s28 = smov %s21418_s29  ;;  %s17726_s30 = scalar_lea.hbm %s21418_s29, %s17357_s14 }
 0x182   : > { %s16944_s25 = scalar_lea.hbm %s17726_s30, 48  ;;  %s16949_s18 = scalar_lea.hbm %s21419_s28, 288 }
 0x183   : > { %p16945_p10 = scmp.ne.s32.totalorder %s17726_s30, %s16944_s25  ;;  %p16950_p1 = scmp.lt.u32.totalorder %s17726_s30, %s21419_s28 }
 0x184   : > { %p16951_p5 = scmp.lt.u32.totalorder %s16949_s18, %s16944_s25  ;;  %p16953_p0 = scmp.lt.u32.totalorder %s16944_s25, %s17726_s30 }
 0x185   : > { %p16947_p11 = pnand %p16945_p10, %p21408_p7 }
 0x186   : > { %p16952_p6 = por %p16951_p5, %p16950_p1 }
 0x187   : > { %p16948_p12 = pneg %p16947_p11 }
 0x188   : > { %p16954_p4 = por %p16953_p0, %p16952_p6 }
 0x18a   : > { %p16955_p3 = pnand %p16954_p4, %p16948_p12 }
 0x18c   : > { %16958 = shalt.err (!%p16955_p3)
}
 0x18d   : > { %s16959_s14 = scalar_lea.vmem %s701_s4, 48  ;;  %s17142_s11 = smov [#allocation20]  }
 0x18e   : > { %p16960_p8 = scmp.ne.s32.totalorder %s701_s4, %s16959_s14  ;;  %s16964_s6 = sshll.u32 %s17142_s11, 4  ;;  %s16965_s6 = int_to_ptr.vmem [resolvable:$false] %s16964_s6 }
 0x18f   : > { %s16966_s26 = scalar_lea.vmem %s16965_s6, 96  ;;  %p16967_p10 = scmp.lt.s32.totalorder %s701_s4, %s16965_s6 }
 0x190   : > { %p16962_p9 = pnand %p16960_p8, %p21408_p7  ;;  %p16968_p11 = scmp.lt.s32.totalorder %s16966_s26, %s16959_s14 }
 0x192   : > { %p16963_p2 = pneg %p16962_p9  ;;  %p16969_p13 = por %p16968_p11, %p16967_p10 }
 0x194   : > { %p16970_p1 = pnand %p16969_p13, %p16963_p2 }
 0x196   : > { %16973 = shalt.err (!%p16970_p1)
}
 0x197   : > { %p21420_p5 = scmp.ne.s32.totalorder %s21396_s0, 0  ;;  %s21421_s1 = scalar_lea.sflag [#allocation19], %s17387_s20 }
 0x198   : > { %s21422_s16 = sld [smem:[#allocation49_spill]] }
 0x199   : > { %14901 = dma.hbm_to_vmem [thread:$0]  (!%p21420_p5), %s17726_s30, 48, %s701_s4, %s21421_s1  }
 0x19e   : > { %p21423_p12 = scmp.ne.s32.totalorder %s21422_s16, 0 }
 0x1a0   : > { %709 = sbr.rel (%p21423_p12) target bundleno = 5598 (0x15de), region = 76 }
 0x1a7   : > { %s21424_s27 = sld [smem:[#allocation36_spill]]  ;;  %s21425_s9 = sld [smem:[#allocation45_spill]] }
 0x1ad   : > { %s17751_s29 = sand.u32 1, %s21424_s27   ;;  %p21426_p7 = scmp.ne.s32.totalorder %s21425_s9, 0 }
 0x1ae   : > { %s17754_s22 = smul.u32 3, %s17751_s29  ;;  %s712_s25 = scalar_lea.sflag [#allocation4], %s17751_s29 }
 0x1b0   : > { %s715_s19 = scalar_lea.vmem [#allocation3], %s17754_s22 }
 0x1b1   : > { %17047 = dma.done.wait (%p21426_p7), %s712_s25, 48  }
 0x1b2   : > { %17049 = vsyncadd (%p21426_p7), %s712_s25, 4294967248  ;;  %s21427_s0 = sld [smem:[#allocation41_spill]] }
 0x1b8   : > { %s720_s20 = sand.u32 1, %s21427_s0  }
 0x1b9   : > { %s721_s30 = scalar_lea.sflag [#allocation7], %s720_s20 }
 0x1ba   : > { %17051 = dma.done.wait (%p21426_p7), %s721_s30, 27696  }
 0x1bb   : > { %17053 = vsyncadd (%p21426_p7), %s721_s30, 4294939600  ;;  %s14824_s2 = smul.u32 1728, %s17751_s29  ;;  %s739_s17 = scalar_lea.sflag [#allocation10], %s720_s20 }
 0x1bc   : > { %s14825_s18 = smul.u32 576, %s17751_s29 }
 0x1bd   : > { %s17770_s15 = scalar_lea.vmem [#allocation8], %s14824_s2 }
 0x1be   : > { %s17772_s14 = scalar_lea.vmem [#allocation9], %s14825_s18 }
 0x1bf   : > { %17055 = dma.done.wait (%p21426_p7), %s739_s17, 9264  }
 0x1c0   : > { %17057 = vsyncadd (%p21426_p7), %s739_s17, 4294958032  ;;  %s757_s6 = scalar_lea.sflag [#allocation13], %s720_s20 }
 0x1c1   : > { %17059 = dma.done.wait (%p21426_p7), %s757_s6, 96  }
 0x1c2   : > { %17061 = vsyncadd (%p21426_p7), %s757_s6, 4294967200  ;;  %s14826_s1 = smul.u32 2304, %s17751_s29  ;;  %s775_s27 = scalar_lea.sflag [#allocation16], %s720_s20 }
 0x1c4   : > { %s17786_s25 = scalar_lea.vmem [#allocation15], %s14826_s1 }
 0x1c5   : > { %17063 = dma.done.wait (%p21426_p7), %s775_s27, 37056  }
 0x1c6   : > { %17065 = vsyncadd (%p21426_p7), %s775_s27, 4294930240  ;;  %s14827_s30 = smul.u32 12, %s17751_s29  ;;  %s793_s18 = scalar_lea.sflag [#allocation19], %s720_s20 }
 0x1c7   : > { %s17795_s17 = scalar_lea.vmem [#allocation18], %s14826_s1 }
 0x1c8   : > { %s17793_s2 = scalar_lea.vmem [#allocation17], %s14827_s30 }
 0x1c9   : > { %17067 = dma.done.wait (%p21426_p7), %s793_s18, 36912  }
 0x1ca   : > { %17069 = vsyncadd (%p21426_p7), %s793_s18, 4294930384  ;;  %p21428_p13 = scmp.eq.s32.totalorder %s21427_s0, 0 }
 0x1cc   : > { %17071 = dma.done.wait (%p21428_p13), [#allocation22], 3088   ;;  %p21429_p6 = pmov %p21428_p13 }
 0x1cd   : > { %s21430_s27 = sld [smem:[#allocation34_spill]]  ;;  %s21431_s29 = sld [smem:[#allocation39_spill]] }
 0x1ce   : > { %17073 = vsyncadd (%p21429_p6), [#allocation22], 4294964208  ;;  %s21432_s26 = sld [smem:[#allocation92_spill]]  ;;  %s21433_s4 = sld [smem:[#allocation38_spill]] }
 0x1d3   : > { %s911_s30 = sand.u32 1, %s21430_s27   ;;  %s12690_s20 = sshll.u32 %s21431_s29, 3 }
 0x1d4   : > { %s12689_s1 = sshll.u32 %s911_s30, 6  ;;  %p915_p0 = scmp.lt.s32.totalorder %s12690_s20, 15 }
 0x1d5   : > { %s17815_s6 = scalar_lea.vmem [#allocation24], %s12689_s1  ;;  %p12692_p4 = scmp.ne.s32.totalorder %s21433_s4, 0 }
 0x1d6   : > { %s21584_s20 = smov (!%p915_p0, %s12690_s20), 15 }
 0x1d7   : > { %s14828_s16 = smul.u32 12, %s21584_s20 }
 0x1d8   : > { %926 = sbr.rel (%p12692_p4) target bundleno = 489 (0x1e9), region = 132 }
 0x1d9   : > { %s17813_s11 = scalar_lea.vmem %s21432_s26, %s14828_s16 }
 0x1da   : > { %v927_v0 = vld [vmem:[%s17813_s11] sm:$0xff] (!%p12692_p4)  ;;  %v928_v1 = vld [vmem:[%s17813_s11 + $0x8] ss:$12 sps:$4 sm:$0xff] (!%p12692_p4)   ;;  %v929_v2 = vld [vmem:[%s17813_s11 + $0xc] sm:$0xff] (!%p12692_p4) }
 0x1db   : > { %v943_v3 = vunpack.c.l.bf16 (!%p12692_p4), %v927_v0  ;;  %v944_v4 = vunpack.c.h.bf16 (!%p12692_p4), %v927_v0  ;;  %v945_v5 = vunpack.c.l.bf16 (!%p12692_p4), %v928_v1  ;;  %v946_v6 = vunpack.c.l.bf16 (!%p12692_p4), %v929_v2  ;;  %v931_v7 = vld [vmem:[%s17813_s11 + $0x18] sm:$0xff] (!%p12692_p4)  ;;  %v932_v8 = vld [vmem:[%s17813_s11 + $0x20] ss:$12 sps:$4 sm:$0xff] (!%p12692_p4)   ;;  %v933_v9 = vld [vmem:[%s17813_s11 + $0x24] sm:$0xff] (!%p12692_p4) }
 0x1dc   : > { %v947_v10 = vunpack.c.h.bf16 (!%p12692_p4), %v929_v2  ;;  %v948_v11 = vunpack.c.h.bf16 (!%p12692_p4), %v928_v1  ;;  %v949_v12 = vunpack.c.l.bf16 (!%p12692_p4), %v931_v7  ;;  %v950_v13 = vunpack.c.h.bf16 (!%p12692_p4), %v931_v7  ;;  %v935_v14 = vld [vmem:[%s17813_s11 + $0x30] sm:$0xff] (!%p12692_p4)  ;;  %v936_v15 = vld [vmem:[%s17813_s11 + $0x38] ss:$12 sps:$4 sm:$0xff] (!%p12692_p4)   ;;  %v937_v16 = vld [vmem:[%s17813_s11 + $0x3c] sm:$0xff] (!%p12692_p4) }
 0x1dd   : > { %967 = vst [vmem:[#allocation2] sm:$0xff] (!%p12692_p4), %v943_v3  ;;  %968 = vst [vmem:[#allocation2 + $0x8] sm:$0xff] (!%p12692_p4), %v944_v4  ;;  %v951_v17 = vunpack.c.l.bf16 (!%p12692_p4), %v932_v8  ;;  %v952_v18 = vunpack.c.l.bf16 (!%p12692_p4), %v933_v9  ;;  %v953_v19 = vunpack.c.h.bf16 (!%p12692_p4), %v933_v9  ;;  %v954_v20 = vunpack.c.h.bf16 (!%p12692_p4), %v932_v8  ;;  %v939_v21 = vld [vmem:[%s17813_s11 + $0x48] sm:$0xff] (!%p12692_p4)  ;;  %v940_v22 = vld [vmem:[%s17813_s11 + $0x50] ss:$12 sps:$4 sm:$0xff] (!%p12692_p4)  }
 0x1de   : > { %969 = vst [vmem:[#allocation2 + $0x10] sm:$0xff] (!%p12692_p4), %v945_v5  ;;  %970 = vst [vmem:[#allocation2 + $0x18] sm:$0xff] (!%p12692_p4), %v946_v6  ;;  %v941_v23 = vld [vmem:[%s17813_s11 + $0x54] sm:$0xff] (!%p12692_p4)  ;;  %v955_v24 = vunpack.c.l.bf16 (!%p12692_p4), %v935_v14  ;;  %v956_v25 = vunpack.c.h.bf16 (!%p12692_p4), %v935_v14  ;;  %v957_v26 = vunpack.c.l.bf16 (!%p12692_p4), %v936_v15  ;;  %v958_v27 = vunpack.c.l.bf16 (!%p12692_p4), %v937_v16 }
 0x1df   : > { %971 = vst [vmem:[#allocation2 + $0x20] sm:$0xff] %v947_v10  ;;  %972 = vst [vmem:[#allocation2 + $0x28] sm:$0xff] %v948_v11  ;;  %v959_v28 = vunpack.c.h.bf16 %v937_v16  ;;  %v960_v29 = vunpack.c.h.bf16 %v936_v15  ;;  %v961_v30 = vunpack.c.l.bf16 %v939_v21  ;;  %v962_v31 = vunpack.c.h.bf16 %v939_v21 }
 0x1e0   : > { %973 = vst [vmem:[#allocation2 + $0x30] sm:$0xff] %v949_v12  ;;  %974 = vst [vmem:[#allocation2 + $0x38] sm:$0xff] %v950_v13  ;;  %v963_v32 = vunpack.c.l.bf16 %v940_v22  ;;  %v964_v33 = vunpack.c.l.bf16 %v941_v23  ;;  %v965_v34 = vunpack.c.h.bf16 %v941_v23  ;;  %v966_v35 = vunpack.c.h.bf16 %v940_v22 }
 0x1e1   : > { %975 = vst [vmem:[#allocation2 + $0x40] sm:$0xff] %v951_v17  ;;  %976 = vst [vmem:[#allocation2 + $0x48] sm:$0xff] %v952_v18 }
 0x1e2   : > { %977 = vst [vmem:[#allocation2 + $0x50] sm:$0xff] %v953_v19  ;;  %978 = vst [vmem:[#allocation2 + $0x58] sm:$0xff] %v954_v20 }
 0x1e3   : > { %979 = vst [vmem:[#allocation2 + $0x60] sm:$0xff] %v955_v24  ;;  %980 = vst [vmem:[#allocation2 + $0x68] sm:$0xff] %v956_v25 }
 0x1e4   : > { %981 = vst [vmem:[#allocation2 + $0x70] sm:$0xff] %v957_v26  ;;  %982 = vst [vmem:[#allocation2 + $0x78] sm:$0xff] %v958_v27 }
 0x1e5   : > { %983 = vst [vmem:[#allocation2 + $0x80] sm:$0xff] %v959_v28  ;;  %984 = vst [vmem:[#allocation2 + $0x88] sm:$0xff] %v960_v29 }
 0x1e6   : > { %985 = vst [vmem:[#allocation2 + $0x90] sm:$0xff] %v961_v30  ;;  %986 = vst [vmem:[#allocation2 + $0x98] sm:$0xff] %v962_v31 }
 0x1e7   : > { %987 = vst [vmem:[#allocation2 + $0xa0] sm:$0xff] %v963_v32  ;;  %988 = vst [vmem:[#allocation2 + $0xa8] sm:$0xff] %v964_v33 }
 0x1e8   : > { %989 = vst [vmem:[#allocation2 + $0xb0] sm:$0xff] %v965_v34  ;;  %990 = vst [vmem:[#allocation2 + $0xb8] sm:$0xff] %v966_v35 }
 0x1e9 PF: > { %v17838_v40 = vld [vmem:[#allocation2 + $0x30] sm:$0xff]  ;;  %v17840_v41 = vld [vmem:[#allocation2 + $0x38] sm:$0xff]  ;;  %v17842_v42 = vld [vmem:[#allocation2 + $0x40] sm:$0xff]  ;;  %vm4165_vm0 = vcmask 523264   ;;  %s17144_s0 = smov 64   ;;  %s21532_s4 = scalar_lea.vmem [#allocation11], %s17754_s22 }
 0x1ea   : > { %v2039_v43 = vadd.f32 %v17840_v41, %v17838_v40  ;;  %v1000_v49 = vld [vmem:[#allocation2 + $0x48] sm:$0xff]  ;;  %v1001_v50 = vld [vmem:[#allocation2 + $0x50] sm:$0xff]  ;;  %v1002_v51 = vld [vmem:[#allocation2 + $0x58] sm:$0xff]  ;;  %s21547_s11 = scalar_lea.vmem [#allocation20], %s17754_s22 }
 0x1eb   : > { %v2043_v53 = vadd.f32 %v1001_v50, %v1000_v49  ;;  %v1003_v54 = vld [vmem:[#allocation2 + $0x60] sm:$0xff]  ;;  %v1004_v55 = vld [vmem:[#allocation2 + $0x68] sm:$0xff]  ;;  %v1006_v58 = vld [vmem:[#allocation2 + $0x78] sm:$0xff] }
 0x1ec   : > { %v2040_v52 = vadd.f32 %v2039_v43, %v17842_v42  ;;  %v2047_v57 = vadd.f32 %v1004_v55, %v1003_v54  ;;  %v1007_v59 = vld [vmem:[#allocation2 + $0x80] sm:$0xff]  ;;  %v1005_v61 = vld [vmem:[#allocation2 + $0x70] sm:$0xff]  ;;  %v1008_v1 = vld [vmem:[#allocation2 + $0x88] sm:$0xff] }
 0x1ed   : > { %v2044_v60 = vadd.f32 %v2043_v53, %v1002_v51  ;;  %v2051_v62 = vadd.f32 %v1007_v59, %v1006_v58  ;;  %v1009_v63 = vld [vmem:[#allocation2 + $0x90] sm:$0xff]  ;;  %v1010_v0 = vld [vmem:[#allocation2 + $0x98] sm:$0xff]  ;;  %v15080_v16 = vld [vmem:[%s17770_s15 + $0x94] ss:$36 sps:$4 sm:$0xff]  }
 0x1ee   : > { %v17830_v36 = vld [vmem:[#allocation2] sm:$0xff]  ;;  %v17832_v37 = vld [vmem:[#allocation2 + $0x8] sm:$0xff]  ;;  %2041 = vadd.xlane.f32.xlu1 %v2040_v52  ;;  %v2048_v5 = vadd.f32 %v2047_v57, %v1005_v61  ;;  %v2055_v6 = vadd.f32 %v1010_v0, %v1009_v63  ;;  %v15074_v12 = vld [vmem:[%s17770_s15 + $0x4] ss:$36 sps:$4 sm:$0xff]  }
 0x1ef   : > { %v17834_v38 = vld [vmem:[#allocation2 + $0x10] sm:$0xff]  ;;  %v2031_v39 = vadd.f32 %v17832_v37, %v17830_v36  ;;  %v994_v44 = vld [vmem:[#allocation2 + $0x18] sm:$0xff]  ;;  %v1012_v2 = vld [vmem:[#allocation2 + $0xa8] sm:$0xff]  ;;  %v2052_v8 = vadd.f32 %v2051_v62, %v1008_v1  ;;  %3396 = vmatprep.subr.bf16.mxu0 %v15074_v12 }
 0x1f0   : > { %v995_v45 = vld [vmem:[#allocation2 + $0x20] sm:$0xff]  ;;  %v996_v46 = vld [vmem:[#allocation2 + $0x28] sm:$0xff]  ;;  %v1013_v3 = vld [vmem:[#allocation2 + $0xb0] sm:$0xff] }
 0x1f1   : > { %v2032_v47 = vadd.f32 %v2031_v39, %v17834_v38  ;;  %v2035_v48 = vadd.f32 %v995_v45, %v994_v44  ;;  %v1011_v4 = vld [vmem:[#allocation2 + $0xa0] sm:$0xff]  ;;  %v1014_v7 = vld [vmem:[#allocation2 + $0xb8] sm:$0xff]  ;;  %v2059_v9 = vadd.f32 %v1013_v3, %v1012_v2  ;;  %v15076_v13 = vld [vmem:[%s17770_s15] ss:$36 sps:$4 sm:$0xff]  }
 0x1f2   : > { %2045 = vadd.xlane.f32.xlu1 %v2044_v60  ;;  %v2056_v10 = vadd.f32 %v2055_v6, %v1011_v4  ;;  %v15077_v14 = vld [vmem:[%s17770_s15 + $0x4c] ss:$36 sps:$4 sm:$0xff]   ;;  %3397 = vmatpush1.bf16.msra.mxu0 %v15076_v13  ;;  %v15104_v20 = vld [vmem:[%s17770_s15 + $0x4d4] ss:$36 sps:$4 sm:$0xff]   ;;  %v15083_v21 = vld [vmem:[%s17770_s15 + $0xdc] ss:$36 sps:$4 sm:$0xff]  }
 0x1f3   : > { %2033 = vadd.xlane.f32.xlu0 %v2032_v47  ;;  %v2036_v56 = vadd.f32 %v2035_v48, %v996_v46  ;;  %v2060_v11 = vadd.f32 %v2059_v9, %v1014_v7  ;;  %v15079_v15 = vld [vmem:[%s17770_s15 + $0x48] ss:$36 sps:$4 sm:$0xff]   ;;  %3398 = vmatprep.subr.bf16.mxu0 %v15077_v14  ;;  %v15082_v18 = vld [vmem:[%s17770_s15 + $0x90] ss:$36 sps:$4 sm:$0xff]   ;;  %v15085_v23 = vld [vmem:[%s17770_s15 + $0xd8] ss:$36 sps:$4 sm:$0xff]  }
 0x1f4   : > { %v15098_v17 = vld [vmem:[%s17770_s15 + $0x48c] ss:$36 sps:$4 sm:$0xff]   ;;  %v15086_v24 = vld [vmem:[%s17770_s15 + $0x124] ss:$36 sps:$4 sm:$0xff]   ;;  %v15092_v28 = vld [vmem:[%s17770_s15 + $0x1b4] ss:$36 sps:$4 sm:$0xff]  }
 0x1f5   : > { %v15102_v19 = vld [vmem:[%s17770_s15 + $0x488] ss:$36 sps:$4 sm:$0xff]   ;;  %3615 = vmatprep.subr.bf16.mxu1 %v15098_v17  ;;  %v15108_v22 = vld [vmem:[%s17770_s15 + $0x4d0] ss:$36 sps:$4 sm:$0xff]   ;;  %v15088_v25 = vld [vmem:[%s17770_s15 + $0x120] ss:$36 sps:$4 sm:$0xff]  }
 0x1f6   : > { %2053 = vadd.xlane.f32.xlu1 %v2052_v8  ;;  %3399 = vmatpush1.bf16.msra.mxu0 %v15079_v15  ;;  %v15089_v26 = vld [vmem:[%s17770_s15 + $0x16c] ss:$36 sps:$4 sm:$0xff]   ;;  %v15095_v30 = vld [vmem:[%s17770_s15 + $0x1fc] ss:$36 sps:$4 sm:$0xff]   ;;  %v15100_v32 = vld [vmem:[%s17770_s15 + $0x244] ss:$36 sps:$4 sm:$0xff]  }
 0x1f7   : > { %2037 = vadd.xlane.f32.xlu0 %v2036_v56  ;;  %3400 = vmatprep.subr.bf16.mxu0 %v15080_v16  ;;  %v15091_v27 = vld [vmem:[%s17770_s15 + $0x168] ss:$36 sps:$4 sm:$0xff]   ;;  %v15094_v29 = vld [vmem:[%s17770_s15 + $0x1b0] ss:$36 sps:$4 sm:$0xff]   ;;  %v15097_v31 = vld [vmem:[%s17770_s15 + $0x1f8] ss:$36 sps:$4 sm:$0xff]  }
 0x1f8   : > { %3616 = vmatpush1.bf16.msra.mxu1 %v15102_v19  ;;  %v15103_v33 = vld [vmem:[%s17770_s15 + $0x240] ss:$36 sps:$4 sm:$0xff]   ;;  %v15106_v34 = vld [vmem:[%s17770_s15 + $0x28c] ss:$36 sps:$4 sm:$0xff]   ;;  %v16523_v57 = vld [vmem:[#allocation2 + $0x20] sm:$0xff] }
 0x1f9   : > { %3617 = vmatprep.subr.bf16.mxu1 %v15104_v20  ;;  %v16522_v55 = vld [vmem:[#allocation2 + $0x18] sm:$0xff]  ;;  %v16524_v60 = vld [vmem:[#allocation2 + $0x28] sm:$0xff]  ;;  %v16526_v0 = vld [vmem:[#allocation2 + $0x50] sm:$0xff] }
 0x1fa   : > { %2061 = vadd.xlane.f32.xlu1 %v2060_v11  ;;  %3401 = vmatpush1.bf16.msra.mxu0 %v15082_v18  ;;  %v16525_v62 = vld [vmem:[#allocation2 + $0x48] sm:$0xff]  ;;  %v16527_v4 = vld [vmem:[#allocation2 + $0x58] sm:$0xff]  ;;  %v16528_v15 = vld [vmem:[#allocation2 + $0x60] sm:$0xff] }
 0x1fb   : > { %2049 = vadd.xlane.f32.xlu0 %v2048_v5  ;;  %3402 = vmatprep.subr.bf16.mxu0 %v15083_v21  ;;  %v16529_v17 = vld [vmem:[#allocation2 + $0x68] sm:$0xff]  ;;  %v16530_v21 = vld [vmem:[#allocation2 + $0x78] sm:$0xff] }
 0x1fc   : > { %3618 = vmatpush1.bf16.msra.mxu1 %v15108_v22 }
 0x1fe   : > { %3403 = vmatpush1.bf16.msra.mxu0 %v15085_v23  ;;  %v16531_v23 = vld [vmem:[#allocation2 + $0x80] sm:$0xff] }
 0x1ff   : > { %2057 = vadd.xlane.f32.xlu0 %v2056_v10  ;;  %3404 = vmatprep.subr.bf16.mxu0 %v15086_v24 }
 0x202   : > { %3405 = vmatpush1.bf16.msra.mxu0 %v15088_v25 }
 0x203   : > { %3406 = vmatprep.subr.bf16.mxu0 %v15089_v26 }
 0x206   : > { %3407 = vmatpush1.bf16.msra.mxu0 %v15091_v27  ;;  %v16532_v27 = vld [vmem:[#allocation2 + $0x70] sm:$0xff] }
 0x207   : > { %3408 = vmatprep.subr.bf16.mxu0 %v15092_v28 }
 0x20a   : > { %3409 = vmatpush1.bf16.msra.mxu0 %v15094_v29 }
 0x20b   : > { %3410 = vmatprep.subr.bf16.mxu0 %v15095_v30 }
 0x20e   : > { %3411 = vmatpush1.bf16.msra.mxu0 %v15097_v31 }
 0x20f   : > { %3412 = vmatprep.subr.bf16.mxu0 %v15100_v32 }
 0x212   : > { %3413 = vmatpush1.bf16.msra.mxu0 %v15103_v33 }
 0x213   : > { %3414 = vmatprep.subr.bf16.mxu0 %v15106_v34 }
 0x27b   : > { %v2042_v43 = vpop.xlane.xlu1 %2041 }
 0x27c   : > { %v2066_v44 = vmul.f32 0.0026041667, %v2042_v43  ;;  %v16533_v43 = vld [vmem:[#allocation2 + $0x88] sm:$0xff] }
 0x27e   : > { %v17881_v48 = vsub.f32 %v17838_v40, %v2066_v44  ;;  %v17884_v49 = vsub.f32 %v17840_v41, %v2066_v44  ;;  %v17887_v51 = vsub.f32 %v17842_v42, %v2066_v44 }
 0x27f   : > { %v2046_v53 = vpop.xlane.xlu1 %2045 }
 0x280   : > { %v2034_v35 = vpop.xlane.xlu0 %2033  ;;  %v2067_v40 = vmul.f32 0.0026041667, %v2046_v53  ;;  %v2102_v41 = vmul.f32 %v17881_v48, %v17881_v48  ;;  %v2103_v54 = vmul.f32 %v17884_v49, %v17884_v49  ;;  %v2104_v42 = vmul.f32 %v17887_v51, %v17887_v51  ;;  %v16535_v53 = vld [vmem:[#allocation2 + $0x98] sm:$0xff] }
 0x281   : > { %v2064_v39 = vmul.f32 0.0026041667, %v2034_v35 }
 0x282   : > { %v17907_v63 = vsub.f32 %v16525_v62, %v2067_v40  ;;  %v17909_v1 = vsub.f32 %v16526_v0, %v2067_v40  ;;  %v2128_v3 = vadd.f32 %v2103_v54, %v2102_v41  ;;  %v17911_v5 = vsub.f32 %v16527_v4, %v2067_v40  ;;  %v16537_v41 = vld [vmem:[#allocation2 + $0xb0] sm:$0xff]  ;;  %v16539_v4 = vld [vmem:[#allocation2 + $0xb8] sm:$0xff] }
 0x283   : > { %v17872_v45 = vsub.f32 %v17830_v36, %v2064_v39  ;;  %v17875_v46 = vsub.f32 %v17832_v37, %v2064_v39  ;;  %v17878_v47 = vsub.f32 %v17834_v38, %v2064_v39  ;;  %v2054_v8 = vpop.xlane.xlu1 %2053 }
 0x284   : > { %v2038_v50 = vpop.xlane.xlu0 %2037  ;;  %v2069_v11 = vmul.f32 0.0026041667, %v2054_v8  ;;  %v2129_v12 = vadd.f32 %v2128_v3, %v2104_v42  ;;  %v2105_v14 = vmul.f32 %v17907_v63, %v17907_v63  ;;  %v2106_v20 = vmul.f32 %v17909_v1, %v17909_v1 }
 0x285   : > { %v2065_v52 = vmul.f32 0.0026041667, %v2038_v50  ;;  %v2096_v36 = vmul.f32 %v17872_v45, %v17872_v45  ;;  %v2097_v37 = vmul.f32 %v17875_v46, %v17875_v46  ;;  %v2098_v38 = vmul.f32 %v17878_v47, %v17878_v47  ;;  %v16534_v50 = vld [vmem:[#allocation2 + $0x90] sm:$0xff] }
 0x286   : > { %v17927_v22 = vsub.f32 %v16530_v21, %v2069_v11  ;;  %v17929_v24 = vsub.f32 %v16531_v23, %v2069_v11  ;;  %v2107_v26 = vmul.f32 %v17911_v5, %v17911_v5  ;;  %v2132_v32 = vadd.f32 %v2106_v20, %v2105_v14  ;;  %v15110_v20 = vld [vmem:[%s17770_s15 + $0x51c] ss:$36 sps:$4 sm:$0xff]   ;;  %v15112_v21 = vld [vmem:[%s17770_s15 + $0x2d4] ss:$36 sps:$4 sm:$0xff]  }
 0x287   : > { %v17901_v56 = vsub.f32 %v16522_v55, %v2065_v52  ;;  %v17903_v58 = vsub.f32 %v16523_v57, %v2065_v52  ;;  %v2120_v59 = vadd.f32 %v2097_v37, %v2096_v36  ;;  %v17905_v61 = vsub.f32 %v16524_v60, %v2065_v52  ;;  %v2062_v31 = vpop.xlane.xlu1 %2061  ;;  %v16538_v60 = vld [vmem:[#allocation2 + $0xa0] sm:$0xff]  ;;  %3619 = vmatprep.subr.bf16.mxu1 %v15110_v20 }
 0x288   : > { %v2050_v2 = vpop.xlane.xlu0 %2049  ;;  %v2071_v34 = vmul.f32 0.0026041667, %v2062_v31  ;;  %v17941_v44 = vsub.f32 %v16533_v43, %v2069_v11  ;;  %v2133_v37 = vadd.f32 %v2132_v32, %v2107_v26  ;;  %v2111_v55 = vmul.f32 %v17927_v22, %v17927_v22  ;;  %v15114_v23 = vld [vmem:[%s17770_s15 + $0x518] ss:$36 sps:$4 sm:$0xff]   ;;  %v15116_v26 = vld [vmem:[%s17770_s15 + $0x564] ss:$36 sps:$4 sm:$0xff]  }
 0x289   : > { %v2068_v6 = vmul.f32 0.0026041667, %v2050_v2  ;;  %v2121_v7 = vadd.f32 %v2120_v59, %v2098_v38  ;;  %v2099_v9 = vmul.f32 %v17901_v56, %v17901_v56  ;;  %v2100_v10 = vmul.f32 %v17903_v58, %v17903_v58  ;;  %v16536_v38 = vld [vmem:[#allocation2 + $0xa8] sm:$0xff]  ;;  %3620 = vmatpush1.bf16.msra.mxu1 %v15114_v23  ;;  %v15122_v31 = vld [vmem:[%s17770_s15 + $0x5ac] ss:$36 sps:$4 sm:$0xff]  }
 0x28a   : > { %v2101_v13 = vmul.f32 %v17905_v61, %v17905_v61  ;;  %v17947_v40 = vsub.f32 %v16536_v38, %v2071_v34  ;;  %v17949_v54 = vsub.f32 %v16537_v41, %v2071_v34  ;;  %v2112_v57 = vmul.f32 %v17929_v24, %v17929_v24  ;;  %3621 = vmatprep.subr.bf16.mxu1 %v15116_v26  ;;  %v15124_v32 = vld [vmem:[%s17770_s15 + $0x364] ss:$36 sps:$4 sm:$0xff]   ;;  %v15132_v43 = vld [vmem:[%s17770_s15 + $0x5f0] ss:$36 sps:$4 sm:$0xff]   ;;  %v15138_v38 = vld [vmem:[%s17770_s15 + $0x638] ss:$36 sps:$4 sm:$0xff]  }
 0x28b   : > { %v17921_v16 = vsub.f32 %v16528_v15, %v2068_v6  ;;  %v17923_v18 = vsub.f32 %v16529_v17, %v2068_v6  ;;  %2122 = vadd.xlane.f32.xlu0 %v2121_v7  ;;  %v2124_v19 = vadd.f32 %v2100_v10, %v2099_v9  ;;  %v17933_v28 = vsub.f32 %v16532_v27, %v2068_v6  ;;  %v15118_v27 = vld [vmem:[%s17770_s15 + $0x31c] ss:$36 sps:$4 sm:$0xff]   ;;  %v15139_v41 = vld [vmem:[%s17770_s15 + $0x3f0] ss:$36 sps:$4 sm:$0xff]  }
 0x28c   : > { %v2058_v25 = vpop.xlane.xlu0 %2057  ;;  %v2113_v59 = vmul.f32 %v17941_v44, %v17941_v44  ;;  %v17963_v6 = vsub.f32 %v16539_v4, %v2071_v34  ;;  %v2117_v7 = vmul.f32 %v17947_v40, %v17947_v40  ;;  %v2140_v8 = vadd.f32 %v2112_v57, %v2111_v55  ;;  %v15127_v34 = vld [vmem:[%s17770_s15 + $0x360] ss:$36 sps:$4 sm:$0xff]  }
 0x28d   : > { %v2070_v29 = vmul.f32 0.0026041667, %v2058_v25  ;;  %v2125_v30 = vadd.f32 %v2124_v19, %v2101_v13  ;;  %v2108_v33 = vmul.f32 %v17921_v16, %v17921_v16  ;;  %v2109_v35 = vmul.f32 %v17923_v18, %v17923_v18  ;;  %v15109_v19 = vld [vmem:[%s17770_s15 + $0x288] ss:$36 sps:$4 sm:$0xff]   ;;  %v15115_v25 = vld [vmem:[%s17770_s15 + $0x2d0] ss:$36 sps:$4 sm:$0xff]  }
 0x28e   : > { %v2110_v39 = vmul.f32 %v17933_v28, %v17933_v28  ;;  %v2118_v10 = vmul.f32 %v17949_v54, %v17949_v54  ;;  %v2141_v13 = vadd.f32 %v2140_v8, %v2113_v59  ;;  %3415 = vmatpush1.bf16.msra.mxu0 %v15109_v19  ;;  %v15142_v55 = vld [vmem:[%s17770_s15 + $0x43c] ss:$36 sps:$4 sm:$0xff]   ;;  %v2201_v4 = vlaneseq }
 0x28f   : > { %v17943_v52 = vsub.f32 %v16534_v50, %v2070_v29  ;;  %v17945_v36 = vsub.f32 %v16535_v53, %v2070_v29  ;;  %2130 = vadd.xlane.f32.xlu0 %v2129_v12  ;;  %2126 = vadd.xlane.f32.xlu1 %v2125_v30  ;;  %v2136_v42 = vadd.f32 %v2109_v35, %v2108_v33  ;;  %v15121_v30 = vld [vmem:[%s17770_s15 + $0x318] ss:$36 sps:$4 sm:$0xff]   ;;  %v15126_v33 = vld [vmem:[%s17770_s15 + $0x5a8] ss:$36 sps:$4 sm:$0xff]   ;;  %v15144_v57 = vld [vmem:[%s17770_s15 + $0x680] ss:$36 sps:$4 sm:$0xff]  }
 0x290   : > { %v17957_v62 = vsub.f32 %v16538_v60, %v2070_v29  ;;  %v2119_v12 = vmul.f32 %v17963_v6, %v17963_v6  ;;  %v2148_v14 = vadd.f32 %v2118_v10, %v2117_v7  ;;  %3416 = vmatprep.subr.bf16.mxu0 %v15112_v21  ;;  %v15120_v29 = vld [vmem:[%s17770_s15 + $0x560] ss:$36 sps:$4 sm:$0xff]   ;;  %v15128_v35 = vld [vmem:[%s17770_s15 + $0x5f4] ss:$36 sps:$4 sm:$0xff]   ;;  %v15133_v50 = vld [vmem:[%s17770_s15 + $0x3a8] ss:$36 sps:$4 sm:$0xff]  }
 0x291   : > { %v2114_v0 = vmul.f32 %v17943_v52, %v17943_v52  ;;  %v2137_v2 = vadd.f32 %v2136_v42, %v2110_v39  ;;  %v2115_v3 = vmul.f32 %v17945_v36, %v17945_v36  ;;  %3622 = vmatpush1.bf16.msra.mxu1 %v15120_v29  ;;  %v15130_v39 = vld [vmem:[%s17770_s15 + $0x3ac] ss:$36 sps:$4 sm:$0xff]   ;;  %v15134_v53 = vld [vmem:[%s17770_s15 + $0x63c] ss:$36 sps:$4 sm:$0xff]   ;;  %v15140_v42 = vld [vmem:[%s17770_s15 + $0x684] ss:$36 sps:$4 sm:$0xff]  }
 0x292   : > { %v2116_v9 = vmul.f32 %v17957_v62, %v17957_v62  ;;  %v2149_v17 = vadd.f32 %v2148_v14, %v2119_v12  ;;  %3417 = vmatpush1.bf16.msra.mxu0 %v15115_v25  ;;  %3623 = vmatprep.subr.bf16.mxu1 %v15122_v31  ;;  %v15145_v59 = vld [vmem:[%s17770_s15 + $0x438] ss:$36 sps:$4 sm:$0xff]  }
 0x293   : > { %2134 = vadd.xlane.f32.xlu1 %v2133_v37  ;;  %2138 = vadd.xlane.f32.xlu0 %v2137_v2  ;;  %v2144_v11 = vadd.f32 %v2115_v3, %v2114_v0  ;;  %v15136_v37 = vld [vmem:[%s17770_s15 + $0x3f4] ss:$36 sps:$4 sm:$0xff]   ;;  %v15148_v60 = vld [vmem:[%s17770_s15 + $0x1c] ss:$36 sps:$4 sm:$0xff]   ;;  %v21342_v0 = vmov 0  }
 0x294   : > { %3418 = vmatprep.subr.bf16.mxu0 %v15118_v27  ;;  %3647 = vmatprep.mubr.bf16.mxu1 %v21342_v0  ;;  %v15151_v2 = vld [vmem:[%s17770_s15 + $0x484] ss:$36 sps:$4 sm:$0xff]   ;;  %v1015_v25 = vld [vmem:[%s715_s19] sm:$0x7]  ;;  %s21438_s19 = scalar_lea.vmem [#allocation6], %s17754_s22 }
 0x295   : > { %v2145_v15 = vadd.f32 %v2144_v11, %v2116_v9  ;;  %3624 = vmatpush1.bf16.msra.mxu1 %v15126_v33  ;;  %v18002_v11 = vshrl.u32 %v2201_v4, 7 }
 0x296   : > { %3419 = vmatpush1.bf16.msra.mxu0 %v15121_v30  ;;  %3625 = vmatprep.subr.bf16.mxu1 %v15128_v35 }
 0x297   : > { %2142 = vadd.xlane.f32.xlu1 %v2141_v13  ;;  %2146 = vadd.xlane.f32.xlu0 %v2145_v15  ;;  %21434 = vst [vmem:[#allocation50_spill] sm:$0xff] %v18002_v11  ;;  %v18005_v19 = vsub.s32 1, %v18002_v11  ;;  %v18008_v20 = vsub.s32 2, %v18002_v11  ;;  %v18013_v33 = vsub.s32 0, %v18002_v11 }
 0x298   : > { %3420 = vmatprep.subr.bf16.mxu0 %v15124_v32 }
 0x299   : > { %3626 = vmatpush1.bf16.msra.mxu1 %v15132_v43  ;;  %21435 = vst [vmem:[#allocation51_spill] sm:$0xff] %v18005_v19  ;;  %21436 = vst [vmem:[#allocation52_spill] sm:$0xff] %v18008_v20  ;;  %v18016_v35 = vrot.slane %v1015_v25, %v18005_v19 }
 0x29a   : > { %3421 = vmatpush1.bf16.msra.mxu0 %v15127_v34  ;;  %3627 = vmatprep.subr.bf16.mxu1 %v15134_v53  ;;  %21437 = vst [vmem:[#allocation53_spill] sm:$0xff] %v18013_v33  ;;  %v1016_v53 = vld [vmem:[%s21438_s19] sm:$0x7] }
 0x29b   : > { %2150 = vadd.xlane.f32.xlu1 %v2149_v17  ;;  %3422 = vmatprep.subr.bf16.mxu0 %v15130_v39  ;;  %v18019_v39 = vrot.slane %v1015_v25, %v18008_v20 }
 0x29d   : > { %3628 = vmatpush1.bf16.msra.mxu1 %v15138_v38 }
 0x29e   : > { %3423 = vmatpush1.bf16.msra.mxu0 %v15133_v50  ;;  %3629 = vmatprep.subr.bf16.mxu1 %v15140_v42 }
 0x29f   : > { %3424 = vmatprep.subr.bf16.mxu0 %v15136_v37 }
 0x2a1   : > { %3630 = vmatpush1.bf16.msra.mxu1 %v15144_v57 }
 0x2a2   : > { %3425 = vmatpush1.bf16.msra.mxu0 %v15139_v41  ;;  %3834 = vmatprep.subr.bf16.mxu1 %v15148_v60 }
 0x2a3   : > { %3426 = vmatprep.subr.bf16.mxu0 %v15142_v55 }
 0x2a6   : > { %3427 = vmatpush1.bf16.msra.mxu0 %v15145_v59  ;;  %v18027_v59 = vrot.slane %v1015_v25, %v18013_v33 }
 0x2a7   : > { %3469 = vmatprep.subr.bf16.mxu0 %v15151_v2  ;;  %v18031_v2 = vrot.slane %v1016_v53, %v18005_v19 }
 0x318   : > { %v2123_v3 = vpop.xlane.xlu0 %2122 }
 0x319   : > { %v2152_v7 = vmul.f32 0.0026041667, %v2123_v3 }
 0x31b   : > { %v2160_v8 = vadd.f32 1e-05, %v2152_v7  ;;  %v18035_v7 = vrot.slane %v1016_v53, %v18008_v20 }
 0x31c   : > { %v2127_v9 = vpop.xlane.xlu1 %2126  ;;  %v2131_v10 = vpop.xlane.xlu0 %2130 }
 0x31d   : > { %16298 = vrsqrt.f32 %v2160_v8  ;;  %v2153_v12 = vmul.f32 0.0026041667, %v2127_v9  ;;  %v2154_v13 = vmul.f32 0.0026041667, %v2131_v10  ;;  %v18040_v10 = vrot.slane %v1016_v53, %v18013_v33 }
 0x31f   : > { %v2161_v14 = vadd.f32 1e-05, %v2153_v12  ;;  %v2162_v15 = vadd.f32 1e-05, %v2154_v13 }
 0x320   : > { %v2135_v17 = vpop.xlane.xlu1 %2134  ;;  %v2139_v23 = vpop.xlane.xlu0 %2138 }
 0x321   : > { %16300 = vrsqrt.f32 %v2161_v14  ;;  %v2155_v21 = vmul.f32 0.0026041667, %v2135_v17  ;;  %v2156_v26 = vmul.f32 0.0026041667, %v2139_v23  ;;  %v15146_v23 = vld [vmem:[%s17770_s15 + $0x18] ss:$36 sps:$4 sm:$0xff]  }
 0x322   : > { %16302 = vrsqrt.f32 %v2162_v15 }
 0x323   : > { %v2163_v27 = vadd.f32 1e-05, %v2155_v21  ;;  %v2164_v29 = vadd.f32 1e-05, %v2156_v26 }
 0x324   : > { %v2143_v30 = vpop.xlane.xlu1 %2142  ;;  %v2147_v32 = vpop.xlane.xlu0 %2146 }
 0x325   : > { %16304 = vrsqrt.f32 %v2163_v27  ;;  %v2157_v31 = vmul.f32 0.0026041667, %v2143_v30  ;;  %v2158_v34 = vmul.f32 0.0026041667, %v2147_v32 }
 0x326   : > { %16306 = vrsqrt.f32 %v2164_v29  ;;  %v15149_v29 = vld [vmem:[%s17770_s15 + $0x480] ss:$36 sps:$4 sm:$0xff]  }
 0x327   : > { %v16299_v43 = vpop.eup %16298  ;;  %v2165_v50 = vadd.f32 1e-05, %v2157_v31  ;;  %v2166_v37 = vadd.f32 1e-05, %v2158_v34  ;;  %v15154_v31 = vld [vmem:[%s17770_s15 + $0x64] ss:$36 sps:$4 sm:$0xff]  }
 0x328   : > { %v2151_v38 = vpop.xlane.xlu1 %2150  ;;  %v2177_v41 = vmul.f32 %v16299_v43, %v17875_v46  ;;  %v2178_v42 = vmul.f32 %v16299_v43, %v17878_v47  ;;  %v2176_v57 = vmul.f32 %v16299_v43, %v17872_v45 }
 0x329   : > { %16308 = vrsqrt.f32 %v2165_v50  ;;  %v2159_v55 = vmul.f32 0.0026041667, %v2151_v38 }
 0x32a   : > { %v2217_v60 = vmul.f32 %v18016_v35, %v2177_v41  ;;  %v2218_v3 = vmul.f32 %v18019_v39, %v2178_v42  ;;  %16310 = vrsqrt.f32 %v2166_v37  ;;  %v2216_v13 = vmul.f32 %v18027_v59, %v2176_v57 }
 0x32b   : > { %v16301_v46 = vpop.eup %16300  ;;  %v2167_v47 = vadd.f32 1e-05, %v2159_v55 }
 0x32c   : > { %v16303_v8 = vpop.eup %16302  ;;  %v2180_v45 = vmul.f32 %v16301_v46, %v17903_v58  ;;  %v2181_v9 = vmul.f32 %v16301_v46, %v17905_v61  ;;  %v2179_v12 = vmul.f32 %v16301_v46, %v17901_v56  ;;  %v2257_v17 = vadd.f32 %v18031_v2, %v2217_v60  ;;  %v15155_v46 = vld [vmem:[%s17770_s15 + $0x4c8] ss:$36 sps:$4 sm:$0xff]  }
 0x32d   : > { %16312 = vrsqrt.f32 %v2167_v47  ;;  %v2183_v14 = vmul.f32 %v16303_v8, %v17884_v49  ;;  %v2258_v61 = vadd.f32 %v18035_v7, %v2218_v3  ;;  %v2184_v26 = vmul.f32 %v16303_v8, %v17887_v51  ;;  %v15157_v51 = vld [vmem:[%s17770_s15 + $0x4cc] ss:$36 sps:$4 sm:$0xff]  }
 0x32e   : > { %v2220_v15 = vmul.f32 %v18016_v35, %v2180_v45  ;;  %v2221_v58 = vmul.f32 %v18019_v39, %v2181_v9  ;;  %v2219_v25 = vmul.f32 %v18027_v59, %v2179_v12  ;;  %v2182_v27 = vmul.f32 %v16303_v8, %v17881_v48 }
 0x32f   : > { %v16305_v21 = vpop.eup %16304  ;;  %v2223_v56 = vmul.f32 %v18016_v35, %v2183_v14  ;;  %v2256_v50 = vadd.f32 %v18040_v10, %v2216_v13  ;;  %v2224_v57 = vmul.f32 %v18019_v39, %v2184_v26  ;;  %v15160_v14 = vld [vmem:[%s17770_s15 + $0xac] ss:$36 sps:$4 sm:$0xff]  }
 0x330   : > { %v2260_v49 = vadd.f32 %v18031_v2, %v2220_v15  ;;  %v2261_v30 = vadd.f32 %v18035_v7, %v2221_v58  ;;  %v2186_v32 = vmul.f32 %v16305_v21, %v17909_v1  ;;  %v2187_v34 = vmul.f32 %v16305_v21, %v17911_v5  ;;  %v16307_v43 = vpop.eup %16306  ;;  %v15163_v15 = vld [vmem:[%s17770_s15 + $0x514] ss:$36 sps:$4 sm:$0xff]  }
 0x331   : > { %v2259_v53 = vadd.f32 %v18040_v10, %v2219_v25  ;;  %v2185_v48 = vmul.f32 %v16305_v21, %v17907_v63  ;;  %v2263_v55 = vadd.f32 %v18031_v2, %v2223_v56  ;;  %v15152_v63 = vld [vmem:[%s17770_s15 + $0x60] ss:$36 sps:$4 sm:$0xff]   ;;  %v2222_v47 = vmul.f32 %v18027_v59, %v2182_v27 }
 0x332   : > { %v18064_v37 = vpack.c.bf16 %v2260_v49, %v2257_v17  ;;  %v18066_v38 = vpack.c.bf16 %v2261_v30, %v2258_v61  ;;  %v2226_v41 = vmul.f32 %v18016_v35, %v2186_v32  ;;  %v2227_v1 = vmul.f32 %v18019_v39, %v2187_v34  ;;  %v15166_v30 = vld [vmem:[%s17770_s15 + $0xf4] ss:$36 sps:$4 sm:$0xff]  }
 0x333   : > { %v16309_v42 = vpop.eup %16308  ;;  %v18070_v5 = vpack.c.bf16 %v2259_v53, %v2256_v50  ;;  %v2225_v60 = vmul.f32 %v18027_v59, %v2185_v48  ;;  %v2189_v8 = vmul.f32 %v16307_v43, %v17923_v18  ;;  %v15158_v18 = vld [vmem:[%s17770_s15 + $0xa8] ss:$36 sps:$4 sm:$0xff]   ;;  %v2262_v25 = vadd.f32 %v18040_v10, %v2222_v47 }
 0x334   : > { %3428 = vmatprep.mubr.bf16.mxu0 %v18064_v37  ;;  %3648 = vmatmul.mubr.bf16.vlgmr.msra.gmra.mrb[0].mxu1 %v18066_v38  ;;  %v2266_v3 = vadd.f32 %v18031_v2, %v2226_v41  ;;  %v2267_v45 = vadd.f32 %v18035_v7, %v2227_v1  ;;  %v2192_v9 = vmul.f32 %v16309_v42, %v17929_v24  ;;  %v18085_v12 = vpop.eup %16310  ;;  %v15172_v41 = vld [vmem:[%s17770_s15 + $0x13c] ss:$36 sps:$4 sm:$0xff]   ;;  %v15175_v1 = vld [vmem:[%s17770_s15 + $0x5a4] ss:$36 sps:$4 sm:$0xff]  }
 0x335   : > { %3835 = vmatpush1.bf16.msra.mxu1 %v15146_v23  ;;  %3429 = vmatmul.mubr.bf16.vlgmr.msra.gmra.mrb[0].mxu0 %v18070_v5  ;;  %v2229_v17 = vmul.f32 %v18016_v35, %v2189_v8  ;;  %v2264_v24 = vadd.f32 %v18035_v7, %v2224_v57  ;;  %v2265_v61 = vadd.f32 %v18040_v10, %v2225_v60  ;;  %v15161_v23 = vld [vmem:[%s17770_s15 + $0x510] ss:$36 sps:$4 sm:$0xff]   ;;  %v15170_v60 = vld [vmem:[%s17770_s15 + $0x138] ss:$36 sps:$4 sm:$0xff]  }
 0x336   : > { %3470 = vmatpush1.bf16.msra.mxu0 %v15149_v29  ;;  %3836 = vmatprep.subr.bf16.mxu1 %v15154_v31  ;;  %v18087_v13 = vpack.c.bf16 %v2266_v3, %v2263_v55  ;;  %v2232_v21 = vmul.f32 %v18016_v35, %v2192_v9  ;;  %v2190_v56 = vmul.f32 %v16307_v43, %v17933_v28  ;;  %v15169_v31 = vld [vmem:[%s17770_s15 + $0x55c] ss:$36 sps:$4 sm:$0xff]  }
 0x337   : > { %v16313_v58 = vpop.eup %16312  ;;  %3471 = vmatprep.subr.bf16.mxu0 %v15157_v51  ;;  %3657 = vmatprep.mubr.bf16.mxu1 %v21342_v0  ;;  %v2193_v26 = vmul.f32 %v16309_v42, %v17941_v44  ;;  %v2191_v27 = vmul.f32 %v16309_v42, %v17927_v22  ;;  %v18103_v49 = vpack.c.bf16 %v2267_v45, %v2264_v24  ;;  %v15173_v3 = vld [vmem:[%s17770_s15 + $0x5a0] ss:$36 sps:$4 sm:$0xff]  }
 0x338   : > { %3438 = vmatprep.mubr.bf16.mxu0 %v18087_v13  ;;  %v2272_v29 = vadd.f32 %v18031_v2, %v2232_v21  ;;  %v2188_v32 = vmul.f32 %v16307_v43, %v17921_v16  ;;  %v2198_v34 = vmul.f32 %v16313_v58, %v17949_v54  ;;  %v2269_v28 = vadd.f32 %v18031_v2, %v2229_v17  ;;  %v15164_v54 = vld [vmem:[%s17770_s15 + $0xf0] ss:$36 sps:$4 sm:$0xff]   ;;  %v15167_v43 = vld [vmem:[%s17770_s15 + $0x558] ss:$36 sps:$4 sm:$0xff]  }
 0x339   : > { %3837 = vmatpush1.bf16.msra.mxu1 %v15152_v63  ;;  %v2233_v44 = vmul.f32 %v18019_v39, %v2193_v26  ;;  %v2195_v22 = vmul.f32 %v18085_v12, %v17945_v36  ;;  %v18114_v50 = vpack.c.bf16 %v2265_v61, %v2262_v25  ;;  %v2231_v53 = vmul.f32 %v18027_v59, %v2191_v27  ;;  %v15181_v17 = vld [vmem:[%s17770_s15 + $0x5ec] ss:$36 sps:$4 sm:$0xff]   ;;  %v15187_v21 = vld [vmem:[%s17770_s15 + $0x634] ss:$36 sps:$4 sm:$0xff]  }
 0x33a   : > { %3472 = vmatpush1.bf16.msra.mxu0 %v15155_v46  ;;  %3838 = vmatprep.subr.bf16.mxu1 %v15160_v14  ;;  %v18118_v16 = vpack.c.bf16 %v2272_v29, %v2269_v28  ;;  %v2230_v51 = vmul.f32 %v18019_v39, %v2190_v56  ;;  %v2238_v48 = vmul.f32 %v18016_v35, %v2198_v34  ;;  %v15184_v61 = vld [vmem:[%s17770_s15 + $0x1cc] ss:$36 sps:$4 sm:$0xff]   ;;  %v15190_v29 = vld [vmem:[%s17770_s15 + $0x214] ss:$36 sps:$4 sm:$0xff]  }
 0x33b   : > { %3473 = vmatprep.subr.bf16.mxu0 %v15163_v15  ;;  %v2228_v36 = vmul.f32 %v18027_v59, %v2188_v32  ;;  %v2273_v42 = vadd.f32 %v18035_v7, %v2233_v44  ;;  %v2235_v55 = vmul.f32 %v18016_v35, %v2195_v22  ;;  %v2199_v57 = vmul.f32 %v16313_v58, %v17963_v6  ;;  %v15178_v15 = vld [vmem:[%s17770_s15 + $0x184] ss:$36 sps:$4 sm:$0xff]   ;;  %v15185_v56 = vld [vmem:[%s17770_s15 + $0x630] ss:$36 sps:$4 sm:$0xff]   ;;  %v15194_v28 = vld [vmem:[%s17770_s15 + $0x258] ss:$36 sps:$4 sm:$0xff]  }
 0x33c   : > { %3658 = vmatmul.mubr.bf16.gmra.mrb[4].mxu1 %v18103_v49  ;;  %v2271_v63 = vadd.f32 %v18040_v10, %v2231_v53  ;;  %v2270_v46 = vadd.f32 %v18035_v7, %v2230_v51  ;;  %v2278_v47 = vadd.f32 %v18031_v2, %v2238_v48  ;;  %v2196_v35 = vmul.f32 %v18085_v12, %v17957_v62  ;;  %v15182_v25 = vld [vmem:[%s17770_s15 + $0x1c8] ss:$36 sps:$4 sm:$0xff]   ;;  %v15188_v32 = vld [vmem:[%s17770_s15 + $0x210] ss:$36 sps:$4 sm:$0xff]   ;;  %v15211_v48 = vld [vmem:[%s17770_s15 + $0x9c] ss:$36 sps:$4 sm:$0xff]  }
 0x33d   : > { %3839 = vmatpush1.bf16.msra.mxu1 %v15158_v18  ;;  %3439 = vmatmul.mubr.bf16.gmra.mrb[4].mxu0 %v18114_v50  ;;  %v2197_v6 = vmul.f32 %v16313_v58, %v17947_v40  ;;  %v2268_v8 = vadd.f32 %v18040_v10, %v2228_v36  ;;  %v2194_v45 = vmul.f32 %v18085_v12, %v17943_v52  ;;  %v15176_v58 = vld [vmem:[%s17770_s15 + $0x180] ss:$36 sps:$4 sm:$0xff]   ;;  %v15179_v12 = vld [vmem:[%s17770_s15 + $0x5e8] ss:$36 sps:$4 sm:$0xff]   ;;  %v15205_v53 = vld [vmem:[%s17770_s15 + $0x54] ss:$36 sps:$4 sm:$0xff]  }
 0x33e   : > { %3474 = vmatpush1.bf16.msra.mxu0 %v15161_v23  ;;  %3448 = vmatprep.mubr.bf16.mxu0 %v18118_v16  ;;  %v18144_v9 = vpack.c.bf16 %v2273_v42, %v2270_v46  ;;  %v2275_v14 = vadd.f32 %v18031_v2, %v2235_v55  ;;  %v2239_v62 = vmul.f32 %v18019_v39, %v2199_v57  ;;  %v15199_v34 = vld [vmem:[%s17770_s15 + $0xc] ss:$36 sps:$4 sm:$0xff]   ;;  %v15202_v22 = vld [vmem:[%s17770_s15 + $0x2a4] ss:$36 sps:$4 sm:$0xff]  }
 0x33f   : > { %3840 = vmatprep.subr.bf16.mxu1 %v15166_v30  ;;  %3475 = vmatprep.subr.bf16.mxu0 %v15169_v31  ;;  %v18150_v40 = vpack.c.bf16 %v2271_v63, %v2268_v8  ;;  %v2237_v18 = vmul.f32 %v18027_v59, %v2197_v6  ;;  %v2236_v2 = vmul.f32 %v18019_v39, %v2196_v35  ;;  %v15193_v30 = vld [vmem:[%s17770_s15 + $0x67c] ss:$36 sps:$4 sm:$0xff]   ;;  %v15197_v44 = vld [vmem:[%s17770_s15 + $0x8] ss:$36 sps:$4 sm:$0xff]   ;;  %v15212_v55 = vld [vmem:[%s17770_s15 + $0x330] ss:$36 sps:$4 sm:$0xff]  }
 0x340   : > { %3667 = vmatprep.mubr.bf16.mxu1 %v21342_v0  ;;  %v18155_v52 = vpack.c.bf16 %v2278_v47, %v2275_v14  ;;  %v2234_v24 = vmul.f32 %v18027_v59, %v2194_v45  ;;  %v2279_v23 = vadd.f32 %v18035_v7, %v2239_v62  ;;  %v15208_v51 = vld [vmem:[%s17770_s15 + $0x2ec] ss:$36 sps:$4 sm:$0xff]   ;;  %v15217_v42 = vld [vmem:[%s17770_s15 + $0xe4] ss:$36 sps:$4 sm:$0xff]   ;;  %v15229_v35 = vld [vmem:[%s17770_s15 + $0x174] ss:$36 sps:$4 sm:$0xff]  }
 0x341   : > { %3841 = vmatpush1.bf16.msra.mxu1 %v15164_v54  ;;  %v2277_v39 = vadd.f32 %v18040_v10, %v2237_v18  ;;  %v2276_v59 = vadd.f32 %v18035_v7, %v2236_v2  ;;  %v15191_v7 = vld [vmem:[%s17770_s15 + $0x678] ss:$36 sps:$4 sm:$0xff]   ;;  %v15200_v54 = vld [vmem:[%s17770_s15 + $0x2a0] ss:$36 sps:$4 sm:$0xff]   ;;  %v15206_v36 = vld [vmem:[%s17770_s15 + $0x2e8] ss:$36 sps:$4 sm:$0xff]  }
 0x342   : > { %3476 = vmatpush1.bf16.msra.mxu0 %v15167_v43  ;;  %3842 = vmatprep.subr.bf16.mxu1 %v15172_v41  ;;  %v2274_v26 = vadd.f32 %v18040_v10, %v2234_v24  ;;  %v15196_v10 = vld [vmem:[%s17770_s15 + $0x25c] ss:$36 sps:$4 sm:$0xff]   ;;  %v15203_v43 = vld [vmem:[%s17770_s15 + $0x50] ss:$36 sps:$4 sm:$0xff]   ;;  %v15221_v46 = vld [vmem:[%s17770_s15 + $0x128] ss:$36 sps:$4 sm:$0xff]  }
 0x343   : > { %3477 = vmatprep.subr.bf16.mxu0 %v15175_v1  ;;  %v18171_v27 = vpack.c.bf16 %v2279_v23, %v2276_v59  ;;  %v15209_v41 = vld [vmem:[%s17770_s15 + $0x98] ss:$36 sps:$4 sm:$0xff]   ;;  %v15215_v57 = vld [vmem:[%s17770_s15 + $0xe0] ss:$36 sps:$4 sm:$0xff]   ;;  %v15223_v63 = vld [vmem:[%s17770_s15 + $0x12c] ss:$36 sps:$4 sm:$0xff]  }
 0x344   : > { %3668 = vmatmul.mubr.bf16.gmra.mrb[8].mxu1 %v18144_v9  ;;  %v18175_v31 = vpack.c.bf16 %v2277_v39, %v2274_v26  ;;  %v15214_v1 = vld [vmem:[%s17770_s15 + $0x334] ss:$36 sps:$4 sm:$0xff]   ;;  %v15226_v47 = vld [vmem:[%s17770_s15 + $0x3c4] ss:$36 sps:$4 sm:$0xff]   ;;  %v15232_v45 = vld [vmem:[%s17770_s15 + $0x40c] ss:$36 sps:$4 sm:$0xff]  }
 0x345   : > { %3843 = vmatpush1.bf16.msra.mxu1 %v15170_v60  ;;  %3449 = vmatmul.mubr.bf16.gmra.mrb[8].mxu0 %v18150_v40  ;;  %v15220_v60 = vld [vmem:[%s17770_s15 + $0x37c] ss:$36 sps:$4 sm:$0xff]   ;;  %v15227_v8 = vld [vmem:[%s17770_s15 + $0x170] ss:$36 sps:$4 sm:$0xff]   ;;  %v15250_v23 = vld [vmem:[%s17770_s15 + $0x4e4] ss:$36 sps:$4 sm:$0xff]  }
 0x346   : > { %3478 = vmatpush1.bf16.msra.mxu0 %v15173_v3  ;;  %3458 = vmatprep.mubr.bf16.mxu0 %v18155_v52  ;;  %v15218_v3 = vld [vmem:[%s17770_s15 + $0x378] ss:$36 sps:$4 sm:$0xff]   ;;  %v15224_v6 = vld [vmem:[%s17770_s15 + $0x3c0] ss:$36 sps:$4 sm:$0xff]   ;;  %v15236_v18 = vld [vmem:[%s17770_s15 + $0x450] ss:$36 sps:$4 sm:$0xff]  }
 0x347   : > { %3844 = vmatprep.subr.bf16.mxu1 %v15178_v15  ;;  %3479 = vmatprep.subr.bf16.mxu0 %v15181_v17  ;;  %v15235_v14 = vld [vmem:[%s17770_s15 + $0x1bc] ss:$36 sps:$4 sm:$0xff]   ;;  %v15230_v15 = vld [vmem:[%s17770_s15 + $0x408] ss:$36 sps:$4 sm:$0xff]   ;;  %v15238_v62 = vld [vmem:[%s17770_s15 + $0x454] ss:$36 sps:$4 sm:$0xff]  }
 0x348   : > { %3677 = vmatprep.mubr.bf16.mxu1 %v21342_v0  ;;  %v15233_v17 = vld [vmem:[%s17770_s15 + $0x1b8] ss:$36 sps:$4 sm:$0xff]   ;;  %v15247_v24 = vld [vmem:[%s17770_s15 + $0x24c] ss:$36 sps:$4 sm:$0xff]   ;;  %v15248_v39 = vld [vmem:[%s17770_s15 + $0x4e0] ss:$36 sps:$4 sm:$0xff]  }
 0x349   : > { %3845 = vmatpush1.bf16.msra.mxu1 %v15176_v58  ;;  %v15241_v58 = vld [vmem:[%s17770_s15 + $0x204] ss:$36 sps:$4 sm:$0xff]   ;;  %v15244_v2 = vld [vmem:[%s17770_s15 + $0x49c] ss:$36 sps:$4 sm:$0xff]   ;;  %v15256_v59 = vld [vmem:[%s17770_s15 + $0x52c] ss:$36 sps:$4 sm:$0xff]  }
 0x34a   : > { %3480 = vmatpush1.bf16.msra.mxu0 %v15179_v12  ;;  %3846 = vmatprep.subr.bf16.mxu1 %v15184_v61  ;;  %v15239_v12 = vld [vmem:[%s17770_s15 + $0x200] ss:$36 sps:$4 sm:$0xff]   ;;  %v15242_v61 = vld [vmem:[%s17770_s15 + $0x498] ss:$36 sps:$4 sm:$0xff]   ;;  %v15254_v26 = vld [vmem:[%s17770_s15 + $0x528] ss:$36 sps:$4 sm:$0xff]  }
 0x34b   : > { %3481 = vmatprep.subr.bf16.mxu0 %v15187_v21  ;;  %v15245_v21 = vld [vmem:[%s17770_s15 + $0x248] ss:$36 sps:$4 sm:$0xff]  }
 0x34c   : > { %3678 = vmatmul.mubr.bf16.gmra.mrb[12].mxu1 %v18171_v27 }
 0x34d   : > { %3847 = vmatpush1.bf16.msra.mxu1 %v15182_v25  ;;  %3459 = vmatmul.mubr.bf16.gmra.mrb[12].mxu0 %v18175_v31  ;;  %v15253_v25 = vld [vmem:[%s17770_s15 + $0x294] ss:$36 sps:$4 sm:$0xff]  }
 0x34e   : > { %3482 = vmatpush1.bf16.msra.mxu0 %v15185_v56  ;;  %3866 = vmatprep.mubr.bf16.mxu1 %v18064_v37  ;;  %v15251_v56 = vld [vmem:[%s17770_s15 + $0x290] ss:$36 sps:$4 sm:$0xff]  }
 0x34f   : > { %3848 = vmatprep.subr.bf16.mxu1 %v15190_v29  ;;  %3483 = vmatprep.subr.bf16.mxu0 %v15193_v30  ;;  %v15259_v29 = vld [vmem:[%s17770_s15 + $0x2dc] ss:$36 sps:$4 sm:$0xff]  }
 0x350   : > { %3501 = vmatprep.mubr.bf16.mxu0 %v21342_v0  ;;  %v15257_v30 = vld [vmem:[%s17770_s15 + $0x2d8] ss:$36 sps:$4 sm:$0xff]  }
 0x351   : > { %3849 = vmatpush1.bf16.msra.mxu1 %v15188_v32  ;;  %v15262_v32 = vld [vmem:[%s17770_s15 + $0x574] ss:$36 sps:$4 sm:$0xff]  }
 0x352   : > { %3484 = vmatpush1.bf16.msra.mxu0 %v15191_v7  ;;  %3850 = vmatprep.subr.bf16.mxu1 %v15196_v10  ;;  %v15265_v7 = vld [vmem:[%s17770_s15 + $0x324] ss:$36 sps:$4 sm:$0xff]   ;;  %v15260_v10 = vld [vmem:[%s17770_s15 + $0x570] ss:$36 sps:$4 sm:$0xff]  }
 0x353   : > { %3542 = vmatprep.subr.bf16.mxu0 %v15199_v34  ;;  %v15263_v34 = vld [vmem:[%s17770_s15 + $0x320] ss:$36 sps:$4 sm:$0xff]  }
 0x355   : > { %3851 = vmatpush1.bf16.msra.mxu1 %v15194_v28  ;;  %3502 = vmatmul.mubr.bf16.vlgmr.msra.gmra.mrb[0].mxu0 %v18066_v38  ;;  %v15268_v28 = vld [vmem:[%s17770_s15 + $0x5bc] ss:$36 sps:$4 sm:$0xff]  }
 0x356   : > { %3543 = vmatpush1.bf16.msra.mxu0 %v15197_v44  ;;  %3852 = vmatprep.subr.bf16.mxu1 %v15202_v22  ;;  %v15266_v44 = vld [vmem:[%s17770_s15 + $0x5b8] ss:$36 sps:$4 sm:$0xff]   ;;  %v15271_v22 = vld [vmem:[%s17770_s15 + $0x36c] ss:$36 sps:$4 sm:$0xff]  }
 0x357   : > { %3544 = vmatprep.subr.bf16.mxu0 %v15205_v53  ;;  %3511 = vmatprep.mubr.bf16.mxu0 %v21342_v0  ;;  %v15269_v53 = vld [vmem:[%s17770_s15 + $0x368] ss:$36 sps:$4 sm:$0xff]  }
 0x359   : > { %3853 = vmatpush1.bf16.msra.mxu1 %v15200_v54  ;;  %v15274_v54 = vld [vmem:[%s17770_s15 + $0x604] ss:$36 sps:$4 sm:$0xff]  }
 0x35a   : > { %3545 = vmatpush1.bf16.msra.mxu0 %v15203_v43  ;;  %3854 = vmatprep.subr.bf16.mxu1 %v15208_v51  ;;  %v15277_v43 = vld [vmem:[%s17770_s15 + $0x3b4] ss:$36 sps:$4 sm:$0xff]   ;;  %v15272_v51 = vld [vmem:[%s17770_s15 + $0x600] ss:$36 sps:$4 sm:$0xff]  }
 0x35b   : > { %3546 = vmatprep.subr.bf16.mxu0 %v15211_v48  ;;  %v15275_v48 = vld [vmem:[%s17770_s15 + $0x3b0] ss:$36 sps:$4 sm:$0xff]  }
 0x35d   : > { %3855 = vmatpush1.bf16.msra.mxu1 %v15206_v36  ;;  %3512 = vmatmul.mubr.bf16.gmra.mrb[4].mxu0 %v18103_v49  ;;  %v15280_v36 = vld [vmem:[%s17770_s15 + $0x64c] ss:$36 sps:$4 sm:$0xff]  }
 0x35e   : > { %3547 = vmatpush1.bf16.msra.mxu0 %v15209_v41  ;;  %3856 = vmatprep.subr.bf16.mxu1 %v15214_v1  ;;  %v15283_v41 = vld [vmem:[%s17770_s15 + $0x3fc] ss:$36 sps:$4 sm:$0xff]   ;;  %v15278_v1 = vld [vmem:[%s17770_s15 + $0x648] ss:$36 sps:$4 sm:$0xff]  }
 0x35f   : > { %3548 = vmatprep.subr.bf16.mxu0 %v15217_v42  ;;  %3521 = vmatprep.mubr.bf16.mxu0 %v21342_v0  ;;  %v15281_v42 = vld [vmem:[%s17770_s15 + $0x3f8] ss:$36 sps:$4 sm:$0xff]  }
 0x361   : > { %3857 = vmatpush1.bf16.msra.mxu1 %v15212_v55  ;;  %v15286_v55 = vld [vmem:[%s17770_s15 + $0x694] ss:$36 sps:$4 sm:$0xff]  }
 0x362   : > { %3549 = vmatpush1.bf16.msra.mxu0 %v15215_v57  ;;  %3858 = vmatprep.subr.bf16.mxu1 %v15220_v60  ;;  %v15289_v57 = vld [vmem:[%s17770_s15 + $0x444] ss:$36 sps:$4 sm:$0xff]   ;;  %v15284_v60 = vld [vmem:[%s17770_s15 + $0x690] ss:$36 sps:$4 sm:$0xff]  }
 0x363   : > { %3550 = vmatprep.subr.bf16.mxu0 %v15223_v63  ;;  %v15287_v63 = vld [vmem:[%s17770_s15 + $0x440] ss:$36 sps:$4 sm:$0xff]  }
 0x365   : > { %3859 = vmatpush1.bf16.msra.mxu1 %v15218_v3  ;;  %3522 = vmatmul.mubr.bf16.gmra.mrb[8].mxu0 %v18144_v9  ;;  %v15290_v3 = vld [vmem:[%s17770_s15 + $0x4a0] ss:$36 sps:$4 sm:$0xff]  }
 0x366   : > { %3551 = vmatpush1.bf16.msra.mxu0 %v15221_v46  ;;  %3860 = vmatprep.subr.bf16.mxu1 %v15226_v47  ;;  %v15293_v46 = vld [vmem:[%s17770_s15 + $0x14] ss:$36 sps:$4 sm:$0xff]  }
 0x367   : > { %3552 = vmatprep.subr.bf16.mxu0 %v15229_v35  ;;  %3531 = vmatprep.mubr.bf16.mxu0 %v21342_v0  ;;  %v15291_v47 = vld [vmem:[%s17770_s15 + $0x10] ss:$36 sps:$4 sm:$0xff]   ;;  %v15294_v35 = vld [vmem:[%s17770_s15 + $0x4e8] ss:$36 sps:$4 sm:$0xff]  }
 0x369   : > { %3861 = vmatpush1.bf16.msra.mxu1 %v15224_v6  ;;  %v15297_v6 = vld [vmem:[%s17770_s15 + $0x5c] ss:$36 sps:$4 sm:$0xff]  }
 0x36a   : > { %3553 = vmatpush1.bf16.msra.mxu0 %v15227_v8  ;;  %3862 = vmatprep.subr.bf16.mxu1 %v15232_v45  ;;  %v15295_v8 = vld [vmem:[%s17770_s15 + $0x58] ss:$36 sps:$4 sm:$0xff]   ;;  %v15298_v45 = vld [vmem:[%s17770_s15 + $0x530] ss:$36 sps:$4 sm:$0xff]  }
 0x36b   : > { %3554 = vmatprep.subr.bf16.mxu0 %v15235_v14  ;;  %v15301_v14 = vld [vmem:[%s17770_s15 + $0xa4] ss:$36 sps:$4 sm:$0xff]  }
 0x36d   : > { %3863 = vmatpush1.bf16.msra.mxu1 %v15230_v15  ;;  %3532 = vmatmul.mubr.bf16.gmra.mrb[12].mxu0 %v18171_v27  ;;  %v15299_v15 = vld [vmem:[%s17770_s15 + $0xa0] ss:$36 sps:$4 sm:$0xff]  }
 0x36e   : > { %3555 = vmatpush1.bf16.msra.mxu0 %v15233_v17  ;;  %3574 = vmatprep.mubr.bf16.mxu0 %v18064_v37  ;;  %v15302_v17 = vld [vmem:[%s17770_s15 + $0x578] ss:$36 sps:$4 sm:$0xff]  }
 0x36f   : > { %3864 = vmatprep.subr.bf16.mxu1 %v15238_v62  ;;  %3556 = vmatprep.subr.bf16.mxu0 %v15241_v58  ;;  %v15305_v62 = vld [vmem:[%s17770_s15 + $0xec] ss:$36 sps:$4 sm:$0xff]  }
 0x370   : > { %v15303_v58 = vld [vmem:[%s17770_s15 + $0xe8] ss:$36 sps:$4 sm:$0xff]  }
 0x371   : > { %3865 = vmatpush1.bf16.msra.mxu1 %v15236_v18  ;;  %v15306_v18 = vld [vmem:[%s17770_s15 + $0x5c0] ss:$36 sps:$4 sm:$0xff]  }
 0x372   : > { %3557 = vmatpush1.bf16.msra.mxu0 %v15239_v12  ;;  %3907 = vmatprep.subr.bf16.mxu1 %v15244_v2  ;;  %v15309_v12 = vld [vmem:[%s17770_s15 + $0x134] ss:$36 sps:$4 sm:$0xff]  }
 0x373   : > { %3558 = vmatprep.subr.bf16.mxu0 %v15247_v24  ;;  %v15307_v2 = vld [vmem:[%s17770_s15 + $0x130] ss:$36 sps:$4 sm:$0xff]   ;;  %v15310_v24 = vld [vmem:[%s17770_s15 + $0x608] ss:$36 sps:$4 sm:$0xff]  }
 0x374   : > { %3867 = vmatmul.mubr.bf16.vlgmr.msra.gmra.mrb[16].mxu1 %v18070_v5 }
 0x375   : > { %3876 = vmatprep.mubr.bf16.mxu1 %v18087_v13  ;;  %3908 = vmatpush1.bf16.msra.mxu1 %v15242_v61  ;;  %v15313_v61 = vld [vmem:[%s17770_s15 + $0x17c] ss:$36 sps:$4 sm:$0xff]  }
 0x376   : > { %3559 = vmatpush1.bf16.msra.mxu0 %v15245_v21  ;;  %3909 = vmatprep.subr.bf16.mxu1 %v15250_v23  ;;  %v15311_v21 = vld [vmem:[%s17770_s15 + $0x178] ss:$36 sps:$4 sm:$0xff]   ;;  %v15314_v23 = vld [vmem:[%s17770_s15 + $0x650] ss:$36 sps:$4 sm:$0xff]  }
 0x377   : > { %3560 = vmatprep.subr.bf16.mxu0 %v15253_v25  ;;  %v15317_v25 = vld [vmem:[%s17770_s15 + $0x1c4] ss:$36 sps:$4 sm:$0xff]  }
 0x379   : > { %3910 = vmatpush1.bf16.msra.mxu1 %v15248_v39  ;;  %v15315_v39 = vld [vmem:[%s17770_s15 + $0x1c0] ss:$36 sps:$4 sm:$0xff]  }
 0x37a   : > { %3561 = vmatpush1.bf16.msra.mxu0 %v15251_v56  ;;  %3911 = vmatprep.subr.bf16.mxu1 %v15256_v59  ;;  %v15318_v56 = vld [vmem:[%s17770_s15 + $0x698] ss:$36 sps:$4 sm:$0xff]   ;;  %v15321_v59 = vld [vmem:[%s17770_s15 + $0x20c] ss:$36 sps:$4 sm:$0xff]  }
 0x37b   : > { %3562 = vmatprep.subr.bf16.mxu0 %v15259_v29  ;;  %v15324_v29 = vld [vmem:[%s17770_s15 + $0x254] ss:$36 sps:$4 sm:$0xff]  }
 0x37c   : > { %3877 = vmatmul.mubr.bf16.gmra.mrb[20].mxu1 %v18114_v50 }
 0x37d   : > { %3886 = vmatprep.mubr.bf16.mxu1 %v18118_v16  ;;  %3912 = vmatpush1.bf16.msra.mxu1 %v15254_v26  ;;  %v15319_v26 = vld [vmem:[%s17770_s15 + $0x208] ss:$36 sps:$4 sm:$0xff]  }
 0x37e   : > { %3563 = vmatpush1.bf16.msra.mxu0 %v15257_v30  ;;  %3913 = vmatprep.subr.bf16.mxu1 %v15262_v32  ;;  %v15322_v30 = vld [vmem:[%s17770_s15 + $0x250] ss:$36 sps:$4 sm:$0xff]   ;;  %v15327_v32 = vld [vmem:[%s17770_s15 + $0x29c] ss:$36 sps:$4 sm:$0xff]  }
 0x37f   : > { %3564 = vmatprep.subr.bf16.mxu0 %v15265_v7  ;;  %v15325_v7 = vld [vmem:[%s17770_s15 + $0x298] ss:$36 sps:$4 sm:$0xff]  }
 0x381   : > { %3914 = vmatpush1.bf16.msra.mxu1 %v15260_v10  ;;  %v15330_v10 = vld [vmem:[%s17770_s15 + $0x2e4] ss:$36 sps:$4 sm:$0xff]  }
 0x382   : > { %3565 = vmatpush1.bf16.msra.mxu0 %v15263_v34  ;;  %3915 = vmatprep.subr.bf16.mxu1 %v15268_v28  ;;  %v15328_v34 = vld [vmem:[%s17770_s15 + $0x2e0] ss:$36 sps:$4 sm:$0xff]   ;;  %v15333_v28 = vld [vmem:[%s17770_s15 + $0x32c] ss:$36 sps:$4 sm:$0xff]  }
 0x383   : > { %3566 = vmatprep.subr.bf16.mxu0 %v15271_v22  ;;  %v15336_v22 = vld [vmem:[%s17770_s15 + $0x374] ss:$36 sps:$4 sm:$0xff]  }
 0x384   : > { %3887 = vmatmul.mubr.bf16.gmra.mrb[24].mxu1 %v18150_v40 }
 0x385   : > { %3896 = vmatprep.mubr.bf16.mxu1 %v18155_v52  ;;  %3916 = vmatpush1.bf16.msra.mxu1 %v15266_v44  ;;  %v15331_v44 = vld [vmem:[%s17770_s15 + $0x328] ss:$36 sps:$4 sm:$0xff]  }
 0x386   : > { %3567 = vmatpush1.bf16.msra.mxu0 %v15269_v53  ;;  %3917 = vmatprep.subr.bf16.mxu1 %v15274_v54  ;;  %v15334_v53 = vld [vmem:[%s17770_s15 + $0x370] ss:$36 sps:$4 sm:$0xff]   ;;  %v15339_v54 = vld [vmem:[%s17770_s15 + $0x3bc] ss:$36 sps:$4 sm:$0xff]  }
 0x387   : > { %3568 = vmatprep.subr.bf16.mxu0 %v15277_v43  ;;  %v15337_v43 = vld [vmem:[%s17770_s15 + $0x3b8] ss:$36 sps:$4 sm:$0xff]  }
 0x389   : > { %3918 = vmatpush1.bf16.msra.mxu1 %v15272_v51  ;;  %v15342_v51 = vld [vmem:[%s17770_s15 + $0x404] ss:$36 sps:$4 sm:$0xff]  }
 0x38a   : > { %3569 = vmatpush1.bf16.msra.mxu0 %v15275_v48  ;;  %3919 = vmatprep.subr.bf16.mxu1 %v15280_v36  ;;  %v15340_v48 = vld [vmem:[%s17770_s15 + $0x400] ss:$36 sps:$4 sm:$0xff]   ;;  %v15345_v36 = vld [vmem:[%s17770_s15 + $0x44c] ss:$36 sps:$4 sm:$0xff]  }
 0x38b   : > { %3570 = vmatprep.subr.bf16.mxu0 %v15283_v41  ;;  %v15343_v41 = vld [vmem:[%s17770_s15 + $0x448] ss:$36 sps:$4 sm:$0xff]  }
 0x38c   : > { %3897 = vmatmul.mubr.bf16.gmra.mrb[28].mxu1 %v18175_v31 }
 0x38d   : > { %3920 = vmatpush1.bf16.msra.mxu1 %v15278_v1  ;;  %3939 = vmatprep.mubr.bf16.mxu1 %v21342_v0  ;;  %v15348_v1 = vld [vmem:[%s17770_s15 + $0x494] ss:$36 sps:$4 sm:$0xff]  }
 0x38e   : > { %3571 = vmatpush1.bf16.msra.mxu0 %v15281_v42  ;;  %3921 = vmatprep.subr.bf16.mxu1 %v15286_v55  ;;  %v15346_v42 = vld [vmem:[%s17770_s15 + $0x490] ss:$36 sps:$4 sm:$0xff]   ;;  %v15351_v55 = vld [vmem:[%s17770_s15 + $0x4dc] ss:$36 sps:$4 sm:$0xff]  }
 0x38f   : > { %3572 = vmatprep.subr.bf16.mxu0 %v15289_v57  ;;  %v15349_v57 = vld [vmem:[%s17770_s15 + $0x4d8] ss:$36 sps:$4 sm:$0xff]  }
 0x391   : > { %3922 = vmatpush1.bf16.msra.mxu1 %v15284_v60  ;;  %v15354_v60 = vld [vmem:[%s17770_s15 + $0x524] ss:$36 sps:$4 sm:$0xff]  }
 0x392   : > { %3573 = vmatpush1.bf16.msra.mxu0 %v15287_v63  ;;  %14129 = vmatprep.subr.bf16.mxu1 %v15290_v3  ;;  %v15352_v63 = vld [vmem:[%s17770_s15 + $0x520] ss:$36 sps:$4 sm:$0xff]  }
 0x393   : > { %3688 = vmatprep.subr.bf16.mxu0 %v15293_v46  ;;  %v15355_v46 = vld [vmem:[%s17770_s15 + $0x568] ss:$36 sps:$4 sm:$0xff]  }
 0x394   : > { %3940 = vmatmul.mubr.bf16.vlgmr.msra.gmra.mrb[16].mxu1 %v18066_v38 }
 0x395   : > { %3575 = vmatmul.mubr.bf16.vlgmr.msra.gmra.mrb[16].mxu0 %v18070_v5  ;;  %14130 = vmatpush3.bf16.msra.mxu1 %v15290_v3  ;;  %v15357_v3 = vld [vmem:[%s17770_s15 + $0x56c] ss:$36 sps:$4 sm:$0xff]  }
 0x396   : > { %3584 = vmatprep.mubr.bf16.mxu0 %v18087_v13  ;;  %3689 = vmatpush1.bf16.msra.mxu0 %v15291_v47  ;;  %v15360_v47 = vld [vmem:[%s17770_s15 + $0x5b4] ss:$36 sps:$4 sm:$0xff]  }
 0x397   : > { %14131 = vmatprep.subr.bf16.mxu1 %v15294_v35  ;;  %3690 = vmatprep.subr.bf16.mxu0 %v15297_v6  ;;  %v15363_v6 = vld [vmem:[%s17770_s15 + $0x5fc] ss:$36 sps:$4 sm:$0xff]  }
 0x398   : > { %3949 = vmatprep.mubr.bf16.mxu1 %v21342_v0 }
 0x399   : > { %14132 = vmatpush3.bf16.msra.mxu1 %v15294_v35  ;;  %v15358_v35 = vld [vmem:[%s17770_s15 + $0x5b0] ss:$36 sps:$4 sm:$0xff]  }
 0x39a   : > { %3691 = vmatpush1.bf16.msra.mxu0 %v15295_v8  ;;  %14133 = vmatprep.subr.bf16.mxu1 %v15298_v45  ;;  %v15361_v8 = vld [vmem:[%s17770_s15 + $0x5f8] ss:$36 sps:$4 sm:$0xff]  }
 0x39b   : > { %3692 = vmatprep.subr.bf16.mxu0 %v15301_v14  ;;  %v15364_v14 = vld [vmem:[%s17770_s15 + $0x640] ss:$36 sps:$4 sm:$0xff]  }
 0x39c   : > { %3950 = vmatmul.mubr.bf16.gmra.mrb[20].mxu1 %v18103_v49 }
 0x39d   : > { %3585 = vmatmul.mubr.bf16.gmra.mrb[20].mxu0 %v18114_v50  ;;  %14134 = vmatpush3.bf16.msra.mxu1 %v15298_v45  ;;  %v15366_v45 = vld [vmem:[%s17770_s15 + $0x644] ss:$36 sps:$4 sm:$0xff]  }
 0x39e   : > { %3594 = vmatprep.mubr.bf16.mxu0 %v18118_v16  ;;  %3693 = vmatpush1.bf16.msra.mxu0 %v15299_v15  ;;  %v15369_v15 = vld [vmem:[%s17770_s15 + $0x68c] ss:$36 sps:$4 sm:$0xff]  }
 0x39f   : > { %14135 = vmatprep.subr.bf16.mxu1 %v15302_v17  ;;  %3694 = vmatprep.subr.bf16.mxu0 %v15305_v62  ;;  %v15370_v62 = vld [vmem:[%s17770_s15 + $0x260] ss:$36 sps:$4 sm:$0xff]  }
 0x3a0   : > { %3959 = vmatprep.mubr.bf16.mxu1 %v21342_v0 }
 0x3a1   : > { %14136 = vmatpush3.bf16.msra.mxu1 %v15302_v17  ;;  %v15367_v17 = vld [vmem:[%s17770_s15 + $0x688] ss:$36 sps:$4 sm:$0xff]  }
 0x3a2   : > { %3695 = vmatpush1.bf16.msra.mxu0 %v15303_v58  ;;  %14137 = vmatprep.subr.bf16.mxu1 %v15306_v18  ;;  %v15371_v58 = vld [vmem:[%s17770_s15 + $0x20] ss:$36 sps:$4 sm:$0xff]  }
 0x3a3   : > { %3696 = vmatprep.subr.bf16.mxu0 %v15309_v12  ;;  %v15373_v12 = vld [vmem:[%s17770_s15 + $0x68] ss:$36 sps:$4 sm:$0xff]  }
 0x3a4   : > { %3960 = vmatmul.mubr.bf16.gmra.mrb[24].mxu1 %v18144_v9 }
 0x3a5   : > { %3595 = vmatmul.mubr.bf16.gmra.mrb[24].mxu0 %v18150_v40  ;;  %14138 = vmatpush3.bf16.msra.mxu1 %v15306_v18  ;;  %v15372_v18 = vld [vmem:[%s17770_s15 + $0x2a8] ss:$36 sps:$4 sm:$0xff]  }
 0x3a6   : > { %3604 = vmatprep.mubr.bf16.mxu0 %v18155_v52  ;;  %3697 = vmatpush1.bf16.msra.mxu0 %v15307_v2  ;;  %v15374_v2 = vld [vmem:[%s17770_s15 + $0x2f0] ss:$36 sps:$4 sm:$0xff]  }
 0x3a7   : > { %14139 = vmatprep.subr.bf16.mxu1 %v15310_v24  ;;  %3698 = vmatprep.subr.bf16.mxu0 %v15313_v61  ;;  %v15376_v61 = vld [vmem:[%s17770_s15 + $0x338] ss:$36 sps:$4 sm:$0xff]  }
 0x3a8   : > { %3969 = vmatprep.mubr.bf16.mxu1 %v21342_v0 }
 0x3a9   : > { %14140 = vmatpush3.bf16.msra.mxu1 %v15310_v24  ;;  %v15375_v24 = vld [vmem:[%s17770_s15 + $0xb0] ss:$36 sps:$4 sm:$0xff]  }
 0x3aa   : > { %3699 = vmatpush1.bf16.msra.mxu0 %v15311_v21  ;;  %14141 = vmatprep.subr.bf16.mxu1 %v15314_v23  ;;  %v15377_v21 = vld [vmem:[%s17770_s15 + $0xf8] ss:$36 sps:$4 sm:$0xff]  }
 0x3ab   : > { %3700 = vmatprep.subr.bf16.mxu0 %v15317_v25  ;;  %v15380_v25 = vld [vmem:[%s17770_s15 + $0x3c8] ss:$36 sps:$4 sm:$0xff]  }
 0x3ac   : > { %3970 = vmatmul.mubr.bf16.gmra.mrb[28].mxu1 %v18171_v27 }
 0x3ad   : > { %3605 = vmatmul.mubr.bf16.gmra.mrb[28].mxu0 %v18175_v31  ;;  %14142 = vmatpush3.bf16.msra.mxu1 %v15314_v23  ;;  %v15379_v23 = vld [vmem:[%s17770_s15 + $0x140] ss:$36 sps:$4 sm:$0xff]  }
 0x3ae   : > { %14145 = vmatprep.mubr.bf16.mxu1 %v18066_v38  ;;  %3701 = vmatpush1.bf16.msra.mxu0 %v15315_v39  ;;  %v15381_v39 = vld [vmem:[%s17770_s15 + $0x188] ss:$36 sps:$4 sm:$0xff]  }
 0x3af   : > { %3720 = vmatprep.mubr.bf16.mxu0 %v18064_v37  ;;  %14143 = vmatprep.subr.bf16.mxu1 %v15318_v56 }
 0x3b0   : > { %3702 = vmatprep.subr.bf16.mxu0 %v15321_v59 }
 0x3b1   : > { %14144 = vmatpush3.bf16.msra.mxu1 %v15318_v56  ;;  %v15382_v56 = vld [vmem:[%s17770_s15 + $0x410] ss:$36 sps:$4 sm:$0xff]  }
 0x3b2   : > { %3703 = vmatpush1.bf16.msra.mxu0 %v15319_v26 }
 0x3b3   : > { %3704 = vmatprep.subr.bf16.mxu0 %v15324_v29 }
 0x3b4   : > { %14146 = vmatmul.mubr.bf16.vlgmr.msra.gmra.mrb[32].mxu1 %v18103_v49 }
 0x3b5   : > { %14149 = vmatprep.mubr.bf16.mxu1 %v18144_v9 }
 0x3b6   : > { %3705 = vmatpush1.bf16.msra.mxu0 %v15322_v30  ;;  %v15383_v30 = vld [vmem:[%s17770_s15 + $0x1d0] ss:$36 sps:$4 sm:$0xff]  }
 0x3b7   : > { %3706 = vmatprep.subr.bf16.mxu0 %v15327_v32  ;;  %v15384_v32 = vld [vmem:[%s17770_s15 + $0x458] ss:$36 sps:$4 sm:$0xff]  }
 0x3ba   : > { %3707 = vmatpush1.bf16.msra.mxu0 %v15325_v7 }
 0x3bb   : > { %3708 = vmatprep.subr.bf16.mxu0 %v15330_v10 }
 0x3bc   : > { %14150 = vmatmul.mubr.bf16.gmra.mrb[36].mxu1 %v18171_v27 }
 0x3be   : > { %3709 = vmatpush1.bf16.msra.mxu0 %v15328_v34 }
 0x3bf   : > { %3710 = vmatprep.subr.bf16.mxu0 %v15333_v28 }
 0x3c2   : > { %3711 = vmatpush1.bf16.msra.mxu0 %v15331_v44 }
 0x3c3   : > { %3712 = vmatprep.subr.bf16.mxu0 %v15336_v22 }
 0x3c6   : > { %3713 = vmatpush1.bf16.msra.mxu0 %v15334_v53 }
 0x3c7   : > { %3714 = vmatprep.subr.bf16.mxu0 %v15339_v54 }
 0x3ca   : > { %3715 = vmatpush1.bf16.msra.mxu0 %v15337_v43 }
 0x3cb   : > { %3716 = vmatprep.subr.bf16.mxu0 %v15342_v51 }
 0x3ce   : > { %3717 = vmatpush1.bf16.msra.mxu0 %v15340_v48 }
 0x3cf   : > { %3718 = vmatprep.subr.bf16.mxu0 %v15345_v36 }
 0x3d2   : > { %3719 = vmatpush1.bf16.msra.mxu0 %v15343_v41 }
 0x3d3   : > { %3761 = vmatprep.subr.bf16.mxu0 %v15348_v1 }
 0x3d5   : > { %3721 = vmatmul.mubr.bf16.vlgmr.msra.gmra.mrb[32].mxu0 %v18070_v5 }
 0x3d6   : > { %3730 = vmatprep.mubr.bf16.mxu0 %v18087_v13  ;;  %3762 = vmatpush1.bf16.msra.mxu0 %v15346_v42 }
 0x3d7   : > { %3763 = vmatprep.subr.bf16.mxu0 %v15351_v55 }
 0x3da   : > { %3764 = vmatpush1.bf16.msra.mxu0 %v15349_v57 }
 0x3db   : > { %3765 = vmatprep.subr.bf16.mxu0 %v15354_v60 }
 0x3dd   : > { %3731 = vmatmul.mubr.bf16.gmra.mrb[36].mxu0 %v18114_v50 }
 0x3de   : > { %3740 = vmatprep.mubr.bf16.mxu0 %v18118_v16  ;;  %3766 = vmatpush1.bf16.msra.mxu0 %v15352_v63 }
 0x3df   : > { %3767 = vmatprep.subr.bf16.mxu0 %v15357_v3 }
 0x3e2   : > { %3768 = vmatpush1.bf16.msra.mxu0 %v15355_v46 }
 0x3e3   : > { %3769 = vmatprep.subr.bf16.mxu0 %v15360_v47 }
 0x3e5   : > { %3741 = vmatmul.mubr.bf16.gmra.mrb[40].mxu0 %v18150_v40 }
 0x3e6   : > { %3750 = vmatprep.mubr.bf16.mxu0 %v18155_v52  ;;  %3770 = vmatpush1.bf16.msra.mxu0 %v15358_v35 }
 0x3e7   : > { %3771 = vmatprep.subr.bf16.mxu0 %v15363_v6 }
 0x3ea   : > { %3772 = vmatpush1.bf16.msra.mxu0 %v15361_v8 }
 0x3eb   : > { %3773 = vmatprep.subr.bf16.mxu0 %v15366_v45 }
 0x3ed   : > { %3751 = vmatmul.mubr.bf16.gmra.mrb[44].mxu0 %v18175_v31 }
 0x3ee   : > { %3774 = vmatpush1.bf16.msra.mxu0 %v15364_v14  ;;  %3793 = vmatprep.mubr.bf16.mxu0 %v21342_v0 }
 0x3ef   : > { %3775 = vmatprep.subr.bf16.mxu0 %v15369_v15 }
 0x3f2   : > { %3776 = vmatpush1.bf16.msra.mxu0 %v15367_v17 }
 0x3f3   : > { %13637 = vmatprep.subr.bf16.mxu0 %v15370_v62 }
 0x3f5   : > { %3794 = vmatmul.mubr.bf16.vlgmr.msra.gmra.mrb[32].mxu0 %v18066_v38  ;;  %v15378_v38 = vld [vmem:[%s17770_s15 + $0x380] ss:$36 sps:$4 sm:$0xff]  }
 0x3f6   : > { %13638 = vmatpush3.bf16.msra.mxu0 %v15371_v58  ;;  %3803 = vmatprep.mubr.bf16.mxu0 %v21342_v0 }
 0x3f7   : > { %13639 = vmatprep.subr.bf16.mxu0 %v15372_v18 }
 0x3fa   : > { %13640 = vmatpush3.bf16.msra.mxu0 %v15373_v12 }
 0x3fb   : > { %13641 = vmatprep.subr.bf16.mxu0 %v15374_v2 }
 0x3fd   : > { %3804 = vmatmul.mubr.bf16.gmra.mrb[36].mxu0 %v18103_v49 }
 0x3fe   : > { %13642 = vmatpush3.bf16.msra.mxu0 %v15375_v24  ;;  %3813 = vmatprep.mubr.bf16.mxu0 %v21342_v0 }
 0x3ff   : > { %13643 = vmatprep.subr.bf16.mxu0 %v15376_v61 }
 0x402   : > { %13644 = vmatpush3.bf16.msra.mxu0 %v15377_v21 }
 0x403   : > { %13645 = vmatprep.subr.bf16.mxu0 %v15378_v38 }
 0x405   : > { %3814 = vmatmul.mubr.bf16.gmra.mrb[40].mxu0 %v18144_v9  ;;  %v15385_v9 = vld [vmem:[%s17770_s15 + $0x218] ss:$36 sps:$4 sm:$0xff]   ;;  %s21544_s15 = scalar_lea.vmem [#allocation12], %s17754_s22 }
 0x406   : > { %13646 = vmatpush3.bf16.msra.mxu0 %v15379_v23  ;;  %3823 = vmatprep.mubr.bf16.mxu0 %v21342_v0 }
 0x407   : > { %v18364_v49 = vpop.f32.mrb[0].mxu1  ;;  %13647 = vmatprep.subr.bf16.mxu0 %v15380_v25 }
 0x408   : > { %v18367_v59 = vpop.f32.mrb[1].mxu1 }
 0x409   : > { %v18369_v26 = vpop.f32.mrb[2].mxu1 }
 0x40a   : > { %13648 = vmatpush3.bf16.msra.mxu0 %v15381_v39  ;;  %v18371_v29 = vpop.f32.mrb[3].mxu1 }
 0x40b   : > { %13649 = vmatprep.subr.bf16.mxu0 %v15382_v56 }
 0x40d   : > { %3824 = vmatmul.mubr.bf16.gmra.mrb[44].mxu0 %v18171_v27 }
 0x40e   : > { %13650 = vmatpush3.bf16.msra.mxu0 %v15383_v30  ;;  %4012 = vmatprep.mubr.bf16.mxu0 %v18064_v37 }
 0x40f   : > { %v18378_v7 = vpop.f32.mrb[4].mxu1  ;;  %13651 = vmatprep.subr.bf16.mxu0 %v15384_v32 }
 0x410   : > { %v18380_v10 = vpop.f32.mrb[5].mxu1 }
 0x411   : > { %v18382_v34 = vpop.f32.mrb[6].mxu1 }
 0x412   : > { %13652 = vmatpush3.bf16.msra.mxu0 %v15385_v9  ;;  %v18384_v28 = vpop.f32.mrb[7].mxu1 }
 0x415   : > { %4013 = vmatmul.mubr.bf16.vlgmr.msra.gmra.mrb[48].mxu0 %v18070_v5 }
 0x416   : > { %4020 = vmatprep.mubr.bf16.mxu0 %v18087_v13 }
 0x417   : > { %v18388_v44 = vpop.f32.mrb[8].mxu1 }
 0x418   : > { %v18390_v27 = vpop.f32.mrb[9].mxu1 }
 0x419   : > { %v18392_v37 = vpop.f32.mrb[10].mxu1 }
 0x41a   : > { %v18394_v22 = vpop.f32.mrb[11].mxu1 }
 0x41d   : > { %4021 = vmatmul.mubr.bf16.gmra.mrb[52].mxu0 %v18114_v50 }
 0x41e   : > { %4028 = vmatprep.mubr.bf16.mxu0 %v18118_v16 }
 0x41f   : > { %v18398_v53 = vpop.f32.mrb[12].mxu1 }
 0x420   : > { %v18400_v54 = vpop.f32.mrb[13].mxu1 }
 0x421   : > { %v18402_v43 = vpop.f32.mrb[14].mxu1 }
 0x422   : > { %v18404_v5 = vpop.f32.mrb[15].mxu1 }
 0x425   : > { %4029 = vmatmul.mubr.bf16.gmra.mrb[56].mxu0 %v18150_v40 }
 0x426   : > { %4036 = vmatprep.mubr.bf16.mxu0 %v18155_v52 }
 0x428   : > { %v3503_v13 = vpop.f32.mrb[0].mxu0 }
 0x429   : > { %v3505_v51 = vpop.f32.mrb[1].mxu0 }
 0x42a   : > { %v3507_v48 = vpop.f32.mrb[2].mxu0 }
 0x42b   : > { %v4110_v36 = vpack.c.bf16 %v3507_v48, %v3503_v13  ;;  %v3509_v41 = vpop.f32.mrb[3].mxu0 }
 0x42c   : > { %v18408_v50 = vpack.c.bf16 %v3509_v41, %v3505_v51 }
 0x42d   : > { %4037 = vmatmul.mubr.bf16.gmra.mrb[60].mxu0 %v18175_v31 }
 0x42e   : > { %14161 = vmatprep.mubr.msk.bf16.mxu0 %vm4165_vm0, %v4110_v36 }
 0x430   : > { %v3513_v16 = vpop.f32.mrb[4].mxu0 }
 0x431   : > { %v3515_v1 = vpop.f32.mrb[5].mxu0 }
 0x432   : > { %v3517_v42 = vpop.f32.mrb[6].mxu0 }
 0x433   : > { %v18412_v55 = vpack.c.bf16 %v3517_v42, %v3513_v16  ;;  %v3519_v40 = vpop.f32.mrb[7].mxu0 }
 0x434   : > { %v18414_v57 = vpack.c.bf16 %v3519_v40, %v3515_v1 }
 0x438   : > { %v3523_v52 = vpop.f32.mrb[8].mxu0 }
 0x439   : > { %v3525_v60 = vpop.f32.mrb[9].mxu0 }
 0x43a   : > { %v3527_v63 = vpop.f32.mrb[10].mxu0 }
 0x43b   : > { %v18416_v3 = vpack.c.bf16 %v3527_v63, %v3523_v52  ;;  %v3529_v46 = vpop.f32.mrb[11].mxu0 }
 0x43c   : > { %v18418_v47 = vpack.c.bf16 %v3529_v46, %v3525_v60 }
 0x440   : > { %v3533_v35 = vpop.f32.mrb[12].mxu0 }
 0x441   : > { %v3535_v31 = vpop.f32.mrb[13].mxu0 }
 0x442   : > { %v3537_v6 = vpop.f32.mrb[14].mxu0 }
 0x443   : > { %v18420_v8 = vpack.c.bf16 %v3537_v6, %v3533_v35  ;;  %v3539_v45 = vpop.f32.mrb[15].mxu0 }
 0x444   : > { %v18422_v14 = vpack.c.bf16 %v3539_v45, %v3535_v31 }
 0x467   : > { %v3941_v15 = vpop.f32.mrb[16].mxu1 }
 0x468   : > { %v3576_v17 = vpop.f32.mrb[16].mxu0  ;;  %v3943_v62 = vpop.f32.mrb[17].mxu1 }
 0x469   : > { %v3650_v58 = vadd.f32 %v18364_v49, %v3576_v17  ;;  %v3578_v18 = vpop.f32.mrb[17].mxu0  ;;  %v3945_v12 = vpop.f32.mrb[18].mxu1 }
 0x46a   : > { %v3652_v2 = vadd.f32 %v18367_v59, %v3578_v18  ;;  %v18426_v24 = vpack.c.bf16 %v3945_v12, %v3941_v15  ;;  %v3580_v61 = vpop.f32.mrb[18].mxu0  ;;  %v3947_v21 = vpop.f32.mrb[19].mxu1 }
 0x46b   : > { %v3654_v38 = vadd.f32 %v18369_v26, %v3580_v61  ;;  %v18429_v23 = vpack.c.bf16 %v3947_v21, %v3943_v62  ;;  %v3582_v25 = vpop.f32.mrb[19].mxu0 }
 0x46c   : > { %v3656_v39 = vadd.f32 %v18371_v29, %v3582_v25 }
 0x46d   : > { %v18432_v56 = vpack.c.bf16 %v3654_v38, %v3650_v58 }
 0x46e   : > { %v4113_v30 = vpack.c.bf16 %v3656_v39, %v3652_v2 }
 0x46f   : > { %v3951_v32 = vpop.f32.mrb[20].mxu1 }
 0x470   : > { %v3953_v49 = vpop.f32.mrb[21].mxu1  ;;  %4456 = vrot.lane.b32.xlu0 %v4113_v30, %s17144_s0  ;;  %v3586_v59 = vpop.f32.mrb[20].mxu0  ;;  %14777 = vmatprep.subr.msk.bf16.mxu0 %vm4165_vm0, %v4113_v30  ;;  %v4179_v9 = vsel %vm4165_vm0, %v4113_v30, 0 }
 0x471   : > { %v3660_v26 = vadd.f32 %v18378_v7, %v3586_v59  ;;  %v3588_v13 = vpop.f32.mrb[21].mxu0  ;;  %v3955_v51 = vpop.f32.mrb[22].mxu1  ;;  %14154 = vmatpush3.bf16.xpose.msra.mxu0 %v4179_v9 }
 0x472   : > { %v3662_v29 = vadd.f32 %v18380_v10, %v3588_v13  ;;  %v18439_v48 = vpack.c.bf16 %v3955_v51, %v3951_v32  ;;  %v3590_v41 = vpop.f32.mrb[22].mxu0  ;;  %v3957_v16 = vpop.f32.mrb[23].mxu1 }
 0x473   : > { %v3664_v1 = vadd.f32 %v18382_v34, %v3590_v41  ;;  %v18442_v42 = vpack.c.bf16 %v3957_v16, %v3953_v49  ;;  %v3592_v40 = vpop.f32.mrb[23].mxu0 }
 0x474   : > { %v3666_v52 = vadd.f32 %v18384_v28, %v3592_v40  ;;  %4444 = vrot.lane.b32.xlu0 %v4110_v36, %s17144_s0 }
 0x475   : > { %v18446_v60 = vpack.c.bf16 %v3664_v1, %v3660_v26 }
 0x476   : > { %v4122_v7 = vpack.c.bf16 %v3666_v52, %v3662_v29 }
 0x477   : > { %v3961_v63 = vpop.f32.mrb[24].mxu1 }
 0x478   : > { %v3963_v46 = vpop.f32.mrb[25].mxu1  ;;  %4448 = vrot.lane.b32.xlu0 %v18416_v3, %s17144_s0  ;;  %4458 = vrot.lane.b32.xlu1 %v4122_v7, %s17144_s0  ;;  %v3596_v10 = vpop.f32.mrb[24].mxu0  ;;  %v4182_v34 = vsel %vm4165_vm0, %v4122_v7, 0 }
 0x479   : > { %v3670_v35 = vadd.f32 %v18388_v44, %v3596_v10  ;;  %14778 = vmatprep.subr.msk.bf16.mxu0 %vm4165_vm0, %v4122_v7  ;;  %v3598_v28 = vpop.f32.mrb[25].mxu0  ;;  %v3965_v31 = vpop.f32.mrb[26].mxu1 }
 0x47a   : > { %v3672_v36 = vadd.f32 %v18390_v27, %v3598_v28  ;;  %v18455_v6 = vpack.c.bf16 %v3965_v31, %v3961_v63  ;;  %14156 = vmatpush3.bf16.xpose.msra.mxu0 %v4182_v34  ;;  %v3600_v45 = vpop.f32.mrb[26].mxu0  ;;  %v3967_v15 = vpop.f32.mrb[27].mxu1 }
 0x47b   : > { %v3674_v17 = vadd.f32 %v18392_v37, %v3600_v45  ;;  %v18458_v62 = vpack.c.bf16 %v3967_v15, %v3963_v46  ;;  %v3602_v58 = vpop.f32.mrb[27].mxu0 }
 0x47c   : > { %v3676_v18 = vadd.f32 %v18394_v22, %v3602_v58 }
 0x47d   : > { %v18461_v12 = vpack.c.bf16 %v3674_v17, %v3670_v35 }
 0x47e   : > { %v4131_v44 = vpack.c.bf16 %v3676_v18, %v3672_v36 }
 0x47f   : > { %v3971_v2 = vpop.f32.mrb[28].mxu1 }
 0x480   : > { %v3973_v61 = vpop.f32.mrb[29].mxu1  ;;  %4460 = vrot.lane.b32.xlu1 %v4131_v44, %s17144_s0  ;;  %v3606_v27 = vpop.f32.mrb[28].mxu0  ;;  %14779 = vmatprep.subr.msk.bf16.mxu0 %vm4165_vm0, %v4131_v44  ;;  %v4185_v21 = vsel %vm4165_vm0, %v4131_v44, 0 }
 0x481   : > { %v3680_v38 = vadd.f32 %v18398_v53, %v3606_v27  ;;  %v3608_v37 = vpop.f32.mrb[29].mxu0  ;;  %v3975_v25 = vpop.f32.mrb[30].mxu1 }
 0x482   : > { %v3682_v39 = vadd.f32 %v18400_v54, %v3608_v37  ;;  %v18468_v30 = vpack.c.bf16 %v3975_v25, %v3971_v2  ;;  %14158 = vmatpush3.bf16.xpose.msra.mxu0 %v4185_v21  ;;  %v3610_v22 = vpop.f32.mrb[30].mxu0  ;;  %v3977_v32 = vpop.f32.mrb[31].mxu1 }
 0x483   : > { %v3684_v49 = vadd.f32 %v18402_v43, %v3610_v22  ;;  %v18471_v59 = vpack.c.bf16 %v3977_v32, %v3973_v61  ;;  %v3612_v9 = vpop.f32.mrb[31].mxu0 }
 0x484   : > { %v3686_v26 = vadd.f32 %v18404_v5, %v3612_v9 }
 0x485   : > { %v18474_v13 = vpack.c.bf16 %v3684_v49, %v3680_v38 }
 0x486   : > { %v4140_v51 = vpack.c.bf16 %v3686_v26, %v3682_v39 }
 0x487   : > { %v18476_v53 = vpop.f32.mrb[32].mxu1 }
 0x488   : > { %v4079_v29 = vpop.f32.mrb[33].mxu1  ;;  %4462 = vrot.lane.b32.xlu1 %v4140_v51, %s17144_s0  ;;  %14780 = vmatprep.subr.msk.bf16.mxu0 %vm4165_vm0, %v4140_v51  ;;  %v4188_v54 = vsel %vm4165_vm0, %v4140_v51, 0 }
 0x489   : > { %v18481_v41 = vpop.f32.mrb[34].mxu1 }
 0x48a   : > { %14160 = vmatpush3.bf16.xpose.msra.mxu0 %v4188_v54  ;;  %v4082_v43 = vpop.f32.mrb[35].mxu1 }
 0x48b   : > { %14169 = vmatprep.subr.bf16.mxu0 %v18426_v24 }
 0x48c   : > { %4446 = vrot.lane.b32.xlu1 %v18412_v55, %s17144_s0 }
 0x48f   : > { %v18486_v5 = vpop.f32.mrb[36].mxu1 }
 0x490   : > { %v18488_v16 = vpop.f32.mrb[37].mxu1  ;;  %4450 = vrot.lane.b32.xlu1 %v18420_v8, %s17144_s0 }
 0x491   : > { %14162 = vmatmul.mubr.msk.bf16.vlgmr.msra.gmra.mrb[64].mxu0 %vm4165_vm0, %v18412_v55  ;;  %v18494_v1 = vpop.f32.mrb[38].mxu1 }
 0x492   : > { %14165 = vmatprep.mubr.msk.bf16.mxu0 %vm4165_vm0, %v18416_v3  ;;  %14170 = vmatpush3.bf16.msra.mxu0 %v18426_v24  ;;  %v18499_v40 = vpop.f32.mrb[39].mxu1 }
 0x493   : > { %14171 = vmatprep.subr.bf16.mxu0 %v18439_v48 }
 0x496   : > { %14172 = vmatpush3.bf16.msra.mxu0 %v18439_v48 }
 0x497   : > { %14173 = vmatprep.subr.bf16.mxu0 %v18455_v6 }
 0x499   : > { %14166 = vmatmul.mubr.msk.bf16.gmra.mrb[68].mxu0 %vm4165_vm0, %v18420_v8 }
 0x49a   : > { %14174 = vmatpush3.bf16.msra.mxu0 %v18455_v6 }
 0x49b   : > { %14175 = vmatprep.subr.bf16.mxu0 %v18468_v30 }
 0x49e   : > { %14176 = vmatpush3.bf16.msra.mxu0 %v18468_v30 }
 0x4c8   : > { %v3795_v55 = vpop.f32.mrb[32].mxu0 }
 0x4c9   : > { %v3797_v3 = vpop.f32.mrb[33].mxu0 }
 0x4ca   : > { %v3799_v52 = vpop.f32.mrb[34].mxu0 }
 0x4cb   : > { %v18509_v7 = vpack.c.bf16 %v3799_v52, %v3795_v55  ;;  %v3801_v63 = vpop.f32.mrb[35].mxu0 }
 0x4cc   : > { %v18511_v46 = vpack.c.bf16 %v3801_v63, %v3797_v3 }
 0x4d0   : > { %v3805_v10 = vpop.f32.mrb[36].mxu0 }
 0x4d1   : > { %v3807_v34 = vpop.f32.mrb[37].mxu0 }
 0x4d2   : > { %v3809_v35 = vpop.f32.mrb[38].mxu0 }
 0x4d3   : > { %v18513_v28 = vpack.c.bf16 %v3809_v35, %v3805_v10  ;;  %v3811_v8 = vpop.f32.mrb[39].mxu0 }
 0x4d4   : > { %v18515_v31 = vpack.c.bf16 %v3811_v8, %v3807_v34 }
 0x4d8   : > { %v3815_v36 = vpop.f32.mrb[40].mxu0 }
 0x4d9   : > { %v3817_v45 = vpop.f32.mrb[41].mxu0 }
 0x4da   : > { %v3819_v15 = vpop.f32.mrb[42].mxu0 }
 0x4db   : > { %v18517_v17 = vpack.c.bf16 %v3819_v15, %v3815_v36  ;;  %v3821_v58 = vpop.f32.mrb[43].mxu0 }
 0x4dc   : > { %v18519_v18 = vpack.c.bf16 %v3821_v58, %v3817_v45 }
 0x4e0   : > { %v3825_v44 = vpop.f32.mrb[44].mxu0 }
 0x4e1   : > { %v3827_v2 = vpop.f32.mrb[45].mxu0 }
 0x4e2   : > { %v4457_v61 = vpop.permute.xlu0 %4456  ;;  %v3829_v27 = vpop.f32.mrb[46].mxu0 }
 0x4e3   : > { %v18521_v21 = vpack.c.bf16 %v3829_v27, %v3825_v44  ;;  %v3831_v38 = vpop.f32.mrb[47].mxu0  ;;  %14781 = vmatprep.subr.msk.bf16.mxu1 %vm4165_vm0, %v4457_v61  ;;  %v4477_v37 = vsel %vm4165_vm0, %v4457_v61, 0 }
 0x4e4   : > { %v18525_v25 = vpack.c.bf16 %v3831_v38, %v3827_v2  ;;  %14186 = vmatpush3.bf16.xpose.msra.mxu1 %v4477_v37 }
 0x4e6   : > { %v4445_v39 = vpop.permute.xlu0 %4444 }
 0x4e7   : > { %14193 = vmatprep.mubr.msk.bf16.mxu1 %vm4165_vm0, %v4445_v39 }
 0x4e8   : > { %v13653_v22 = vpop.f32.mrb[48].mxu0 }
 0x4e9   : > { %v13654_v32 = vpop.f32.mrb[49].mxu0 }
 0x4ea   : > { %v13655_v49 = vadd.f32 %v13654_v32, %v13653_v22  ;;  %v4459_v9 = vpop.permute.xlu1 %4458  ;;  %v13656_v26 = vpop.f32.mrb[50].mxu0 }
 0x4eb   : > { %14782 = vmatprep.subr.msk.bf16.mxu1 %vm4165_vm0, %v4459_v9  ;;  %v4480_v51 = vsel %vm4165_vm0, %v4459_v9, 0  ;;  %v13657_v55 = vpop.f32.mrb[51].mxu0 }
 0x4ec   : > { %v4080_v54 = vadd.f32 %v13655_v49, %v4079_v29  ;;  %14188 = vmatpush3.bf16.xpose.msra.mxu1 %v4480_v51  ;;  %v13658_v3 = vadd.f32 %v13657_v55, %v13656_v26 }
 0x4ee   : > { %v4083_v52 = vadd.f32 %v13658_v3, %v4082_v43  ;;  %v4449_v3 = vpop.permute.xlu0 %4448 }
 0x4f0   : > { %v13659_v63 = vpop.f32.mrb[52].mxu0  ;;  %v18530_v34 = vpack.c.bf16 %v4083_v52, %v4080_v54 }
 0x4f1   : > { %v13660_v10 = vpop.f32.mrb[53].mxu0 }
 0x4f2   : > { %v13661_v35 = vadd.f32 %v13660_v10, %v13659_v63  ;;  %v4461_v8 = vpop.permute.xlu1 %4460  ;;  %v13662_v36 = vpop.f32.mrb[54].mxu0 }
 0x4f3   : > { %v13663_v45 = vpop.f32.mrb[55].mxu0  ;;  %14783 = vmatprep.subr.msk.bf16.mxu1 %vm4165_vm0, %v4461_v8  ;;  %v4483_v15 = vsel %vm4165_vm0, %v4461_v8, 0  ;;  %v4156_v8 = vand.u32 127, %v2201_v4 }
 0x4f4   : > { %v4088_v58 = vadd.f32 %v18476_v53, %v13661_v35  ;;  %v13664_v44 = vadd.f32 %v13663_v45, %v13662_v36  ;;  %14190 = vmatpush3.bf16.xpose.msra.mxu1 %v4483_v15 }
 0x4f5   : > { %vm18567_vm2 = vcmp.le.s32.totalorder %v4156_v8, %v18002_v11 }
 0x4f6   : > { %v4091_v29 = vadd.f32 %v18481_v41, %v13664_v44 }
 0x4f8   : > { %v13665_v2 = vpop.f32.mrb[56].mxu0  ;;  %v18536_v43 = vpack.c.bf16 %v4091_v29, %v4088_v58 }
 0x4f9   : > { %v13666_v61 = vpop.f32.mrb[57].mxu0 }
 0x4fa   : > { %v13667_v27 = vadd.f32 %v13666_v61, %v13665_v2  ;;  %v13668_v38 = vpop.f32.mrb[58].mxu0  ;;  %v4463_v37 = vpop.permute.xlu1 %4462  ;;  %v4150_v61 = vadd.s32 24, %v18002_v11 }
 0x4fb   : > { %v13669_v39 = vpop.f32.mrb[59].mxu0  ;;  %14784 = vmatprep.subr.msk.bf16.mxu1 %vm4165_vm0, %v4463_v37  ;;  %v4486_v22 = vsel %vm4165_vm0, %v4463_v37, 0 }
 0x4fc   : > { %v4096_v32 = vadd.f32 %v13667_v27, %v18488_v16  ;;  %v13670_v49 = vadd.f32 %v13669_v39, %v13668_v38  ;;  %14192 = vmatpush3.bf16.xpose.msra.mxu1 %v4486_v22  ;;  %vm18590_vm4 = vcmp.le.s32.totalorder %v4156_v8, %v4150_v61 }
 0x4fd   : > { %14233 = vmatprep.subr.bf16.mxu1 %v18429_v23 }
 0x4fe   : > { %v4099_v53 = vadd.f32 %v13670_v49, %v18499_v40  ;;  %v4447_v51 = vpop.permute.xlu1 %4446 }
 0x500   : > { %v13671_v41 = vpop.f32.mrb[60].mxu0  ;;  %v18543_v9 = vpack.c.bf16 %v4099_v53, %v4096_v32 }
 0x501   : > { %v13672_v26 = vpop.f32.mrb[61].mxu0 }
 0x502   : > { %v13673_v54 = vadd.f32 %v13672_v26, %v13671_v41  ;;  %v13674_v55 = vpop.f32.mrb[62].mxu0  ;;  %v4451_v35 = vpop.permute.xlu1 %4450  ;;  %v4154_v41 = vadd.s32 56, %v18002_v11  ;;  %v4153_v26 = vadd.s32 48, %v18002_v11 }
 0x503   : > { %v13675_v52 = vpop.f32.mrb[63].mxu0  ;;  %14194 = vmatmul.mubr.msk.bf16.vlgmr.msra.gmra.mrb[40].mxu1 %vm4165_vm0, %v4447_v51 }
 0x504   : > { %v4104_v63 = vadd.f32 %v18486_v5, %v13673_v54  ;;  %v13676_v16 = vadd.f32 %v13675_v52, %v13674_v55  ;;  %14197 = vmatprep.mubr.msk.bf16.mxu1 %vm4165_vm0, %v4449_v3  ;;  %14234 = vmatpush3.bf16.msra.mxu1 %v18429_v23  ;;  %v4149_v5 = vadd.s32 16, %v18002_v11  ;;  %v4152_v3 = vadd.s32 40, %v18002_v11 }
 0x505   : > { %14235 = vmatprep.subr.bf16.mxu1 %v18442_v42  ;;  %vm18605_vm5 = vcmp.le.s32.totalorder %v4156_v8, %v4154_v41  ;;  %vm18609_vm6 = vcmp.le.s32.totalorder %v4156_v8, %v4153_v26 }
 0x506   : > { %v4107_v40 = vadd.f32 %v18494_v1, %v13676_v16  ;;  %v4148_v1 = vadd.s32 8, %v18002_v11  ;;  %vm18562_vm1 = vcmp.le.s32.totalorder %v4156_v8, %v4149_v5  ;;  %vm18616_vm7 = vcmp.le.s32.totalorder %v4156_v8, %v4152_v3 }
 0x508   : > { %14236 = vmatpush3.bf16.msra.mxu1 %v18442_v42  ;;  %v18552_v10 = vpack.c.bf16 %v4107_v40, %v4104_v63  ;;  %vm18576_vm3 = vcmp.le.s32.totalorder %v4156_v8, %v4148_v1  ;;  %v4151_v1 = vadd.s32 32, %v18002_v11 }
 0x509   : > { %14237 = vmatprep.subr.bf16.mxu1 %v18458_v62 }
 0x50a   : > { %vm18628_vm8 = vcmp.le.s32.totalorder %v4156_v8, %v4151_v1 }
 0x50b   : > { %14198 = vmatmul.mubr.msk.bf16.gmra.mrb[44].mxu1 %vm4165_vm0, %v4451_v35 }
 0x50c   : > { %14238 = vmatpush3.bf16.msra.mxu1 %v18458_v62 }
 0x50d   : > { %14239 = vmatprep.subr.bf16.mxu1 %v18471_v59 }
 0x510   : > { %14240 = vmatpush3.bf16.msra.mxu1 %v18471_v59 }
 0x564   : > { %v14163_v36 = vpop.f32.mrb[64].mxu0 }
 0x565   : > { %v4257_v15 = vmul.f32 0.05103104, %v14163_v36  ;;  %v4224_v58 = vpop.f32.mrb[65].mxu0 }
 0x566   : > { %v4255_v44 = vmul.f32 0.05103104, %v4224_v58  ;;  %v14164_v29 = vpop.f32.mrb[66].mxu0 }
 0x567   : > { %v4227_v27 = vpop.f32.mrb[67].mxu0  ;;  %v18574_v4 = vsel %vm18562_vm1, %v4257_v15, -1e+30  ;;  %v4258_v22 = vmul.f32 0.05103104, %v14164_v29 }
 0x568   : > { %v4256_v37 = vmul.f32 0.05103104, %v4227_v27  ;;  %v4277_v39 = vsel %vm4165_vm0, %v18574_v4, -inf  ;;  %v18584_v32 = vsel %vm18567_vm2, %v4255_v44, -1e+30 }
 0x569   : > { %4278 = vmax.xlane.f32.xlu0 %v4277_v39  ;;  %v4271_v55 = vsel %vm4165_vm0, %v18584_v32, -inf  ;;  %v18603_v16 = vsel %vm18590_vm4, %v4258_v22, -1e+30 }
 0x56a   : > { %v18588_v49 = vsel %vm18576_vm3, %v4256_v37, -1e+30  ;;  %v4280_v44 = vsel %vm4165_vm0, %v18603_v16, -inf }
 0x56b   : > { %v4274_v51 = vsel %vm4165_vm0, %v18588_v49, -inf }
 0x56c   : > { %4275 = vmax.xlane.f32.xlu1 %v4274_v51  ;;  %v14167_v54 = vpop.f32.mrb[68].mxu0 }
 0x56d   : > { %v4261_v52 = vmul.f32 0.05103104, %v14167_v54  ;;  %4272 = vmax.xlane.f32.xlu0 %v4271_v55  ;;  %v4240_v63 = vpop.f32.mrb[69].mxu0 }
 0x56e   : > { %v14168_v40 = vpop.f32.mrb[70].mxu0  ;;  %v4259_v61 = vmul.f32 0.05103104, %v4240_v63 }
 0x56f   : > { %v4262_v36 = vmul.f32 0.05103104, %v14168_v40  ;;  %v4243_v15 = vpop.f32.mrb[71].mxu0  ;;  %v4269_v37 = vsel %vm18609_vm6, %v4261_v52, -1e+30 }
 0x570   : > { %v4260_v58 = vmul.f32 0.05103104, %v4243_v15  ;;  %v4289_v26 = vsel %vm4165_vm0, %v4269_v37, -inf  ;;  %v18637_v51 = vsel %vm18628_vm8, %v4259_v61, -1e+30 }
 0x571   : > { %4281 = vmax.xlane.f32.xlu0 %v4280_v44  ;;  %v18622_v27 = vsel %vm18605_vm5, %v4262_v36, -1e+30  ;;  %v4283_v8 = vsel %vm4165_vm0, %v18637_v51, -inf }
 0x572   : > { %v4292_v39 = vsel %vm4165_vm0, %v18622_v27, -inf  ;;  %v4268_v41 = vsel %vm18616_vm7, %v4260_v58, -1e+30 }
 0x573   : > { %4293 = vmax.xlane.f32.xlu1 %v4292_v39  ;;  %v4286_v54 = vsel %vm4165_vm0, %v4268_v41, -inf }
 0x575   : > { %4290 = vmax.xlane.f32.xlu0 %v4289_v26 }
 0x577   : > { %4287 = vmax.xlane.f32.xlu1 %v4286_v54 }
 0x579   : > { %4284 = vmax.xlane.f32.xlu0 %v4283_v8 }
 0x588   : > { %4651 = vrot.lane.b32.xlu1 %v18439_v48, %s17144_s0 }
 0x58c   : > { %4653 = vrot.lane.b32.xlu1 %v18455_v6, %s17144_s0 }
 0x5d6   : > { %v14195_v55 = vpop.f32.mrb[40].mxu1 }
 0x5d7   : > { %v4555_v3 = vmul.f32 0.05103104, %v14195_v55  ;;  %v4522_v52 = vpop.f32.mrb[41].mxu1 }
 0x5d8   : > { %v4553_v63 = vmul.f32 0.05103104, %v4522_v52  ;;  %v14196_v40 = vpop.f32.mrb[42].mxu1 }
 0x5d9   : > { %v4556_v1 = vmul.f32 0.05103104, %v14196_v40  ;;  %v4525_v36 = vpop.f32.mrb[43].mxu1  ;;  %v18648_v15 = vsel %vm18562_vm1, %v4555_v3, -1e+30 }
 0x5da   : > { %v4554_v58 = vmul.f32 0.05103104, %v4525_v36  ;;  %v4575_v44 = vsel %vm4165_vm0, %v18648_v15, -inf  ;;  %v18658_v6 = vsel %vm18567_vm2, %v4553_v63, -1e+30 }
 0x5db   : > { %4576 = vmax.xlane.f32.xlu0 %v4575_v44  ;;  %v18654_v48 = vsel %vm18590_vm4, %v4556_v1, -1e+30  ;;  %v4569_v54 = vsel %vm4165_vm0, %v18658_v6, -inf }
 0x5dc   : > { %v4578_v61 = vsel %vm4165_vm0, %v18654_v48, -inf  ;;  %v18664_v39 = vsel %vm18576_vm3, %v4554_v58, -1e+30 }
 0x5dd   : > { %4579 = vmax.xlane.f32.xlu1 %v4578_v61  ;;  %v4572_v3 = vsel %vm4165_vm0, %v18664_v39, -inf }
 0x5de   : > { %v14199_v26 = vpop.f32.mrb[44].mxu1 }
 0x5df   : > { %v4538_v8 = vpop.f32.mrb[45].mxu1  ;;  %4570 = vmax.xlane.f32.xlu0 %v4569_v54 }
 0x5e0   : > { %v14200_v55 = vpop.f32.mrb[46].mxu1 }
 0x5e1   : > { %v4541_v52 = vpop.f32.mrb[47].mxu1  ;;  %4573 = vmax.xlane.f32.xlu1 %v4572_v3 }
 0x5f2   : > { %4655 = vrot.lane.b32.xlu1 %v18468_v30, %s17144_s0 }
 0x5f5   : > { %4649 = vrot.lane.b32.xlu0 %v18426_v24, %s17144_s0 }
 0x5f6   : > { %v4279_v63 = vpop.xlane.xlu0 %4278 }
 0x5f7   : > { %v4297_v1 = vsub.f32 %v18574_v4, %v4279_v63 }
 0x5f9   : > { %v4276_v40 = vpop.xlane.xlu1 %4275  ;;  %v4307_v0 = vmul.f32 1.442695, %v4297_v1 }
 0x5fa   : > { %v4296_v36 = vsub.f32 %v18588_v49, %v4276_v40  ;;  %v4273_v58 = vpop.xlane.xlu0 %4272 }
 0x5fb   : > { %v4295_v44 = vsub.f32 %v18584_v32, %v4273_v58 }
 0x5fc   : > { %v4305_v61 = vmul.f32 1.442695, %v4296_v36 }
 0x5fd   : > { %v4303_v54 = vmul.f32 1.442695, %v4295_v44 }
 0x5fe   : > { %16314 = vpow2.f32 %v4305_v61  ;;  %v4282_v3 = vpop.xlane.xlu0 %4281 }
 0x5ff   : > { %16316 = vpow2.f32 %v4303_v54  ;;  %v4298_v30 = vsub.f32 %v18603_v16, %v4282_v3 }
 0x600   : > { %v4294_v11 = vpop.xlane.xlu1 %4293  ;;  %16318 = vpow2.f32 %v4307_v0 }
 0x601   : > { %v4309_v20 = vmul.f32 1.442695, %v4298_v30  ;;  %v4302_v4 = vsub.f32 %v18622_v27, %v4294_v11  ;;  %v4558_v27 = vmul.f32 0.05103104, %v4541_v52  ;;  %v4560_v30 = vmul.f32 0.05103104, %v14200_v55 }
 0x602   : > { %v4291_v24 = vpop.xlane.xlu0 %4290 }
 0x603   : > { %16320 = vpow2.f32 %v4309_v20  ;;  %v4301_v19 = vsub.f32 %v4269_v37, %v4291_v24  ;;  %v4317_v44 = vmul.f32 1.442695, %v4302_v4  ;;  %v18700_v54 = vsel %vm18616_vm7, %v4558_v27, -1e+30 }
 0x604   : > { %v4288_v49 = vpop.xlane.xlu1 %4287  ;;  %v4584_v4 = vsel %vm4165_vm0, %v18700_v54, -inf }
 0x605   : > { %v4315_v63 = vmul.f32 1.442695, %v4301_v19  ;;  %v4300_v40 = vsub.f32 %v4268_v41, %v4288_v49  ;;  %v4557_v19 = vmul.f32 0.05103104, %v4538_v8  ;;  %v4559_v41 = vmul.f32 0.05103104, %v14199_v26 }
 0x606   : > { %v4285_v32 = vpop.xlane.xlu0 %4284 }
 0x607   : > { %v4313_v36 = vmul.f32 1.442695, %v4300_v40  ;;  %v4299_v1 = vsub.f32 %v18637_v51, %v4285_v32  ;;  %16322 = vpow2.f32 %v4315_v63  ;;  %v18696_v51 = vsel %vm18628_vm8, %v4557_v19, -1e+30 }
 0x608   : > { %v18680_v58 = vpop.eup %16314  ;;  %v4581_v3 = vsel %vm4165_vm0, %v18696_v51, -inf  ;;  %v18710_v26 = vsel %vm18609_vm6, %v4559_v41, -1e+30  ;;  %v18727_v32 = vsel %vm18605_vm5, %v4560_v30, -1e+30 }
 0x609   : > { %v18682_v61 = vpop.eup %16316  ;;  %v4311_v16 = vmul.f32 1.442695, %v4299_v1  ;;  %16324 = vpow2.f32 %v4313_v36  ;;  %v4587_v40 = vsel %vm4165_vm0, %v18710_v26, -inf  ;;  %v4590_v36 = vsel %vm4165_vm0, %v18727_v32, -inf  ;;  %v4652_v1 = vpop.permute.xlu1 %4651 }
 0x60a   : > { %v4343_v0 = vpack.c.bf16 %v18680_v58, %v18682_v61  ;;  %v18686_v11 = vpop.eup %16318 }
 0x60b   : > { %16326 = vpow2.f32 %v4311_v16 }
 0x60c   : > { %16328 = vpow2.f32 %v4317_v44  ;;  %14177 = vmatprep.mubr.msk.bf16.mxu0 %vm4165_vm0, %v4343_v0 }
 0x60d   : > { %v18689_v20 = vpop.eup %16320  ;;  %v4654_v44 = vpop.permute.xlu1 %4653 }
 0x60e   : > { %v4344_v37 = vpack.c.bf16 %v18689_v20, %v18686_v11 }
 0x610   : > { %14178 = vmatmul.mubr.msk.bf16.vlgmr.msra.gmra.mrb[72].mxu0 %vm4165_vm0, %v4344_v37 }
 0x611   : > { %v18702_v8 = vpop.eup %16322 }
 0x612   : > { %21455 = vst [vmem:[#allocation54_spill] sm:$0xff] %v18702_v8 }
 0x613   : > { %v18706_v52 = vpop.eup %16324 }
 0x614   : > { %4582 = vmax.xlane.f32.xlu0 %v4581_v3 }
 0x615   : > { %v18712_v24 = vpop.eup %16326 }
 0x616   : > { %v18716_v49 = vpop.eup %16328  ;;  %4585 = vmax.xlane.f32.xlu1 %v4584_v4  ;;  %v4345_v63 = vpack.c.bf16 %v18706_v52, %v18712_v24 }
 0x617   : > { %21456 = vst [vmem:[#allocation55_spill] sm:$0xff] %v18716_v49  ;;  %v4346_v55 = vpack.c.bf16 %v18716_v49, %v18702_v8 }
 0x618   : > { %14181 = vmatprep.mubr.msk.bf16.mxu0 %vm4165_vm0, %v4345_v63  ;;  %4588 = vmax.xlane.f32.xlu0 %v4587_v40 }
 0x619   : > { %14182 = vmatmul.mubr.msk.bf16.gmra.mrb[76].mxu0 %vm4165_vm0, %v4346_v55 }
 0x61c   : > { %4591 = vmax.xlane.f32.xlu0 %v4590_v36 }
 0x668   : > { %v4577_v16 = vpop.xlane.xlu0 %4576 }
 0x669   : > { %v4595_v27 = vsub.f32 %v18648_v15, %v4577_v16 }
 0x66a   : > { %v4580_v0 = vpop.xlane.xlu1 %4579 }
 0x66b   : > { %v4596_v19 = vsub.f32 %v18654_v48, %v4580_v0  ;;  %v4605_v40 = vmul.f32 1.442695, %v4595_v27  ;;  %v4773_v27 = vsel %vm4165_vm0, %v18517_v17, 0 }
 0x66c   : > { %v4571_v37 = vpop.xlane.xlu0 %4570 }
 0x66d   : > { %v4607_v41 = vmul.f32 1.442695, %v4596_v19  ;;  %v4593_v3 = vsub.f32 %v18658_v6, %v4571_v37  ;;  %v4776_v37 = vsel %vm4165_vm0, %v18521_v21, 0 }
 0x66e   : > { %v4574_v30 = vpop.xlane.xlu1 %4573 }
 0x66f   : > { %v4601_v4 = vmul.f32 1.442695, %v4593_v3  ;;  %v4594_v63 = vsub.f32 %v18664_v39, %v4574_v30  ;;  %16330 = vpow2.f32 %v4607_v41 }
 0x670   : > { %v4650_v55 = vpop.permute.xlu0 %4649 }
 0x671   : > { %v4603_v36 = vmul.f32 1.442695, %v4594_v63  ;;  %14201 = vmatprep.subr.bf16.mxu0 %v4650_v55  ;;  %16332 = vpow2.f32 %v4601_v4 }
 0x672   : > { %14202 = vmatpush3.bf16.msra.mxu0 %v4650_v55  ;;  %v4656_v15 = vpop.permute.xlu1 %4655 }
 0x673   : > { %16334 = vpow2.f32 %v4603_v36  ;;  %14203 = vmatprep.subr.bf16.mxu0 %v4652_v1 }
 0x674   : > { %16336 = vpow2.f32 %v4605_v40 }
 0x676   : > { %14204 = vmatpush3.bf16.msra.mxu0 %v4652_v1  ;;  %v4767_v1 = vsel %vm4165_vm0, %v18509_v7, 0 }
 0x677   : > { %14205 = vmatprep.subr.bf16.mxu0 %v4654_v44 }
 0x679   : > { %v18736_v48 = vpop.eup %16330 }
 0x67a   : > { %14206 = vmatpush3.bf16.msra.mxu0 %v4654_v44  ;;  %v4770_v44 = vsel %vm4165_vm0, %v18513_v28, 0 }
 0x67b   : > { %14207 = vmatprep.subr.bf16.mxu0 %v4656_v15  ;;  %v18738_v6 = vpop.eup %16332 }
 0x67c   : > { %v4617_v29 = vsel %vm4165_vm0, %v18738_v6, 0.0 }
 0x67d   : > { %v18740_v39 = vpop.eup %16334 }
 0x67e   : > { %v18742_v16 = vpop.eup %16336  ;;  %14208 = vmatpush3.bf16.msra.mxu0 %v4656_v15  ;;  %v4641_v0 = vpack.c.bf16 %v18740_v39, %v18738_v6 }
 0x67f   : > { %v4642_v19 = vpack.c.bf16 %v18736_v48, %v18742_v16  ;;  %14785 = vmatprep.subr.msk.bf16.mxu0 %vm4165_vm0, %v18509_v7  ;;  %v4623_v6 = vsel %vm4165_vm0, %v18742_v16, 0.0 }
 0x680   : > { %14209 = vmatprep.mubr.msk.bf16.mxu0 %vm4165_vm0, %v4641_v0 }
 0x681   : > { %14210 = vmatmul.mubr.msk.bf16.vlgmr.msra.gmra.mrb[80].mxu0 %vm4165_vm0, %v4642_v19 }
 0x687   : > { %14218 = vmatpush3.bf16.xpose.msra.mxu0 %v4767_v1 }
 0x688   : > { %14786 = vmatprep.subr.msk.bf16.mxu0 %vm4165_vm0, %v18513_v28 }
 0x68f   : > { %14220 = vmatpush3.bf16.xpose.msra.mxu0 %v4770_v44 }
 0x690   : > { %14787 = vmatprep.subr.msk.bf16.mxu0 %vm4165_vm0, %v18517_v17 }
 0x697   : > { %14222 = vmatpush3.bf16.xpose.msra.mxu0 %v4773_v27 }
 0x698   : > { %14788 = vmatprep.subr.msk.bf16.mxu0 %vm4165_vm0, %v18521_v21 }
 0x69f   : > { %14224 = vmatpush3.bf16.xpose.msra.mxu0 %v4776_v37 }
 0x6a1   : > { %v4583_v41 = vpop.xlane.xlu0 %4582 }
 0x6a2   : > { %v4597_v3 = vsub.f32 %v18696_v51, %v4583_v41 }
 0x6a3   : > { %v4586_v30 = vpop.xlane.xlu1 %4585 }
 0x6a4   : > { %v4609_v4 = vmul.f32 1.442695, %v4597_v3  ;;  %v4598_v63 = vsub.f32 %v18700_v54, %v4586_v30 }
 0x6a5   : > { %v4589_v40 = vpop.xlane.xlu0 %4588 }
 0x6a6   : > { %v4611_v55 = vmul.f32 1.442695, %v4598_v63  ;;  %v4599_v36 = vsub.f32 %v18710_v26, %v4589_v40  ;;  %16338 = vpow2.f32 %v4609_v4 }
 0x6a8   : > { %16340 = vpow2.f32 %v4611_v55  ;;  %v4613_v15 = vmul.f32 1.442695, %v4599_v36 }
 0x6a9   : > { %v4592_v0 = vpop.xlane.xlu0 %4591 }
 0x6aa   : > { %v4600_v19 = vsub.f32 %v18727_v32, %v4592_v0  ;;  %16342 = vpow2.f32 %v4613_v15 }
 0x6ac   : > { %v4615_v1 = vmul.f32 1.442695, %v4600_v19 }
 0x6ae   : > { %16344 = vpow2.f32 %v4615_v1 }
 0x6b0   : > { %v18770_v44 = vpop.eup %16338 }
 0x6b2   : > { %v18772_v51 = vpop.eup %16340 }
 0x6b3   : > { %v4643_v54 = vpack.c.bf16 %v18772_v51, %v18770_v44 }
 0x6b4   : > { %v18777_v27 = vpop.eup %16342 }
 0x6b5   : > { %14213 = vmatprep.mubr.msk.bf16.mxu0 %vm4165_vm0, %v4643_v54 }
 0x6b8   : > { %v18779_v26 = vpop.eup %16344 }
 0x6b9   : > { %v4644_v37 = vpack.c.bf16 %v18779_v26, %v18777_v27 }
 0x6bb   : > { %14214 = vmatmul.mubr.msk.bf16.gmra.mrb[84].mxu0 %vm4165_vm0, %v4644_v37 }
 0x6bc   : > { %14225 = vmatprep.mubr.msk.bf16.mxu0 %vm4165_vm0, %v18408_v50 }
 0x6c3   : > { %14226 = vmatmul.mubr.msk.bf16.vlgmr.msra.gmra.mrb[88].mxu0 %vm4165_vm0, %v18414_v57 }
 0x6c4   : > { %14229 = vmatprep.mubr.msk.bf16.mxu0 %vm4165_vm0, %v18418_v47 }
 0x6cb   : > { %14230 = vmatmul.mubr.msk.bf16.gmra.mrb[92].mxu0 %vm4165_vm0, %v18422_v14 }
 0x6e3   : > { %v18792_v32 = vpop.f32.mrb[72].mxu0 }
 0x6e4   : > { %21457 = vst [vmem:[#allocation56_spill] sm:$0xff] %v18792_v32  ;;  %v18794_v41 = vpop.f32.mrb[73].mxu0 }
 0x6e5   : > { %21458 = vst [vmem:[#allocation57_spill] sm:$0xff] %v18794_v41  ;;  %v18796_v3 = vpop.f32.mrb[74].mxu0 }
 0x6e6   : > { %21459 = vst [vmem:[#allocation58_spill] sm:$0xff] %v18796_v3  ;;  %v18798_v30 = vpop.f32.mrb[75].mxu0 }
 0x6e7   : > { %21460 = vst [vmem:[#allocation59_spill] sm:$0xff] %v18798_v30 }
 0x6ec   : > { %v18800_v4 = vpop.f32.mrb[76].mxu0 }
 0x6ed   : > { %21461 = vst [vmem:[#allocation60_spill] sm:$0xff] %v18800_v4  ;;  %v18802_v63 = vpop.f32.mrb[77].mxu0 }
 0x6ee   : > { %21462 = vst [vmem:[#allocation61_spill] sm:$0xff] %v18802_v63  ;;  %v18804_v40 = vpop.f32.mrb[78].mxu0 }
 0x6ef   : > { %21463 = vst [vmem:[#allocation62_spill] sm:$0xff] %v18804_v40  ;;  %v18806_v55 = vpop.f32.mrb[79].mxu0 }
 0x6f0   : > { %21464 = vst [vmem:[#allocation63_spill] sm:$0xff] %v18806_v55 }
 0x754   : > { %v18808_v36 = vpop.f32.mrb[80].mxu0 }
 0x755   : > { %21465 = vst [vmem:[#allocation64_spill] sm:$0xff] %v18808_v36  ;;  %v18810_v15 = vpop.f32.mrb[81].mxu0 }
 0x756   : > { %21466 = vst [vmem:[#allocation65_spill] sm:$0xff] %v18810_v15  ;;  %v18812_v0 = vpop.f32.mrb[82].mxu0 }
 0x757   : > { %21467 = vst [vmem:[#allocation66_spill] sm:$0xff] %v18812_v0  ;;  %v18814_v19 = vpop.f32.mrb[83].mxu0 }
 0x758   : > { %21468 = vst [vmem:[#allocation67_spill] sm:$0xff] %v18814_v19 }
 0x78e   : > { %v18816_v1 = vpop.f32.mrb[84].mxu0 }
 0x78f   : > { %21469 = vst [vmem:[#allocation68_spill] sm:$0xff] %v18816_v1  ;;  %v18818_v54 = vpop.f32.mrb[85].mxu0 }
 0x790   : > { %21470 = vst [vmem:[#allocation69_spill] sm:$0xff] %v18818_v54  ;;  %v18820_v37 = vpop.f32.mrb[86].mxu0 }
 0x791   : > { %21471 = vst [vmem:[#allocation70_spill] sm:$0xff] %v18820_v37  ;;  %v18822_v33 = vpop.f32.mrb[87].mxu0 }
 0x792   : > { %21472 = vst [vmem:[#allocation71_spill] sm:$0xff] %v18822_v33 }
 0x796   : > { %v14227_v4 = vpop.f32.mrb[88].mxu0 }
 0x797   : > { %v4845_v40 = vmul.f32 0.05103104, %v14227_v4  ;;  %v4812_v41 = vpop.f32.mrb[89].mxu0 }
 0x798   : > { %v4843_v30 = vmul.f32 0.05103104, %v4812_v41  ;;  %v14228_v63 = vpop.f32.mrb[90].mxu0 }
 0x799   : > { %v4846_v55 = vmul.f32 0.05103104, %v14228_v63  ;;  %v4815_v32 = vpop.f32.mrb[91].mxu0  ;;  %v4853_v3 = vsel %vm18562_vm1, %v4845_v40, -1e+30 }
 0x79a   : > { %v4844_v0 = vmul.f32 0.05103104, %v4815_v32  ;;  %v4865_v36 = vsel %vm4165_vm0, %v4853_v3, -inf  ;;  %v4851_v37 = vsel %vm18567_vm2, %v4843_v30, -1e+30 }
 0x79b   : > { %4866 = vmax.xlane.f32.xlu0 %v4865_v36  ;;  %v4854_v1 = vsel %vm18590_vm4, %v4846_v55, -1e+30  ;;  %v4859_v33 = vsel %vm4165_vm0, %v4851_v37, -inf }
 0x79c   : > { %v4868_v4 = vsel %vm4165_vm0, %v4854_v1, -inf  ;;  %v4852_v41 = vsel %vm18576_vm3, %v4844_v0, -1e+30 }
 0x79d   : > { %4869 = vmax.xlane.f32.xlu1 %v4868_v4  ;;  %v4862_v19 = vsel %vm4165_vm0, %v4852_v41, -inf }
 0x79e   : > { %v14231_v63 = vpop.f32.mrb[92].mxu0 }
 0x79f   : > { %v4849_v40 = vmul.f32 0.05103104, %v14231_v63  ;;  %4860 = vmax.xlane.f32.xlu0 %v4859_v33  ;;  %v4828_v32 = vpop.f32.mrb[93].mxu0 }
 0x7a0   : > { %v4847_v54 = vmul.f32 0.05103104, %v4828_v32  ;;  %v14232_v36 = vpop.f32.mrb[94].mxu0 }
 0x7a1   : > { %4863 = vmax.xlane.f32.xlu1 %v4862_v19  ;;  %v4831_v55 = vpop.f32.mrb[95].mxu0  ;;  %v18838_v30 = vsel %vm18609_vm6, %v4849_v40, -1e+30  ;;  %v4850_v19 = vmul.f32 0.05103104, %v14232_v36 }
 0x7a2   : > { %v4877_v4 = vsel %vm4165_vm0, %v18838_v30, -inf  ;;  %v18844_v0 = vsel %vm18628_vm8, %v4847_v54, -1e+30  ;;  %v4848_v54 = vmul.f32 0.05103104, %v4831_v55 }
 0x7a3   : > { %4878 = vmax.xlane.f32.xlu0 %v4877_v4  ;;  %v4871_v33 = vsel %vm4165_vm0, %v18844_v0, -inf  ;;  %v4858_v63 = vsel %vm18605_vm5, %v4850_v19, -1e+30 }
 0x7a4   : > { %v4880_v40 = vsel %vm4165_vm0, %v4858_v63, -inf }
 0x7a7   : > { %4872 = vmax.xlane.f32.xlu0 %v4871_v33 }
 0x7b2   : > { %5046 = vrot.lane.b32.xlu1 %v18513_v28, %s17144_s0  ;;  %v4856_v28 = vsel %vm18616_vm7, %v4848_v54, -1e+30 }
 0x7b6   : > { %5048 = vrot.lane.b32.xlu1 %v18517_v17, %s17144_s0  ;;  %v4874_v17 = vsel %vm4165_vm0, %v4856_v28, -inf }
 0x7bd   : > { %5044 = vrot.lane.b32.xlu0 %v18509_v7, %s17144_s0 }
 0x7c1   : > { %5032 = vrot.lane.b32.xlu0 %v18408_v50, %s17144_s0 }
 0x7c5   : > { %5036 = vrot.lane.b32.xlu0 %v18418_v47, %s17144_s0 }
 0x7da   : > { %4881 = vmax.xlane.f32.xlu1 %v4880_v40 }
 0x7de   : > { %4875 = vmax.xlane.f32.xlu1 %v4874_v17 }
 0x7ef   : > { %5050 = vrot.lane.b32.xlu1 %v18521_v21, %s17144_s0 }
 0x7f3   : > { %5034 = vrot.lane.b32.xlu1 %v18414_v57, %s17144_s0 }
 0x7f7   : > { %5038 = vrot.lane.b32.xlu1 %v18422_v14, %s17144_s0 }
 0x7fb   : > { %5239 = vrot.lane.b32.xlu1 %v18442_v42, %s17144_s0 }
 0x7ff   : > { %5241 = vrot.lane.b32.xlu1 %v18458_v62, %s17144_s0 }
 0x828   : > { %v4867_v50 = vpop.xlane.xlu0 %4866 }
 0x829   : > { %v4885_v32 = vsub.f32 %v4853_v3, %v4867_v50 }
 0x82a   : > { %v4870_v47 = vpop.xlane.xlu1 %4869 }
 0x82b   : > { %v4886_v7 = vsub.f32 %v4854_v1, %v4870_v47  ;;  %v4895_v57 = vmul.f32 1.442695, %v4885_v32 }
 0x82c   : > { %v4861_v36 = vpop.xlane.xlu0 %4860 }
 0x82d   : > { %v4897_v55 = vmul.f32 1.442695, %v4886_v7  ;;  %v4883_v4 = vsub.f32 %v4851_v37, %v4861_v36 }
 0x82e   : > { %v4864_v21 = vpop.xlane.xlu1 %4863 }
 0x82f   : > { %v4891_v33 = vmul.f32 1.442695, %v4883_v4  ;;  %v4884_v19 = vsub.f32 %v4852_v41, %v4864_v21  ;;  %16346 = vpow2.f32 %v4897_v55 }
 0x830   : > { %v4879_v54 = vpop.xlane.xlu0 %4878 }
 0x831   : > { %v4893_v14 = vmul.f32 1.442695, %v4884_v19  ;;  %16348 = vpow2.f32 %v4891_v33  ;;  %v4889_v33 = vsub.f32 %v18838_v30, %v4879_v54 }
 0x832   : > { %v5047_v47 = vpop.permute.xlu1 %5046 }
 0x833   : > { %16350 = vpow2.f32 %v4893_v14  ;;  %v5068_v7 = vsel %vm4165_vm0, %v5047_v47, 0 }
 0x834   : > { %16352 = vpow2.f32 %v4895_v57  ;;  %v4873_v42 = vpop.xlane.xlu0 %4872 }
 0x835   : > { %v4887_v55 = vsub.f32 %v18844_v0, %v4873_v42 }
 0x836   : > { %v5049_v32 = vpop.permute.xlu1 %5048 }
 0x837   : > { %v5071_v36 = vsel %vm4165_vm0, %v5049_v32, 0  ;;  %v4899_v19 = vmul.f32 1.442695, %v4887_v55 }
 0x838   : > { %v5045_v40 = vpop.permute.xlu0 %5044 }
 0x839   : > { %14789 = vmatprep.subr.msk.bf16.mxu1 %vm4165_vm0, %v5045_v40  ;;  %v18875_v62 = vpop.eup %16346  ;;  %v5065_v50 = vsel %vm4165_vm0, %v5045_v40, 0  ;;  %16354 = vpow2.f32 %v4899_v19 }
 0x83b   : > { %v18877_v3 = vpop.eup %16348 }
 0x83d   : > { %v18879_v1 = vpop.eup %16350 }
 0x83e   : > { %v18881_v37 = vpop.eup %16352  ;;  %v4931_v41 = vpack.c.bf16 %v18879_v1, %v18877_v3 }
 0x83f   : > { %v4932_v17 = vpack.c.bf16 %v18875_v62, %v18881_v37 }
 0x840   : > { %14241 = vmatprep.mubr.msk.bf16.mxu1 %vm4165_vm0, %v4931_v41  ;;  %v4903_v41 = vmul.f32 1.442695, %v4889_v33 }
 0x841   : > { %14242 = vmatmul.mubr.msk.bf16.vlgmr.msra.gmra.mrb[48].mxu1 %vm4165_vm0, %v4932_v17 }
 0x842   : > { %14250 = vmatpush3.bf16.xpose.msra.mxu1 %v5065_v50 }
 0x843   : > { %14790 = vmatprep.subr.msk.bf16.mxu1 %vm4165_vm0, %v5047_v47  ;;  %v18899_v0 = vpop.eup %16354 }
 0x84a   : > { %14252 = vmatpush3.bf16.xpose.msra.mxu1 %v5068_v7  ;;  %v5033_v7 = vpop.permute.xlu0 %5032 }
 0x84b   : > { %14791 = vmatprep.subr.msk.bf16.mxu1 %vm4165_vm0, %v5049_v32 }
 0x852   : > { %14254 = vmatpush3.bf16.xpose.msra.mxu1 %v5071_v36  ;;  %v5037_v36 = vpop.permute.xlu0 %5036 }
 0x867   : > { %v4882_v4 = vpop.xlane.xlu1 %4881 }
 0x868   : > { %v4890_v21 = vsub.f32 %v4858_v63, %v4882_v4 }
 0x86a   : > { %v4905_v57 = vmul.f32 1.442695, %v4890_v21 }
 0x86b   : > { %v4876_v14 = vpop.xlane.xlu1 %4875 }
 0x86c   : > { %v4888_v40 = vsub.f32 %v4856_v28, %v4876_v14  ;;  %16356 = vpow2.f32 %v4905_v57 }
 0x86e   : > { %v4901_v17 = vmul.f32 1.442695, %v4888_v40 }
 0x86f   : > { %v5051_v50 = vpop.permute.xlu1 %5050 }
 0x870   : > { %16358 = vpow2.f32 %v4901_v17  ;;  %14792 = vmatprep.subr.msk.bf16.mxu1 %vm4165_vm0, %v5051_v50  ;;  %v5074_v47 = vsel %vm4165_vm0, %v5051_v50, 0 }
 0x871   : > { %16360 = vpow2.f32 %v4903_v41  ;;  %14256 = vmatpush3.bf16.xpose.msra.mxu1 %v5074_v47 }
 0x872   : > { %14297 = vmatprep.subr.bf16.mxu1 %v18530_v34 }
 0x873   : > { %v5035_v32 = vpop.permute.xlu1 %5034 }
 0x876   : > { %v18901_v30 = vpop.eup %16356 }
 0x877   : > { %21473 = vst [vmem:[#allocation72_spill] sm:$0xff] %v18901_v30  ;;  %v5039_v55 = vpop.permute.xlu1 %5038 }
 0x87a   : > { %v18903_v63 = vpop.eup %16358 }
 0x87b   : > { %v18905_v28 = vpop.eup %16360  ;;  %v4933_v54 = vpack.c.bf16 %v18903_v63, %v18899_v0 }
 0x87c   : > { %21474 = vst [vmem:[#allocation73_spill] sm:$0xff] %v18905_v28  ;;  %v4934_v42 = vpack.c.bf16 %v18901_v30, %v18905_v28 }
 0x87d   : > { %14245 = vmatprep.mubr.msk.bf16.mxu1 %vm4165_vm0, %v4933_v54 }
 0x87e   : > { %14246 = vmatmul.mubr.msk.bf16.gmra.mrb[52].mxu1 %vm4165_vm0, %v4934_v42 }
 0x87f   : > { %14257 = vmatprep.mubr.msk.bf16.mxu1 %vm4165_vm0, %v5033_v7 }
 0x886   : > { %14258 = vmatmul.mubr.msk.bf16.vlgmr.msra.gmra.mrb[56].mxu1 %vm4165_vm0, %v5035_v32 }
 0x887   : > { %14298 = vmatpush3.bf16.msra.mxu1 %v18530_v34  ;;  %14261 = vmatprep.mubr.msk.bf16.mxu1 %vm4165_vm0, %v5037_v36 }
 0x888   : > { %14299 = vmatprep.subr.bf16.mxu1 %v18536_v43 }
 0x88b   : > { %14300 = vmatpush3.bf16.msra.mxu1 %v18536_v43 }
 0x88c   : > { %14301 = vmatprep.subr.bf16.mxu1 %v18543_v9 }
 0x88e   : > { %14262 = vmatmul.mubr.msk.bf16.gmra.mrb[60].mxu1 %vm4165_vm0, %v5039_v55 }
 0x88f   : > { %14302 = vmatpush3.bf16.msra.mxu1 %v18543_v9 }
 0x890   : > { %14303 = vmatprep.subr.bf16.mxu1 %v18552_v10 }
 0x893   : > { %14304 = vmatpush3.bf16.msra.mxu1 %v18552_v10 }
 0x914   : > { %v18924_v4 = vpop.f32.mrb[48].mxu1 }
 0x915   : > { %21475 = vst [vmem:[#allocation74_spill] sm:$0xff] %v18924_v4  ;;  %v18926_v21 = vpop.f32.mrb[49].mxu1 }
 0x916   : > { %21476 = vst [vmem:[#allocation75_spill] sm:$0xff] %v18926_v21  ;;  %v18928_v33 = vpop.f32.mrb[50].mxu1 }
 0x917   : > { %21477 = vst [vmem:[#allocation76_spill] sm:$0xff] %v18928_v33  ;;  %v18930_v19 = vpop.f32.mrb[51].mxu1 }
 0x918   : > { %21478 = vst [vmem:[#allocation77_spill] sm:$0xff] %v18930_v19 }
 0x951   : > { %v18932_v57 = vpop.f32.mrb[52].mxu1 }
 0x952   : > { %21479 = vst [vmem:[#allocation78_spill] sm:$0xff] %v18932_v57  ;;  %v18934_v14 = vpop.f32.mrb[53].mxu1 }
 0x953   : > { %21480 = vst [vmem:[#allocation79_spill] sm:$0xff] %v18934_v14  ;;  %v18936_v40 = vpop.f32.mrb[54].mxu1 }
 0x954   : > { %21481 = vst [vmem:[#allocation80_spill] sm:$0xff] %v18936_v40  ;;  %v18938_v41 = vpop.f32.mrb[55].mxu1 }
 0x955   : > { %21482 = vst [vmem:[#allocation81_spill] sm:$0xff] %v18938_v41 }
 0x959   : > { %v14259_v17 = vpop.f32.mrb[56].mxu1 }
 0x95a   : > { %v5143_v50 = vmul.f32 0.05103104, %v14259_v17  ;;  %v5110_v47 = vpop.f32.mrb[57].mxu1 }
 0x95b   : > { %v5141_v54 = vmul.f32 0.05103104, %v5110_v47  ;;  %v14260_v42 = vpop.f32.mrb[58].mxu1 }
 0x95c   : > { %v5113_v7 = vpop.f32.mrb[59].mxu1  ;;  %v5151_v32 = vsel %vm18562_vm1, %v5143_v50, -1e+30  ;;  %v5144_v19 = vmul.f32 0.05103104, %v14260_v42 }
 0x95d   : > { %v5142_v36 = vmul.f32 0.05103104, %v5113_v7  ;;  %v5163_v55 = vsel %vm4165_vm0, %v5151_v32, -inf  ;;  %v5149_v21 = vsel %vm18567_vm2, %v5141_v54, -1e+30 }
 0x95e   : > { %5164 = vmax.xlane.f32.xlu0 %v5163_v55  ;;  %v5157_v40 = vsel %vm4165_vm0, %v5149_v21, -inf  ;;  %v5152_v50 = vsel %vm18590_vm4, %v5144_v19, -1e+30 }
 0x95f   : > { %v5150_v57 = vsel %vm18576_vm3, %v5142_v36, -1e+30  ;;  %v5166_v55 = vsel %vm4165_vm0, %v5152_v50, -inf }
 0x960   : > { %v5160_v17 = vsel %vm4165_vm0, %v5150_v57, -inf }
 0x961   : > { %5161 = vmax.xlane.f32.xlu1 %v5160_v17  ;;  %v14263_v47 = vpop.f32.mrb[60].mxu1 }
 0x962   : > { %5158 = vmax.xlane.f32.xlu0 %v5157_v40  ;;  %v5126_v14 = vpop.f32.mrb[61].mxu1  ;;  %v5147_v17 = vmul.f32 0.05103104, %v14263_v47 }
 0x963   : > { %v14264_v7 = vpop.f32.mrb[62].mxu1  ;;  %v5145_v40 = vmul.f32 0.05103104, %v5126_v14 }
 0x964   : > { %v5129_v42 = vpop.f32.mrb[63].mxu1  ;;  %v5148_v41 = vmul.f32 0.05103104, %v14264_v7 }
 0x965   : > { %v5146_v54 = vmul.f32 0.05103104, %v5129_v42 }
 0x966   : > { %5167 = vmax.xlane.f32.xlu0 %v5166_v55  ;;  %v18964_v55 = vsel %vm18628_vm8, %v5145_v40, -1e+30  ;;  %v18976_v47 = vsel %vm18605_vm5, %v5148_v41, -1e+30 }
 0x967   : > { %v18958_v36 = vsel %vm18616_vm7, %v5146_v54, -1e+30  ;;  %v5178_v42 = vsel %vm4165_vm0, %v18976_v47, -inf  ;;  %v5240_v54 = vpop.permute.xlu1 %5239 }
 0x968   : > { %v5172_v19 = vsel %vm4165_vm0, %v18958_v36, -inf }
 0x96b   : > { %v5242_v40 = vpop.permute.xlu1 %5241 }
 0x972   : > { %5243 = vrot.lane.b32.xlu1 %v18471_v59, %s17144_s0  ;;  %v5169_v59 = vsel %vm4165_vm0, %v18964_v55, -inf }
 0x97c   : > { %5237 = vrot.lane.b32.xlu0 %v18429_v23, %s17144_s0  ;;  %v18970_v23 = vsel %vm18609_vm6, %v5147_v17, -1e+30 }
 0x97d   : > { %v5175_v14 = vsel %vm4165_vm0, %v18970_v23, -inf }
 0x996   : > { %5173 = vmax.xlane.f32.xlu1 %v5172_v19 }
 0x99b   : > { %5170 = vmax.xlane.f32.xlu0 %v5169_v59 }
 0x99f   : > { %5176 = vmax.xlane.f32.xlu0 %v5175_v14 }
 0x9a3   : > { %5179 = vmax.xlane.f32.xlu0 %v5178_v42 }
 0x9eb   : > { %v5165_v7 = vpop.xlane.xlu0 %5164 }
 0x9ec   : > { %v5183_v8 = vsub.f32 %v5151_v32, %v5165_v7 }
 0x9ee   : > { %v5162_v19 = vpop.xlane.xlu1 %5161  ;;  %v5193_v28 = vmul.f32 1.442695, %v5183_v8 }
 0x9ef   : > { %v5182_v59 = vsub.f32 %v5150_v57, %v5162_v19  ;;  %v5159_v4 = vpop.xlane.xlu0 %5158 }
 0x9f0   : > { %v5181_v17 = vsub.f32 %v5149_v21, %v5159_v4 }
 0x9f1   : > { %v5191_v33 = vmul.f32 1.442695, %v5182_v59 }
 0x9f2   : > { %v5189_v15 = vmul.f32 1.442695, %v5181_v17  ;;  %v5244_v21 = vpop.permute.xlu1 %5243 }
 0x9f3   : > { %16362 = vpow2.f32 %v5191_v33  ;;  %v5168_v14 = vpop.xlane.xlu0 %5167  ;;  %v5361_v33 = vsel %vm4165_vm0, %v18519_v18, 0 }
 0x9f4   : > { %16364 = vpow2.f32 %v5189_v15  ;;  %v5184_v49 = vsub.f32 %v5152_v50, %v5168_v14 }
 0x9f6   : > { %v5195_v41 = vmul.f32 1.442695, %v5184_v49 }
 0x9f7   : > { %v5238_v30 = vpop.permute.xlu0 %5237 }
 0x9f8   : > { %14265 = vmatprep.subr.bf16.mxu0 %v5238_v30  ;;  %16366 = vpow2.f32 %v5195_v41 }
 0x9f9   : > { %14266 = vmatpush3.bf16.msra.mxu0 %v5238_v30  ;;  %16368 = vpow2.f32 %v5193_v28  ;;  %v5355_v30 = vsel %vm4165_vm0, %v18511_v46, 0  ;;  %v5358_v28 = vsel %vm4165_vm0, %v18515_v31, 0 }
 0x9fa   : > { %14267 = vmatprep.subr.bf16.mxu0 %v5240_v54 }
 0x9fd   : > { %v18980_v42 = vpop.eup %16362  ;;  %14268 = vmatpush3.bf16.msra.mxu0 %v5240_v54  ;;  %v5364_v54 = vsel %vm4165_vm0, %v18525_v25, 0 }
 0x9fe   : > { %v18982_v57 = vpop.eup %16364  ;;  %14269 = vmatprep.subr.bf16.mxu0 %v5242_v40 }
 0x9ff   : > { %v5229_v4 = vpack.c.bf16 %v18980_v42, %v18982_v57  ;;  %v5205_v35 = vsel %vm4165_vm0, %v18982_v57, 0.0  ;;  %v4626_v57 = vsel %vm4165_vm0, %v18736_v48, 0.0  ;;  %v4629_v48 = vsel %vm4165_vm0, %v18770_v44, 0.0 }
 0xa00   : > { %v4907_v44 = vsel %vm4165_vm0, %v18877_v3, 0.0  ;;  %v4922_v3 = vsel %vm4165_vm0, %v18903_v63, 0.0 }
 0xa01   : > { %14270 = vmatpush3.bf16.msra.mxu0 %v5242_v40  ;;  %14273 = vmatprep.mubr.msk.bf16.mxu0 %vm4165_vm0, %v5229_v4 }
 0xa02   : > { %14271 = vmatprep.subr.bf16.mxu0 %v5244_v21  ;;  %v18987_v8 = vpop.eup %16366 }
 0xa03   : > { %v18989_v49 = vpop.eup %16368 }
 0xa04   : > { %v5230_v15 = vpack.c.bf16 %v18987_v8, %v18989_v49 }
 0xa05   : > { %14272 = vmatpush3.bf16.msra.mxu0 %v5244_v21 }
 0xa06   : > { %14793 = vmatprep.subr.msk.bf16.mxu0 %vm4165_vm0, %v18511_v46 }
 0xa08   : > { %14274 = vmatmul.mubr.msk.bf16.vlgmr.msra.gmra.mrb[96].mxu0 %vm4165_vm0, %v5230_v15 }
 0xa0e   : > { %14282 = vmatpush3.bf16.xpose.msra.mxu0 %v5355_v30 }
 0xa0f   : > { %14794 = vmatprep.subr.msk.bf16.mxu0 %vm4165_vm0, %v18515_v31 }
 0xa16   : > { %14284 = vmatpush3.bf16.xpose.msra.mxu0 %v5358_v28 }
 0xa17   : > { %14795 = vmatprep.subr.msk.bf16.mxu0 %vm4165_vm0, %v18519_v18 }
 0xa1e   : > { %14286 = vmatpush3.bf16.xpose.msra.mxu0 %v5361_v33 }
 0xa1f   : > { %14796 = vmatprep.subr.msk.bf16.mxu0 %vm4165_vm0, %v18525_v25 }
 0xa23   : > { %v5174_v32 = vpop.xlane.xlu1 %5173 }
 0xa24   : > { %v5186_v50 = vsub.f32 %v18958_v36, %v5174_v32 }
 0xa26   : > { %14288 = vmatpush3.bf16.xpose.msra.mxu0 %v5364_v54  ;;  %v5199_v40 = vmul.f32 1.442695, %v5186_v50 }
 0xa28   : > { %v5171_v7 = vpop.xlane.xlu0 %5170  ;;  %16370 = vpow2.f32 %v5199_v40 }
 0xa29   : > { %v5185_v19 = vsub.f32 %v18964_v55, %v5171_v7 }
 0xa2b   : > { %v5197_v59 = vmul.f32 1.442695, %v5185_v19 }
 0xa2c   : > { %v5177_v17 = vpop.xlane.xlu0 %5176 }
 0xa2d   : > { %16372 = vpow2.f32 %v5197_v59  ;;  %v5187_v14 = vsub.f32 %v18970_v23, %v5177_v17 }
 0xa2f   : > { %v5201_v41 = vmul.f32 1.442695, %v5187_v14 }
 0xa30   : > { %v5180_v4 = vpop.xlane.xlu0 %5179 }
 0xa31   : > { %v5188_v21 = vsub.f32 %v18976_v47, %v5180_v4  ;;  %16374 = vpow2.f32 %v5201_v41 }
 0xa32   : > { %v19014_v36 = vpop.eup %16370 }
 0xa33   : > { %v5203_v15 = vmul.f32 1.442695, %v5188_v21 }
 0xa35   : > { %16376 = vpow2.f32 %v5203_v15 }
 0xa37   : > { %v19016_v30 = vpop.eup %16372 }
 0xa38   : > { %v5231_v55 = vpack.c.bf16 %v19014_v36, %v19016_v30 }
 0xa3a   : > { %14277 = vmatprep.mubr.msk.bf16.mxu0 %vm4165_vm0, %v5231_v55 }
 0xa3b   : > { %v19021_v28 = vpop.eup %16374 }
 0xa3c   : > { %v5223_v16 = vsel %vm4165_vm0, %v19021_v28, 0.0 }
 0xa3f   : > { %v19023_v33 = vpop.eup %16376 }
 0xa40   : > { %v5232_v23 = vpack.c.bf16 %v19023_v33, %v19021_v28  ;;  %v4916_v28 = vsel %vm4165_vm0, %v18875_v62, 0.0  ;;  %v4334_v62 = vsel %vm4165_vm0, %v18706_v52, 0.0 }
 0xa42   : > { %14278 = vmatmul.mubr.msk.bf16.gmra.mrb[100].mxu0 %vm4165_vm0, %v5232_v23 }
 0xa43   : > { %14289 = vmatprep.mubr.msk.bf16.mxu0 %vm4165_vm0, %v18432_v56 }
 0xa4a   : > { %14290 = vmatmul.mubr.msk.bf16.vlgmr.msra.gmra.mrb[104].mxu0 %vm4165_vm0, %v18446_v60 }
 0xa4b   : > { %14293 = vmatprep.mubr.msk.bf16.mxu0 %vm4165_vm0, %v18461_v12 }
 0xa52   : > { %14294 = vmatmul.mubr.msk.bf16.gmra.mrb[108].mxu0 %vm4165_vm0, %v18474_v13 }
 0xadb   : > { %v19036_v47 = vpop.f32.mrb[96].mxu0 }
 0xadc   : > { %21483 = vst [vmem:[#allocation82_spill] sm:$0xff] %v19036_v47  ;;  %v19038_v32 = vpop.f32.mrb[97].mxu0 }
 0xadd   : > { %v19040_v50 = vpop.f32.mrb[98].mxu0 }
 0xade   : > { %21484 = vst [vmem:[#allocation83_spill] sm:$0xff] %v19040_v50  ;;  %v19042_v54 = vpop.f32.mrb[99].mxu0 }
 0xadf   : > { %21485 = vst [vmem:[#allocation84_spill] sm:$0xff] %v19042_v54 }
 0xb15   : > { %v19044_v40 = vpop.f32.mrb[100].mxu0 }
 0xb16   : > { %21486 = vst [vmem:[#allocation85_spill] sm:$0xff] %v19044_v40  ;;  %v19046_v7 = vpop.f32.mrb[101].mxu0 }
 0xb17   : > { %21487 = vst [vmem:[#allocation86_spill] sm:$0xff] %v19046_v7  ;;  %v19048_v19 = vpop.f32.mrb[102].mxu0 }
 0xb18   : > { %21488 = vst [vmem:[#allocation87_spill] sm:$0xff] %v19048_v19  ;;  %v19050_v59 = vpop.f32.mrb[103].mxu0 }
 0xb19   : > { %21489 = vst [vmem:[#allocation88_spill] sm:$0xff] %v19050_v59 }
 0xb1d   : > { %v14291_v17 = vpop.f32.mrb[104].mxu0 }
 0xb1e   : > { %v5433_v14 = vmul.f32 0.05103104, %v14291_v17  ;;  %v5400_v41 = vpop.f32.mrb[105].mxu0 }
 0xb1f   : > { %v5431_v4 = vmul.f32 0.05103104, %v5400_v41  ;;  %v14292_v21 = vpop.f32.mrb[106].mxu0 }
 0xb20   : > { %v5434_v15 = vmul.f32 0.05103104, %v14292_v21  ;;  %v5403_v55 = vpop.f32.mrb[107].mxu0  ;;  %v5441_v23 = vsel %vm18562_vm1, %v5433_v14, -1e+30 }
 0xb21   : > { %v5432_v50 = vmul.f32 0.05103104, %v5403_v55  ;;  %v5453_v47 = vsel %vm4165_vm0, %v5441_v23, -inf  ;;  %v5439_v19 = vsel %vm18567_vm2, %v5431_v4, -1e+30 }
 0xb22   : > { %5454 = vmax.xlane.f32.xlu0 %v5453_v47  ;;  %v5442_v40 = vsel %vm18590_vm4, %v5434_v15, -1e+30  ;;  %v5447_v59 = vsel %vm4165_vm0, %v5439_v19, -inf }
 0xb23   : > { %v5456_v17 = vsel %vm4165_vm0, %v5442_v40, -inf  ;;  %v5440_v41 = vsel %vm18576_vm3, %v5432_v50, -1e+30 }
 0xb24   : > { %5457 = vmax.xlane.f32.xlu1 %v5456_v17  ;;  %v5450_v54 = vsel %vm4165_vm0, %v5440_v41, -inf }
 0xb25   : > { %v14295_v21 = vpop.f32.mrb[108].mxu0 }
 0xb26   : > { %v5437_v14 = vmul.f32 0.05103104, %v14295_v21  ;;  %5448 = vmax.xlane.f32.xlu0 %v5447_v59  ;;  %v5416_v55 = vpop.f32.mrb[109].mxu0 }
 0xb27   : > { %v5435_v7 = vmul.f32 0.05103104, %v5416_v55  ;;  %v14296_v47 = vpop.f32.mrb[110].mxu0 }
 0xb28   : > { %5451 = vmax.xlane.f32.xlu1 %v5450_v54  ;;  %v5419_v15 = vpop.f32.mrb[111].mxu0  ;;  %v19066_v4 = vsel %vm18609_vm6, %v5437_v14, -1e+30  ;;  %v5438_v54 = vmul.f32 0.05103104, %v14296_v47 }
 0xb29   : > { %v5465_v17 = vsel %vm4165_vm0, %v19066_v4, -inf  ;;  %v19072_v50 = vsel %vm18628_vm8, %v5435_v7, -1e+30  ;;  %v5436_v7 = vmul.f32 0.05103104, %v5419_v15 }
 0xb2a   : > { %5466 = vmax.xlane.f32.xlu0 %v5465_v17  ;;  %v5459_v59 = vsel %vm4165_vm0, %v19072_v50, -inf }
 0xb2e   : > { %5460 = vmax.xlane.f32.xlu0 %v5459_v59 }
 0xb39   : > { %5634 = vrot.lane.b32.xlu1 %v18515_v31, %s17144_s0  ;;  %v5446_v31 = vsel %vm18605_vm5, %v5438_v54, -1e+30 }
 0xb3a   : > { %v5468_v21 = vsel %vm4165_vm0, %v5446_v31, -inf }
 0xb3d   : > { %5636 = vrot.lane.b32.xlu1 %v18519_v18, %s17144_s0 }
 0xb44   : > { %5632 = vrot.lane.b32.xlu0 %v18511_v46, %s17144_s0  ;;  %v5444_v46 = vsel %vm18616_vm7, %v5436_v7, -1e+30 }
 0xb45   : > { %v5462_v18 = vsel %vm4165_vm0, %v5444_v46, -inf }
 0xb48   : > { %5620 = vrot.lane.b32.xlu0 %v18432_v56, %s17144_s0 }
 0xb4c   : > { %5624 = vrot.lane.b32.xlu0 %v18461_v12, %s17144_s0 }
 0xb50   : > { %5825 = vrot.lane.b32.xlu0 %v18530_v34, %s17144_s0 }
 0xb61   : > { %5469 = vmax.xlane.f32.xlu1 %v5468_v21 }
 0xb65   : > { %5463 = vmax.xlane.f32.xlu1 %v5462_v18 }
 0xb76   : > { %5638 = vrot.lane.b32.xlu1 %v18525_v25, %s17144_s0 }
 0xb7a   : > { %5622 = vrot.lane.b32.xlu1 %v18446_v60, %s17144_s0 }
 0xb7e   : > { %5626 = vrot.lane.b32.xlu1 %v18474_v13, %s17144_s0 }
 0xb82   : > { %5827 = vrot.lane.b32.xlu1 %v18536_v43, %s17144_s0 }
 0xbaf   : > { %v5455_v56 = vpop.xlane.xlu0 %5454 }
 0xbb0   : > { %v5473_v14 = vsub.f32 %v5441_v23, %v5455_v56 }
 0xbb1   : > { %v5458_v12 = vpop.xlane.xlu1 %5457 }
 0xbb2   : > { %v5474_v34 = vsub.f32 %v5442_v40, %v5458_v12  ;;  %v5483_v25 = vmul.f32 1.442695, %v5473_v14 }
 0xbb3   : > { %v5449_v55 = vpop.xlane.xlu0 %5448 }
 0xbb4   : > { %v5485_v47 = vmul.f32 1.442695, %v5474_v34  ;;  %v5471_v15 = vsub.f32 %v5439_v19, %v5449_v55 }
 0xbb5   : > { %v5452_v17 = vpop.xlane.xlu1 %5451 }
 0xbb6   : > { %v5479_v59 = vmul.f32 1.442695, %v5471_v15  ;;  %v5472_v54 = vsub.f32 %v5440_v41, %v5452_v17  ;;  %16378 = vpow2.f32 %v5485_v47 }
 0xbb7   : > { %v5467_v7 = vpop.xlane.xlu0 %5466 }
 0xbb8   : > { %v5481_v60 = vmul.f32 1.442695, %v5472_v54  ;;  %16380 = vpow2.f32 %v5479_v59 }
 0xbb9   : > { %v5635_v14 = vpop.permute.xlu1 %5634 }
 0xbba   : > { %16382 = vpow2.f32 %v5481_v60  ;;  %v5656_v47 = vsel %vm4165_vm0, %v5635_v14, 0  ;;  %v5477_v60 = vsub.f32 %v19066_v4, %v5467_v7 }
 0xbbb   : > { %16384 = vpow2.f32 %v5483_v25  ;;  %v5461_v13 = vpop.xlane.xlu0 %5460 }
 0xbbc   : > { %v5475_v59 = vsub.f32 %v19072_v50, %v5461_v13 }
 0xbbd   : > { %v5637_v15 = vpop.permute.xlu1 %5636 }
 0xbbe   : > { %v5659_v17 = vsel %vm4165_vm0, %v5637_v15, 0 }
 0xbbf   : > { %v5633_v21 = vpop.permute.xlu0 %5632 }
 0xbc0   : > { %14797 = vmatprep.subr.msk.bf16.mxu1 %vm4165_vm0, %v5633_v21  ;;  %v19103_v43 = vpop.eup %16378  ;;  %v5653_v34 = vsel %vm4165_vm0, %v5633_v21, 0  ;;  %v5487_v21 = vmul.f32 1.442695, %v5475_v59 }
 0xbc1   : > { %21490 = vst [vmem:[#allocation89_spill] sm:$0xff] %v19103_v43 }
 0xbc2   : > { %v19105_v40 = vpop.eup %16380  ;;  %16386 = vpow2.f32 %v5487_v21 }
 0xbc3   : > { %v5621_v23 = vpop.permute.xlu0 %5620 }
 0xbc4   : > { %v19107_v19 = vpop.eup %16382 }
 0xbc5   : > { %v19109_v18 = vpop.eup %16384  ;;  %v5519_v41 = vpack.c.bf16 %v19107_v19, %v19105_v40 }
 0xbc6   : > { %v5520_v56 = vpack.c.bf16 %v19103_v43, %v19109_v18 }
 0xbc7   : > { %14305 = vmatprep.mubr.msk.bf16.mxu1 %vm4165_vm0, %v5519_v41  ;;  %v5625_v12 = vpop.permute.xlu0 %5624 }
 0xbc8   : > { %14306 = vmatmul.mubr.msk.bf16.vlgmr.msra.gmra.mrb[64].mxu1 %vm4165_vm0, %v5520_v56 }
 0xbc9   : > { %14314 = vmatpush3.bf16.xpose.msra.mxu1 %v5653_v34 }
 0xbca   : > { %14798 = vmatprep.subr.msk.bf16.mxu1 %vm4165_vm0, %v5635_v14 }
 0xbcb   : > { %v5826_v55 = vpop.permute.xlu0 %5825 }
 0xbcc   : > { %14329 = vmatprep.subr.bf16.mxu0 %v5826_v55  ;;  %v19126_v13 = vpop.eup %16386 }
 0xbcd   : > { %14330 = vmatpush3.bf16.msra.mxu0 %v5826_v55  ;;  %v5491_v55 = vmul.f32 1.442695, %v5477_v60 }
 0xbd1   : > { %14316 = vmatpush3.bf16.xpose.msra.mxu1 %v5656_v47 }
 0xbd2   : > { %14799 = vmatprep.subr.msk.bf16.mxu1 %vm4165_vm0, %v5637_v15 }
 0xbd9   : > { %14318 = vmatpush3.bf16.xpose.msra.mxu1 %v5659_v17 }
 0xbee   : > { %v5470_v54 = vpop.xlane.xlu1 %5469 }
 0xbef   : > { %v5478_v25 = vsub.f32 %v5446_v31, %v5470_v54 }
 0xbf1   : > { %v5493_v41 = vmul.f32 1.442695, %v5478_v25 }
 0xbf2   : > { %v5464_v56 = vpop.xlane.xlu1 %5463 }
 0xbf3   : > { %v5476_v34 = vsub.f32 %v5444_v46, %v5464_v56  ;;  %16388 = vpow2.f32 %v5493_v41 }
 0xbf5   : > { %v5489_v14 = vmul.f32 1.442695, %v5476_v34 }
 0xbf6   : > { %v5639_v47 = vpop.permute.xlu1 %5638 }
 0xbf7   : > { %16390 = vpow2.f32 %v5489_v14  ;;  %v5662_v43 = vsel %vm4165_vm0, %v5639_v47, 0  ;;  %14800 = vmatprep.subr.msk.bf16.mxu1 %vm4165_vm0, %v5639_v47 }
 0xbf8   : > { %16392 = vpow2.f32 %v5491_v55  ;;  %14320 = vmatpush3.bf16.xpose.msra.mxu1 %v5662_v43 }
 0xbfa   : > { %v5623_v50 = vpop.permute.xlu1 %5622 }
 0xbfd   : > { %v19128_v4 = vpop.eup %16388 }
 0xbfe   : > { %v5627_v31 = vpop.permute.xlu1 %5626 }
 0xc01   : > { %v19130_v7 = vpop.eup %16390 }
 0xc02   : > { %v19132_v46 = vpop.eup %16392  ;;  %v5828_v15 = vpop.permute.xlu1 %5827  ;;  %v5521_v17 = vpack.c.bf16 %v19130_v7, %v19126_v13 }
 0xc03   : > { %14331 = vmatprep.subr.bf16.mxu0 %v5828_v15  ;;  %v5522_v59 = vpack.c.bf16 %v19128_v4, %v19132_v46 }
 0xc04   : > { %14309 = vmatprep.mubr.msk.bf16.mxu1 %vm4165_vm0, %v5521_v17  ;;  %14332 = vmatpush3.bf16.msra.mxu0 %v5828_v15 }
 0xc05   : > { %14310 = vmatmul.mubr.msk.bf16.gmra.mrb[68].mxu1 %vm4165_vm0, %v5522_v59 }
 0xc06   : > { %14321 = vmatprep.mubr.msk.bf16.mxu1 %vm4165_vm0, %v5621_v23 }
 0xc0d   : > { %14322 = vmatmul.mubr.msk.bf16.vlgmr.msra.gmra.mrb[72].mxu1 %vm4165_vm0, %v5623_v50 }
 0xc0e   : > { %14325 = vmatprep.mubr.msk.bf16.mxu1 %vm4165_vm0, %v5625_v12 }
 0xc15   : > { %14326 = vmatmul.mubr.msk.bf16.gmra.mrb[76].mxu1 %vm4165_vm0, %v5627_v31 }
 0xc9b   : > { %v19144_v43 = vpop.f32.mrb[64].mxu1 }
 0xc9c   : > { %v19146_v54 = vpop.f32.mrb[65].mxu1 }
 0xc9d   : > { %v19148_v25 = vpop.f32.mrb[66].mxu1 }
 0xc9e   : > { %v19150_v60 = vpop.f32.mrb[67].mxu1 }
 0xcd8   : > { %v19152_v21 = vpop.f32.mrb[68].mxu1 }
 0xcd9   : > { %v19154_v41 = vpop.f32.mrb[69].mxu1 }
 0xcda   : > { %v19156_v56 = vpop.f32.mrb[70].mxu1 }
 0xcdb   : > { %21491 = vst [vmem:[#allocation90_spill] sm:$0xff] %v19156_v56  ;;  %v19158_v23 = vpop.f32.mrb[71].mxu1 }
 0xcdc   : > { %21492 = vst [vmem:[#allocation91_spill] sm:$0xff] %v19158_v23 }
 0xce0   : > { %v14323_v34 = vpop.f32.mrb[72].mxu1 }
 0xce1   : > { %v5731_v12 = vmul.f32 0.05103104, %v14323_v34  ;;  %v5698_v55 = vpop.f32.mrb[73].mxu1 }
 0xce2   : > { %v5729_v14 = vmul.f32 0.05103104, %v5698_v55  ;;  %v14324_v47 = vpop.f32.mrb[74].mxu1 }
 0xce3   : > { %v5701_v50 = vpop.f32.mrb[75].mxu1  ;;  %v19162_v31 = vsel %vm18562_vm1, %v5731_v12, -1e+30  ;;  %v5732_v59 = vmul.f32 0.05103104, %v14324_v47 }
 0xce4   : > { %v5730_v15 = vmul.f32 0.05103104, %v5701_v50  ;;  %v5751_v17 = vsel %vm4165_vm0, %v19162_v31, -inf  ;;  %v19168_v56 = vsel %vm18567_vm2, %v5729_v14, -1e+30 }
 0xce5   : > { %5752 = vmax.xlane.f32.xlu0 %v5751_v17  ;;  %v5745_v12 = vsel %vm4165_vm0, %v19168_v56, -inf  ;;  %v19180_v2 = vsel %vm18590_vm4, %v5732_v59, -1e+30 }
 0xce6   : > { %v19172_v34 = vsel %vm18576_vm3, %v5730_v15, -1e+30 }
 0xce7   : > { %v5748_v55 = vsel %vm4165_vm0, %v19172_v34, -inf }
 0xce8   : > { %5749 = vmax.xlane.f32.xlu1 %v5748_v55  ;;  %v14327_v45 = vpop.f32.mrb[76].mxu1  ;;  %v5754_v55 = vsel %vm4165_vm0, %v19180_v2, -inf }
 0xce9   : > { %v5735_v50 = vmul.f32 0.05103104, %v14327_v45  ;;  %5746 = vmax.xlane.f32.xlu0 %v5745_v12  ;;  %v5714_v47 = vpop.f32.mrb[77].mxu1 }
 0xcea   : > { %v5733_v14 = vmul.f32 0.05103104, %v5714_v47  ;;  %v14328_v17 = vpop.f32.mrb[78].mxu1 }
 0xceb   : > { %v5736_v38 = vmul.f32 0.05103104, %v14328_v17  ;;  %v5717_v15 = vpop.f32.mrb[79].mxu1  ;;  %v19184_v23 = vsel %vm18609_vm6, %v5735_v50, -1e+30  ;;  %v4620_v17 = vsel %vm4165_vm0, %v18740_v39, 0.0 }
 0xcec   : > { %v5763_v45 = vsel %vm4165_vm0, %v19184_v23, -inf  ;;  %v5734_v12 = vmul.f32 0.05103104, %v5717_v15  ;;  %v19192_v53 = vsel %vm18628_vm8, %v5733_v14, -1e+30  ;;  %v5208_v14 = vsel %vm4165_vm0, %v18980_v42, 0.0 }
 0xced   : > { %5755 = vmax.xlane.f32.xlu0 %v5754_v55  ;;  %5764 = vmax.xlane.f32.xlu1 %v5763_v45  ;;  %v19196_v59 = vsel %vm18605_vm5, %v5736_v38, -1e+30  ;;  %v5757_v5 = vsel %vm4165_vm0, %v19192_v53, -inf  ;;  %v5220_v42 = vsel %vm4165_vm0, %v19014_v36, 0.0  ;;  %v5217_v39 = vsel %vm4165_vm0, %v19016_v30, 0.0  ;;  %v21495_v15 = vld [vmem:[#allocation55_spill] sm:$0xff] }
 0xcee   : > { %v5766_v50 = vsel %vm4165_vm0, %v19196_v59, -inf  ;;  %v19204_v47 = vsel %vm18616_vm7, %v5734_v12, -1e+30  ;;  %v4638_v36 = vsel %vm4165_vm0, %v18779_v26, 0.0  ;;  %v4910_v30 = vsel %vm4165_vm0, %v18879_v1, 0.0 }
 0xcef   : > { %v5760_v22 = vsel %vm4165_vm0, %v19204_v47, -inf  ;;  %v4319_v26 = vsel %vm4165_vm0, %v18682_v61, 0.0  ;;  %v4328_v1 = vsel %vm4165_vm0, %v18689_v20, 0.0  ;;  %v4919_v61 = vsel %vm4165_vm0, %v18899_v0, 0.0  ;;  %v21496_v0 = vld [vmem:[#allocation54_spill] sm:$0xff] }
 0xcf0   : > { %v4331_v20 = vsel %vm4165_vm0, %v18712_v24, 0.0  ;;  %v4340_v55 = vsel %vm4165_vm0, %v21495_v15, 0.0  ;;  %v4337_v52 = vsel %vm4165_vm0, %v21496_v0, 0.0  ;;  %v15414_v15 = vld [vmem:[%s17772_s14 + $0x8] ss:$12 sps:$4 sm:$0xff]  }
 0xcf1   : > { %5758 = vmax.xlane.f32.xlu0 %v5757_v5  ;;  %5767 = vmax.xlane.f32.xlu1 %v5766_v50  ;;  %v15395_v0 = vld [vmem:[%s17772_s14 + $0x48] ss:$12 sps:$4 sm:$0xff]  }
 0xcf5   : > { %5761 = vmax.xlane.f32.xlu1 %v5760_v22 }
 0xd06   : > { %5831 = vrot.lane.b32.xlu1 %v18552_v10, %s17144_s0  ;;  %v5214_v10 = vsel %vm4165_vm0, %v18987_v8, 0.0  ;;  %v4632_v8 = vsel %vm4165_vm0, %v18772_v51, 0.0  ;;  %v4635_v51 = vsel %vm4165_vm0, %v18777_v27, 0.0  ;;  %v4913_v27 = vsel %vm4165_vm0, %v18881_v37, 0.0  ;;  %v21493_v37 = vld [vmem:[#allocation72_spill] sm:$0xff] }
 0xd07   : > { %5829 = vrot.lane.b32.xlu0 %v18543_v9, %s17144_s0  ;;  %v5211_v9 = vsel %vm4165_vm0, %v18989_v49, 0.0  ;;  %v5226_v49 = vsel %vm4165_vm0, %v19023_v33, 0.0  ;;  %v4322_v33 = vsel %vm4165_vm0, %v18680_v58, 0.0  ;;  %v4325_v58 = vsel %vm4165_vm0, %v18686_v11, 0.0  ;;  %v21494_v11 = vld [vmem:[#allocation73_spill] sm:$0xff] }
 0xd08   : > { %v4928_v38 = vsel %vm4165_vm0, %v21493_v37, 0.0  ;;  %v4925_v63 = vsel %vm4165_vm0, %v21494_v11, 0.0  ;;  %v15392_v37 = vld [vmem:[%s17772_s14 + $0x30] ss:$12 sps:$4 sm:$0xff]   ;;  %v15397_v11 = vld [vmem:[%s17772_s14 + $0x4c] ss:$12 sps:$4 sm:$0xff]  }
 0xd26   : > { %5206 = vadd.xlane.f32.xlu0 %v5205_v35 }
 0xd2a   : > { %4618 = vadd.xlane.f32.xlu0 %v4617_v29  ;;  %5209 = vadd.xlane.f32.xlu1 %v5208_v14 }
 0xd2e   : > { %4621 = vadd.xlane.f32.xlu0 %v4620_v17  ;;  %5215 = vadd.xlane.f32.xlu1 %v5214_v10 }
 0xd32   : > { %5212 = vadd.xlane.f32.xlu0 %v5211_v9  ;;  %4627 = vadd.xlane.f32.xlu1 %v4626_v57 }
 0xd36   : > { %4624 = vadd.xlane.f32.xlu0 %v4623_v6  ;;  %5221 = vadd.xlane.f32.xlu1 %v5220_v42 }
 0xd3a   : > { %5218 = vadd.xlane.f32.xlu0 %v5217_v39  ;;  %4633 = vadd.xlane.f32.xlu1 %v4632_v8 }
 0xd3e   : > { %4630 = vadd.xlane.f32.xlu0 %v4629_v48  ;;  %5227 = vadd.xlane.f32.xlu1 %v5226_v49 }
 0xd42   : > { %5224 = vadd.xlane.f32.xlu0 %v5223_v16  ;;  %4639 = vadd.xlane.f32.xlu1 %v4638_v36 }
 0xd46   : > { %4636 = vadd.xlane.f32.xlu0 %v4635_v51  ;;  %4911 = vadd.xlane.f32.xlu1 %v4910_v30 }
 0xd4a   : > { %4908 = vadd.xlane.f32.xlu0 %v4907_v44  ;;  %4323 = vadd.xlane.f32.xlu1 %v4322_v33  ;;  %v15386_v33 = vld [vmem:[%s17772_s14] ss:$12 sps:$4 sm:$0xff]  }
 0xd4e   : > { %4320 = vadd.xlane.f32.xlu0 %v4319_v26  ;;  %4917 = vadd.xlane.f32.xlu1 %v4916_v28  ;;  %v15391_v28 = vld [vmem:[%s17772_s14 + $0x1c] ss:$12 sps:$4 sm:$0xff]  }
 0xd52   : > { %4914 = vadd.xlane.f32.xlu0 %v4913_v27  ;;  %4329 = vadd.xlane.f32.xlu1 %v4328_v1  ;;  %v15389_v27 = vld [vmem:[%s17772_s14 + $0x18] ss:$12 sps:$4 sm:$0xff]   ;;  %v15394_v1 = vld [vmem:[%s17772_s14 + $0x34] ss:$12 sps:$4 sm:$0xff]  }
 0xd56   : > { %4326 = vadd.xlane.f32.xlu0 %v4325_v58  ;;  %4923 = vadd.xlane.f32.xlu1 %v4922_v3 }
 0xd5a   : > { %4920 = vadd.xlane.f32.xlu0 %v4919_v61  ;;  %4335 = vadd.xlane.f32.xlu1 %v4334_v62 }
 0xd5e   : > { %4332 = vadd.xlane.f32.xlu0 %v4331_v20  ;;  %4929 = vadd.xlane.f32.xlu1 %v4928_v38 }
 0xd62   : > { %4926 = vadd.xlane.f32.xlu0 %v4925_v63  ;;  %4341 = vadd.xlane.f32.xlu1 %v4340_v55  ;;  %v15413_v63 = vld [vmem:[%s17772_s14 + $0xc8] ss:$12 sps:$4 sm:$0xff]   ;;  %v15418_v55 = vld [vmem:[%s17772_s14 + $0xe0] ss:$12 sps:$4 sm:$0xff]  }
 0xd63   : > { %13785 = vmatprep.subr.bf16.mxu1 %v15413_v63  ;;  %v15442_v63 = vld [vmem:[%s17772_s14 + $0x154] ss:$12 sps:$4 sm:$0xff]  }
 0xd64   : > { %13786 = vmatpush3.bf16.msra.mxu1 %v15414_v15 }
 0xd65   : > { %13787 = vmatprep.subr.bf16.mxu1 %v15418_v55  ;;  %v15448_v55 = vld [vmem:[%s17772_s14 + $0x170] ss:$12 sps:$4 sm:$0xff]  }
 0xd66   : > { %4338 = vadd.xlane.f32.xlu0 %v4337_v52  ;;  %v15400_v52 = vld [vmem:[%s17772_s14 + $0x64] ss:$12 sps:$4 sm:$0xff]  }
 0xd72   : > { %v5753_v45 = vpop.xlane.xlu0 %5752 }
 0xd73   : > { %v5771_v24 = vsub.f32 %v19162_v31, %v5753_v45  ;;  %v15419_v45 = vld [vmem:[%s17772_s14 + $0x20] ss:$12 sps:$4 sm:$0xff]  }
 0xd74   : > { %13788 = vmatpush3.bf16.msra.mxu1 %v15419_v45 }
 0xd75   : > { %v5750_v12 = vpop.xlane.xlu1 %5749  ;;  %v5781_v14 = vmul.f32 1.442695, %v5771_v24  ;;  %v15398_v24 = vld [vmem:[%s17772_s14 + $0x60] ss:$12 sps:$4 sm:$0xff]  }
 0xd76   : > { %v5770_v5 = vsub.f32 %v19172_v34, %v5750_v12  ;;  %v5747_v50 = vpop.xlane.xlu0 %5746  ;;  %v15423_v12 = vld [vmem:[%s17772_s14 + $0xf8] ss:$12 sps:$4 sm:$0xff]  }
 0xd77   : > { %v5769_v22 = vsub.f32 %v19168_v56, %v5747_v50  ;;  %v15424_v50 = vld [vmem:[%s17772_s14 + $0x38] ss:$12 sps:$4 sm:$0xff]   ;;  %13789 = vmatprep.subr.bf16.mxu1 %v15423_v12 }
 0xd78   : > { %v5779_v35 = vmul.f32 1.442695, %v5770_v5  ;;  %v15403_v5 = vld [vmem:[%s17772_s14 + $0x7c] ss:$12 sps:$4 sm:$0xff]   ;;  %13790 = vmatpush3.bf16.msra.mxu1 %v15424_v50 }
 0xd79   : > { %v5777_v29 = vmul.f32 1.442695, %v5769_v22  ;;  %v15428_v22 = vld [vmem:[%s17772_s14 + $0x110] ss:$12 sps:$4 sm:$0xff]  }
 0xd7a   : > { %16394 = vpow2.f32 %v5779_v35  ;;  %v5756_v17 = vpop.xlane.xlu0 %5755  ;;  %v5765_v10 = vpop.xlane.xlu1 %5764  ;;  %v15401_v35 = vld [vmem:[%s17772_s14 + $0x78] ss:$12 sps:$4 sm:$0xff]   ;;  %13791 = vmatprep.subr.bf16.mxu1 %v15428_v22 }
 0xd7b   : > { %16396 = vpow2.f32 %v5777_v29  ;;  %v5772_v9 = vsub.f32 %v19180_v2, %v5756_v17  ;;  %v5775_v56 = vsub.f32 %v19184_v23, %v5765_v10  ;;  %v15406_v29 = vld [vmem:[%s17772_s14 + $0x94] ss:$12 sps:$4 sm:$0xff]   ;;  %v15409_v17 = vld [vmem:[%s17772_s14 + $0xac] ss:$12 sps:$4 sm:$0xff]  }
 0xd7c   : > { %16398 = vpow2.f32 %v5781_v14  ;;  %v15404_v14 = vld [vmem:[%s17772_s14 + $0x90] ss:$12 sps:$4 sm:$0xff]   ;;  %v15407_v10 = vld [vmem:[%s17772_s14 + $0xa8] ss:$12 sps:$4 sm:$0xff]  }
 0xd7d   : > { %v5783_v57 = vmul.f32 1.442695, %v5772_v9  ;;  %v5789_v36 = vmul.f32 1.442695, %v5775_v56  ;;  %v15412_v9 = vld [vmem:[%s17772_s14 + $0xc4] ss:$12 sps:$4 sm:$0xff]  }
 0xd7e   : > { %v5759_v6 = vpop.xlane.xlu0 %5758  ;;  %v5768_v42 = vpop.xlane.xlu1 %5767  ;;  %v15433_v56 = vld [vmem:[%s17772_s14 + $0x128] ss:$12 sps:$4 sm:$0xff]  }
 0xd7f   : > { %16400 = vpow2.f32 %v5783_v57  ;;  %v5773_v31 = vsub.f32 %v19192_v53, %v5759_v6  ;;  %v5776_v34 = vsub.f32 %v19196_v59, %v5768_v42  ;;  %v15388_v59 = vld [vmem:[%s17772_s14 + $0x4] ss:$12 sps:$4 sm:$0xff]   ;;  %v15410_v57 = vld [vmem:[%s17772_s14 + $0xc0] ss:$12 sps:$4 sm:$0xff]   ;;  %v15417_v6 = vld [vmem:[%s17772_s14 + $0xdc] ss:$12 sps:$4 sm:$0xff]  }
 0xd80   : > { %v15415_v42 = vld [vmem:[%s17772_s14 + $0xd8] ss:$12 sps:$4 sm:$0xff]  }
 0xd81   : > { %v5785_v39 = vmul.f32 1.442695, %v5773_v31  ;;  %v5791_v8 = vmul.f32 1.442695, %v5776_v34  ;;  %v15422_v31 = vld [vmem:[%s17772_s14 + $0xf4] ss:$12 sps:$4 sm:$0xff]  }
 0xd82   : > { %v5830_v48 = vpop.permute.xlu0 %5829  ;;  %v5762_v49 = vpop.xlane.xlu1 %5761  ;;  %v15429_v34 = vld [vmem:[%s17772_s14 + $0x50] ss:$12 sps:$4 sm:$0xff]  }
 0xd83   : > { %v5774_v16 = vsub.f32 %v19204_v47, %v5762_v49  ;;  %14333 = vmatprep.subr.bf16.mxu0 %v5830_v48  ;;  %16402 = vpow2.f32 %v5785_v39  ;;  %v15420_v39 = vld [vmem:[%s17772_s14 + $0xf0] ss:$12 sps:$4 sm:$0xff]   ;;  %13792 = vmatpush3.bf16.msra.mxu1 %v15429_v34  ;;  %v15434_v49 = vld [vmem:[%s17772_s14 + $0x68] ss:$12 sps:$4 sm:$0xff]  }
 0xd84   : > { %v19284_v2 = vpop.eup %16394  ;;  %14334 = vmatpush3.bf16.msra.mxu0 %v5830_v48  ;;  %16404 = vpow2.f32 %v5791_v8  ;;  %v15427_v48 = vld [vmem:[%s17772_s14 + $0x10c] ss:$12 sps:$4 sm:$0xff]   ;;  %13793 = vmatprep.subr.bf16.mxu1 %v15433_v56 }
 0xd85   : > { %v19286_v51 = vpop.eup %16396  ;;  %v5787_v53 = vmul.f32 1.442695, %v5774_v16  ;;  %v15438_v16 = vld [vmem:[%s17772_s14 + $0x140] ss:$12 sps:$4 sm:$0xff]  }
 0xd86   : > { %v5832_v23 = vpop.permute.xlu1 %5831  ;;  %v5817_v30 = vpack.c.bf16 %v19284_v2, %v19286_v51  ;;  %v19291_v47 = vpop.eup %16398 }
 0xd87   : > { %16406 = vpow2.f32 %v5787_v53  ;;  %14335 = vmatprep.subr.bf16.mxu0 %v5832_v23  ;;  %13794 = vmatpush3.bf16.msra.mxu1 %v15434_v49  ;;  %v21500_v49 = vld [vmem:[#allocation82_spill] sm:$0xff] }
 0xd88   : > { %16408 = vpow2.f32 %v5789_v36  ;;  %14336 = vmatpush3.bf16.msra.mxu0 %v5832_v23  ;;  %14337 = vmatprep.mubr.msk.bf16.mxu0 %vm4165_vm0, %v5817_v30  ;;  %v15425_v36 = vld [vmem:[%s17772_s14 + $0x108] ss:$12 sps:$4 sm:$0xff]   ;;  %v15432_v23 = vld [vmem:[%s17772_s14 + $0x124] ss:$12 sps:$4 sm:$0xff]   ;;  %v15439_v30 = vld [vmem:[%s17772_s14 + $0x80] ss:$12 sps:$4 sm:$0xff]  }
 0xd89   : > { %v19294_v44 = vpop.eup %16400  ;;  %6462 = vmatprep.subr.bf16.mxu0 %v15388_v59  ;;  %13795 = vmatprep.subr.bf16.mxu1 %v15438_v16 }
 0xd8a   : > { %v5818_v26 = vpack.c.bf16 %v19294_v44, %v19291_v47 }
 0xd8b   : > { %13796 = vmatpush3.bf16.msra.mxu1 %v15439_v30 }
 0xd8c   : > { %14338 = vmatmul.mubr.msk.bf16.vlgmr.msra.gmra.mrb[112].mxu0 %vm4165_vm0, %v5818_v26 }
 0xd8d   : > { %6463 = vmatpush1.bf16.msra.mxu0 %v15386_v33  ;;  %v19303_v58 = vpop.eup %16402  ;;  %v15430_v33 = vld [vmem:[%s17772_s14 + $0x120] ss:$12 sps:$4 sm:$0xff]  }
 0xd8e   : > { %6464 = vmatprep.subr.bf16.mxu0 %v15391_v28  ;;  %v19305_v3 = vpop.eup %16404 }
 0xd91   : > { %v19307_v61 = vpop.eup %16406  ;;  %6465 = vmatpush1.bf16.msra.mxu0 %v15389_v27  ;;  %v15437_v27 = vld [vmem:[%s17772_s14 + $0x13c] ss:$12 sps:$4 sm:$0xff]  }
 0xd92   : > { %v19309_v62 = vpop.eup %16408  ;;  %v5819_v20 = vpack.c.bf16 %v19307_v61, %v19303_v58  ;;  %6466 = vmatprep.subr.bf16.mxu0 %v15394_v1  ;;  %v15443_v1 = vld [vmem:[%s17772_s14 + $0x158] ss:$12 sps:$4 sm:$0xff]  }
 0xd93   : > { %v5820_v38 = vpack.c.bf16 %v19305_v3, %v19309_v62  ;;  %13797 = vmatprep.subr.bf16.mxu1 %v15443_v1  ;;  %v21503_v1 = vld [vmem:[#allocation66_spill] sm:$0xff] }
 0xd94   : > { %14341 = vmatprep.mubr.msk.bf16.mxu0 %vm4165_vm0, %v5819_v20  ;;  %v15444_v20 = vld [vmem:[%s17772_s14 + $0x98] ss:$12 sps:$4 sm:$0xff]  }
 0xd95   : > { %14342 = vmatmul.mubr.msk.bf16.gmra.mrb[116].mxu0 %vm4165_vm0, %v5820_v38  ;;  %13798 = vmatpush3.bf16.msra.mxu1 %v15444_v20 }
 0xd96   : > { %6467 = vmatpush1.bf16.msra.mxu0 %v15392_v37  ;;  %v15435_v37 = vld [vmem:[%s17772_s14 + $0x138] ss:$12 sps:$4 sm:$0xff]   ;;  %13799 = vmatprep.subr.bf16.mxu1 %v15448_v55 }
 0xd97   : > { %6468 = vmatprep.subr.bf16.mxu0 %v15397_v11  ;;  %v21504_v55 = vld [vmem:[#allocation86_spill] sm:$0xff] }
 0xd9a   : > { %6469 = vmatpush1.bf16.msra.mxu0 %v15395_v0  ;;  %v15440_v0 = vld [vmem:[%s17772_s14 + $0x150] ss:$12 sps:$4 sm:$0xff]  }
 0xd9b   : > { %6470 = vmatprep.subr.bf16.mxu0 %v15400_v52  ;;  %v15449_v52 = vld [vmem:[%s17772_s14 + $0xb0] ss:$12 sps:$4 sm:$0xff]  }
 0xd9c   : > { %13800 = vmatpush3.bf16.msra.mxu1 %v15449_v52  ;;  %v21505_v52 = vld [vmem:[#allocation88_spill] sm:$0xff] }
 0xd9e   : > { %6471 = vmatpush1.bf16.msra.mxu0 %v15398_v24 }
 0xd9f   : > { %6472 = vmatprep.subr.bf16.mxu0 %v15403_v5  ;;  %v15447_v5 = vld [vmem:[%s17772_s14 + $0x16c] ss:$12 sps:$4 sm:$0xff]  }
 0xda2   : > { %6473 = vmatpush1.bf16.msra.mxu0 %v15401_v35  ;;  %v21497_v35 = vld [vmem:[#allocation84_spill] sm:$0xff] }
 0xda3   : > { %6474 = vmatprep.subr.bf16.mxu0 %v15406_v29 }
 0xda6   : > { %6475 = vmatpush1.bf16.msra.mxu0 %v15404_v14 }
 0xda7   : > { %6476 = vmatprep.subr.bf16.mxu0 %v15409_v17 }
 0xdaa   : > { %6477 = vmatpush1.bf16.msra.mxu0 %v15407_v10  ;;  %v15445_v10 = vld [vmem:[%s17772_s14 + $0x168] ss:$12 sps:$4 sm:$0xff]  }
 0xdab   : > { %6478 = vmatprep.subr.bf16.mxu0 %v15412_v9 }
 0xdae   : > { %6479 = vmatpush1.bf16.msra.mxu0 %v15410_v57 }
 0xdaf   : > { %6480 = vmatprep.subr.bf16.mxu0 %v15417_v6  ;;  %v21498_v6 = vld [vmem:[#allocation65_spill] sm:$0xff] }
 0xdb2   : > { %6481 = vmatpush1.bf16.msra.mxu0 %v15415_v42 }
 0xdb3   : > { %v5207_v8 = vpop.xlane.xlu0 %5206  ;;  %6482 = vmatprep.subr.bf16.mxu0 %v15422_v31  ;;  %v21499_v31 = vld [vmem:[#allocation67_spill] sm:$0xff] }
 0xdb4   : > { %16410 = vrcp.f32 %v5207_v8 }
 0xdb6   : > { %6483 = vmatpush1.bf16.msra.mxu0 %v15420_v39 }
 0xdb7   : > { %v4619_v53 = vpop.xlane.xlu0 %4618  ;;  %v5210_v59 = vpop.xlane.xlu1 %5209  ;;  %6484 = vmatprep.subr.bf16.mxu0 %v15427_v48 }
 0xdb8   : > { %16412 = vrcp.f32 %v5210_v59 }
 0xdb9   : > { %16414 = vrcp.f32 %v4619_v53 }
 0xdba   : > { %6485 = vmatpush1.bf16.msra.mxu0 %v15425_v36  ;;  %v21501_v36 = vld [vmem:[#allocation83_spill] sm:$0xff] }
 0xdbb   : > { %v4622_v26 = vpop.xlane.xlu0 %4621  ;;  %v5216_v28 = vpop.xlane.xlu1 %5215  ;;  %6486 = vmatprep.subr.bf16.mxu0 %v15432_v23 }
 0xdbc   : > { %16416 = vrcp.f32 %v4622_v26 }
 0xdbd   : > { %16418 = vrcp.f32 %v5216_v28  ;;  %v21502_v28 = vld [vmem:[#allocation64_spill] sm:$0xff] }
 0xdbe   : > { %6487 = vmatpush1.bf16.msra.mxu0 %v15430_v33  ;;  %v16411_v15 = vpop.eup %16410 }
 0xdbf   : > { %v5213_v38 = vpop.xlane.xlu0 %5212  ;;  %v4628_v11 = vpop.xlane.xlu1 %4627  ;;  %6488 = vmatprep.subr.bf16.mxu0 %v15437_v27  ;;  %v5334_v22 = vmul.f32 %v16411_v15, %v19038_v32 }
 0xdc0   : > { %16420 = vrcp.f32 %v5213_v38 }
 0xdc1   : > { %16422 = vrcp.f32 %v4628_v11 }
 0xdc2   : > { %6489 = vmatpush1.bf16.msra.mxu0 %v15435_v37  ;;  %v16413_v45 = vpop.eup %16412 }
 0xdc3   : > { %v4625_v12 = vpop.xlane.xlu0 %4624  ;;  %v5222_v24 = vpop.xlane.xlu1 %5221  ;;  %6490 = vmatprep.subr.bf16.mxu0 %v15442_v63  ;;  %v5335_v29 = vmul.f32 %v16413_v45, %v21497_v35  ;;  %v21506_v35 = vld [vmem:[#allocation69_spill] sm:$0xff] }
 0xdc4   : > { %v16415_v50 = vpop.eup %16414  ;;  %16424 = vrcp.f32 %v4625_v12 }
 0xdc5   : > { %16426 = vrcp.f32 %v5222_v24  ;;  %v15014_v17 = vpack.i.bf16 %v5335_v29, %v5334_v22  ;;  %v4746_v42 = vmul.f32 %v16415_v50, %v21498_v6 }
 0xdc6   : > { %v16417_v14 = vpop.eup %16416  ;;  %6491 = vmatpush1.bf16.msra.mxu0 %v15440_v0 }
 0xdc7   : > { %v5219_v9 = vpop.xlane.xlu0 %5218  ;;  %v4634_v57 = vpop.xlane.xlu1 %4633  ;;  %v4747_v34 = vmul.f32 %v16417_v14, %v21499_v31  ;;  %6492 = vmatprep.subr.bf16.mxu0 %v15447_v5  ;;  %15015 = vrot.lane.b32.xlu0 %v15014_v17, %s17144_s0  ;;  %v21507_v14 = vld [vmem:[#allocation71_spill] sm:$0xff] }
 0xdc8   : > { %v16419_v56 = vpop.eup %16418  ;;  %16428 = vrcp.f32 %v5219_v9 }
 0xdc9   : > { %v15019_v32 = vpack.i.bf16 %v4747_v34, %v4746_v42  ;;  %16430 = vrcp.f32 %v4634_v57  ;;  %v19370_v53 = vmul.f32 %v16419_v56, %v21501_v36  ;;  %v21508_v34 = vld [vmem:[#allocation85_spill] sm:$0xff] }
 0xdca   : > { %v16421_v39 = vpop.eup %16420  ;;  %6493 = vmatpush1.bf16.msra.mxu0 %v15445_v10 }
 0xdcb   : > { %v4631_v8 = vpop.xlane.xlu0 %4630  ;;  %15020 = vrot.lane.b32.xlu1 %v15019_v32, %s17144_s0  ;;  %v5228_v48 = vpop.xlane.xlu1 %5227  ;;  %v19367_v16 = vmul.f32 %v16421_v39, %v21500_v49  ;;  %v21509_v32 = vld [vmem:[#allocation87_spill] sm:$0xff] }
 0xdcc   : > { %v16423_v59 = vpop.eup %16422  ;;  %16432 = vrcp.f32 %v4631_v8  ;;  %v21510_v8 = vld [vmem:[#allocation70_spill] sm:$0xff] }
 0xdcd   : > { %v15024_v23 = vpack.i.bf16 %v19370_v53, %v19367_v16  ;;  %16434 = vrcp.f32 %v5228_v48  ;;  %v19378_v20 = vmul.f32 %v16423_v59, %v21503_v1 }
 0xdce   : > { %v16425_v30 = vpop.eup %16424 }
 0xdcf   : > { %v5225_v33 = vpop.xlane.xlu0 %5224  ;;  %v4640_v26 = vpop.xlane.xlu1 %4639  ;;  %v19375_v27 = vmul.f32 %v16425_v30, %v21502_v28 }
 0xdd0   : > { %v16427_v37 = vpop.eup %16426  ;;  %16436 = vrcp.f32 %v5225_v33  ;;  %v21511_v33 = vld [vmem:[#allocation68_spill] sm:$0xff] }
 0xdd1   : > { %16438 = vrcp.f32 %v4640_v26  ;;  %v15029_v38 = vpack.i.bf16 %v19378_v20, %v19375_v27  ;;  %v19388_v45 = vmul.f32 %v16427_v37, %v21505_v52  ;;  %v5814_v27 = vsel %vm4165_vm0, %v19305_v3, 0.0 }
 0xdd2   : > { %v16429_v11 = vpop.eup %16428 }
 0xdd3   : > { %v4637_v63 = vpop.xlane.xlu0 %4636  ;;  %v19382_v15 = vpop.xlane.xlu1 %4911  ;;  %v19385_v0 = vmul.f32 %v16429_v11, %v21504_v55  ;;  %v5498_v11 = vsel %vm4165_vm0, %v19107_v19, 0.0  ;;  %v21514_v19 = vld [vmem:[#allocation58_spill] sm:$0xff] }
 0xdd4   : > { %v16431_v12 = vpop.eup %16430  ;;  %16440 = vrcp.f32 %v4637_v63 }
 0xdd5   : > { %v15034_v24 = vpack.i.bf16 %v19388_v45, %v19385_v0  ;;  %v19400_v17 = vmul.f32 %v16431_v12, %v21507_v14  ;;  %v21512_v12 = vld [vmem:[#allocation76_spill] sm:$0xff]  ;;  %v5501_v14 = vsel %vm4165_vm0, %v19109_v18, 0.0 }
 0xdd6   : > { %v16433_v5 = vpop.eup %16432 }
 0xdd7   : > { %v19392_v50 = vpop.xlane.xlu0 %4908  ;;  %v19394_v22 = vpop.xlane.xlu1 %4323  ;;  %v19397_v29 = vmul.f32 %v16433_v5, %v21506_v35 }
 0xdd8   : > { %v16435_v10 = vpop.eup %16434 }
 0xdd9   : > { %v15039_v9 = vpack.i.bf16 %v19400_v17, %v19397_v29  ;;  %v19410_v39 = vmul.f32 %v16435_v10, %v21509_v32  ;;  %v15457_v29 = vld [vmem:[%s17772_s14 + $0x1b0] ss:$12 sps:$4 sm:$0xff]  }
 0xdda   : > { %v16437_v57 = vpop.eup %16436 }
 0xddb   : > { %v16439_v6 = vpop.eup %16438  ;;  %v19404_v42 = vpop.xlane.xlu0 %4320  ;;  %v19407_v56 = vmul.f32 %v16437_v57, %v21508_v34 }
 0xddc   : > { %v4918_v31 = vpop.xlane.xlu1 %4917  ;;  %v19413_v48 = vmul.f32 %v16439_v6, %v21510_v8 }
 0xddd   : > { %16442 = vrcp.f32 %v4918_v31  ;;  %v15044_v49 = vpack.i.bf16 %v19410_v39, %v19407_v56  ;;  %v21513_v31 = vld [vmem:[#allocation74_spill] sm:$0xff] }
 0xdde   : > { %v16441_v36 = vpop.eup %16440 }
 0xddf   : > { %v4915_v59 = vpop.xlane.xlu0 %4914  ;;  %v19418_v26 = vmul.f32 %v16441_v36, %v21511_v33  ;;  %v5799_v36 = vsel %vm4165_vm0, %v19291_v47, 0.0  ;;  %v21515_v33 = vld [vmem:[#allocation56_spill] sm:$0xff] }
 0xde0   : > { %v4330_v30 = vpop.xlane.xlu1 %4329  ;;  %16444 = vrcp.f32 %v4915_v59  ;;  %v5495_v59 = vsel %vm4165_vm0, %v19105_v40, 0.0  ;;  %v21518_v40 = vld [vmem:[#allocation79_spill] sm:$0xff] }
 0xde1   : > { %16446 = vrcp.f32 %v4330_v30  ;;  %v15049_v28 = vpack.i.bf16 %v19413_v48, %v19418_v26 }
 0xde3   : > { %v4327_v1 = vpop.xlane.xlu0 %4326 }
 0xde4   : > { %v4924_v37 = vpop.xlane.xlu1 %4923  ;;  %16448 = vrcp.f32 %v4327_v1 }
 0xde5   : > { %16450 = vrcp.f32 %v4924_v37  ;;  %v21516_v37 = vld [vmem:[#allocation81_spill] sm:$0xff] }
 0xde6   : > { %5499 = vadd.xlane.f32.xlu0 %v5498_v11 }
 0xde7   : > { %v16443_v63 = vpop.eup %16442  ;;  %v4921_v55 = vpop.xlane.xlu0 %4920 }
 0xde8   : > { %v4336_v52 = vpop.xlane.xlu1 %4335  ;;  %16452 = vrcp.f32 %v4921_v55  ;;  %v19425_v5 = vmul.f32 %v16443_v63, %v21512_v12  ;;  %v5793_v55 = vsel %vm4165_vm0, %v19286_v51, 0.0 }
 0xde9   : > { %16454 = vrcp.f32 %v4336_v52  ;;  %v21517_v52 = vld [vmem:[#allocation89_spill] sm:$0xff] }
 0xdea   : > { %v16445_v35 = vpop.eup %16444  ;;  %5502 = vadd.xlane.f32.xlu0 %v5501_v14  ;;  %v5504_v47 = vsel %vm4165_vm0, %v21517_v52, 0.0  ;;  %v21519_v14 = vld [vmem:[#allocation63_spill] sm:$0xff]  ;;  %v21526_v52 = vld [vmem:[#allocation57_spill] sm:$0xff] }
 0xdeb   : > { %v16447_v10 = vpop.eup %16446  ;;  %v4333_v57 = vpop.xlane.xlu0 %4332  ;;  %v19430_v34 = vmul.f32 %v16445_v35, %v21513_v31  ;;  %v5802_v31 = vsel %vm4165_vm0, %v19294_v44, 0.0 }
 0xdec   : > { %v4930_v6 = vpop.xlane.xlu1 %4929  ;;  %16456 = vrcp.f32 %v4333_v57  ;;  %v19433_v32 = vmul.f32 %v16447_v10, %v21514_v19  ;;  %v21520_v19 = vld [vmem:[#allocation61_spill] sm:$0xff] }
 0xded   : > { %16458 = vrcp.f32 %v4930_v6  ;;  %v5811_v6 = vsel %vm4165_vm0, %v19309_v62, 0.0  ;;  %v21522_v62 = vld [vmem:[#allocation78_spill] sm:$0xff] }
 0xdee   : > { %v16449_v8 = vpop.eup %16448  ;;  %5800 = vadd.xlane.f32.xlu0 %v5799_v36  ;;  %v21521_v36 = vld [vmem:[#allocation80_spill] sm:$0xff] }
 0xdef   : > { %v16451_v18 = vpop.eup %16450  ;;  %v4927_v30 = vpop.xlane.xlu0 %4926  ;;  %5496 = vadd.xlane.f32.xlu1 %v5495_v59  ;;  %v19440_v1 = vmul.f32 %v16449_v8, %v21515_v33  ;;  %v5796_v33 = vsel %vm4165_vm0, %v19284_v2, 0.0  ;;  %v5507_v2 = vsel %vm4165_vm0, %v19126_v13, 0.0  ;;  %v5808_v13 = vsel %vm4165_vm0, %v19307_v61, 0.0 }
 0xdf0   : > { %16460 = vrcp.f32 %v4927_v30  ;;  %v19443_v11 = vmul.f32 %v16451_v18, %v21516_v37  ;;  %v5805_v30 = vsel %vm4165_vm0, %v19303_v58, 0.0  ;;  %v5513_v58 = vsel %vm4165_vm0, %v19132_v46, 0.0  ;;  %v21525_v37 = vld [vmem:[#allocation59_spill] sm:$0xff] }
 0xdf1   : > { %16462 = vrcp.f32 %v19382_v15 }
 0xdf2   : > { %v16453_v63 = vpop.eup %16452  ;;  %5794 = vadd.xlane.f32.xlu0 %v5793_v55  ;;  %16464 = vrcp.f32 %v19392_v50 }
 0xdf3   : > { %v16455_v12 = vpop.eup %16454  ;;  %5505 = vadd.xlane.f32.xlu1 %v5504_v47  ;;  %v19450_v35 = vmul.f32 %v16453_v63, %v21518_v40  ;;  %16466 = vrcp.f32 %v19394_v22  ;;  %v19494_v16 = vpop.xlane.xlu0 %4338  ;;  %v21524_v22 = vld [vmem:[#allocation77_spill] sm:$0xff] }
 0xdf4   : > { %v19453_v10 = vmul.f32 %v16455_v12, %v21519_v14  ;;  %16468 = vrcp.f32 %v19404_v42 }
 0xdf6   : > { %v16457_v57 = vpop.eup %16456  ;;  %5812 = vadd.xlane.f32.xlu0 %v5811_v6 }
 0xdf7   : > { %v16459_v51 = vpop.eup %16458  ;;  %5803 = vadd.xlane.f32.xlu1 %v5802_v31  ;;  %v19460_v8 = vmul.f32 %v16457_v57, %v21520_v19  ;;  %v15452_v19 = vld [vmem:[%s17772_s14 + $0x184] ss:$12 sps:$4 sm:$0xff]  }
 0xdf8   : > { %v19463_v59 = vmul.f32 %v16459_v51, %v21521_v36  ;;  %v15450_v51 = vld [vmem:[%s17772_s14 + $0x180] ss:$12 sps:$4 sm:$0xff]   ;;  %v15455_v36 = vld [vmem:[%s17772_s14 + $0x19c] ss:$12 sps:$4 sm:$0xff]   ;;  %6535 = vmatprep.subr.bf16.mxu0 %v15452_v19 }
 0xdfa   : > { %v16461_v18 = vpop.eup %16460  ;;  %5806 = vadd.xlane.f32.xlu0 %v5805_v30  ;;  %v15460_v30 = vld [vmem:[%s17772_s14 + $0x1a0] ss:$12 sps:$4 sm:$0xff]  }
 0xdfb   : > { %5797 = vadd.xlane.f32.xlu1 %v5796_v33  ;;  %v19470_v44 = vmul.f32 %v16461_v18, %v21522_v62  ;;  %v16463_v53 = vpop.eup %16462  ;;  %v15456_v18 = vld [vmem:[%s17772_s14 + $0x188] ss:$12 sps:$4 sm:$0xff]   ;;  %v15453_v33 = vld [vmem:[%s17772_s14 + $0x198] ss:$12 sps:$4 sm:$0xff]  }
 0xdfc   : > { %v16465_v20 = vpop.eup %16464  ;;  %v5021_v42 = vmul.f32 %v16463_v53, %v21524_v22  ;;  %14345 = vmatprep.subr.bf16.mxu1 %v15456_v18  ;;  %v15459_v62 = vld [vmem:[%s17772_s14 + $0x1b4] ss:$12 sps:$4 sm:$0xff]   ;;  %v5510_v53 = vsel %vm4165_vm0, %v19130_v7, 0.0 }
 0xdfd   : > { %v16467_v46 = vpop.eup %16466 }
 0xdfe   : > { %v16469_v0 = vpop.eup %16468  ;;  %v4433_v63 = vmul.f32 %v16467_v46, %v21525_v37  ;;  %v15463_v46 = vld [vmem:[%s17772_s14 + $0x1cc] ss:$12 sps:$4 sm:$0xff]  }
 0xdff   : > { %v4432_v47 = vmul.f32 %v16469_v0, %v21526_v52  ;;  %v15475_v52 = vld [vmem:[%s17772_s14 + $0x214] ss:$12 sps:$4 sm:$0xff]  }
 0xe0c   : > { %15030 = vrot.lane.b32.xlu1 %v15029_v38, %s17144_s0  ;;  %v19500_v38 = vpop.xlane.xlu1 %4341 }
 0xe10   : > { %15035 = vrot.lane.b32.xlu1 %v15034_v24, %s17144_s0  ;;  %15025 = vrot.lane.b32.xlu0 %v15024_v23, %s17144_s0  ;;  %v5516_v23 = vsel %vm4165_vm0, %v19128_v4, 0.0  ;;  %v21523_v24 = vld [vmem:[#allocation75_spill] sm:$0xff] }
 0xe11   : > { %v5020_v50 = vmul.f32 %v16465_v20, %v21523_v24  ;;  %v15461_v20 = vld [vmem:[%s17772_s14 + $0x1c8] ss:$12 sps:$4 sm:$0xff]   ;;  %v15467_v24 = vld [vmem:[%s17772_s14 + $0x1e4] ss:$12 sps:$4 sm:$0xff]  }
 0xe2f   : > { %5508 = vadd.xlane.f32.xlu0 %v5507_v2 }
 0xe33   : > { %5514 = vadd.xlane.f32.xlu0 %v5513_v58 }
 0xe34   : > { %5815 = vadd.xlane.f32.xlu1 %v5814_v27 }
 0xe37   : > { %5517 = vadd.xlane.f32.xlu0 %v5516_v23 }
 0xe38   : > { %5809 = vadd.xlane.f32.xlu1 %v5808_v13 }
 0xe39   : > { %v15016_v15 = vpop.permute.xlu0 %15015 }
 0xe3a   : > { %v15018_v3 = vunpack.i.h.bf16 %v15016_v15  ;;  %v15017_v45 = vunpack.i.l.bf16 %v15016_v15  ;;  %v15464_v15 = vld [vmem:[%s17772_s14 + $0x1b8] ss:$12 sps:$4 sm:$0xff]  }
 0xe3c   : > { %v6034_v61 = vsel %vm4165_vm0, %v5020_v50, %v15017_v45  ;;  %v6035_v55 = vsel %vm4165_vm0, %v5021_v42, %v15018_v3  ;;  %v15465_v45 = vld [vmem:[%s17772_s14 + $0x1e0] ss:$12 sps:$4 sm:$0xff]   ;;  %v15468_v50 = vld [vmem:[%s17772_s14 + $0x1d0] ss:$12 sps:$4 sm:$0xff]  }
 0xe3d   : > { %v15021_v4 = vpop.permute.xlu1 %15020  ;;  %v6051_v14 = vpack.c.bf16 %v6035_v55, %v6034_v61  ;;  %v15472_v61 = vld [vmem:[%s17772_s14 + $0x1e8] ss:$12 sps:$4 sm:$0xff]  }
 0xe3e   : > { %v15023_v12 = vunpack.i.h.bf16 %v15021_v4  ;;  %v15022_v40 = vunpack.i.l.bf16 %v15021_v4  ;;  %v15471_v4 = vld [vmem:[%s17772_s14 + $0x1fc] ss:$12 sps:$4 sm:$0xff]  }
 0xe3f   : > { %6494 = vmatprep.mubr.bf16.mxu0 %v6051_v14  ;;  %6640 = vmatprep.mubr.bf16.mxu1 %v6051_v14 }
 0xe40   : > { %v6027_v57 = vsel %vm4165_vm0, %v4433_v63, %v15023_v12  ;;  %v6026_v6 = vsel %vm4165_vm0, %v4432_v47, %v15022_v40  ;;  %v15469_v63 = vld [vmem:[%s17772_s14 + $0x1f8] ss:$12 sps:$4 sm:$0xff]   ;;  %v15473_v47 = vld [vmem:[%s17772_s14 + $0x210] ss:$12 sps:$4 sm:$0xff]  }
 0xe41   : > { %v6050_v31 = vpack.c.bf16 %v6027_v57, %v6026_v6 }
 0xe43   : > { %6495 = vmatmul.mubr.bf16.vlgmr.msra.gmra.mrb[120].mxu0 %v6050_v31  ;;  %6641 = vmatmul.mubr.bf16.vlgmr.msra.gmra.mrb[80].mxu1 %v6050_v31 }
 0xe44   : > { %6536 = vmatpush1.bf16.msra.mxu0 %v15450_v51  ;;  %14346 = vmatpush3.bf16.msra.mxu1 %v15456_v18 }
 0xe45   : > { %6537 = vmatprep.subr.bf16.mxu0 %v15455_v36  ;;  %14347 = vmatprep.subr.bf16.mxu1 %v15460_v30 }
 0xe48   : > { %6538 = vmatpush1.bf16.msra.mxu0 %v15453_v33  ;;  %14348 = vmatpush3.bf16.msra.mxu1 %v15460_v30 }
 0xe49   : > { %15040 = vrot.lane.b32.xlu1 %v15039_v9, %s17144_s0  ;;  %6539 = vmatprep.subr.bf16.mxu0 %v15459_v62 }
 0xe4a   : > { %14349 = vmatprep.subr.bf16.mxu1 %v15464_v15 }
 0xe4c   : > { %6540 = vmatpush1.bf16.msra.mxu0 %v15457_v29  ;;  %14350 = vmatpush3.bf16.msra.mxu1 %v15464_v15 }
 0xe4d   : > { %15045 = vrot.lane.b32.xlu0 %v15044_v49, %s17144_s0  ;;  %6541 = vmatprep.subr.bf16.mxu0 %v15463_v46 }
 0xe4e   : > { %14351 = vmatprep.subr.bf16.mxu1 %v15468_v50 }
 0xe50   : > { %6542 = vmatpush1.bf16.msra.mxu0 %v15461_v20  ;;  %14352 = vmatpush3.bf16.msra.mxu1 %v15468_v50  ;;  %v15481_v50 = vld [vmem:[%s17772_s14 + $0x230] ss:$12 sps:$4 sm:$0xff]  }
 0xe51   : > { %6543 = vmatprep.subr.bf16.mxu0 %v15467_v24  ;;  %14353 = vmatprep.subr.bf16.mxu1 %v15472_v61 }
 0xe54   : > { %6544 = vmatpush1.bf16.msra.mxu0 %v15465_v45  ;;  %14354 = vmatpush3.bf16.msra.mxu1 %v15472_v61 }
 0xe55   : > { %6545 = vmatprep.subr.bf16.mxu0 %v15471_v4 }
 0xe58   : > { %6546 = vmatpush1.bf16.msra.mxu0 %v15469_v63 }
 0xe59   : > { %6547 = vmatprep.subr.bf16.mxu0 %v15475_v52 }
 0xe5c   : > { %6548 = vmatpush1.bf16.msra.mxu0 %v15473_v47 }
 0xe5f   : > { %v19526_v17 = vpop.f32.mrb[112].mxu0 }
 0xe60   : > { %v19528_v9 = vpop.f32.mrb[113].mxu0 }
 0xe61   : > { %v19530_v56 = vpop.f32.mrb[114].mxu0 }
 0xe62   : > { %v19532_v39 = vpop.f32.mrb[115].mxu0 }
 0xe68   : > { %v19534_v49 = vpop.f32.mrb[116].mxu0 }
 0xe69   : > { %v19536_v2 = vpop.f32.mrb[117].mxu0 }
 0xe6a   : > { %v19538_v58 = vpop.f32.mrb[118].mxu0 }
 0xe6b   : > { %v19540_v27 = vpop.f32.mrb[119].mxu0 }
 0xe6d   : > { %5511 = vadd.xlane.f32.xlu1 %v5510_v53 }
 0xe73   : > { %v5500_v23 = vpop.xlane.xlu0 %5499 }
 0xe74   : > { %16470 = vrcp.f32 %v5500_v23  ;;  %v15479_v23 = vld [vmem:[%s17772_s14 + $0x22c] ss:$12 sps:$4 sm:$0xff]  }
 0xe75   : > { %6549 = vmatprep.subr.bf16.mxu0 %v15479_v23 }
 0xe77   : > { %v5503_v13 = vpop.xlane.xlu0 %5502 }
 0xe78   : > { %16472 = vrcp.f32 %v5503_v13  ;;  %v15480_v13 = vld [vmem:[%s17772_s14 + $0x218] ss:$12 sps:$4 sm:$0xff]  }
 0xe7b   : > { %v5801_v0 = vpop.xlane.xlu0 %5800 }
 0xe7c   : > { %v5497_v3 = vpop.xlane.xlu1 %5496 }
 0xe7d   : > { %16474 = vrcp.f32 %v5497_v3 }
 0xe7e   : > { %15050 = vrot.lane.b32.xlu1 %v15049_v28, %s17144_s0  ;;  %v16471_v7 = vpop.eup %16470 }
 0xe7f   : > { %v5795_v22 = vpop.xlane.xlu0 %5794  ;;  %v19555_v37 = vmul.f32 %v16471_v7, %v19150_v60  ;;  %v15476_v60 = vld [vmem:[%s17772_s14 + $0x200] ss:$12 sps:$4 sm:$0xff]  }
 0xe80   : > { %v5506_v42 = vpop.xlane.xlu1 %5505  ;;  %14355 = vmatprep.subr.bf16.mxu1 %v15476_v60 }
 0xe81   : > { %16476 = vrcp.f32 %v5506_v42  ;;  %14356 = vmatpush3.bf16.msra.mxu1 %v15476_v60 }
 0xe82   : > { %v16473_v48 = vpop.eup %16472  ;;  %16478 = vrcp.f32 %v5801_v0  ;;  %14357 = vmatprep.subr.bf16.mxu1 %v15480_v13 }
 0xe83   : > { %v19557_v26 = vpop.xlane.xlu0 %5812  ;;  %v19563_v55 = vmul.f32 %v16473_v48, %v19144_v43 }
 0xe84   : > { %v5804_v28 = vpop.xlane.xlu1 %5803 }
 0xe85   : > { %16480 = vrcp.f32 %v5804_v28  ;;  %14358 = vmatpush3.bf16.msra.mxu1 %v15480_v13 }
 0xe86   : > { %16482 = vrcp.f32 %v5795_v22  ;;  %14359 = vmatprep.subr.bf16.mxu1 %v15481_v50 }
 0xe87   : > { %v16475_v12 = vpop.eup %16474  ;;  %v5807_v40 = vpop.xlane.xlu0 %5806 }
 0xe88   : > { %v5798_v14 = vpop.xlane.xlu1 %5797  ;;  %v19569_v57 = vmul.f32 %v16475_v12, %v19146_v54 }
 0xe89   : > { %16484 = vrcp.f32 %v5798_v14  ;;  %14360 = vmatpush3.bf16.msra.mxu1 %v15481_v50 }
 0xe8b   : > { %v16477_v43 = vpop.eup %16476  ;;  %v15026_v6 = vpop.permute.xlu0 %15025 }
 0xe8c   : > { %v15031_v31 = vpop.permute.xlu1 %15030  ;;  %v15028_v51 = vunpack.i.h.bf16 %v15026_v6  ;;  %v15027_v19 = vunpack.i.l.bf16 %v15026_v6  ;;  %v16479_v30 = vpop.eup %16478  ;;  %v19572_v33 = vmul.f32 %v16477_v43, %v19148_v25  ;;  %v15477_v25 = vld [vmem:[%s17772_s14 + $0x228] ss:$12 sps:$4 sm:$0xff]   ;;  %s21545_s14 = scalar_lea.vmem [#allocation14], %s17754_s22  ;;  %s21556_s22 = sld [smem:[#allocation38_spill]] }
 0xe8d   : > { %v15033_v36 = vunpack.i.h.bf16 %v15031_v31  ;;  %v15032_v18 = vunpack.i.l.bf16 %v15031_v31  ;;  %6550 = vmatpush1.bf16.msra.mxu0 %v15477_v25 }
 0xe8e   : > { %v6036_v54 = vsel %vm4165_vm0, %v19430_v34, %v15027_v19  ;;  %v6037_v62 = vsel %vm4165_vm0, %v19425_v5, %v15028_v51  ;;  %v5924_v34 = vmul.f32 %v16479_v30, %v19526_v17 }
 0xe8f   : > { %v6028_v29 = vsel %vm4165_vm0, %v19440_v1, %v15032_v18  ;;  %v6029_v53 = vsel %vm4165_vm0, %v19433_v32, %v15033_v36  ;;  %v16481_v20 = vpop.eup %16480  ;;  %v6054_v15 = vpack.c.bf16 %v6037_v62, %v6036_v54 }
 0xe90   : > { %v15036_v46 = vpop.permute.xlu1 %15035  ;;  %v6053_v0 = vpack.c.bf16 %v6029_v53, %v6028_v29  ;;  %v5925_v5 = vmul.f32 %v16481_v20, %v19530_v56  ;;  %v16483_v1 = vpop.eup %16482  ;;  %v21527_v29 = vld [vmem:[#allocation90_spill] sm:$0xff] }
 0xe91   : > { %v15038_v3 = vunpack.i.h.bf16 %v15036_v46  ;;  %v15037_v7 = vunpack.i.l.bf16 %v15036_v46  ;;  %6504 = vmatprep.mubr.bf16.mxu0 %v6054_v15  ;;  %6648 = vmatprep.mubr.bf16.mxu1 %v6054_v15  ;;  %v5922_v17 = vmul.f32 %v16483_v1, %v19528_v9 }
 0xe92   : > { %6505 = vmatmul.mubr.bf16.gmra.mrb[124].mxu0 %v6053_v0  ;;  %6649 = vmatmul.mubr.bf16.gmra.mrb[84].mxu1 %v6053_v0  ;;  %v15059_v24 = vpack.i.bf16 %v5925_v5, %v5924_v34  ;;  %v21528_v0 = vld [vmem:[#allocation60_spill] sm:$0xff]  ;;  %v21531_v5 = vld [vmem:[#allocation91_spill] sm:$0xff]  ;;  %p13605_p3 = scmp.ne.s32.totalorder %s21556_s22, 5 }
 0xe93   : > { %v6038_v32 = vsel %vm4165_vm0, %v19450_v35, %v15037_v7  ;;  %v6039_v45 = vsel %vm4165_vm0, %v19443_v11, %v15038_v3  ;;  %v16485_v22 = vpop.eup %16484  ;;  %v21529_v3 = vld [vmem:[#allocation62_spill] sm:$0xff] }
 0xe94   : > { %v6057_v42 = vpack.c.bf16 %v6039_v45, %v6038_v32  ;;  %v5923_v56 = vmul.f32 %v16485_v22, %v19532_v39 }
 0xe96   : > { %6514 = vmatprep.mubr.bf16.mxu0 %v6057_v42  ;;  %6656 = vmatprep.mubr.bf16.mxu1 %v6057_v42  ;;  %v15054_v48 = vpack.i.bf16 %v5923_v56, %v5922_v17 }
 0xe98   : > { %15055 = vrot.lane.b32.xlu1 %v15054_v48, %s17144_s0 }
 0xe9c   : > { %15060 = vrot.lane.b32.xlu1 %v15059_v24, %s17144_s0 }
 0xebc   : > { %v5509_v11 = vpop.xlane.xlu0 %5508 }
 0xebd   : > { %16486 = vrcp.f32 %v5509_v11 }
 0xebe   : > { %16488 = vrcp.f32 %v19557_v26 }
 0xec0   : > { %v5515_v35 = vpop.xlane.xlu0 %5514 }
 0xec1   : > { %v5816_v28 = vpop.xlane.xlu1 %5815  ;;  %16490 = vrcp.f32 %v5515_v35 }
 0xec2   : > { %16492 = vrcp.f32 %v5816_v28 }
 0xec3   : > { %16494 = vrcp.f32 %v5807_v40 }
 0xec4   : > { %v5518_v9 = vpop.xlane.xlu0 %5517 }
 0xec5   : > { %v5810_v39 = vpop.xlane.xlu1 %5809  ;;  %16496 = vrcp.f32 %v5518_v9 }
 0xec6   : > { %16498 = vrcp.f32 %v5810_v39 }
 0xec7   : > { %v16487_v63 = vpop.eup %16486  ;;  %16500 = vrcp.f32 %v19500_v38 }
 0xec8   : > { %v15046_v4 = vpop.permute.xlu0 %15045  ;;  %v19598_v52 = vmul.f32 %v16487_v63, %v19154_v41  ;;  %v16489_v26 = vpop.eup %16488  ;;  %16502 = vrcp.f32 %v19494_v16  ;;  %v21530_v16 = vmov 0  }
 0xec9   : > { %v15041_v61 = vpop.permute.xlu1 %15040  ;;  %v15048_v60 = vunpack.i.h.bf16 %v15046_v4  ;;  %v15047_v47 = vunpack.i.l.bf16 %v15046_v4  ;;  %v5928_v30 = vmul.f32 %v16489_v26, %v19534_v49 }
 0xeca   : > { %v15043_v12 = vunpack.i.h.bf16 %v15041_v61  ;;  %v15042_v14 = vunpack.i.l.bf16 %v15041_v61 }
 0xecb   : > { %v16491_v43 = vpop.eup %16490  ;;  %v6040_v31 = vsel %vm4165_vm0, %v19470_v44, %v15047_v47  ;;  %v6041_v51 = vsel %vm4165_vm0, %v19463_v59, %v15048_v60 }
 0xecc   : > { %v6030_v6 = vsel %vm4165_vm0, %v19460_v8, %v15042_v14  ;;  %v6031_v40 = vsel %vm4165_vm0, %v19453_v10, %v15043_v12  ;;  %v16493_v41 = vpop.eup %16492  ;;  %v6060_v36 = vpack.c.bf16 %v6041_v51, %v6040_v31  ;;  %v19609_v18 = vmul.f32 %v16491_v43, %v19152_v21 }
 0xecd   : > { %v6056_v19 = vpack.c.bf16 %v6031_v40, %v6030_v6  ;;  %v5929_v54 = vmul.f32 %v16493_v41, %v19538_v58  ;;  %v16495_v8 = vpop.eup %16494 }
 0xece   : > { %v5926_v53 = vmul.f32 %v16495_v8, %v19536_v2 }
 0xecf   : > { %6515 = vmatmul.mubr.bf16.gmra.mrb[128].mxu0 %v6056_v19  ;;  %6657 = vmatmul.mubr.bf16.gmra.mrb[88].mxu1 %v6056_v19  ;;  %v16497_v10 = vpop.eup %16496  ;;  %v15069_v44 = vpack.i.bf16 %v5929_v54, %v5928_v30 }
 0xed0   : > { %6524 = vmatprep.mubr.bf16.mxu0 %v6060_v36  ;;  %6664 = vmatprep.mubr.bf16.mxu1 %v6060_v36  ;;  %v16499_v62 = vpop.eup %16498  ;;  %v5615_v59 = vmul.f32 %v16497_v10, %v21527_v29 }
 0xed1   : > { %15070 = vrot.lane.b32.xlu1 %v15069_v44, %s17144_s0  ;;  %v5927_v21 = vmul.f32 %v16499_v62, %v19540_v27  ;;  %v16501_v58 = vpop.eup %16500 }
 0xed2   : > { %v16503_v13 = vpop.eup %16502  ;;  %v4439_v2 = vmul.f32 %v16501_v58, %v21529_v3  ;;  %v1353_v58 = vld [vmem:[%s21532_s4] sm:$0x7] }
 0xed3   : > { %v15064_v23 = vpack.i.bf16 %v5927_v21, %v5926_v53  ;;  %v4438_v25 = vmul.f32 %v16503_v13, %v21528_v0  ;;  %v21533_v13 = vld [vmem:[#allocation53_spill] sm:$0xff] }
 0xed5   : > { %15065 = vrot.lane.b32.xlu0 %v15064_v23, %s17144_s0 }
 0xefa   : > { %v5512_v49 = vpop.xlane.xlu1 %5511 }
 0xefb   : > { %16504 = vrcp.f32 %v5512_v49 }
 0xefe   : > { %v15051_v20 = vpop.permute.xlu1 %15050 }
 0xeff   : > { %v15053_v46 = vunpack.i.h.bf16 %v15051_v20  ;;  %v15052_v15 = vunpack.i.l.bf16 %v15051_v20  ;;  %v19656_v20 = vrot.slane %v1353_v58, %v21533_v13 }
 0xf01   : > { %v6032_v27 = vsel %vm4165_vm0, %v4438_v25, %v15052_v15  ;;  %v6033_v7 = vsel %vm4165_vm0, %v4439_v2, %v15053_v46  ;;  %v21534_v46 = vld [vmem:[#allocation51_spill] sm:$0xff]  ;;  %v21535_v25 = vld [vmem:[#allocation52_spill] sm:$0xff] }
 0xf02   : > { %v6059_v34 = vpack.c.bf16 %v6033_v7, %v6032_v27  ;;  %v19659_v15 = vrot.slane %v1353_v58, %v21534_v46  ;;  %v19662_v3 = vrot.slane %v1353_v58, %v21535_v25  ;;  %v16550_v58 = vld [vmem:[#allocation2 + $0x50] sm:$0xff] }
 0xf04   : > { %6525 = vmatmul.mubr.bf16.gmra.mrb[132].mxu0 %v6059_v34  ;;  %6665 = vmatmul.mubr.bf16.gmra.mrb[92].mxu1 %v6059_v34 }
 0xf05   : > { %v16505_v38 = vpop.eup %16504  ;;  %6567 = vmatprep.mubr.bf16.mxu0 %v21530_v16 }
 0xf06   : > { %v5613_v1 = vmul.f32 %v16505_v38, %v21531_v5 }
 0xf0a   : > { %v15056_v32 = vpop.permute.xlu1 %15055 }
 0xf0b   : > { %v15058_v45 = vunpack.i.h.bf16 %v15056_v32  ;;  %v15057_v24 = vunpack.i.l.bf16 %v15056_v32  ;;  %v16540_v32 = vld [vmem:[#allocation2] sm:$0xff] }
 0xf0d   : > { %v6043_v50 = vsel %vm4165_vm0, %v19555_v37, %v15058_v45  ;;  %v6042_v22 = vsel %vm4165_vm0, %v19569_v57, %v15057_v24  ;;  %v16541_v24 = vld [vmem:[#allocation2 + $0x8] sm:$0xff] }
 0xf0e   : > { %v6052_v42 = vpack.c.bf16 %v6043_v50, %v6042_v22  ;;  %v15061_v17 = vpop.permute.xlu1 %15060 }
 0xf0f   : > { %v15063_v56 = vunpack.i.h.bf16 %v15061_v17  ;;  %v15062_v48 = vunpack.i.l.bf16 %v15061_v17 }
 0xf10   : > { %6568 = vmatmul.mubr.bf16.vlgmr.msra.gmra.mrb[120].mxu0 %v6052_v42  ;;  %14361 = vmatprep.mubr.bf16.mxu1 %v6052_v42 }
 0xf11   : > { %v6045_v11 = vsel %vm4165_vm0, %v19572_v33, %v15063_v56  ;;  %v6044_v35 = vsel %vm4165_vm0, %v19563_v55, %v15062_v48  ;;  %6577 = vmatprep.mubr.bf16.mxu0 %v21530_v16 }
 0xf12   : > { %v6055_v28 = vpack.c.bf16 %v6045_v11, %v6044_v35  ;;  %v16542_v35 = vld [vmem:[#allocation2 + $0x18] sm:$0xff] }
 0xf14   : > { %14362 = vmatmul.mubr.bf16.vlgmr.msra.gmra.mrb[96].mxu1 %v6055_v28 }
 0xf16   : > { %v13801_v37 = vpop.f32.mrb[80].mxu1 }
 0xf17   : > { %v13802_v9 = vpop.f32.mrb[81].mxu1 }
 0xf18   : > { %v13803_v39 = vadd.f32 %v13802_v9, %v13801_v37  ;;  %v13804_v57 = vpop.f32.mrb[82].mxu1  ;;  %6578 = vmatmul.mubr.bf16.gmra.mrb[124].mxu0 %v6055_v28  ;;  %v16543_v37 = vld [vmem:[#allocation2 + $0x20] sm:$0xff] }
 0xf19   : > { %v13805_v63 = vpop.f32.mrb[83].mxu1  ;;  %6587 = vmatprep.mubr.bf16.mxu0 %v21530_v16 }
 0xf1a   : > { %v19635_v4 = vadd.f32 %v13805_v63, %v13804_v57  ;;  %v6643_v17 = vadd.f32 %v13803_v39, %v19662_v3 }
 0xf43   : > { %v15071_v61 = vpop.permute.xlu1 %15070 }
 0xf44   : > { %v15073_v60 = vunpack.i.h.bf16 %v15071_v61  ;;  %v15072_v33 = vunpack.i.l.bf16 %v15071_v61  ;;  %v6646_v61 = vadd.f32 %v19635_v4, %v19662_v3 }
 0xf46   : > { %v6048_v55 = vsel %vm4165_vm0, %v19609_v18, %v15072_v33  ;;  %v6049_v47 = vsel %vm4165_vm0, %v5615_v59, %v15073_v60 }
 0xf47   : > { %v15066_v12 = vpop.permute.xlu0 %15065  ;;  %v6061_v14 = vpack.c.bf16 %v6049_v47, %v6048_v55  ;;  %v16544_v55 = vld [vmem:[#allocation2 + $0x10] sm:$0xff] }
 0xf48   : > { %v15068_v26 = vunpack.i.h.bf16 %v15066_v12  ;;  %v15067_v43 = vunpack.i.l.bf16 %v15066_v12 }
 0xf4a   : > { %v6046_v6 = vsel %vm4165_vm0, %v19598_v52, %v15067_v43  ;;  %v6047_v40 = vsel %vm4165_vm0, %v5613_v1, %v15068_v26 }
 0xf4b   : > { %v6058_v31 = vpack.c.bf16 %v6047_v40, %v6046_v6  ;;  %v16545_v6 = vld [vmem:[#allocation2 + $0x28] sm:$0xff] }
 0xf4d   : > { %6588 = vmatmul.mubr.bf16.gmra.mrb[128].mxu0 %v6058_v31  ;;  %14365 = vmatprep.mubr.bf16.mxu1 %v6058_v31 }
 0xf4e   : > { %14366 = vmatmul.mubr.bf16.gmra.mrb[100].mxu1 %v6061_v14  ;;  %6597 = vmatprep.mubr.bf16.mxu0 %v21530_v16 }
 0xf55   : > { %6598 = vmatmul.mubr.bf16.gmra.mrb[132].mxu0 %v6061_v14 }
 0xf65   : > { %v13807_v51 = vpop.f32.mrb[84].mxu1 }
 0xf66   : > { %v13808_v41 = vpop.f32.mrb[85].mxu1 }
 0xf67   : > { %v13809_v19 = vadd.f32 %v13808_v41, %v13807_v51  ;;  %v13810_v36 = vpop.f32.mrb[86].mxu1 }
 0xf68   : > { %v13811_v18 = vpop.f32.mrb[87].mxu1 }
 0xf69   : > { %v13812_v30 = vadd.f32 %v13811_v18, %v13810_v36  ;;  %v6651_v1 = vadd.f32 %v13809_v19, %v19662_v3  ;;  %v16546_v19 = vld [vmem:[#allocation2 + $0x30] sm:$0xff] }
 0xf6b   : > { %v6654_v11 = vadd.f32 %v13812_v30, %v19662_v3 }
 0xfa2   : > { %v13813_v54 = vpop.f32.mrb[88].mxu1 }
 0xfa3   : > { %v13814_v8 = vpop.f32.mrb[89].mxu1 }
 0xfa4   : > { %v19645_v10 = vadd.f32 %v13814_v8, %v13813_v54  ;;  %v13816_v52 = vpop.f32.mrb[90].mxu1  ;;  %v16547_v54 = vld [vmem:[#allocation2 + $0x38] sm:$0xff] }
 0xfa5   : > { %v13817_v44 = vpop.f32.mrb[91].mxu1 }
 0xfa6   : > { %v19647_v62 = vadd.f32 %v13817_v44, %v13816_v52 }
 0xfd7   : > { %v13819_v29 = vpop.f32.mrb[92].mxu1 }
 0xfd8   : > { %v13820_v59 = vpop.f32.mrb[93].mxu1 }
 0xfd9   : > { %v19649_v53 = vadd.f32 %v13820_v59, %v13819_v29  ;;  %v13822_v21 = vpop.f32.mrb[94].mxu1  ;;  %v16548_v29 = vld [vmem:[#allocation2 + $0x48] sm:$0xff] }
 0xfda   : > { %v13823_v23 = vpop.f32.mrb[95].mxu1 }
 0xfdb   : > { %v19651_v49 = vadd.f32 %v13823_v23, %v13822_v21  ;;  %v16549_v21 = vld [vmem:[#allocation2 + $0x40] sm:$0xff] }
 0xfe3   : > { %v6569_v0 = vpop.f32.mrb[120].mxu0 }
 0xfe4   : > { %v14409_v2 = vadd.f32 %v6569_v0, %v19656_v20  ;;  %v6571_v27 = vpop.f32.mrb[121].mxu0 }
 0xfe5   : > { %v14410_v7 = vadd.f32 %v6571_v27, %v19659_v15  ;;  %v6573_v34 = vpop.f32.mrb[122].mxu0 }
 0xfe6   : > { %v14411_v38 = vadd.f32 %v6573_v34, %v19656_v20  ;;  %v6575_v5 = vpop.f32.mrb[123].mxu0  ;;  %v19668_v45 = vadd.f32 %v16540_v32, %v14409_v2  ;;  %v16551_v34 = vld [vmem:[#allocation2 + $0x58] sm:$0xff]  ;;  %v6667_v32 = vadd.f32 %v19649_v53, %v19662_v3 }
 0xfe7   : > { %v19670_v50 = vadd.f32 %v16541_v24, %v14410_v7  ;;  %v14412_v22 = vadd.f32 %v6575_v5, %v19659_v15  ;;  %v14363_v42 = vpop.f32.mrb[96].mxu1 }
 0xfe8   : > { %v6716_v56 = vadd.f32 %v14363_v42, %v6651_v1  ;;  %v6707_v48 = vpop.f32.mrb[97].mxu1  ;;  %v19675_v28 = vadd.f32 %v16542_v35, %v14411_v38 }
 0xfe9   : > { %v19677_v9 = vadd.f32 %v16543_v37, %v14412_v22  ;;  %v6708_v57 = vadd.f32 %v6707_v48, %v6643_v17  ;;  %v14364_v63 = vpop.f32.mrb[98].mxu1  ;;  %v6762_v14 = vadd.f32 %v19670_v50, %v19668_v45  ;;  %v6659_v17 = vadd.f32 %v19645_v10, %v19662_v3  ;;  %v16553_v10 = vld [vmem:[#allocation2 + $0x68] sm:$0xff] }
 0xfea   : > { %v6719_v60 = vadd.f32 %v14364_v63, %v6654_v11  ;;  %v6710_v33 = vpop.f32.mrb[99].mxu1  ;;  %v19701_v23 = vadd.f32 %v16549_v21, %v6716_v56  ;;  %v6670_v37 = vadd.f32 %v19651_v49, %v19662_v3 }
 0xfeb   : > { %v19681_v47 = vadd.f32 %v16544_v55, %v6708_v57  ;;  %v6711_v39 = vadd.f32 %v6710_v33, %v6646_v61  ;;  %v6579_v12 = vpop.f32.mrb[124].mxu0  ;;  %v6766_v41 = vadd.f32 %v19677_v9, %v19675_v28  ;;  %v16552_v57 = vld [vmem:[#allocation2 + $0x60] sm:$0xff]  ;;  %v6662_v55 = vadd.f32 %v19647_v62, %v19662_v3  ;;  %v16557_v3 = vld [vmem:[#allocation2 + $0x88] sm:$0xff] }
 0xfec   : > { %v14413_v26 = vadd.f32 %v6579_v12, %v19656_v20  ;;  %v6581_v43 = vpop.f32.mrb[125].mxu0  ;;  %v19710_v38 = vadd.f32 %v16551_v34, %v6719_v60 }
 0xfed   : > { %v19686_v40 = vadd.f32 %v16545_v6, %v6711_v39  ;;  %v14414_v31 = vadd.f32 %v6581_v43, %v19659_v15  ;;  %v6583_v51 = vpop.f32.mrb[126].mxu0  ;;  %v6763_v4 = vadd.f32 %v6762_v14, %v19681_v47  ;;  %v16554_v43 = vld [vmem:[#allocation2 + $0x78] sm:$0xff]  ;;  %v16555_v6 = vld [vmem:[#allocation2 + $0x70] sm:$0xff] }
 0xfee   : > { %v19692_v36 = vadd.f32 %v16546_v19, %v14413_v26  ;;  %v14415_v18 = vadd.f32 %v6583_v51, %v19656_v20  ;;  %v6585_v30 = vpop.f32.mrb[127].mxu0 }
 0xfef   : > { %v19695_v8 = vadd.f32 %v16547_v54, %v14414_v31  ;;  %v14416_v52 = vadd.f32 %v6585_v30, %v19659_v15  ;;  %6764 = vadd.xlane.f32.xlu0 %v6763_v4  ;;  %v6767_v44 = vadd.f32 %v6766_v41, %v19686_v40  ;;  %v16556_v4 = vld [vmem:[#allocation2 + $0x80] sm:$0xff] }
 0xff0   : > { %v19699_v59 = vadd.f32 %v16548_v29, %v14415_v18 }
 0xff1   : > { %v19703_v0 = vadd.f32 %v16550_v58, %v14416_v52  ;;  %6768 = vadd.xlane.f32.xlu1 %v6767_v44  ;;  %v6770_v2 = vadd.f32 %v19695_v8, %v19692_v36 }
 0xff3   : > { %v6771_v27 = vadd.f32 %v6770_v2, %v19701_v23  ;;  %v6774_v7 = vadd.f32 %v19703_v0, %v19699_v59  ;;  %v16558_v2 = vld [vmem:[#allocation2 + $0x90] sm:$0xff] }
 0xff5   : > { %6772 = vadd.xlane.f32.xlu0 %v6771_v27  ;;  %v6775_v5 = vadd.f32 %v6774_v7, %v19710_v38 }
 0xff9   : > { %6776 = vadd.xlane.f32.xlu0 %v6775_v5  ;;  %v16559_v5 = vld [vmem:[#allocation2 + $0x98] sm:$0xff] }
0x1020   : > { %v6589_v1 = vpop.f32.mrb[128].mxu0 }
0x1021   : > { %v14417_v24 = vadd.f32 %v6589_v1, %v19656_v20  ;;  %v6591_v22 = vpop.f32.mrb[129].mxu0  ;;  %v14367_v42 = vpop.f32.mrb[100].mxu1 }
0x1022   : > { %v14418_v56 = vadd.f32 %v6591_v22, %v19659_v15  ;;  %v6732_v48 = vadd.f32 %v14367_v42, %v6667_v32  ;;  %v6593_v11 = vpop.f32.mrb[130].mxu0  ;;  %v6723_v35 = vpop.f32.mrb[101].mxu1  ;;  %v16561_v42 = vld [vmem:[#allocation2 + $0xa0] sm:$0xff] }
0x1023   : > { %v19721_v63 = vadd.f32 %v16552_v57, %v14417_v24  ;;  %v14419_v53 = vadd.f32 %v6593_v11, %v19656_v20  ;;  %v6724_v61 = vadd.f32 %v6723_v35, %v6659_v17  ;;  %v6595_v60 = vpop.f32.mrb[131].mxu0  ;;  %v14368_v33 = vpop.f32.mrb[102].mxu1  ;;  %v16560_v24 = vld [vmem:[#allocation2 + $0xa8] sm:$0xff] }
0x1024   : > { %v19726_v39 = vadd.f32 %v16553_v10, %v14418_v56  ;;  %v14420_v12 = vadd.f32 %v6595_v60, %v19659_v15  ;;  %v6735_v14 = vadd.f32 %v14368_v33, %v6670_v37  ;;  %v6726_v26 = vpop.f32.mrb[103].mxu1  ;;  %v19753_v17 = vadd.f32 %v16561_v42, %v6732_v48  ;;  %v16562_v56 = vld [vmem:[#allocation2 + $0xb0] sm:$0xff]  ;;  %v15487_v33 = vld [vmem:[%s17786_s25 + $0xc] ss:$48 sps:$4 sm:$0xff]  }
0x1025   : > { %21536 = vst [vmem:[#allocation72_spill] sm:$0xff] %v19721_v63  ;;  %v19729_v49 = vadd.f32 %v16554_v43, %v14419_v53  ;;  %v19731_v31 = vadd.f32 %v16555_v6, %v6724_v61  ;;  %v6727_v51 = vadd.f32 %v6726_v26, %v6662_v55  ;;  %v15482_v53 = vld [vmem:[%s17786_s25] ss:$48 sps:$4 sm:$0xff]   ;;  %v15484_v61 = vld [vmem:[%s17786_s25 + $0x4] ss:$48 sps:$4 sm:$0xff]   ;;  %8670 = vmatprep.subr.bf16.mxu0 %v15487_v33 }
0x1026   : > { %21537 = vst [vmem:[#allocation73_spill] sm:$0xff] %v19726_v39  ;;  %v19733_v41 = vadd.f32 %v16556_v4, %v14420_v12  ;;  %v6778_v62 = vadd.f32 %v19726_v39, %v19721_v63  ;;  %v15485_v60 = vld [vmem:[%s17786_s25 + $0x8] ss:$48 sps:$4 sm:$0xff]   ;;  %v15490_v55 = vld [vmem:[%s17786_s25 + $0x64] ss:$48 sps:$4 sm:$0xff]   ;;  %8524 = vmatprep.subr.bf16.mxu1 %v15484_v61 }
0x1027   : > { %21538 = vst [vmem:[#allocation55_spill] sm:$0xff] %v19729_v49  ;;  %v19737_v19 = vadd.f32 %v16557_v3, %v6727_v51  ;;  %v15493_v10 = vld [vmem:[%s17786_s25 + $0x6c] ss:$48 sps:$4 sm:$0xff]   ;;  %8525 = vmatpush1.bf16.msra.mxu1 %v15482_v53  ;;  %v15488_v12 = vld [vmem:[%s17786_s25 + $0x60] ss:$48 sps:$4 sm:$0xff]   ;;  %8671 = vmatpush1.bf16.msra.mxu0 %v15485_v60 }
0x1028   : > { %21539 = vst [vmem:[#allocation54_spill] sm:$0xff] %v19733_v41  ;;  %v6599_v18 = vpop.f32.mrb[132].mxu0  ;;  %v6779_v30 = vadd.f32 %v6778_v62, %v19731_v31  ;;  %v6782_v54 = vadd.f32 %v19733_v41, %v19729_v49  ;;  %8526 = vmatprep.subr.bf16.mxu1 %v15490_v55  ;;  %v15496_v26 = vld [vmem:[%s17786_s25 + $0xc4] ss:$48 sps:$4 sm:$0xff]   ;;  %8672 = vmatprep.subr.bf16.mxu0 %v15493_v10  ;;  %v15499_v43 = vld [vmem:[%s17786_s25 + $0xcc] ss:$48 sps:$4 sm:$0xff]  }
0x1029   : > { %v14421_v52 = vadd.f32 %v6599_v18, %v19656_v20  ;;  %v6601_v44 = vpop.f32.mrb[133].mxu0  ;;  %v15494_v6 = vld [vmem:[%s17786_s25 + $0xc0] ss:$48 sps:$4 sm:$0xff]   ;;  %v15497_v51 = vld [vmem:[%s17786_s25 + $0xc8] ss:$48 sps:$4 sm:$0xff]  }
0x102a   : > { %v14422_v29 = vadd.f32 %v6601_v44, %v19659_v15  ;;  %v6603_v21 = vpop.f32.mrb[134].mxu0  ;;  %6780 = vadd.xlane.f32.xlu0 %v6779_v30  ;;  %v6783_v58 = vadd.f32 %v6782_v54, %v19737_v19  ;;  %v15502_v4 = vld [vmem:[%s17786_s25 + $0x124] ss:$48 sps:$4 sm:$0xff]   ;;  %v15505_v62 = vld [vmem:[%s17786_s25 + $0x12c] ss:$48 sps:$4 sm:$0xff]  }
0x102b   : > { %v19745_v27 = vadd.f32 %v16558_v2, %v14421_v52  ;;  %v14423_v7 = vadd.f32 %v6603_v21, %v19656_v20  ;;  %v6605_v34 = vpop.f32.mrb[135].mxu0  ;;  %8527 = vmatpush1.bf16.msra.mxu1 %v15488_v12  ;;  %v15500_v3 = vld [vmem:[%s17786_s25 + $0x120] ss:$48 sps:$4 sm:$0xff]   ;;  %v15503_v18 = vld [vmem:[%s17786_s25 + $0x128] ss:$48 sps:$4 sm:$0xff]  }
0x102c   : > { %v19748_v1 = vadd.f32 %v16559_v5, %v14422_v29  ;;  %v14424_v32 = vadd.f32 %v6605_v34, %v19659_v15  ;;  %6784 = vadd.xlane.f32.xlu1 %v6783_v58  ;;  %v16563_v15 = vld [vmem:[#allocation2 + $0xb8] sm:$0xff]  ;;  %8528 = vmatprep.subr.bf16.mxu1 %v15496_v26  ;;  %v15508_v30 = vld [vmem:[%s17786_s25 + $0x184] ss:$48 sps:$4 sm:$0xff]  }
0x102d   : > { %21540 = vst [vmem:[#allocation84_spill] sm:$0xff] %v19745_v27  ;;  %v19751_v22 = vadd.f32 %v16560_v24, %v14423_v7  ;;  %v19759_v35 = vadd.f32 %v16563_v15, %v6735_v14  ;;  %v15491_v14 = vld [vmem:[%s17786_s25 + $0x68] ss:$48 sps:$4 sm:$0xff]   ;;  %v15511_v54 = vld [vmem:[%s17786_s25 + $0x18c] ss:$48 sps:$4 sm:$0xff]  }
0x102e   : > { %21541 = vst [vmem:[#allocation65_spill] sm:$0xff] %v19748_v1  ;;  %v19755_v20 = vadd.f32 %v16562_v56, %v14424_v32  ;;  %v6786_v11 = vadd.f32 %v19748_v1, %v19745_v27  ;;  %8673 = vmatpush1.bf16.msra.mxu0 %v15491_v14  ;;  %v15506_v52 = vld [vmem:[%s17786_s25 + $0x180] ss:$48 sps:$4 sm:$0xff]   ;;  %v15509_v44 = vld [vmem:[%s17786_s25 + $0x188] ss:$48 sps:$4 sm:$0xff]  }
0x102f   : > { %21542 = vst [vmem:[#allocation67_spill] sm:$0xff] %v19751_v22  ;;  %8674 = vmatprep.subr.bf16.mxu0 %v15499_v43  ;;  %8529 = vmatpush1.bf16.msra.mxu1 %v15494_v6  ;;  %v15514_v29 = vld [vmem:[%s17786_s25 + $0x1e4] ss:$48 sps:$4 sm:$0xff]   ;;  %v15517_v21 = vld [vmem:[%s17786_s25 + $0x1ec] ss:$48 sps:$4 sm:$0xff]  }
0x1030   : > { %21543 = vst [vmem:[#allocation82_spill] sm:$0xff] %v19755_v20  ;;  %v6787_v37 = vadd.f32 %v6786_v11, %v19753_v17  ;;  %v6790_v57 = vadd.f32 %v19755_v20, %v19751_v22  ;;  %8530 = vmatprep.subr.bf16.mxu1 %v15502_v4  ;;  %v15512_v58 = vld [vmem:[%s17786_s25 + $0x1e0] ss:$48 sps:$4 sm:$0xff]   ;;  %v15515_v2 = vld [vmem:[%s17786_s25 + $0x1e8] ss:$48 sps:$4 sm:$0xff]  }
0x1031   : > { %v15520_v7 = vld [vmem:[%s17786_s25 + $0x244] ss:$48 sps:$4 sm:$0xff]   ;;  %v15523_v34 = vld [vmem:[%s17786_s25 + $0x24c] ss:$48 sps:$4 sm:$0xff]   ;;  %v15518_v5 = vld [vmem:[%s17786_s25 + $0x240] ss:$48 sps:$4 sm:$0xff]  }
0x1032   : > { %6788 = vadd.xlane.f32.xlu0 %v6787_v37  ;;  %v6791_v48 = vadd.f32 %v6790_v57, %v19759_v35  ;;  %8675 = vmatpush1.bf16.msra.mxu0 %v15497_v51  ;;  %v15521_v32 = vld [vmem:[%s17786_s25 + $0x248] ss:$48 sps:$4 sm:$0xff]   ;;  %v15526_v24 = vld [vmem:[%s17786_s25 + $0x2a4] ss:$48 sps:$4 sm:$0xff]   ;;  %v15529_v42 = vld [vmem:[%s17786_s25 + $0x2ac] ss:$48 sps:$4 sm:$0xff]  }
0x1033   : > { %8676 = vmatprep.subr.bf16.mxu0 %v15505_v62  ;;  %8531 = vmatpush1.bf16.msra.mxu1 %v15500_v3  ;;  %v15524_v56 = vld [vmem:[%s17786_s25 + $0x2a0] ss:$48 sps:$4 sm:$0xff]   ;;  %v15527_v11 = vld [vmem:[%s17786_s25 + $0x2a8] ss:$48 sps:$4 sm:$0xff]   ;;  %v15532_v15 = vld [vmem:[%s17786_s25 + $0x304] ss:$48 sps:$4 sm:$0xff]  }
0x1034   : > { %6792 = vadd.xlane.f32.xlu1 %v6791_v48  ;;  %8532 = vmatprep.subr.bf16.mxu1 %v15508_v30  ;;  %v15535_v37 = vld [vmem:[%s17786_s25 + $0x30c] ss:$48 sps:$4 sm:$0xff]   ;;  %v15530_v57 = vld [vmem:[%s17786_s25 + $0x300] ss:$48 sps:$4 sm:$0xff]   ;;  %v15533_v48 = vld [vmem:[%s17786_s25 + $0x308] ss:$48 sps:$4 sm:$0xff]  }
0x1035   : > { %v15538_v53 = vld [vmem:[%s17786_s25 + $0x364] ss:$48 sps:$4 sm:$0xff]   ;;  %v15541_v61 = vld [vmem:[%s17786_s25 + $0x36c] ss:$48 sps:$4 sm:$0xff]   ;;  %v15536_v60 = vld [vmem:[%s17786_s25 + $0x360] ss:$48 sps:$4 sm:$0xff]  }
0x1036   : > { %8677 = vmatpush1.bf16.msra.mxu0 %v15503_v18  ;;  %v15539_v33 = vld [vmem:[%s17786_s25 + $0x368] ss:$48 sps:$4 sm:$0xff]  }
0x1037   : > { %8678 = vmatprep.subr.bf16.mxu0 %v15511_v54  ;;  %8533 = vmatpush1.bf16.msra.mxu1 %v15506_v52 }
0x1038   : > { %8534 = vmatprep.subr.bf16.mxu1 %v15514_v29 }
0x103a   : > { %8679 = vmatpush1.bf16.msra.mxu0 %v15509_v44 }
0x103b   : > { %8680 = vmatprep.subr.bf16.mxu0 %v15517_v21  ;;  %8535 = vmatpush1.bf16.msra.mxu1 %v15512_v58 }
0x103c   : > { %8536 = vmatprep.subr.bf16.mxu1 %v15520_v7 }
0x103e   : > { %8681 = vmatpush1.bf16.msra.mxu0 %v15515_v2 }
0x103f   : > { %8682 = vmatprep.subr.bf16.mxu0 %v15523_v34  ;;  %8537 = vmatpush1.bf16.msra.mxu1 %v15518_v5 }
0x1040   : > { %8538 = vmatprep.subr.bf16.mxu1 %v15526_v24 }
0x1042   : > { %8683 = vmatpush1.bf16.msra.mxu0 %v15521_v32 }
0x1043   : > { %8684 = vmatprep.subr.bf16.mxu0 %v15529_v42  ;;  %8539 = vmatpush1.bf16.msra.mxu1 %v15524_v56 }
0x1044   : > { %8540 = vmatprep.subr.bf16.mxu1 %v15532_v15 }
0x1046   : > { %8685 = vmatpush1.bf16.msra.mxu0 %v15527_v11 }
0x1047   : > { %8686 = vmatprep.subr.bf16.mxu0 %v15535_v37  ;;  %8541 = vmatpush1.bf16.msra.mxu1 %v15530_v57 }
0x1048   : > { %8542 = vmatprep.subr.bf16.mxu1 %v15538_v53 }
0x104a   : > { %8687 = vmatpush1.bf16.msra.mxu0 %v15533_v48 }
0x104b   : > { %8688 = vmatprep.subr.bf16.mxu0 %v15541_v61  ;;  %8543 = vmatpush1.bf16.msra.mxu1 %v15536_v60 }
0x104e   : > { %8689 = vmatpush1.bf16.msra.mxu0 %v15539_v33 }
0x107c   : > { %v6765_v55 = vpop.xlane.xlu0 %6764 }
0x107d   : > { %v6794_v10 = vmul.f32 0.0026041667, %v6765_v55 }
0x107e   : > { %v6769_v12 = vpop.xlane.xlu1 %6768 }
0x107f   : > { %v19806_v14 = vsub.f32 %v19668_v45, %v6794_v10  ;;  %v19809_v26 = vsub.f32 %v19670_v50, %v6794_v10  ;;  %v19812_v43 = vsub.f32 %v19681_v47, %v6794_v10  ;;  %v6795_v6 = vmul.f32 0.0026041667, %v6769_v12 }
0x1081   : > { %v6826_v51 = vmul.f32 %v19806_v14, %v19806_v14  ;;  %v6827_v4 = vmul.f32 %v19809_v26, %v19809_v26  ;;  %v19819_v62 = vsub.f32 %v19675_v28, %v6795_v6  ;;  %v19822_v3 = vsub.f32 %v19677_v9, %v6795_v6 }
0x1082   : > { %v19825_v18 = vsub.f32 %v19686_v40, %v6795_v6  ;;  %v6773_v30 = vpop.xlane.xlu0 %6772  ;;  %v6828_v54 = vmul.f32 %v19812_v43, %v19812_v43 }
0x1083   : > { %v6829_v52 = vmul.f32 %v19819_v62, %v19819_v62  ;;  %v6830_v44 = vmul.f32 %v19822_v3, %v19822_v3  ;;  %v6796_v29 = vmul.f32 0.0026041667, %v6773_v30  ;;  %v6850_v21 = vadd.f32 %v6827_v4, %v6826_v51  ;;  %v15542_v51 = vld [vmem:[%s17786_s25 + $0x3c0] ss:$48 sps:$4 sm:$0xff]   ;;  %v15544_v4 = vld [vmem:[%s17786_s25 + $0x3c4] ss:$48 sps:$4 sm:$0xff]  }
0x1084   : > { %v6831_v32 = vmul.f32 %v19825_v18, %v19825_v18  ;;  %v15545_v30 = vld [vmem:[%s17786_s25 + $0x3c8] ss:$48 sps:$4 sm:$0xff]   ;;  %8544 = vmatprep.subr.bf16.mxu1 %v15544_v4 }
0x1085   : > { %v19834_v58 = vsub.f32 %v19692_v36, %v6796_v29  ;;  %v19837_v2 = vsub.f32 %v19695_v8, %v6796_v29  ;;  %v19840_v7 = vsub.f32 %v19701_v23, %v6796_v29  ;;  %v6851_v34 = vadd.f32 %v6850_v21, %v6828_v54  ;;  %v15547_v54 = vld [vmem:[%s17786_s25 + $0x3cc] ss:$48 sps:$4 sm:$0xff]   ;;  %8545 = vmatpush1.bf16.msra.mxu1 %v15542_v51  ;;  %v15551_v29 = vld [vmem:[%s17786_s25 + $0x428] ss:$48 sps:$4 sm:$0xff]  }
0x1086   : > { %v6777_v5 = vpop.xlane.xlu0 %6776  ;;  %v6854_v24 = vadd.f32 %v6830_v44, %v6829_v52  ;;  %8690 = vmatprep.subr.bf16.mxu0 %v15547_v54  ;;  %v15548_v52 = vld [vmem:[%s17786_s25 + $0x420] ss:$48 sps:$4 sm:$0xff]   ;;  %v15550_v44 = vld [vmem:[%s17786_s25 + $0x424] ss:$48 sps:$4 sm:$0xff]   ;;  %v15553_v21 = vld [vmem:[%s17786_s25 + $0x42c] ss:$48 sps:$4 sm:$0xff]  }
0x1087   : > { %v6832_v42 = vmul.f32 %v19834_v58, %v19834_v58  ;;  %v6833_v56 = vmul.f32 %v19837_v2, %v19837_v2  ;;  %v6797_v11 = vmul.f32 0.0026041667, %v6777_v5  ;;  %6852 = vadd.xlane.f32.xlu0 %v6851_v34  ;;  %v6834_v37 = vmul.f32 %v19840_v7, %v19840_v7  ;;  %8691 = vmatpush1.bf16.msra.mxu0 %v15545_v30  ;;  %v15554_v34 = vld [vmem:[%s17786_s25 + $0x480] ss:$48 sps:$4 sm:$0xff]   ;;  %v15556_v5 = vld [vmem:[%s17786_s25 + $0x484] ss:$48 sps:$4 sm:$0xff]  }
0x1088   : > { %v6855_v15 = vadd.f32 %v6854_v24, %v6831_v32  ;;  %8546 = vmatprep.subr.bf16.mxu1 %v15550_v44  ;;  %8692 = vmatprep.subr.bf16.mxu0 %v15553_v21  ;;  %v15557_v32 = vld [vmem:[%s17786_s25 + $0x488] ss:$48 sps:$4 sm:$0xff]   ;;  %v15559_v24 = vld [vmem:[%s17786_s25 + $0x48c] ss:$48 sps:$4 sm:$0xff]  }
0x1089   : > { %v19851_v57 = vsub.f32 %v19699_v59, %v6797_v11  ;;  %v19854_v48 = vsub.f32 %v19703_v0, %v6797_v11  ;;  %v19857_v53 = vsub.f32 %v19710_v38, %v6797_v11  ;;  %v6858_v61 = vadd.f32 %v6833_v56, %v6832_v42  ;;  %8547 = vmatpush1.bf16.msra.mxu1 %v15548_v52  ;;  %v15562_v42 = vld [vmem:[%s17786_s25 + $0x4e4] ss:$48 sps:$4 sm:$0xff]   ;;  %v15565_v56 = vld [vmem:[%s17786_s25 + $0x4ec] ss:$48 sps:$4 sm:$0xff]   ;;  %v15560_v11 = vld [vmem:[%s17786_s25 + $0x4e0] ss:$48 sps:$4 sm:$0xff]  }
0x108a   : > { %6856 = vadd.xlane.f32.xlu1 %v6855_v15  ;;  %8548 = vmatprep.subr.bf16.mxu1 %v15556_v5  ;;  %v15563_v15 = vld [vmem:[%s17786_s25 + $0x4e8] ss:$48 sps:$4 sm:$0xff]  }
0x108b   : > { %v6835_v60 = vmul.f32 %v19851_v57, %v19851_v57  ;;  %v6836_v33 = vmul.f32 %v19854_v48, %v19854_v48  ;;  %v6859_v55 = vadd.f32 %v6858_v61, %v6834_v37  ;;  %v6837_v10 = vmul.f32 %v19857_v53, %v19857_v53  ;;  %8693 = vmatpush1.bf16.msra.mxu0 %v15551_v29  ;;  %v15568_v37 = vld [vmem:[%s17786_s25 + $0x544] ss:$48 sps:$4 sm:$0xff]   ;;  %v15571_v61 = vld [vmem:[%s17786_s25 + $0x54c] ss:$48 sps:$4 sm:$0xff]  }
0x108c   : > { %8694 = vmatprep.subr.bf16.mxu0 %v15559_v24 }
0x108d   : > { %6860 = vadd.xlane.f32.xlu0 %v6859_v55  ;;  %v6862_v12 = vadd.f32 %v6836_v33, %v6835_v60  ;;  %8549 = vmatpush1.bf16.msra.mxu1 %v15554_v34  ;;  %v15566_v60 = vld [vmem:[%s17786_s25 + $0x540] ss:$48 sps:$4 sm:$0xff]   ;;  %v15569_v33 = vld [vmem:[%s17786_s25 + $0x548] ss:$48 sps:$4 sm:$0xff]   ;;  %v15574_v55 = vld [vmem:[%s17786_s25 + $0x5a4] ss:$48 sps:$4 sm:$0xff]  }
0x108e   : > { %8550 = vmatprep.subr.bf16.mxu1 %v15562_v42 }
0x108f   : > { %v6863_v6 = vadd.f32 %v6862_v12, %v6837_v10  ;;  %8695 = vmatpush1.bf16.msra.mxu0 %v15557_v32  ;;  %v15577_v10 = vld [vmem:[%s17786_s25 + $0x5ac] ss:$48 sps:$4 sm:$0xff]   ;;  %v15572_v12 = vld [vmem:[%s17786_s25 + $0x5a0] ss:$48 sps:$4 sm:$0xff]  }
0x1090   : > { %8696 = vmatprep.subr.bf16.mxu0 %v15565_v56 }
0x1091   : > { %6864 = vadd.xlane.f32.xlu1 %v6863_v6  ;;  %8551 = vmatpush1.bf16.msra.mxu1 %v15560_v11  ;;  %v15575_v6 = vld [vmem:[%s17786_s25 + $0x5a8] ss:$48 sps:$4 sm:$0xff]  }
0x1092   : > { %8552 = vmatprep.subr.bf16.mxu1 %v15568_v37 }
0x1093   : > { %8697 = vmatpush1.bf16.msra.mxu0 %v15563_v15 }
0x1094   : > { %8698 = vmatprep.subr.bf16.mxu0 %v15571_v61 }
0x1095   : > { %8553 = vmatpush1.bf16.msra.mxu1 %v15566_v60 }
0x1096   : > { %8554 = vmatprep.subr.bf16.mxu1 %v15574_v55 }
0x1097   : > { %8699 = vmatpush1.bf16.msra.mxu0 %v15569_v33 }
0x1098   : > { %8700 = vmatprep.subr.bf16.mxu0 %v15577_v10 }
0x1099   : > { %8555 = vmatpush1.bf16.msra.mxu1 %v15572_v12 }
0x109b   : > { %8701 = vmatpush1.bf16.msra.mxu0 %v15575_v6 }
0x10b7   : > { %v6781_v51 = vpop.xlane.xlu0 %6780 }
0x10b8   : > { %v6798_v4 = vmul.f32 0.0026041667, %v6781_v51 }
0x10b9   : > { %v6785_v30 = vpop.xlane.xlu1 %6784 }
0x10ba   : > { %v19890_v54 = vsub.f32 %v19721_v63, %v6798_v4  ;;  %v19893_v52 = vsub.f32 %v19726_v39, %v6798_v4  ;;  %v19896_v44 = vsub.f32 %v19731_v31, %v6798_v4  ;;  %v6799_v29 = vmul.f32 0.0026041667, %v6785_v30 }
0x10bc   : > { %v6838_v21 = vmul.f32 %v19890_v54, %v19890_v54  ;;  %v6839_v34 = vmul.f32 %v19893_v52, %v19893_v52  ;;  %v19903_v5 = vsub.f32 %v19729_v49, %v6799_v29  ;;  %v19906_v32 = vsub.f32 %v19733_v41, %v6799_v29 }
0x10bd   : > { %v19909_v24 = vsub.f32 %v19737_v19, %v6799_v29  ;;  %v6840_v11 = vmul.f32 %v19896_v44, %v19896_v44 }
0x10be   : > { %v6841_v42 = vmul.f32 %v19903_v5, %v19903_v5  ;;  %v6842_v56 = vmul.f32 %v19906_v32, %v19906_v32  ;;  %v6866_v15 = vadd.f32 %v6839_v34, %v6838_v21 }
0x10bf   : > { %v6789_v37 = vpop.xlane.xlu0 %6788  ;;  %v6843_v10 = vmul.f32 %v19909_v24, %v19909_v24 }
0x10c0   : > { %v6800_v61 = vmul.f32 0.0026041667, %v6789_v37  ;;  %v6867_v60 = vadd.f32 %v6866_v15, %v6840_v11  ;;  %v6870_v33 = vadd.f32 %v6842_v56, %v6841_v42 }
0x10c1   : > { %v6793_v55 = vpop.xlane.xlu1 %6792 }
0x10c2   : > { %v19920_v12 = vsub.f32 %v19745_v27, %v6800_v61  ;;  %v19923_v6 = vsub.f32 %v19748_v1, %v6800_v61  ;;  %v19926_v51 = vsub.f32 %v19753_v17, %v6800_v61  ;;  %v6801_v4 = vmul.f32 0.0026041667, %v6793_v55  ;;  %6868 = vadd.xlane.f32.xlu0 %v6867_v60 }
0x10c3   : > { %v6871_v30 = vadd.f32 %v6870_v33, %v6843_v10 }
0x10c4   : > { %v6844_v29 = vmul.f32 %v19920_v12, %v19920_v12  ;;  %v6845_v21 = vmul.f32 %v19923_v6, %v19923_v6  ;;  %v19933_v34 = vsub.f32 %v19751_v22, %v6801_v4  ;;  %v19936_v42 = vsub.f32 %v19755_v20, %v6801_v4 }
0x10c5   : > { %v19939_v56 = vsub.f32 %v19759_v35, %v6801_v4  ;;  %6872 = vadd.xlane.f32.xlu1 %v6871_v30  ;;  %v6846_v37 = vmul.f32 %v19926_v51, %v19926_v51  ;;  %v15580_v4 = vld [vmem:[%s17786_s25 + $0x604] ss:$48 sps:$4 sm:$0xff]   ;;  %v15583_v30 = vld [vmem:[%s17786_s25 + $0x60c] ss:$48 sps:$4 sm:$0xff]  }
0x10c6   : > { %v6847_v11 = vmul.f32 %v19933_v34, %v19933_v34  ;;  %v6848_v15 = vmul.f32 %v19936_v42, %v19936_v42  ;;  %v6874_v61 = vadd.f32 %v6845_v21, %v6844_v29  ;;  %8597 = vmatprep.subr.bf16.mxu1 %v15580_v4  ;;  %8743 = vmatprep.subr.bf16.mxu0 %v15583_v30 }
0x10c7   : > { %v6849_v33 = vmul.f32 %v19939_v56, %v19939_v56 }
0x10c8   : > { %v6875_v60 = vadd.f32 %v6874_v61, %v6846_v37  ;;  %v6878_v55 = vadd.f32 %v6848_v15, %v6847_v11 }
0x10ca   : > { %6876 = vadd.xlane.f32.xlu0 %v6875_v60  ;;  %v6879_v10 = vadd.f32 %v6878_v55, %v6849_v33  ;;  %v1354_v60 = vld [vmem:[%s21544_s15] sm:$0x7]  ;;  %v1355_v55 = vld [vmem:[%s21545_s14] sm:$0x7] }
0x10cb   : > { %v19968_v30 = vrot.slane %v1355_v55, %v21535_v25 }
0x10cc   : > { %6880 = vadd.xlane.f32.xlu1 %v6879_v10  ;;  %v19956_v10 = vrot.slane %v1354_v60, %v21534_v46 }
0x1114   : > { %v6853_v20 = vpop.xlane.xlu0 %6852 }
0x1115   : > { %v6882_v22 = vmul.f32 0.0026041667, %v6853_v20 }
0x1117   : > { %v6890_v1 = vadd.f32 1e-05, %v6882_v22  ;;  %v6857_v27 = vpop.xlane.xlu1 %6856  ;;  %v19959_v22 = vrot.slane %v1354_v60, %v21535_v25 }
0x1118   : > { %v6883_v41 = vmul.f32 0.0026041667, %v6857_v27 }
0x1119   : > { %16506 = vrsqrt.f32 %v6890_v1 }
0x111a   : > { %v6891_v29 = vadd.f32 1e-05, %v6883_v41  ;;  %v6861_v21 = vpop.xlane.xlu0 %6860  ;;  %v19962_v41 = vrot.slane %v1354_v60, %v21533_v13 }
0x111b   : > { %v6884_v37 = vmul.f32 0.0026041667, %v6861_v21 }
0x111c   : > { %16508 = vrsqrt.f32 %v6891_v29 }
0x111d   : > { %v6892_v11 = vadd.f32 1e-05, %v6884_v37  ;;  %v19972_v37 = vrot.slane %v1355_v55, %v21534_v46 }
0x111e   : > { %v6865_v15 = vpop.xlane.xlu1 %6864 }
0x111f   : > { %16510 = vrsqrt.f32 %v6892_v11  ;;  %v6885_v61 = vmul.f32 0.0026041667, %v6865_v15  ;;  %v19975_v11 = vrot.slane %v1355_v55, %v21533_v13 }
0x1121   : > { %v6893_v33 = vadd.f32 1e-05, %v6885_v61 }
0x1123   : > { %v16507_v27 = vpop.eup %16506  ;;  %16512 = vrsqrt.f32 %v6893_v33 }
0x1124   : > { %v6907_v1 = vmul.f32 %v16507_v27, %v19809_v26  ;;  %v6906_v20 = vmul.f32 %v16507_v27, %v19806_v14  ;;  %v6908_v4 = vmul.f32 %v16507_v27, %v19812_v43 }
0x1126   : > { %v16509_v29 = vpop.eup %16508  ;;  %v6947_v21 = vmul.f32 %v19956_v10, %v6907_v1  ;;  %v6948_v15 = vmul.f32 %v19959_v22, %v6908_v4  ;;  %v6946_v43 = vmul.f32 %v19962_v41, %v6906_v20 }
0x1127   : > { %v6910_v26 = vmul.f32 %v16509_v29, %v19822_v3  ;;  %v6909_v14 = vmul.f32 %v16509_v29, %v19819_v62  ;;  %v6911_v61 = vmul.f32 %v16509_v29, %v19825_v18 }
0x1128   : > { %v6988_v60 = vadd.f32 %v19968_v30, %v6948_v15  ;;  %v6987_v4 = vadd.f32 %v19972_v37, %v6947_v21  ;;  %v6986_v29 = vadd.f32 %v19975_v11, %v6946_v43 }
0x1129   : > { %v16511_v33 = vpop.eup %16510  ;;  %v6950_v27 = vmul.f32 %v19956_v10, %v6910_v26  ;;  %v6949_v1 = vmul.f32 %v19962_v41, %v6909_v14  ;;  %v6951_v55 = vmul.f32 %v19959_v22, %v6911_v61 }
0x112a   : > { %v6913_v3 = vmul.f32 %v16511_v33, %v19837_v2  ;;  %v6912_v62 = vmul.f32 %v16511_v33, %v19834_v58  ;;  %v6914_v20 = vmul.f32 %v16511_v33, %v19840_v7  ;;  %v15578_v7 = vld [vmem:[%s17786_s25 + $0x600] ss:$48 sps:$4 sm:$0xff]   ;;  %v15581_v33 = vld [vmem:[%s17786_s25 + $0x608] ss:$48 sps:$4 sm:$0xff]  }
0x112b   : > { %v6990_v18 = vadd.f32 %v19972_v37, %v6950_v27  ;;  %v6989_v15 = vadd.f32 %v19975_v11, %v6949_v1  ;;  %v6991_v26 = vadd.f32 %v19968_v30, %v6951_v55  ;;  %v15586_v55 = vld [vmem:[%s17786_s25 + $0x664] ss:$48 sps:$4 sm:$0xff]  }
0x112c   : > { %v6954_v14 = vmul.f32 %v19959_v22, %v6914_v20  ;;  %v6953_v58 = vmul.f32 %v19956_v10, %v6913_v3  ;;  %v6952_v1 = vmul.f32 %v19962_v41, %v6912_v62  ;;  %v15589_v20 = vld [vmem:[%s17786_s25 + $0x66c] ss:$48 sps:$4 sm:$0xff]   ;;  %v15584_v62 = vld [vmem:[%s17786_s25 + $0x660] ss:$48 sps:$4 sm:$0xff]  }
0x112d   : > { %v16513_v61 = vpop.eup %16512  ;;  %v19995_v21 = vpack.c.bf16 %v6990_v18, %v6987_v4  ;;  %v19997_v2 = vpack.c.bf16 %v6989_v15, %v6986_v29  ;;  %v20002_v49 = vpack.c.bf16 %v6991_v26, %v6988_v60 }
0x112e   : > { %v6916_v27 = vmul.f32 %v16513_v61, %v19854_v48  ;;  %v6915_v43 = vmul.f32 %v16513_v61, %v19851_v57  ;;  %v6917_v4 = vmul.f32 %v16513_v61, %v19857_v53  ;;  %v6994_v3 = vadd.f32 %v19968_v30, %v6954_v14  ;;  %v15587_v53 = vld [vmem:[%s17786_s25 + $0x668] ss:$48 sps:$4 sm:$0xff]   ;;  %v15592_v14 = vld [vmem:[%s17786_s25 + $0x6c4] ss:$48 sps:$4 sm:$0xff]   ;;  %v15595_v61 = vld [vmem:[%s17786_s25 + $0x6cc] ss:$48 sps:$4 sm:$0xff]  }
0x112f   : > { %8556 = vmatprep.mubr.bf16.mxu1 %v19995_v21  ;;  %8702 = vmatprep.mubr.bf16.mxu0 %v19995_v21  ;;  %v6993_v60 = vadd.f32 %v19972_v37, %v6953_v58  ;;  %v6992_v15 = vadd.f32 %v19975_v11, %v6952_v1 }
0x1130   : > { %8557 = vmatmul.mubr.bf16.vlgmr.msra.gmra.mrb[104].mxu1 %v19997_v2  ;;  %8703 = vmatmul.mubr.bf16.vlgmr.msra.gmra.mrb[136].mxu0 %v19997_v2  ;;  %v6956_v57 = vmul.f32 %v19956_v10, %v6916_v27  ;;  %v6955_v48 = vmul.f32 %v19962_v41, %v6915_v43  ;;  %v6957_v18 = vmul.f32 %v19959_v22, %v6917_v4  ;;  %v15590_v27 = vld [vmem:[%s17786_s25 + $0x6c0] ss:$48 sps:$4 sm:$0xff]   ;;  %v15593_v43 = vld [vmem:[%s17786_s25 + $0x6c8] ss:$48 sps:$4 sm:$0xff]  }
0x1131   : > { %8598 = vmatpush1.bf16.msra.mxu1 %v15578_v7  ;;  %8744 = vmatpush1.bf16.msra.mxu0 %v15581_v33  ;;  %v15596_v4 = vld [vmem:[%s17786_s25 + $0x720] ss:$48 sps:$4 sm:$0xff]  }
0x1132   : > { %v6996_v29 = vadd.f32 %v19972_v37, %v6956_v57  ;;  %v6995_v26 = vadd.f32 %v19975_v11, %v6955_v48  ;;  %8599 = vmatprep.subr.bf16.mxu1 %v15586_v55  ;;  %8745 = vmatprep.subr.bf16.mxu0 %v15589_v20  ;;  %v6997_v58 = vadd.f32 %v19968_v30, %v6957_v18  ;;  %v15598_v55 = vld [vmem:[%s17786_s25 + $0x724] ss:$48 sps:$4 sm:$0xff]   ;;  %v15601_v20 = vld [vmem:[%s17786_s25 + $0x72c] ss:$48 sps:$4 sm:$0xff]  }
0x1133   : > { %v15604_v57 = vld [vmem:[%s17786_s25 + $0x784] ss:$48 sps:$4 sm:$0xff]   ;;  %v15607_v48 = vld [vmem:[%s17786_s25 + $0x78c] ss:$48 sps:$4 sm:$0xff]  }
0x1134   : > { %v20027_v7 = vpack.c.bf16 %v6996_v29, %v6993_v60  ;;  %v20029_v33 = vpack.c.bf16 %v6995_v26, %v6992_v15  ;;  %v20033_v1 = vpack.c.bf16 %v6997_v58, %v6994_v3  ;;  %v15599_v3 = vld [vmem:[%s17786_s25 + $0x728] ss:$48 sps:$4 sm:$0xff]   ;;  %v15602_v60 = vld [vmem:[%s17786_s25 + $0x780] ss:$48 sps:$4 sm:$0xff]   ;;  %v15613_v18 = vld [vmem:[%s17786_s25 + $0x7ec] ss:$48 sps:$4 sm:$0xff]  }
0x1135   : > { %8600 = vmatpush1.bf16.msra.mxu1 %v15584_v62  ;;  %8746 = vmatpush1.bf16.msra.mxu0 %v15587_v53  ;;  %v15605_v62 = vld [vmem:[%s17786_s25 + $0x788] ss:$48 sps:$4 sm:$0xff]   ;;  %v15610_v53 = vld [vmem:[%s17786_s25 + $0x7e4] ss:$48 sps:$4 sm:$0xff]   ;;  %v15608_v29 = vld [vmem:[%s17786_s25 + $0x7e0] ss:$48 sps:$4 sm:$0xff]  }
0x1136   : > { %8566 = vmatprep.mubr.bf16.mxu1 %v20027_v7  ;;  %8712 = vmatprep.mubr.bf16.mxu0 %v20027_v7  ;;  %v15611_v15 = vld [vmem:[%s17786_s25 + $0x7e8] ss:$48 sps:$4 sm:$0xff]   ;;  %v15616_v26 = vld [vmem:[%s17786_s25 + $0x844] ss:$48 sps:$4 sm:$0xff]  }
0x1137   : > { %8601 = vmatprep.subr.bf16.mxu1 %v15592_v14  ;;  %8747 = vmatprep.subr.bf16.mxu0 %v15595_v61  ;;  %v15619_v14 = vld [vmem:[%s17786_s25 + $0x84c] ss:$48 sps:$4 sm:$0xff]   ;;  %v15614_v61 = vld [vmem:[%s17786_s25 + $0x840] ss:$48 sps:$4 sm:$0xff]   ;;  %v15617_v58 = vld [vmem:[%s17786_s25 + $0x848] ss:$48 sps:$4 sm:$0xff]  }
0x1138   : > { %8567 = vmatmul.mubr.bf16.gmra.mrb[108].mxu1 %v20029_v33  ;;  %8713 = vmatmul.mubr.bf16.gmra.mrb[140].mxu0 %v20029_v33 }
0x1139   : > { %8602 = vmatpush1.bf16.msra.mxu1 %v15590_v27  ;;  %8748 = vmatpush1.bf16.msra.mxu0 %v15593_v43  ;;  %v15622_v27 = vld [vmem:[%s17786_s25 + $0x8a4] ss:$48 sps:$4 sm:$0xff]   ;;  %v15625_v43 = vld [vmem:[%s17786_s25 + $0x8ac] ss:$48 sps:$4 sm:$0xff]  }
0x113a   : > { %8603 = vmatprep.subr.bf16.mxu1 %v15598_v55  ;;  %8749 = vmatprep.subr.bf16.mxu0 %v15601_v20  ;;  %v15620_v55 = vld [vmem:[%s17786_s25 + $0x8a0] ss:$48 sps:$4 sm:$0xff]   ;;  %v15623_v20 = vld [vmem:[%s17786_s25 + $0x8a8] ss:$48 sps:$4 sm:$0xff]  }
0x113d   : > { %8604 = vmatpush1.bf16.msra.mxu1 %v15596_v4  ;;  %8750 = vmatpush1.bf16.msra.mxu0 %v15599_v3  ;;  %v15628_v4 = vld [vmem:[%s17786_s25 + $0x14] ss:$48 sps:$4 sm:$0xff]   ;;  %v15631_v3 = vld [vmem:[%s17786_s25 + $0x1c] ss:$48 sps:$4 sm:$0xff]  }
0x113e   : > { %8605 = vmatprep.subr.bf16.mxu1 %v15604_v57  ;;  %8751 = vmatprep.subr.bf16.mxu0 %v15607_v48 }
0x1141   : > { %8606 = vmatpush1.bf16.msra.mxu1 %v15602_v60  ;;  %8752 = vmatpush1.bf16.msra.mxu0 %v15605_v62 }
0x1142   : > { %8607 = vmatprep.subr.bf16.mxu1 %v15610_v53  ;;  %8753 = vmatprep.subr.bf16.mxu0 %v15613_v18 }
0x1145   : > { %8608 = vmatpush1.bf16.msra.mxu1 %v15608_v29  ;;  %8754 = vmatpush1.bf16.msra.mxu0 %v15611_v15 }
0x1146   : > { %8609 = vmatprep.subr.bf16.mxu1 %v15616_v26  ;;  %8755 = vmatprep.subr.bf16.mxu0 %v15619_v14 }
0x1149   : > { %8610 = vmatpush1.bf16.msra.mxu1 %v15614_v61  ;;  %8756 = vmatpush1.bf16.msra.mxu0 %v15617_v58 }
0x114a   : > { %8611 = vmatprep.subr.bf16.mxu1 %v15622_v27  ;;  %8757 = vmatprep.subr.bf16.mxu0 %v15625_v43 }
0x114d   : > { %8612 = vmatpush1.bf16.msra.mxu1 %v15620_v55  ;;  %8758 = vmatpush1.bf16.msra.mxu0 %v15623_v20 }
0x114e   : > { %8816 = vmatprep.subr.bf16.mxu1 %v15628_v4  ;;  %8962 = vmatprep.subr.bf16.mxu0 %v15631_v3 }
0x114f   : > { %v6869_v57 = vpop.xlane.xlu0 %6868 }
0x1150   : > { %v6886_v48 = vmul.f32 0.0026041667, %v6869_v57 }
0x1152   : > { %v6894_v60 = vadd.f32 1e-05, %v6886_v48  ;;  %v6873_v62 = vpop.xlane.xlu1 %6872 }
0x1153   : > { %v6887_v53 = vmul.f32 0.0026041667, %v6873_v62 }
0x1154   : > { %16514 = vrsqrt.f32 %v6894_v60 }
0x1155   : > { %v6895_v18 = vadd.f32 1e-05, %v6887_v53 }
0x1157   : > { %16516 = vrsqrt.f32 %v6895_v18  ;;  %v6877_v29 = vpop.xlane.xlu0 %6876 }
0x1158   : > { %v6888_v15 = vmul.f32 0.0026041667, %v6877_v29 }
0x1159   : > { %v6881_v26 = vpop.xlane.xlu1 %6880 }
0x115a   : > { %v6896_v14 = vadd.f32 1e-05, %v6888_v15  ;;  %v6889_v61 = vmul.f32 0.0026041667, %v6881_v26 }
0x115c   : > { %16518 = vrsqrt.f32 %v6896_v14  ;;  %v6897_v58 = vadd.f32 1e-05, %v6889_v61 }
0x115e   : > { %v16515_v27 = vpop.eup %16514  ;;  %16520 = vrsqrt.f32 %v6897_v58 }
0x115f   : > { %v6919_v43 = vmul.f32 %v16515_v27, %v19893_v52  ;;  %v6918_v55 = vmul.f32 %v16515_v27, %v19890_v54  ;;  %v6920_v20 = vmul.f32 %v16515_v27, %v19896_v44 }
0x1161   : > { %v16517_v4 = vpop.eup %16516  ;;  %v6959_v3 = vmul.f32 %v19956_v10, %v6919_v43  ;;  %v6960_v57 = vmul.f32 %v19959_v22, %v6920_v20  ;;  %v6958_v62 = vmul.f32 %v19962_v41, %v6918_v55 }
0x1162   : > { %v6922_v48 = vmul.f32 %v16517_v4, %v19906_v32  ;;  %v6921_v60 = vmul.f32 %v16517_v4, %v19903_v5  ;;  %v6923_v53 = vmul.f32 %v16517_v4, %v19909_v24 }
0x1163   : > { %v7000_v18 = vadd.f32 %v19968_v30, %v6960_v57  ;;  %v6999_v29 = vadd.f32 %v19972_v37, %v6959_v3  ;;  %v6998_v32 = vadd.f32 %v19975_v11, %v6958_v62 }
0x1164   : > { %v6962_v52 = vmul.f32 %v19956_v10, %v6922_v48  ;;  %v6961_v54 = vmul.f32 %v19962_v41, %v6921_v60  ;;  %v6963_v44 = vmul.f32 %v19959_v22, %v6923_v53 }
0x1166   : > { %v16519_v15 = vpop.eup %16518  ;;  %v7002_v26 = vadd.f32 %v19972_v37, %v6962_v52  ;;  %v7001_v5 = vadd.f32 %v19975_v11, %v6961_v54  ;;  %v7003_v14 = vadd.f32 %v19968_v30, %v6963_v44  ;;  %v15637_v54 = vld [vmem:[%s17786_s25 + $0x7c] ss:$48 sps:$4 sm:$0xff]   ;;  %v15632_v44 = vld [vmem:[%s17786_s25 + $0x70] ss:$48 sps:$4 sm:$0xff]  }
0x1167   : > { %v6925_v24 = vmul.f32 %v16519_v15, %v19923_v6  ;;  %v6924_v61 = vmul.f32 %v16519_v15, %v19920_v12  ;;  %v6926_v58 = vmul.f32 %v16519_v15, %v19926_v51  ;;  %v15640_v15 = vld [vmem:[%s17786_s25 + $0xd4] ss:$48 sps:$4 sm:$0xff]  }
0x1168   : > { %v16521_v27 = vpop.eup %16520  ;;  %v20082_v43 = vpack.c.bf16 %v7002_v26, %v6999_v29  ;;  %v20084_v55 = vpack.c.bf16 %v7001_v5, %v6998_v32  ;;  %v20086_v20 = vpack.c.bf16 %v7003_v14, %v7000_v18  ;;  %v15635_v29 = vld [vmem:[%s17786_s25 + $0x78] ss:$48 sps:$4 sm:$0xff]   ;;  %v15643_v26 = vld [vmem:[%s17786_s25 + $0xdc] ss:$48 sps:$4 sm:$0xff]   ;;  %v15638_v32 = vld [vmem:[%s17786_s25 + $0xd0] ss:$48 sps:$4 sm:$0xff]  }
0x1169   : > { %v6928_v4 = vmul.f32 %v16521_v27, %v19936_v42  ;;  %v6965_v3 = vmul.f32 %v19956_v10, %v6925_v24  ;;  %v6927_v57 = vmul.f32 %v16521_v27, %v19933_v34  ;;  %v6964_v48 = vmul.f32 %v19962_v41, %v6924_v61  ;;  %v15641_v5 = vld [vmem:[%s17786_s25 + $0xd8] ss:$48 sps:$4 sm:$0xff]   ;;  %v15646_v14 = vld [vmem:[%s17786_s25 + $0x134] ss:$48 sps:$4 sm:$0xff]   ;;  %v15649_v24 = vld [vmem:[%s17786_s25 + $0x13c] ss:$48 sps:$4 sm:$0xff]  }
0x116a   : > { %8576 = vmatprep.mubr.bf16.mxu1 %v20082_v43  ;;  %8722 = vmatprep.mubr.bf16.mxu0 %v20082_v43  ;;  %v6929_v12 = vmul.f32 %v16521_v27, %v19939_v56  ;;  %v6966_v6 = vmul.f32 %v19959_v22, %v6926_v58  ;;  %v15644_v61 = vld [vmem:[%s17786_s25 + $0x130] ss:$48 sps:$4 sm:$0xff]   ;;  %v15647_v58 = vld [vmem:[%s17786_s25 + $0x138] ss:$48 sps:$4 sm:$0xff]   ;;  %v15652_v27 = vld [vmem:[%s17786_s25 + $0x194] ss:$48 sps:$4 sm:$0xff]  }
0x116b   : > { %8577 = vmatmul.mubr.bf16.gmra.mrb[112].mxu1 %v20084_v55  ;;  %8723 = vmatmul.mubr.bf16.gmra.mrb[144].mxu0 %v20084_v55  ;;  %v6968_v51 = vmul.f32 %v19956_v10, %v6928_v4  ;;  %v6967_v42 = vmul.f32 %v19962_v41, %v6927_v57  ;;  %v7005_v62 = vadd.f32 %v19972_v37, %v6965_v3  ;;  %v15655_v4 = vld [vmem:[%s17786_s25 + $0x19c] ss:$48 sps:$4 sm:$0xff]   ;;  %v15650_v3 = vld [vmem:[%s17786_s25 + $0x190] ss:$48 sps:$4 sm:$0xff]   ;;  %v15653_v57 = vld [vmem:[%s17786_s25 + $0x198] ss:$48 sps:$4 sm:$0xff]  }
0x116c   : > { %v6969_v34 = vmul.f32 %v19959_v22, %v6929_v12  ;;  %v7006_v60 = vadd.f32 %v19968_v30, %v6966_v6  ;;  %v7004_v53 = vadd.f32 %v19975_v11, %v6964_v48  ;;  %v15658_v48 = vld [vmem:[%s17786_s25 + $0x1f4] ss:$48 sps:$4 sm:$0xff]   ;;  %v15661_v12 = vld [vmem:[%s17786_s25 + $0x1fc] ss:$48 sps:$4 sm:$0xff]   ;;  %v15656_v6 = vld [vmem:[%s17786_s25 + $0x1f0] ss:$48 sps:$4 sm:$0xff]  }
0x116d   : > { %v7008_v56 = vadd.f32 %v19972_v37, %v6968_v51  ;;  %v7007_v18 = vadd.f32 %v19975_v11, %v6967_v42  ;;  %v15629_v37 = vld [vmem:[%s17786_s25 + $0x18] ss:$48 sps:$4 sm:$0xff]   ;;  %v15634_v11 = vld [vmem:[%s17786_s25 + $0x74] ss:$48 sps:$4 sm:$0xff]  }
0x116e   : > { %v7009_v10 = vadd.f32 %v19968_v30, %v6969_v34  ;;  %v15626_v30 = vld [vmem:[%s17786_s25 + $0x10] ss:$48 sps:$4 sm:$0xff]   ;;  %v15659_v51 = vld [vmem:[%s17786_s25 + $0x1f8] ss:$48 sps:$4 sm:$0xff]   ;;  %v15664_v42 = vld [vmem:[%s17786_s25 + $0x254] ss:$48 sps:$4 sm:$0xff]  }
0x116f   : > { %v20107_v52 = vpack.c.bf16 %v7008_v56, %v7005_v62  ;;  %v20109_v41 = vpack.c.bf16 %v7007_v18, %v7004_v53  ;;  %v15667_v34 = vld [vmem:[%s17786_s25 + $0x25c] ss:$48 sps:$4 sm:$0xff]   ;;  %v15665_v62 = vld [vmem:[%s17786_s25 + $0x258] ss:$48 sps:$4 sm:$0xff]   ;;  %v15670_v56 = vld [vmem:[%s17786_s25 + $0x2b4] ss:$48 sps:$4 sm:$0xff]  }
0x1170   : > { %v20111_v22 = vpack.c.bf16 %v7009_v10, %v7006_v60  ;;  %v15662_v60 = vld [vmem:[%s17786_s25 + $0x250] ss:$48 sps:$4 sm:$0xff]   ;;  %v15673_v53 = vld [vmem:[%s17786_s25 + $0x2bc] ss:$48 sps:$4 sm:$0xff]   ;;  %v15671_v10 = vld [vmem:[%s17786_s25 + $0x2b8] ss:$48 sps:$4 sm:$0xff]  }
0x1171   : > { %8586 = vmatprep.mubr.bf16.mxu1 %v20107_v52  ;;  %8732 = vmatprep.mubr.bf16.mxu0 %v20107_v52  ;;  %v15668_v18 = vld [vmem:[%s17786_s25 + $0x2b0] ss:$48 sps:$4 sm:$0xff]  }
0x1173   : > { %8587 = vmatmul.mubr.bf16.gmra.mrb[116].mxu1 %v20109_v41  ;;  %8733 = vmatmul.mubr.bf16.gmra.mrb[148].mxu0 %v20109_v41 }
0x1174   : > { %8629 = vmatprep.mubr.bf16.mxu1 %v21530_v16  ;;  %8775 = vmatprep.mubr.bf16.mxu0 %v21530_v16 }
0x117b   : > { %8630 = vmatmul.mubr.bf16.vlgmr.msra.gmra.mrb[104].mxu1 %v20002_v49  ;;  %8776 = vmatmul.mubr.bf16.vlgmr.msra.gmra.mrb[136].mxu0 %v20002_v49 }
0x117c   : > { %8817 = vmatpush1.bf16.msra.mxu1 %v15626_v30  ;;  %8963 = vmatpush1.bf16.msra.mxu0 %v15629_v37  ;;  %v15676_v30 = vld [vmem:[%s17786_s25 + $0x314] ss:$48 sps:$4 sm:$0xff]   ;;  %v15679_v37 = vld [vmem:[%s17786_s25 + $0x31c] ss:$48 sps:$4 sm:$0xff]  }
0x117d   : > { %8818 = vmatprep.subr.bf16.mxu1 %v15634_v11  ;;  %8964 = vmatprep.subr.bf16.mxu0 %v15637_v54  ;;  %v15674_v11 = vld [vmem:[%s17786_s25 + $0x310] ss:$48 sps:$4 sm:$0xff]   ;;  %v15677_v54 = vld [vmem:[%s17786_s25 + $0x318] ss:$48 sps:$4 sm:$0xff]  }
0x117e   : > { %8639 = vmatprep.mubr.bf16.mxu1 %v21530_v16  ;;  %8785 = vmatprep.mubr.bf16.mxu0 %v21530_v16 }
0x1180   : > { %8819 = vmatpush1.bf16.msra.mxu1 %v15632_v44  ;;  %8965 = vmatpush1.bf16.msra.mxu0 %v15635_v29  ;;  %v15682_v44 = vld [vmem:[%s17786_s25 + $0x374] ss:$48 sps:$4 sm:$0xff]   ;;  %v15685_v29 = vld [vmem:[%s17786_s25 + $0x37c] ss:$48 sps:$4 sm:$0xff]  }
0x1181   : > { %8820 = vmatprep.subr.bf16.mxu1 %v15640_v15  ;;  %8966 = vmatprep.subr.bf16.mxu0 %v15643_v26  ;;  %v15680_v15 = vld [vmem:[%s17786_s25 + $0x370] ss:$48 sps:$4 sm:$0xff]   ;;  %v15683_v26 = vld [vmem:[%s17786_s25 + $0x378] ss:$48 sps:$4 sm:$0xff]  }
0x1183   : > { %8640 = vmatmul.mubr.bf16.gmra.mrb[108].mxu1 %v20033_v1  ;;  %8786 = vmatmul.mubr.bf16.gmra.mrb[140].mxu0 %v20033_v1 }
0x1184   : > { %8821 = vmatpush1.bf16.msra.mxu1 %v15638_v32  ;;  %8967 = vmatpush1.bf16.msra.mxu0 %v15641_v5  ;;  %v15688_v32 = vld [vmem:[%s17786_s25 + $0x3d4] ss:$48 sps:$4 sm:$0xff]   ;;  %v15691_v5 = vld [vmem:[%s17786_s25 + $0x3dc] ss:$48 sps:$4 sm:$0xff]  }
0x1185   : > { %8822 = vmatprep.subr.bf16.mxu1 %v15646_v14  ;;  %8968 = vmatprep.subr.bf16.mxu0 %v15649_v24  ;;  %v15686_v14 = vld [vmem:[%s17786_s25 + $0x3d0] ss:$48 sps:$4 sm:$0xff]   ;;  %v15689_v24 = vld [vmem:[%s17786_s25 + $0x3d8] ss:$48 sps:$4 sm:$0xff]  }
0x1186   : > { %8649 = vmatprep.mubr.bf16.mxu1 %v21530_v16  ;;  %8795 = vmatprep.mubr.bf16.mxu0 %v21530_v16 }
0x1188   : > { %8823 = vmatpush1.bf16.msra.mxu1 %v15644_v61  ;;  %8969 = vmatpush1.bf16.msra.mxu0 %v15647_v58  ;;  %v15694_v61 = vld [vmem:[%s17786_s25 + $0x434] ss:$48 sps:$4 sm:$0xff]   ;;  %v15697_v58 = vld [vmem:[%s17786_s25 + $0x43c] ss:$48 sps:$4 sm:$0xff]  }
0x1189   : > { %8824 = vmatprep.subr.bf16.mxu1 %v15652_v27  ;;  %8970 = vmatprep.subr.bf16.mxu0 %v15655_v4  ;;  %v15692_v27 = vld [vmem:[%s17786_s25 + $0x430] ss:$48 sps:$4 sm:$0xff]   ;;  %v15695_v4 = vld [vmem:[%s17786_s25 + $0x438] ss:$48 sps:$4 sm:$0xff]  }
0x118b   : > { %8650 = vmatmul.mubr.bf16.gmra.mrb[112].mxu1 %v20086_v20  ;;  %8796 = vmatmul.mubr.bf16.gmra.mrb[144].mxu0 %v20086_v20 }
0x118c   : > { %8825 = vmatpush1.bf16.msra.mxu1 %v15650_v3  ;;  %8971 = vmatpush1.bf16.msra.mxu0 %v15653_v57  ;;  %v15700_v3 = vld [vmem:[%s17786_s25 + $0x494] ss:$48 sps:$4 sm:$0xff]   ;;  %v15703_v57 = vld [vmem:[%s17786_s25 + $0x49c] ss:$48 sps:$4 sm:$0xff]  }
0x118d   : > { %8826 = vmatprep.subr.bf16.mxu1 %v15658_v48  ;;  %8972 = vmatprep.subr.bf16.mxu0 %v15661_v12  ;;  %v15698_v48 = vld [vmem:[%s17786_s25 + $0x490] ss:$48 sps:$4 sm:$0xff]   ;;  %v15701_v12 = vld [vmem:[%s17786_s25 + $0x498] ss:$48 sps:$4 sm:$0xff]  }
0x118e   : > { %8659 = vmatprep.mubr.bf16.mxu1 %v21530_v16  ;;  %8805 = vmatprep.mubr.bf16.mxu0 %v21530_v16 }
0x1190   : > { %8827 = vmatpush1.bf16.msra.mxu1 %v15656_v6  ;;  %8973 = vmatpush1.bf16.msra.mxu0 %v15659_v51  ;;  %v15706_v6 = vld [vmem:[%s17786_s25 + $0x4f4] ss:$48 sps:$4 sm:$0xff]   ;;  %v15709_v51 = vld [vmem:[%s17786_s25 + $0x4fc] ss:$48 sps:$4 sm:$0xff]  }
0x1191   : > { %8828 = vmatprep.subr.bf16.mxu1 %v15664_v42  ;;  %8974 = vmatprep.subr.bf16.mxu0 %v15667_v34  ;;  %v15704_v42 = vld [vmem:[%s17786_s25 + $0x4f0] ss:$48 sps:$4 sm:$0xff]   ;;  %v15707_v34 = vld [vmem:[%s17786_s25 + $0x4f8] ss:$48 sps:$4 sm:$0xff]  }
0x1193   : > { %8660 = vmatmul.mubr.bf16.gmra.mrb[116].mxu1 %v20111_v22  ;;  %8806 = vmatmul.mubr.bf16.gmra.mrb[148].mxu0 %v20111_v22 }
0x1194   : > { %8829 = vmatpush1.bf16.msra.mxu1 %v15662_v60  ;;  %8975 = vmatpush1.bf16.msra.mxu0 %v15665_v62  ;;  %v15712_v60 = vld [vmem:[%s17786_s25 + $0x554] ss:$48 sps:$4 sm:$0xff]   ;;  %v15715_v62 = vld [vmem:[%s17786_s25 + $0x55c] ss:$48 sps:$4 sm:$0xff]  }
0x1195   : > { %8848 = vmatprep.mubr.bf16.mxu1 %v19995_v21  ;;  %8994 = vmatprep.mubr.bf16.mxu0 %v19995_v21 }
0x1196   : > { %8830 = vmatprep.subr.bf16.mxu1 %v15670_v56  ;;  %8976 = vmatprep.subr.bf16.mxu0 %v15673_v53  ;;  %v15710_v56 = vld [vmem:[%s17786_s25 + $0x550] ss:$48 sps:$4 sm:$0xff]   ;;  %v15713_v53 = vld [vmem:[%s17786_s25 + $0x558] ss:$48 sps:$4 sm:$0xff]  }
0x1198   : > { %8831 = vmatpush1.bf16.msra.mxu1 %v15668_v18  ;;  %8977 = vmatpush1.bf16.msra.mxu0 %v15671_v10  ;;  %v15718_v18 = vld [vmem:[%s17786_s25 + $0x5b4] ss:$48 sps:$4 sm:$0xff]   ;;  %v15721_v10 = vld [vmem:[%s17786_s25 + $0x5bc] ss:$48 sps:$4 sm:$0xff]  }
0x1199   : > { %8832 = vmatprep.subr.bf16.mxu1 %v15676_v30  ;;  %8978 = vmatprep.subr.bf16.mxu0 %v15679_v37  ;;  %v15716_v30 = vld [vmem:[%s17786_s25 + $0x5b0] ss:$48 sps:$4 sm:$0xff]   ;;  %v15719_v37 = vld [vmem:[%s17786_s25 + $0x5b8] ss:$48 sps:$4 sm:$0xff]  }
0x119c   : > { %8833 = vmatpush1.bf16.msra.mxu1 %v15674_v11  ;;  %8979 = vmatpush1.bf16.msra.mxu0 %v15677_v54  ;;  %v15724_v11 = vld [vmem:[%s17786_s25 + $0x614] ss:$48 sps:$4 sm:$0xff]   ;;  %v15727_v54 = vld [vmem:[%s17786_s25 + $0x61c] ss:$48 sps:$4 sm:$0xff]  }
0x119d   : > { %8834 = vmatprep.subr.bf16.mxu1 %v15682_v44  ;;  %8980 = vmatprep.subr.bf16.mxu0 %v15685_v29  ;;  %v15722_v44 = vld [vmem:[%s17786_s25 + $0x610] ss:$48 sps:$4 sm:$0xff]   ;;  %v15725_v29 = vld [vmem:[%s17786_s25 + $0x618] ss:$48 sps:$4 sm:$0xff]  }
0x11a0   : > { %8835 = vmatpush1.bf16.msra.mxu1 %v15680_v15  ;;  %8981 = vmatpush1.bf16.msra.mxu0 %v15683_v26  ;;  %v15730_v15 = vld [vmem:[%s17786_s25 + $0x674] ss:$48 sps:$4 sm:$0xff]   ;;  %v15733_v26 = vld [vmem:[%s17786_s25 + $0x67c] ss:$48 sps:$4 sm:$0xff]  }
0x11a1   : > { %8836 = vmatprep.subr.bf16.mxu1 %v15688_v32  ;;  %8982 = vmatprep.subr.bf16.mxu0 %v15691_v5  ;;  %v15728_v32 = vld [vmem:[%s17786_s25 + $0x670] ss:$48 sps:$4 sm:$0xff]   ;;  %v15731_v5 = vld [vmem:[%s17786_s25 + $0x678] ss:$48 sps:$4 sm:$0xff]  }
0x11a4   : > { %8837 = vmatpush1.bf16.msra.mxu1 %v15686_v14  ;;  %8983 = vmatpush1.bf16.msra.mxu0 %v15689_v24  ;;  %v15736_v14 = vld [vmem:[%s17786_s25 + $0x6d4] ss:$48 sps:$4 sm:$0xff]   ;;  %v15739_v24 = vld [vmem:[%s17786_s25 + $0x6dc] ss:$48 sps:$4 sm:$0xff]  }
0x11a5   : > { %8838 = vmatprep.subr.bf16.mxu1 %v15694_v61  ;;  %8984 = vmatprep.subr.bf16.mxu0 %v15697_v58  ;;  %v15734_v61 = vld [vmem:[%s17786_s25 + $0x6d0] ss:$48 sps:$4 sm:$0xff]   ;;  %v15737_v58 = vld [vmem:[%s17786_s25 + $0x6d8] ss:$48 sps:$4 sm:$0xff]  }
0x11a8   : > { %8839 = vmatpush1.bf16.msra.mxu1 %v15692_v27  ;;  %8985 = vmatpush1.bf16.msra.mxu0 %v15695_v4  ;;  %v15742_v27 = vld [vmem:[%s17786_s25 + $0x734] ss:$48 sps:$4 sm:$0xff]   ;;  %v15745_v4 = vld [vmem:[%s17786_s25 + $0x73c] ss:$48 sps:$4 sm:$0xff]  }
0x11a9   : > { %8840 = vmatprep.subr.bf16.mxu1 %v15700_v3  ;;  %8986 = vmatprep.subr.bf16.mxu0 %v15703_v57  ;;  %v15740_v3 = vld [vmem:[%s17786_s25 + $0x730] ss:$48 sps:$4 sm:$0xff]   ;;  %v15743_v57 = vld [vmem:[%s17786_s25 + $0x738] ss:$48 sps:$4 sm:$0xff]  }
0x11ac   : > { %8841 = vmatpush1.bf16.msra.mxu1 %v15698_v48  ;;  %8987 = vmatpush1.bf16.msra.mxu0 %v15701_v12  ;;  %v15748_v48 = vld [vmem:[%s17786_s25 + $0x794] ss:$48 sps:$4 sm:$0xff]   ;;  %v15751_v12 = vld [vmem:[%s17786_s25 + $0x79c] ss:$48 sps:$4 sm:$0xff]  }
0x11ad   : > { %8842 = vmatprep.subr.bf16.mxu1 %v15706_v6  ;;  %8988 = vmatprep.subr.bf16.mxu0 %v15709_v51  ;;  %v15746_v6 = vld [vmem:[%s17786_s25 + $0x790] ss:$48 sps:$4 sm:$0xff]   ;;  %v15749_v51 = vld [vmem:[%s17786_s25 + $0x798] ss:$48 sps:$4 sm:$0xff]  }
0x11b0   : > { %8843 = vmatpush1.bf16.msra.mxu1 %v15704_v42  ;;  %8989 = vmatpush1.bf16.msra.mxu0 %v15707_v34  ;;  %v15754_v42 = vld [vmem:[%s17786_s25 + $0x7f4] ss:$48 sps:$4 sm:$0xff]   ;;  %v15757_v34 = vld [vmem:[%s17786_s25 + $0x7fc] ss:$48 sps:$4 sm:$0xff]  }
0x11b1   : > { %8844 = vmatprep.subr.bf16.mxu1 %v15712_v60  ;;  %8990 = vmatprep.subr.bf16.mxu0 %v15715_v62  ;;  %v15752_v60 = vld [vmem:[%s17786_s25 + $0x7f0] ss:$48 sps:$4 sm:$0xff]   ;;  %v15755_v62 = vld [vmem:[%s17786_s25 + $0x7f8] ss:$48 sps:$4 sm:$0xff]  }
0x11b4   : > { %8845 = vmatpush1.bf16.msra.mxu1 %v15710_v56  ;;  %8991 = vmatpush1.bf16.msra.mxu0 %v15713_v53  ;;  %v15760_v56 = vld [vmem:[%s17786_s25 + $0x854] ss:$48 sps:$4 sm:$0xff]   ;;  %v15763_v53 = vld [vmem:[%s17786_s25 + $0x85c] ss:$48 sps:$4 sm:$0xff]  }
0x11b5   : > { %8846 = vmatprep.subr.bf16.mxu1 %v15718_v18  ;;  %8992 = vmatprep.subr.bf16.mxu0 %v15721_v10  ;;  %v15758_v18 = vld [vmem:[%s17786_s25 + $0x850] ss:$48 sps:$4 sm:$0xff]   ;;  %v15761_v10 = vld [vmem:[%s17786_s25 + $0x858] ss:$48 sps:$4 sm:$0xff]  }
0x11b8   : > { %8847 = vmatpush1.bf16.msra.mxu1 %v15716_v30  ;;  %8993 = vmatpush1.bf16.msra.mxu0 %v15719_v37  ;;  %v15766_v30 = vld [vmem:[%s17786_s25 + $0x8b4] ss:$48 sps:$4 sm:$0xff]   ;;  %v15769_v37 = vld [vmem:[%s17786_s25 + $0x8bc] ss:$48 sps:$4 sm:$0xff]  }
0x11b9   : > { %8889 = vmatprep.subr.bf16.mxu1 %v15724_v11  ;;  %9035 = vmatprep.subr.bf16.mxu0 %v15727_v54  ;;  %v15764_v11 = vld [vmem:[%s17786_s25 + $0x8b0] ss:$48 sps:$4 sm:$0xff]   ;;  %v15767_v54 = vld [vmem:[%s17786_s25 + $0x8b8] ss:$48 sps:$4 sm:$0xff]  }
0x11bb   : > { %8849 = vmatmul.mubr.bf16.vlgmr.msra.gmra.mrb[120].mxu1 %v19997_v2  ;;  %8995 = vmatmul.mubr.bf16.vlgmr.msra.gmra.mrb[152].mxu0 %v19997_v2 }
0x11bc   : > { %8858 = vmatprep.mubr.bf16.mxu1 %v20027_v7  ;;  %8890 = vmatpush1.bf16.msra.mxu1 %v15722_v44  ;;  %v15772_v44 = vld [vmem:[%s17786_s25 + $0x24] ss:$48 sps:$4 sm:$0xff]  }
0x11bd   : > { %9004 = vmatprep.mubr.bf16.mxu0 %v20027_v7  ;;  %9036 = vmatpush1.bf16.msra.mxu0 %v15725_v29  ;;  %v15775_v29 = vld [vmem:[%s17786_s25 + $0x2c] ss:$48 sps:$4 sm:$0xff]  }
0x11be   : > { %8891 = vmatprep.subr.bf16.mxu1 %v15730_v15  ;;  %9037 = vmatprep.subr.bf16.mxu0 %v15733_v26  ;;  %v15770_v15 = vld [vmem:[%s17786_s25 + $0x20] ss:$48 sps:$4 sm:$0xff]   ;;  %v15773_v26 = vld [vmem:[%s17786_s25 + $0x28] ss:$48 sps:$4 sm:$0xff]  }
0x11c0   : > { %8892 = vmatpush1.bf16.msra.mxu1 %v15728_v32  ;;  %v15778_v32 = vld [vmem:[%s17786_s25 + $0x84] ss:$48 sps:$4 sm:$0xff]  }
0x11c1   : > { %9038 = vmatpush1.bf16.msra.mxu0 %v15731_v5  ;;  %8893 = vmatprep.subr.bf16.mxu1 %v15736_v14  ;;  %v15781_v5 = vld [vmem:[%s17786_s25 + $0x8c] ss:$48 sps:$4 sm:$0xff]   ;;  %v15776_v14 = vld [vmem:[%s17786_s25 + $0x80] ss:$48 sps:$4 sm:$0xff]  }
0x11c2   : > { %9039 = vmatprep.subr.bf16.mxu0 %v15739_v24  ;;  %v15779_v24 = vld [vmem:[%s17786_s25 + $0x88] ss:$48 sps:$4 sm:$0xff]  }
0x11c3   : > { %8859 = vmatmul.mubr.bf16.gmra.mrb[124].mxu1 %v20029_v33  ;;  %9005 = vmatmul.mubr.bf16.gmra.mrb[156].mxu0 %v20029_v33 }
0x11c4   : > { %8868 = vmatprep.mubr.bf16.mxu1 %v20082_v43  ;;  %8894 = vmatpush1.bf16.msra.mxu1 %v15734_v61  ;;  %v15784_v61 = vld [vmem:[%s17786_s25 + $0xe4] ss:$48 sps:$4 sm:$0xff]  }
0x11c5   : > { %9014 = vmatprep.mubr.bf16.mxu0 %v20082_v43  ;;  %9040 = vmatpush1.bf16.msra.mxu0 %v15737_v58  ;;  %v15787_v58 = vld [vmem:[%s17786_s25 + $0xec] ss:$48 sps:$4 sm:$0xff]  }
0x11c6   : > { %8895 = vmatprep.subr.bf16.mxu1 %v15742_v27  ;;  %9041 = vmatprep.subr.bf16.mxu0 %v15745_v4  ;;  %v15782_v27 = vld [vmem:[%s17786_s25 + $0xe0] ss:$48 sps:$4 sm:$0xff]   ;;  %v15785_v4 = vld [vmem:[%s17786_s25 + $0xe8] ss:$48 sps:$4 sm:$0xff]  }
0x11c8   : > { %8896 = vmatpush1.bf16.msra.mxu1 %v15740_v3  ;;  %v15790_v3 = vld [vmem:[%s17786_s25 + $0x144] ss:$48 sps:$4 sm:$0xff]  }
0x11c9   : > { %9042 = vmatpush1.bf16.msra.mxu0 %v15743_v57  ;;  %8897 = vmatprep.subr.bf16.mxu1 %v15748_v48  ;;  %v15793_v57 = vld [vmem:[%s17786_s25 + $0x14c] ss:$48 sps:$4 sm:$0xff]   ;;  %v15788_v48 = vld [vmem:[%s17786_s25 + $0x140] ss:$48 sps:$4 sm:$0xff]  }
0x11ca   : > { %9043 = vmatprep.subr.bf16.mxu0 %v15751_v12  ;;  %v15791_v12 = vld [vmem:[%s17786_s25 + $0x148] ss:$48 sps:$4 sm:$0xff]  }
0x11cb   : > { %8869 = vmatmul.mubr.bf16.gmra.mrb[128].mxu1 %v20084_v55  ;;  %9015 = vmatmul.mubr.bf16.gmra.mrb[160].mxu0 %v20084_v55 }
0x11cc   : > { %8878 = vmatprep.mubr.bf16.mxu1 %v20107_v52  ;;  %8898 = vmatpush1.bf16.msra.mxu1 %v15746_v6  ;;  %v15796_v6 = vld [vmem:[%s17786_s25 + $0x1a4] ss:$48 sps:$4 sm:$0xff]  }
0x11cd   : > { %9024 = vmatprep.mubr.bf16.mxu0 %v20107_v52  ;;  %9044 = vmatpush1.bf16.msra.mxu0 %v15749_v51  ;;  %v15799_v51 = vld [vmem:[%s17786_s25 + $0x1ac] ss:$48 sps:$4 sm:$0xff]  }
0x11ce   : > { %8899 = vmatprep.subr.bf16.mxu1 %v15754_v42  ;;  %9045 = vmatprep.subr.bf16.mxu0 %v15757_v34  ;;  %v15794_v42 = vld [vmem:[%s17786_s25 + $0x1a0] ss:$48 sps:$4 sm:$0xff]   ;;  %v15797_v34 = vld [vmem:[%s17786_s25 + $0x1a8] ss:$48 sps:$4 sm:$0xff]  }
0x11d0   : > { %8900 = vmatpush1.bf16.msra.mxu1 %v15752_v60  ;;  %v15802_v60 = vld [vmem:[%s17786_s25 + $0x204] ss:$48 sps:$4 sm:$0xff]  }
0x11d1   : > { %9046 = vmatpush1.bf16.msra.mxu0 %v15755_v62  ;;  %8901 = vmatprep.subr.bf16.mxu1 %v15760_v56  ;;  %v15805_v62 = vld [vmem:[%s17786_s25 + $0x20c] ss:$48 sps:$4 sm:$0xff]   ;;  %v15800_v56 = vld [vmem:[%s17786_s25 + $0x200] ss:$48 sps:$4 sm:$0xff]  }
0x11d2   : > { %9047 = vmatprep.subr.bf16.mxu0 %v15763_v53  ;;  %v15803_v53 = vld [vmem:[%s17786_s25 + $0x208] ss:$48 sps:$4 sm:$0xff]  }
0x11d3   : > { %8879 = vmatmul.mubr.bf16.gmra.mrb[132].mxu1 %v20109_v41  ;;  %9025 = vmatmul.mubr.bf16.gmra.mrb[164].mxu0 %v20109_v41 }
0x11d4   : > { %8902 = vmatpush1.bf16.msra.mxu1 %v15758_v18  ;;  %8921 = vmatprep.mubr.bf16.mxu1 %v21530_v16  ;;  %v15808_v18 = vld [vmem:[%s17786_s25 + $0x264] ss:$48 sps:$4 sm:$0xff]  }
0x11d5   : > { %9048 = vmatpush1.bf16.msra.mxu0 %v15761_v10  ;;  %8903 = vmatprep.subr.bf16.mxu1 %v15766_v30  ;;  %v15811_v10 = vld [vmem:[%s17786_s25 + $0x26c] ss:$48 sps:$4 sm:$0xff]   ;;  %v15806_v30 = vld [vmem:[%s17786_s25 + $0x260] ss:$48 sps:$4 sm:$0xff]  }
0x11d6   : > { %9049 = vmatprep.subr.bf16.mxu0 %v15769_v37  ;;  %9067 = vmatprep.mubr.bf16.mxu0 %v21530_v16  ;;  %v15809_v37 = vld [vmem:[%s17786_s25 + $0x268] ss:$48 sps:$4 sm:$0xff]  }
0x11d8   : > { %8904 = vmatpush1.bf16.msra.mxu1 %v15764_v11  ;;  %v15814_v11 = vld [vmem:[%s17786_s25 + $0x2c4] ss:$48 sps:$4 sm:$0xff]  }
0x11d9   : > { %9050 = vmatpush1.bf16.msra.mxu0 %v15767_v54  ;;  %9108 = vmatprep.subr.bf16.mxu1 %v15772_v44  ;;  %v15817_v54 = vld [vmem:[%s17786_s25 + $0x2cc] ss:$48 sps:$4 sm:$0xff]   ;;  %v15812_v44 = vld [vmem:[%s17786_s25 + $0x2c0] ss:$48 sps:$4 sm:$0xff]  }
0x11da   : > { %9254 = vmatprep.subr.bf16.mxu0 %v15775_v29  ;;  %v15815_v29 = vld [vmem:[%s17786_s25 + $0x2c8] ss:$48 sps:$4 sm:$0xff]  }
0x11db   : > { %8922 = vmatmul.mubr.bf16.vlgmr.msra.gmra.mrb[120].mxu1 %v20002_v49 }
0x11dc   : > { %9068 = vmatmul.mubr.bf16.vlgmr.msra.gmra.mrb[152].mxu0 %v20002_v49  ;;  %9109 = vmatpush1.bf16.msra.mxu1 %v15770_v15  ;;  %v15820_v15 = vld [vmem:[%s17786_s25 + $0x324] ss:$48 sps:$4 sm:$0xff]  }
0x11dd   : > { %9255 = vmatpush1.bf16.msra.mxu0 %v15773_v26  ;;  %9110 = vmatprep.subr.bf16.mxu1 %v15778_v32  ;;  %v15823_v26 = vld [vmem:[%s17786_s25 + $0x32c] ss:$48 sps:$4 sm:$0xff]   ;;  %v15818_v32 = vld [vmem:[%s17786_s25 + $0x320] ss:$48 sps:$4 sm:$0xff]  }
0x11de   : > { %9256 = vmatprep.subr.bf16.mxu0 %v15781_v5  ;;  %8931 = vmatprep.mubr.bf16.mxu1 %v21530_v16  ;;  %v15821_v5 = vld [vmem:[%s17786_s25 + $0x328] ss:$48 sps:$4 sm:$0xff]  }
0x11df   : > { %9077 = vmatprep.mubr.bf16.mxu0 %v21530_v16 }
0x11e0   : > { %9111 = vmatpush1.bf16.msra.mxu1 %v15776_v14  ;;  %v15826_v14 = vld [vmem:[%s17786_s25 + $0x384] ss:$48 sps:$4 sm:$0xff]  }
0x11e1   : > { %9257 = vmatpush1.bf16.msra.mxu0 %v15779_v24  ;;  %9112 = vmatprep.subr.bf16.mxu1 %v15784_v61  ;;  %v15829_v24 = vld [vmem:[%s17786_s25 + $0x38c] ss:$48 sps:$4 sm:$0xff]   ;;  %v15827_v61 = vld [vmem:[%s17786_s25 + $0x388] ss:$48 sps:$4 sm:$0xff]  }
0x11e2   : > { %9258 = vmatprep.subr.bf16.mxu0 %v15787_v58  ;;  %v15832_v58 = vld [vmem:[%s17786_s25 + $0x3e4] ss:$48 sps:$4 sm:$0xff]  }
0x11e3   : > { %8932 = vmatmul.mubr.bf16.gmra.mrb[124].mxu1 %v20033_v1 }
0x11e4   : > { %9078 = vmatmul.mubr.bf16.gmra.mrb[156].mxu0 %v20033_v1  ;;  %9113 = vmatpush1.bf16.msra.mxu1 %v15782_v27  ;;  %v15835_v27 = vld [vmem:[%s17786_s25 + $0x3ec] ss:$48 sps:$4 sm:$0xff]  }
0x11e5   : > { %9259 = vmatpush1.bf16.msra.mxu0 %v15785_v4  ;;  %9114 = vmatprep.subr.bf16.mxu1 %v15790_v3  ;;  %v15830_v4 = vld [vmem:[%s17786_s25 + $0x3e0] ss:$48 sps:$4 sm:$0xff]   ;;  %v15833_v3 = vld [vmem:[%s17786_s25 + $0x3e8] ss:$48 sps:$4 sm:$0xff]  }
0x11e6   : > { %9260 = vmatprep.subr.bf16.mxu0 %v15793_v57  ;;  %8941 = vmatprep.mubr.bf16.mxu1 %v21530_v16  ;;  %v15838_v57 = vld [vmem:[%s17786_s25 + $0x444] ss:$48 sps:$4 sm:$0xff]  }
0x11e7   : > { %9087 = vmatprep.mubr.bf16.mxu0 %v21530_v16 }
0x11e8   : > { %9115 = vmatpush1.bf16.msra.mxu1 %v15788_v48  ;;  %v15841_v48 = vld [vmem:[%s17786_s25 + $0x44c] ss:$48 sps:$4 sm:$0xff]  }
0x11e9   : > { %9261 = vmatpush1.bf16.msra.mxu0 %v15791_v12  ;;  %9116 = vmatprep.subr.bf16.mxu1 %v15796_v6  ;;  %v15836_v12 = vld [vmem:[%s17786_s25 + $0x440] ss:$48 sps:$4 sm:$0xff]   ;;  %v15839_v6 = vld [vmem:[%s17786_s25 + $0x448] ss:$48 sps:$4 sm:$0xff]  }
0x11ea   : > { %9262 = vmatprep.subr.bf16.mxu0 %v15799_v51  ;;  %v15844_v51 = vld [vmem:[%s17786_s25 + $0x4a4] ss:$48 sps:$4 sm:$0xff]  }
0x11eb   : > { %8942 = vmatmul.mubr.bf16.gmra.mrb[128].mxu1 %v20086_v20 }
0x11ec   : > { %9088 = vmatmul.mubr.bf16.gmra.mrb[160].mxu0 %v20086_v20  ;;  %9117 = vmatpush1.bf16.msra.mxu1 %v15794_v42  ;;  %v15847_v42 = vld [vmem:[%s17786_s25 + $0x4ac] ss:$48 sps:$4 sm:$0xff]  }
0x11ed   : > { %9263 = vmatpush1.bf16.msra.mxu0 %v15797_v34  ;;  %9118 = vmatprep.subr.bf16.mxu1 %v15802_v60  ;;  %v15842_v34 = vld [vmem:[%s17786_s25 + $0x4a0] ss:$48 sps:$4 sm:$0xff]   ;;  %v15845_v60 = vld [vmem:[%s17786_s25 + $0x4a8] ss:$48 sps:$4 sm:$0xff]  }
0x11ee   : > { %9264 = vmatprep.subr.bf16.mxu0 %v15805_v62  ;;  %8951 = vmatprep.mubr.bf16.mxu1 %v21530_v16  ;;  %v15850_v62 = vld [vmem:[%s17786_s25 + $0x504] ss:$48 sps:$4 sm:$0xff]  }
0x11ef   : > { %9097 = vmatprep.mubr.bf16.mxu0 %v21530_v16 }
0x11f0   : > { %9119 = vmatpush1.bf16.msra.mxu1 %v15800_v56  ;;  %v15853_v56 = vld [vmem:[%s17786_s25 + $0x50c] ss:$48 sps:$4 sm:$0xff]  }
0x11f1   : > { %9265 = vmatpush1.bf16.msra.mxu0 %v15803_v53  ;;  %9120 = vmatprep.subr.bf16.mxu1 %v15808_v18  ;;  %v15848_v53 = vld [vmem:[%s17786_s25 + $0x500] ss:$48 sps:$4 sm:$0xff]   ;;  %v15851_v18 = vld [vmem:[%s17786_s25 + $0x508] ss:$48 sps:$4 sm:$0xff]  }
0x11f2   : > { %9266 = vmatprep.subr.bf16.mxu0 %v15811_v10  ;;  %v15856_v10 = vld [vmem:[%s17786_s25 + $0x564] ss:$48 sps:$4 sm:$0xff]  }
0x11f3   : > { %8952 = vmatmul.mubr.bf16.gmra.mrb[132].mxu1 %v20111_v22 }
0x11f4   : > { %9098 = vmatmul.mubr.bf16.gmra.mrb[164].mxu0 %v20111_v22  ;;  %9121 = vmatpush1.bf16.msra.mxu1 %v15806_v30  ;;  %v15859_v30 = vld [vmem:[%s17786_s25 + $0x56c] ss:$48 sps:$4 sm:$0xff]  }
0x11f5   : > { %9140 = vmatprep.mubr.bf16.mxu1 %v19995_v21  ;;  %9267 = vmatpush1.bf16.msra.mxu0 %v15809_v37  ;;  %v15854_v37 = vld [vmem:[%s17786_s25 + $0x560] ss:$48 sps:$4 sm:$0xff]  }
0x11f6   : > { %9286 = vmatprep.mubr.bf16.mxu0 %v19995_v21  ;;  %9122 = vmatprep.subr.bf16.mxu1 %v15814_v11  ;;  %v15824_v21 = vld [vmem:[%s17786_s25 + $0x380] ss:$48 sps:$4 sm:$0xff]   ;;  %v15857_v11 = vld [vmem:[%s17786_s25 + $0x568] ss:$48 sps:$4 sm:$0xff]  }
0x11f7   : > { %9268 = vmatprep.subr.bf16.mxu0 %v15817_v54  ;;  %v15862_v54 = vld [vmem:[%s17786_s25 + $0x5c4] ss:$48 sps:$4 sm:$0xff]  }
0x11f8   : > { %9123 = vmatpush1.bf16.msra.mxu1 %v15812_v44  ;;  %v15865_v44 = vld [vmem:[%s17786_s25 + $0x5cc] ss:$48 sps:$4 sm:$0xff]  }
0x11f9   : > { %9269 = vmatpush1.bf16.msra.mxu0 %v15815_v29  ;;  %9124 = vmatprep.subr.bf16.mxu1 %v15820_v15  ;;  %v15860_v29 = vld [vmem:[%s17786_s25 + $0x5c0] ss:$48 sps:$4 sm:$0xff]   ;;  %v15863_v15 = vld [vmem:[%s17786_s25 + $0x5c8] ss:$48 sps:$4 sm:$0xff]  }
0x11fa   : > { %9270 = vmatprep.subr.bf16.mxu0 %v15823_v26  ;;  %v15868_v26 = vld [vmem:[%s17786_s25 + $0x624] ss:$48 sps:$4 sm:$0xff]  }
0x11fc   : > { %9125 = vmatpush1.bf16.msra.mxu1 %v15818_v32  ;;  %v15871_v32 = vld [vmem:[%s17786_s25 + $0x62c] ss:$48 sps:$4 sm:$0xff]  }
0x11fd   : > { %9271 = vmatpush1.bf16.msra.mxu0 %v15821_v5  ;;  %9126 = vmatprep.subr.bf16.mxu1 %v15826_v14  ;;  %v15866_v5 = vld [vmem:[%s17786_s25 + $0x620] ss:$48 sps:$4 sm:$0xff]   ;;  %v15869_v14 = vld [vmem:[%s17786_s25 + $0x628] ss:$48 sps:$4 sm:$0xff]  }
0x11fe   : > { %9272 = vmatprep.subr.bf16.mxu0 %v15829_v24  ;;  %v15874_v24 = vld [vmem:[%s17786_s25 + $0x684] ss:$48 sps:$4 sm:$0xff]  }
0x1200   : > { %9127 = vmatpush1.bf16.msra.mxu1 %v15824_v21  ;;  %v15877_v21 = vld [vmem:[%s17786_s25 + $0x68c] ss:$48 sps:$4 sm:$0xff]  }
0x1201   : > { %9273 = vmatpush1.bf16.msra.mxu0 %v15827_v61  ;;  %9128 = vmatprep.subr.bf16.mxu1 %v15832_v58  ;;  %v15872_v61 = vld [vmem:[%s17786_s25 + $0x680] ss:$48 sps:$4 sm:$0xff]   ;;  %v15875_v58 = vld [vmem:[%s17786_s25 + $0x688] ss:$48 sps:$4 sm:$0xff]  }
0x1202   : > { %9274 = vmatprep.subr.bf16.mxu0 %v15835_v27  ;;  %v15880_v27 = vld [vmem:[%s17786_s25 + $0x6e4] ss:$48 sps:$4 sm:$0xff]  }
0x1204   : > { %9129 = vmatpush1.bf16.msra.mxu1 %v15830_v4  ;;  %v15883_v4 = vld [vmem:[%s17786_s25 + $0x6ec] ss:$48 sps:$4 sm:$0xff]  }
0x1205   : > { %9275 = vmatpush1.bf16.msra.mxu0 %v15833_v3  ;;  %9130 = vmatprep.subr.bf16.mxu1 %v15838_v57  ;;  %v15878_v3 = vld [vmem:[%s17786_s25 + $0x6e0] ss:$48 sps:$4 sm:$0xff]   ;;  %v15886_v57 = vld [vmem:[%s17786_s25 + $0x744] ss:$48 sps:$4 sm:$0xff]  }
0x1206   : > { %9276 = vmatprep.subr.bf16.mxu0 %v15841_v48  ;;  %v15884_v48 = vld [vmem:[%s17786_s25 + $0x740] ss:$48 sps:$4 sm:$0xff]  }
0x1208   : > { %9131 = vmatpush1.bf16.msra.mxu1 %v15836_v12  ;;  %v15887_v12 = vld [vmem:[%s17786_s25 + $0x748] ss:$48 sps:$4 sm:$0xff]  }
0x1209   : > { %9277 = vmatpush1.bf16.msra.mxu0 %v15839_v6  ;;  %9132 = vmatprep.subr.bf16.mxu1 %v15844_v51  ;;  %v15892_v6 = vld [vmem:[%s17786_s25 + $0x7a4] ss:$48 sps:$4 sm:$0xff]   ;;  %v15895_v51 = vld [vmem:[%s17786_s25 + $0x7ac] ss:$48 sps:$4 sm:$0xff]  }
0x120a   : > { %9278 = vmatprep.subr.bf16.mxu0 %v15847_v42  ;;  %v15890_v42 = vld [vmem:[%s17786_s25 + $0x7a0] ss:$48 sps:$4 sm:$0xff]  }
0x120c   : > { %9133 = vmatpush1.bf16.msra.mxu1 %v15842_v34  ;;  %v15898_v34 = vld [vmem:[%s17786_s25 + $0x804] ss:$48 sps:$4 sm:$0xff]  }
0x120d   : > { %9279 = vmatpush1.bf16.msra.mxu0 %v15845_v60  ;;  %9134 = vmatprep.subr.bf16.mxu1 %v15850_v62  ;;  %v15896_v60 = vld [vmem:[%s17786_s25 + $0x800] ss:$48 sps:$4 sm:$0xff]   ;;  %v15899_v62 = vld [vmem:[%s17786_s25 + $0x808] ss:$48 sps:$4 sm:$0xff]  }
0x120e   : > { %9280 = vmatprep.subr.bf16.mxu0 %v15853_v56  ;;  %v15904_v56 = vld [vmem:[%s17786_s25 + $0x864] ss:$48 sps:$4 sm:$0xff]  }
0x1210   : > { %9135 = vmatpush1.bf16.msra.mxu1 %v15848_v53  ;;  %v15907_v53 = vld [vmem:[%s17786_s25 + $0x86c] ss:$48 sps:$4 sm:$0xff]  }
0x1211   : > { %9281 = vmatpush1.bf16.msra.mxu0 %v15851_v18  ;;  %9136 = vmatprep.subr.bf16.mxu1 %v15856_v10  ;;  %v15902_v18 = vld [vmem:[%s17786_s25 + $0x860] ss:$48 sps:$4 sm:$0xff]   ;;  %v15910_v10 = vld [vmem:[%s17786_s25 + $0x8c4] ss:$48 sps:$4 sm:$0xff]  }
0x1212   : > { %9282 = vmatprep.subr.bf16.mxu0 %v15859_v30  ;;  %v15908_v30 = vld [vmem:[%s17786_s25 + $0x8c0] ss:$48 sps:$4 sm:$0xff]  }
0x1214   : > { %9137 = vmatpush1.bf16.msra.mxu1 %v15854_v37  ;;  %v15911_v37 = vld [vmem:[%s17786_s25 + $0x8c8] ss:$48 sps:$4 sm:$0xff]  }
0x1215   : > { %9283 = vmatpush1.bf16.msra.mxu0 %v15857_v11  ;;  %9138 = vmatprep.subr.bf16.mxu1 %v15862_v54  ;;  %v15916_v11 = vld [vmem:[%s17795_s17 + $0x4] ss:$12 sps:$4 sm:$0xff]   ;;  %v15917_v54 = vld [vmem:[%s17795_s17 + $0xc8] ss:$12 sps:$4 sm:$0xff]  }
0x1216   : > { %9284 = vmatprep.subr.bf16.mxu0 %v15865_v44  ;;  %v15914_v44 = vld [vmem:[%s17795_s17] ss:$12 sps:$4 sm:$0xff]  }
0x1218   : > { %9139 = vmatpush1.bf16.msra.mxu1 %v15860_v29  ;;  %v15921_v29 = vld [vmem:[%s17795_s17 + $0x1c] ss:$12 sps:$4 sm:$0xff]  }
0x1219   : > { %9285 = vmatpush1.bf16.msra.mxu0 %v15863_v15  ;;  %9181 = vmatprep.subr.bf16.mxu1 %v15868_v26  ;;  %v15922_v15 = vld [vmem:[%s17795_s17 + $0xe0] ss:$12 sps:$4 sm:$0xff]   ;;  %v15919_v26 = vld [vmem:[%s17795_s17 + $0x18] ss:$12 sps:$4 sm:$0xff]  }
0x121a   : > { %9327 = vmatprep.subr.bf16.mxu0 %v15871_v32  ;;  %v15923_v32 = vld [vmem:[%s17795_s17 + $0x20] ss:$12 sps:$4 sm:$0xff]  }
0x121b   : > { %9141 = vmatmul.mubr.bf16.vlgmr.msra.gmra.mrb[136].mxu1 %v19997_v2 }
0x121c   : > { %9287 = vmatmul.mubr.bf16.vlgmr.msra.gmra.mrb[168].mxu0 %v19997_v2  ;;  %9150 = vmatprep.mubr.bf16.mxu1 %v20027_v7  ;;  %v15881_v2 = vld [vmem:[%s17786_s25 + $0x6e8] ss:$48 sps:$4 sm:$0xff]  }
0x121d   : > { %9182 = vmatpush1.bf16.msra.mxu1 %v15866_v5  ;;  %9296 = vmatprep.mubr.bf16.mxu0 %v20027_v7  ;;  %v15889_v7 = vld [vmem:[%s17786_s25 + $0x74c] ss:$48 sps:$4 sm:$0xff]  }
0x121e   : > { %9328 = vmatpush1.bf16.msra.mxu0 %v15869_v14  ;;  %9183 = vmatprep.subr.bf16.mxu1 %v15874_v24  ;;  %v15926_v5 = vld [vmem:[%s17795_s17 + $0x34] ss:$12 sps:$4 sm:$0xff]   ;;  %v15927_v14 = vld [vmem:[%s17795_s17 + $0xf8] ss:$12 sps:$4 sm:$0xff]   ;;  %v15924_v24 = vld [vmem:[%s17795_s17 + $0x30] ss:$12 sps:$4 sm:$0xff]  }
0x121f   : > { %9329 = vmatprep.subr.bf16.mxu0 %v15877_v21  ;;  %v15931_v21 = vld [vmem:[%s17795_s17 + $0x4c] ss:$12 sps:$4 sm:$0xff]  }
0x1221   : > { %9184 = vmatpush1.bf16.msra.mxu1 %v15872_v61  ;;  %v15932_v61 = vld [vmem:[%s17795_s17 + $0x110] ss:$12 sps:$4 sm:$0xff]  }
0x1222   : > { %9330 = vmatpush1.bf16.msra.mxu0 %v15875_v58  ;;  %9185 = vmatprep.subr.bf16.mxu1 %v15880_v27  ;;  %v15929_v58 = vld [vmem:[%s17795_s17 + $0x48] ss:$12 sps:$4 sm:$0xff]   ;;  %v15933_v27 = vld [vmem:[%s17795_s17 + $0x50] ss:$12 sps:$4 sm:$0xff]  }
0x1223   : > { %9151 = vmatmul.mubr.bf16.gmra.mrb[140].mxu1 %v20029_v33  ;;  %9331 = vmatprep.subr.bf16.mxu0 %v15883_v4  ;;  %v15936_v4 = vld [vmem:[%s17795_s17 + $0x64] ss:$12 sps:$4 sm:$0xff]  }
0x1224   : > { %9297 = vmatmul.mubr.bf16.gmra.mrb[172].mxu0 %v20029_v33  ;;  %9160 = vmatprep.mubr.bf16.mxu1 %v20082_v43  ;;  %v15893_v33 = vld [vmem:[%s17786_s25 + $0x7a8] ss:$48 sps:$4 sm:$0xff]  }
0x1225   : > { %9186 = vmatpush1.bf16.msra.mxu1 %v15878_v3  ;;  %9306 = vmatprep.mubr.bf16.mxu0 %v20082_v43  ;;  %v15901_v43 = vld [vmem:[%s17786_s25 + $0x80c] ss:$48 sps:$4 sm:$0xff]  }
0x1226   : > { %9332 = vmatpush1.bf16.msra.mxu0 %v15881_v2  ;;  %9187 = vmatprep.subr.bf16.mxu1 %v15886_v57  ;;  %v15937_v3 = vld [vmem:[%s17795_s17 + $0x128] ss:$12 sps:$4 sm:$0xff]  }
0x1227   : > { %9333 = vmatprep.subr.bf16.mxu0 %v15889_v7  ;;  %v20400_v2 = vld [vmem:[%s17793_s2] sm:$0xff] }
0x1228   : > { %v21546_v57 = vld [vmem:[#allocation50_spill] sm:$0xff] }
0x1229   : > { %9188 = vmatpush1.bf16.msra.mxu1 %v15884_v48  ;;  %v7038_v7 = vsub.s32 3, %v21546_v57  ;;  %v15938_v48 = vld [vmem:[%s17795_s17 + $0x68] ss:$12 sps:$4 sm:$0xff]  }
0x122a   : > { %9334 = vmatpush1.bf16.msra.mxu0 %v15887_v12  ;;  %9189 = vmatprep.subr.bf16.mxu1 %v15892_v6  ;;  %v15941_v12 = vld [vmem:[%s17795_s17 + $0x7c] ss:$12 sps:$4 sm:$0xff]   ;;  %v20408_v6 = vrot.slane %v20400_v2, %v21533_v13 }
0x122b   : > { %9161 = vmatmul.mubr.bf16.gmra.mrb[144].mxu1 %v20084_v55  ;;  %9335 = vmatprep.subr.bf16.mxu0 %v15895_v51  ;;  %v20412_v51 = vrot.slane %v20400_v2, %v21535_v25 }
0x122c   : > { %9307 = vmatmul.mubr.bf16.gmra.mrb[176].mxu0 %v20084_v55  ;;  %9170 = vmatprep.mubr.bf16.mxu1 %v20107_v52  ;;  %v15905_v55 = vld [vmem:[%s17786_s25 + $0x868] ss:$48 sps:$4 sm:$0xff]  }
0x122d   : > { %9190 = vmatpush1.bf16.msra.mxu1 %v15890_v42  ;;  %9316 = vmatprep.mubr.bf16.mxu0 %v20107_v52  ;;  %v15913_v52 = vld [vmem:[%s17786_s25 + $0x8cc] ss:$48 sps:$4 sm:$0xff]   ;;  %v15942_v42 = vld [vmem:[%s17795_s17 + $0x140] ss:$12 sps:$4 sm:$0xff]  }
0x122e   : > { %9336 = vmatpush1.bf16.msra.mxu0 %v15893_v33  ;;  %9191 = vmatprep.subr.bf16.mxu1 %v15898_v34  ;;  %v20418_v33 = vrot.slane %v20400_v2, %v21534_v46  ;;  %v20423_v34 = vrot.slane %v20400_v2, %v7038_v7 }
0x122f   : > { %9337 = vmatprep.subr.bf16.mxu0 %v15901_v43  ;;  %v15939_v43 = vld [vmem:[%s17795_s17 + $0x78] ss:$12 sps:$4 sm:$0xff]  }
0x1231   : > { %9192 = vmatpush1.bf16.msra.mxu1 %v15896_v60 }
0x1232   : > { %9338 = vmatpush1.bf16.msra.mxu0 %v15899_v62  ;;  %9193 = vmatprep.subr.bf16.mxu1 %v15904_v56  ;;  %v15943_v56 = vld [vmem:[%s17795_s17 + $0x80] ss:$12 sps:$4 sm:$0xff]  }
0x1233   : > { %9171 = vmatmul.mubr.bf16.gmra.mrb[148].mxu1 %v20109_v41  ;;  %9339 = vmatprep.subr.bf16.mxu0 %v15907_v53  ;;  %v15946_v53 = vld [vmem:[%s17795_s17 + $0x94] ss:$12 sps:$4 sm:$0xff]  }
0x1234   : > { %9317 = vmatmul.mubr.bf16.gmra.mrb[180].mxu0 %v20109_v41  ;;  %9213 = vmatprep.mubr.bf16.mxu1 %v21530_v16  ;;  %v15918_v41 = vld [vmem:[%s17795_s17 + $0x8] ss:$12 sps:$4 sm:$0xff]  }
0x1235   : > { %9194 = vmatpush1.bf16.msra.mxu1 %v15902_v18  ;;  %9359 = vmatprep.mubr.bf16.mxu0 %v21530_v16 }
0x1236   : > { %9340 = vmatpush1.bf16.msra.mxu0 %v15905_v55  ;;  %9195 = vmatprep.subr.bf16.mxu1 %v15910_v10 }
0x1237   : > { %9341 = vmatprep.subr.bf16.mxu0 %v15913_v52 }
0x1239   : > { %9196 = vmatpush1.bf16.msra.mxu1 %v15908_v30  ;;  %v15947_v30 = vld [vmem:[%s17795_s17 + $0x158] ss:$12 sps:$4 sm:$0xff]  }
0x123a   : > { %9342 = vmatpush1.bf16.msra.mxu0 %v15911_v37  ;;  %11096 = vmatprep.subr.bf16.mxu1 %v15916_v11 }
0x123b   : > { %13837 = vmatprep.subr.bf16.mxu0 %v15917_v54 }
0x123c   : > { %9214 = vmatmul.mubr.bf16.vlgmr.msra.gmra.mrb[136].mxu1 %v20002_v49 }
0x123d   : > { %9360 = vmatmul.mubr.bf16.vlgmr.msra.gmra.mrb[168].mxu0 %v20002_v49  ;;  %11097 = vmatpush1.bf16.msra.mxu1 %v15914_v44  ;;  %v15928_v49 = vld [vmem:[%s17795_s17 + $0x38] ss:$12 sps:$4 sm:$0xff]  }
0x123e   : > { %13838 = vmatpush3.bf16.msra.mxu0 %v15918_v41  ;;  %11098 = vmatprep.subr.bf16.mxu1 %v15921_v29 }
0x123f   : > { %13839 = vmatprep.subr.bf16.mxu0 %v15922_v15  ;;  %9223 = vmatprep.mubr.bf16.mxu1 %v21530_v16 }
0x1240   : > { %9369 = vmatprep.mubr.bf16.mxu0 %v21530_v16 }
0x1241   : > { %11099 = vmatpush1.bf16.msra.mxu1 %v15919_v26  ;;  %v15944_v26 = vld [vmem:[%s17795_s17 + $0x90] ss:$12 sps:$4 sm:$0xff]  }
0x1242   : > { %13840 = vmatpush3.bf16.msra.mxu0 %v15923_v32  ;;  %11100 = vmatprep.subr.bf16.mxu1 %v15926_v5 }
0x1243   : > { %13841 = vmatprep.subr.bf16.mxu0 %v15927_v14  ;;  %v15948_v14 = vld [vmem:[%s17795_s17 + $0x98] ss:$12 sps:$4 sm:$0xff]  }
0x1244   : > { %9224 = vmatmul.mubr.bf16.gmra.mrb[140].mxu1 %v20033_v1 }
0x1245   : > { %9370 = vmatmul.mubr.bf16.gmra.mrb[172].mxu0 %v20033_v1  ;;  %11101 = vmatpush1.bf16.msra.mxu1 %v15924_v24  ;;  %v15934_v1 = vld [vmem:[%s17795_s17 + $0x60] ss:$12 sps:$4 sm:$0xff]  }
0x1246   : > { %13842 = vmatpush3.bf16.msra.mxu0 %v15928_v49  ;;  %11102 = vmatprep.subr.bf16.mxu1 %v15931_v21  ;;  %v15951_v24 = vld [vmem:[%s17795_s17 + $0xac] ss:$12 sps:$4 sm:$0xff]  }
0x1247   : > { %13843 = vmatprep.subr.bf16.mxu0 %v15932_v61  ;;  %9233 = vmatprep.mubr.bf16.mxu1 %v21530_v16 }
0x1248   : > { %9379 = vmatprep.mubr.bf16.mxu0 %v21530_v16 }
0x1249   : > { %11103 = vmatpush1.bf16.msra.mxu1 %v15929_v58  ;;  %v15952_v58 = vld [vmem:[%s17795_s17 + $0x170] ss:$12 sps:$4 sm:$0xff]  }
0x124a   : > { %13844 = vmatpush3.bf16.msra.mxu0 %v15933_v27  ;;  %11104 = vmatprep.subr.bf16.mxu1 %v15936_v4 }
0x124b   : > { %13845 = vmatprep.subr.bf16.mxu0 %v15937_v3 }
0x124c   : > { %9234 = vmatmul.mubr.bf16.gmra.mrb[144].mxu1 %v20086_v20 }
0x124d   : > { %9380 = vmatmul.mubr.bf16.gmra.mrb[176].mxu0 %v20086_v20  ;;  %11105 = vmatpush1.bf16.msra.mxu1 %v15934_v1 }
0x124e   : > { %13846 = vmatpush3.bf16.msra.mxu0 %v15938_v48  ;;  %v8631_v60 = vpop.f32.mrb[104].mxu1  ;;  %v8777_v62 = vpop.f32.mrb[136].mxu0  ;;  %11106 = vmatprep.subr.bf16.mxu1 %v15941_v12 }
0x124f   : > { %v14425_v18 = vadd.f32 %v8631_v60, %v20408_v6  ;;  %v14441_v55 = vadd.f32 %v8777_v62, %v20412_v51  ;;  %13847 = vmatprep.subr.bf16.mxu0 %v15942_v42  ;;  %v8633_v10 = vpop.f32.mrb[105].mxu1  ;;  %v8779_v52 = vpop.f32.mrb[137].mxu0  ;;  %9243 = vmatprep.mubr.bf16.mxu1 %v21530_v16  ;;  %v15949_v42 = vld [vmem:[%s17795_s17 + $0xa8] ss:$12 sps:$4 sm:$0xff]  }
0x1250   : > { %v14426_v20 = vadd.f32 %v8633_v10, %v20418_v33  ;;  %v14442_v37 = vadd.f32 %v8779_v52, %v20423_v34  ;;  %v8635_v11 = vpop.f32.mrb[106].mxu1  ;;  %v8781_v54 = vpop.f32.mrb[138].mxu0  ;;  %9389 = vmatprep.mubr.bf16.mxu0 %v21530_v16 }
0x1251   : > { %11107 = vmatpush1.bf16.msra.mxu1 %v15939_v43  ;;  %v14427_v44 = vadd.f32 %v8635_v11, %v20408_v6  ;;  %v14443_v41 = vadd.f32 %v8781_v54, %v20412_v51  ;;  %v8637_v29 = vpop.f32.mrb[107].mxu1  ;;  %v8783_v15 = vpop.f32.mrb[139].mxu0  ;;  %v9400_v49 = vmax.f32 %v14425_v18, 0.0  ;;  %v9402_v16 = vmax.f32 %v14441_v55, 0.0  ;;  %v15956_v18 = vld [vmem:[%s17795_s17 + $0xc4] ss:$12 sps:$4 sm:$0xff]  }
0x1252   : > { %13848 = vmatpush3.bf16.msra.mxu0 %v15943_v56  ;;  %v14428_v32 = vadd.f32 %v8637_v29, %v20418_v33  ;;  %v14444_v5 = vadd.f32 %v8783_v15, %v20423_v34  ;;  %11108 = vmatprep.subr.bf16.mxu1 %v15946_v53  ;;  %v9401_v27 = vmax.f32 %v14426_v20, 0.0  ;;  %v9403_v4 = vmax.f32 %v14442_v37, 0.0  ;;  %v15953_v53 = vld [vmem:[%s17795_s17 + $0xb0] ss:$12 sps:$4 sm:$0xff]  }
0x1253   : > { %v9412_v21 = vmax.f32 %v14427_v44, 0.0  ;;  %v9414_v61 = vmax.f32 %v14443_v41, 0.0  ;;  %13849 = vmatprep.subr.bf16.mxu0 %v15947_v30  ;;  %v15957_v30 = vld [vmem:[%s17795_s17 + $0x248] ss:$12 sps:$4 sm:$0xff]  }
0x1254   : > { %v9413_v3 = vmax.f32 %v14428_v32, 0.0  ;;  %v9415_v1 = vmax.f32 %v14444_v5, 0.0  ;;  %9244 = vmatmul.mubr.bf16.gmra.mrb[148].mxu1 %v20111_v22 }
0x1255   : > { %v20445_v48 = vpack.c.bf16 %v9412_v21, %v9400_v49  ;;  %v20447_v12 = vpack.c.bf16 %v9414_v61, %v9402_v16  ;;  %9390 = vmatmul.mubr.bf16.gmra.mrb[180].mxu0 %v20111_v22  ;;  %11109 = vmatpush1.bf16.msra.mxu1 %v15944_v26  ;;  %v15954_v26 = vld [vmem:[%s17795_s17 + $0xc0] ss:$12 sps:$4 sm:$0xff]  }
0x1256   : > { %v9497_v43 = vpack.c.bf16 %v9413_v3, %v9401_v27  ;;  %v20451_v60 = vpack.c.bf16 %v9415_v1, %v9403_v4  ;;  %13850 = vmatpush3.bf16.msra.mxu0 %v15948_v14  ;;  %v8641_v62 = vpop.f32.mrb[108].mxu1  ;;  %v8787_v56 = vpop.f32.mrb[140].mxu0  ;;  %11110 = vmatprep.subr.bf16.mxu1 %v15951_v24  ;;  %v15958_v14 = vld [vmem:[%s17795_s17 + $0x188] ss:$12 sps:$4 sm:$0xff]  }
0x1257   : > { %v14429_v55 = vadd.f32 %v8641_v62, %v20408_v6  ;;  %v14445_v10 = vadd.f32 %v8787_v56, %v20412_v51  ;;  %13851 = vmatprep.subr.bf16.mxu0 %v15952_v58  ;;  %v8643_v52 = vpop.f32.mrb[109].mxu1  ;;  %v8789_v22 = vpop.f32.mrb[141].mxu0  ;;  %v15961_v24 = vld [vmem:[%s17795_s17 + $0xdc] ss:$12 sps:$4 sm:$0xff]   ;;  %v15962_v58 = vld [vmem:[%s17795_s17 + $0x260] ss:$12 sps:$4 sm:$0xff]  }
0x1258   : > { %v14430_v20 = vadd.f32 %v8643_v52, %v20418_v33  ;;  %v14446_v37 = vadd.f32 %v8789_v22, %v20423_v34  ;;  %v8645_v11 = vpop.f32.mrb[110].mxu1  ;;  %v8791_v54 = vpop.f32.mrb[142].mxu0  ;;  %11128 = vmatprep.mubr.bf16.mxu1 %v9497_v43  ;;  %11566 = vmatprep.mubr.bf16.mxu0 %v9497_v43  ;;  %v15959_v62 = vld [vmem:[%s17795_s17 + $0xd8] ss:$12 sps:$4 sm:$0xff]   ;;  %v15966_v52 = vld [vmem:[%s17795_s17 + $0xf4] ss:$12 sps:$4 sm:$0xff]  }
0x1259   : > { %11111 = vmatpush1.bf16.msra.mxu1 %v15949_v42  ;;  %v14431_v44 = vadd.f32 %v8645_v11, %v20408_v6  ;;  %v14447_v41 = vadd.f32 %v8791_v54, %v20412_v51  ;;  %v8647_v29 = vpop.f32.mrb[111].mxu1  ;;  %v8793_v15 = vpop.f32.mrb[143].mxu0  ;;  %v9424_v49 = vmax.f32 %v14429_v55, 0.0  ;;  %v9426_v16 = vmax.f32 %v14445_v10, 0.0  ;;  %v15963_v10 = vld [vmem:[%s17795_s17 + $0x1a0] ss:$12 sps:$4 sm:$0xff]  }
0x125a   : > { %13852 = vmatpush3.bf16.msra.mxu0 %v15953_v53  ;;  %v14432_v32 = vadd.f32 %v8647_v29, %v20418_v33  ;;  %v14448_v5 = vadd.f32 %v8793_v15, %v20423_v34  ;;  %11112 = vmatprep.subr.bf16.mxu1 %v15956_v18  ;;  %v9425_v27 = vmax.f32 %v14430_v20, 0.0  ;;  %v9427_v4 = vmax.f32 %v14446_v37, 0.0  ;;  %v15967_v11 = vld [vmem:[%s17795_s17 + $0x278] ss:$12 sps:$4 sm:$0xff]  }
0x125b   : > { %v9436_v21 = vmax.f32 %v14431_v44, 0.0  ;;  %v9438_v61 = vmax.f32 %v14447_v41, 0.0  ;;  %13877 = vmatprep.subr.bf16.mxu0 %v15957_v30 }
0x125c   : > { %v9437_v3 = vmax.f32 %v14432_v32, 0.0  ;;  %v9439_v1 = vmax.f32 %v14448_v5, 0.0 }
0x125d   : > { %v20468_v42 = vpack.c.bf16 %v9436_v21, %v9424_v49  ;;  %v20470_v43 = vpack.c.bf16 %v9438_v61, %v9426_v16  ;;  %11567 = vmatmul.mubr.bf16.vlgmr.msra.gmra.mrb[184].mxu0 %v20445_v48  ;;  %11113 = vmatpush1.bf16.msra.mxu1 %v15954_v26  ;;  %v15968_v16 = vld [vmem:[%s17795_s17 + $0x1b8] ss:$12 sps:$4 sm:$0xff]  }
0x125e   : > { %v20474_v56 = vpack.c.bf16 %v9437_v3, %v9425_v27  ;;  %v20476_v53 = vpack.c.bf16 %v9439_v1, %v9427_v4  ;;  %13878 = vmatpush3.bf16.msra.mxu0 %v15958_v14  ;;  %v8651_v18 = vpop.f32.mrb[112].mxu1  ;;  %v8797_v55 = vpop.f32.mrb[144].mxu0  ;;  %11114 = vmatprep.subr.bf16.mxu1 %v15961_v24  ;;  %v15964_v14 = vld [vmem:[%s17795_s17 + $0xf0] ss:$12 sps:$4 sm:$0xff]   ;;  %v15971_v21 = vld [vmem:[%s17795_s17 + $0x10c] ss:$12 sps:$4 sm:$0xff]  }
0x125f   : > { %v14433_v22 = vadd.f32 %v8651_v18, %v20408_v6  ;;  %v14449_v30 = vadd.f32 %v8797_v55, %v20412_v51  ;;  %13879 = vmatprep.subr.bf16.mxu0 %v15962_v58  ;;  %v8653_v20 = vpop.f32.mrb[113].mxu1  ;;  %v8799_v37 = vpop.f32.mrb[145].mxu0  ;;  %v15972_v3 = vld [vmem:[%s17795_s17 + $0x290] ss:$12 sps:$4 sm:$0xff]  }
0x1260   : > { %v14434_v54 = vadd.f32 %v8653_v20, %v20418_v33  ;;  %v14450_v44 = vadd.f32 %v8799_v37, %v20423_v34  ;;  %v8655_v41 = vpop.f32.mrb[114].mxu1  ;;  %v8801_v29 = vpop.f32.mrb[146].mxu0  ;;  %11574 = vmatprep.mubr.bf16.mxu0 %v20474_v56 }
0x1261   : > { %11115 = vmatpush1.bf16.msra.mxu1 %v15959_v62  ;;  %v14435_v15 = vadd.f32 %v8655_v41, %v20408_v6  ;;  %v14451_v26 = vadd.f32 %v8801_v29, %v20412_v51  ;;  %v8657_v32 = vpop.f32.mrb[115].mxu1  ;;  %v8803_v5 = vpop.f32.mrb[147].mxu0  ;;  %v9448_v61 = vmax.f32 %v14433_v22, 0.0  ;;  %v9450_v58 = vmax.f32 %v14449_v30, 0.0 }
0x1262   : > { %13880 = vmatpush3.bf16.msra.mxu0 %v15963_v10  ;;  %v14436_v24 = vadd.f32 %v8657_v32, %v20418_v33  ;;  %v14452_v49 = vadd.f32 %v8803_v5, %v20423_v34  ;;  %11116 = vmatprep.subr.bf16.mxu1 %v15966_v52  ;;  %v9449_v1 = vmax.f32 %v14434_v54, 0.0  ;;  %v9451_v62 = vmax.f32 %v14450_v44, 0.0  ;;  %v15969_v52 = vld [vmem:[%s17795_s17 + $0x108] ss:$12 sps:$4 sm:$0xff]   ;;  %v15973_v54 = vld [vmem:[%s17795_s17 + $0x1d0] ss:$12 sps:$4 sm:$0xff]  }
0x1263   : > { %v9460_v27 = vmax.f32 %v14435_v15, 0.0  ;;  %v9462_v4 = vmax.f32 %v14451_v26, 0.0  ;;  %13881 = vmatprep.subr.bf16.mxu0 %v15967_v11  ;;  %v15976_v44 = vld [vmem:[%s17795_s17 + $0x124] ss:$12 sps:$4 sm:$0xff]   ;;  %v15977_v32 = vld [vmem:[%s17795_s17 + $0x2a8] ss:$12 sps:$4 sm:$0xff]  }
0x1264   : > { %v9461_v18 = vmax.f32 %v14436_v24, 0.0  ;;  %v9463_v55 = vmax.f32 %v14452_v49, 0.0 }
0x1265   : > { %v20494_v10 = vpack.c.bf16 %v9460_v27, %v9448_v61  ;;  %v20496_v20 = vpack.c.bf16 %v9462_v4, %v9450_v58  ;;  %11575 = vmatmul.mubr.bf16.gmra.mrb[188].mxu0 %v20468_v42  ;;  %11117 = vmatpush1.bf16.msra.mxu1 %v15964_v14  ;;  %v15974_v27 = vld [vmem:[%s17795_s17 + $0x120] ss:$12 sps:$4 sm:$0xff]  }
0x1266   : > { %v20500_v22 = vpack.c.bf16 %v9461_v18, %v9449_v1  ;;  %v20502_v30 = vpack.c.bf16 %v9463_v55, %v9451_v62  ;;  %13882 = vmatpush3.bf16.msra.mxu0 %v15968_v16  ;;  %v8661_v37 = vpop.f32.mrb[116].mxu1  ;;  %v8807_v11 = vpop.f32.mrb[148].mxu0  ;;  %11118 = vmatprep.subr.bf16.mxu1 %v15971_v21  ;;  %v15978_v1 = vld [vmem:[%s17795_s17 + $0x1e8] ss:$12 sps:$4 sm:$0xff]  }
0x1267   : > { %v14437_v41 = vadd.f32 %v8661_v37, %v20408_v6  ;;  %v14453_v29 = vadd.f32 %v8807_v11, %v20412_v51  ;;  %13883 = vmatprep.subr.bf16.mxu0 %v15972_v3  ;;  %v8663_v15 = vpop.f32.mrb[117].mxu1  ;;  %v8809_v26 = vpop.f32.mrb[149].mxu0  ;;  %v15981_v62 = vld [vmem:[%s17795_s17 + $0x13c] ss:$12 sps:$4 sm:$0xff]  }
0x1268   : > { %v14438_v5 = vadd.f32 %v8663_v15, %v20418_v33  ;;  %v14454_v14 = vadd.f32 %v8809_v26, %v20423_v34  ;;  %v8665_v24 = vpop.f32.mrb[118].mxu1  ;;  %v8811_v49 = vpop.f32.mrb[150].mxu0  ;;  %11582 = vmatprep.mubr.bf16.mxu0 %v20500_v22  ;;  %v15983_v26 = vld [vmem:[%s17795_s17 + $0x200] ss:$12 sps:$4 sm:$0xff]  }
0x1269   : > { %11119 = vmatpush1.bf16.msra.mxu1 %v15969_v52  ;;  %v14439_v16 = vadd.f32 %v8665_v24, %v20408_v6  ;;  %v14455_v21 = vadd.f32 %v8811_v49, %v20412_v51  ;;  %v8667_v61 = vpop.f32.mrb[119].mxu1  ;;  %v8813_v58 = vpop.f32.mrb[151].mxu0  ;;  %v9472_v18 = vmax.f32 %v14437_v41, 0.0  ;;  %v9474_v55 = vmax.f32 %v14453_v29, 0.0  ;;  %v15982_v6 = vld [vmem:[%s17795_s17 + $0x2c0] ss:$12 sps:$4 sm:$0xff]  }
0x126a   : > { %13884 = vmatpush3.bf16.msra.mxu0 %v15973_v54  ;;  %v14440_v4 = vadd.f32 %v8667_v61, %v20418_v33  ;;  %v14456_v3 = vadd.f32 %v8813_v58, %v20423_v34  ;;  %11120 = vmatprep.subr.bf16.mxu1 %v15976_v44  ;;  %v9473_v51 = vmax.f32 %v14438_v5, 0.0  ;;  %v9475_v11 = vmax.f32 %v14454_v14, 0.0  ;;  %v15979_v44 = vld [vmem:[%s17795_s17 + $0x138] ss:$12 sps:$4 sm:$0xff]   ;;  %v15984_v14 = vld [vmem:[%s17795_s17 + $0x150] ss:$12 sps:$4 sm:$0xff]  }
0x126b   : > { %v9484_v52 = vmax.f32 %v14439_v16, 0.0  ;;  %v9486_v37 = vmax.f32 %v14455_v21, 0.0  ;;  %13885 = vmatprep.subr.bf16.mxu0 %v15977_v32  ;;  %v15986_v32 = vld [vmem:[%s17795_s17 + $0x154] ss:$12 sps:$4 sm:$0xff]   ;;  %v15987_v5 = vld [vmem:[%s17795_s17 + $0x2d8] ss:$12 sps:$4 sm:$0xff]  }
0x126c   : > { %v9485_v54 = vmax.f32 %v14440_v4, 0.0  ;;  %v9487_v15 = vmax.f32 %v14456_v3, 0.0  ;;  %v15988_v24 = vld [vmem:[%s17795_s17 + $0x218] ss:$12 sps:$4 sm:$0xff]   ;;  %v15992_v16 = vld [vmem:[%s17795_s17 + $0x2f0] ss:$12 sps:$4 sm:$0xff]  }
0x126d   : > { %v20520_v33 = vpack.c.bf16 %v9484_v52, %v9472_v18  ;;  %v20522_v34 = vpack.c.bf16 %v9486_v37, %v9474_v55  ;;  %11583 = vmatmul.mubr.bf16.gmra.mrb[192].mxu0 %v20494_v10  ;;  %11121 = vmatpush1.bf16.msra.mxu1 %v15974_v27  ;;  %v15991_v49 = vld [vmem:[%s17795_s17 + $0x16c] ss:$12 sps:$4 sm:$0xff]   ;;  %v15989_v21 = vld [vmem:[%s17795_s17 + $0x168] ss:$12 sps:$4 sm:$0xff]   ;;  %v15993_v61 = vld [vmem:[%s17795_s17 + $0x230] ss:$12 sps:$4 sm:$0xff]  }
0x126e   : > { %v20526_v41 = vpack.c.bf16 %v9485_v54, %v9473_v51  ;;  %v20528_v29 = vpack.c.bf16 %v9487_v15, %v9475_v11  ;;  %13886 = vmatpush3.bf16.msra.mxu0 %v15978_v1  ;;  %11122 = vmatprep.subr.bf16.mxu1 %v15981_v62  ;;  %v15996_v58 = vld [vmem:[%s17795_s17 + $0x184] ss:$12 sps:$4 sm:$0xff]   ;;  %v16018_v27 = vld [vmem:[%s17795_s17 + $0x3c8] ss:$12 sps:$4 sm:$0xff]   ;;  %v15994_v4 = vld [vmem:[%s17795_s17 + $0x180] ss:$12 sps:$4 sm:$0xff]  }
0x126f   : > { %13887 = vmatprep.subr.bf16.mxu0 %v15982_v6  ;;  %v15999_v3 = vld [vmem:[%s17795_s17 + $0x19c] ss:$12 sps:$4 sm:$0xff]   ;;  %v16023_v62 = vld [vmem:[%s17795_s17 + $0x3e0] ss:$12 sps:$4 sm:$0xff]   ;;  %v15997_v18 = vld [vmem:[%s17795_s17 + $0x198] ss:$12 sps:$4 sm:$0xff]  }
0x1270   : > { %11590 = vmatprep.mubr.bf16.mxu0 %v20526_v41  ;;  %v16019_v1 = vld [vmem:[%s17795_s17 + $0x308] ss:$12 sps:$4 sm:$0xff]   ;;  %v16024_v52 = vld [vmem:[%s17795_s17 + $0x320] ss:$12 sps:$4 sm:$0xff]   ;;  %v16028_v37 = vld [vmem:[%s17795_s17 + $0x3f8] ss:$12 sps:$4 sm:$0xff]  }
0x1271   : > { %11123 = vmatpush1.bf16.msra.mxu1 %v15979_v44  ;;  %v16002_v55 = vld [vmem:[%s17795_s17 + $0x1b4] ss:$12 sps:$4 sm:$0xff]   ;;  %v16005_v6 = vld [vmem:[%s17795_s17 + $0x1cc] ss:$12 sps:$4 sm:$0xff]   ;;  %v16033_v51 = vld [vmem:[%s17795_s17 + $0x410] ss:$12 sps:$4 sm:$0xff]  }
0x1272   : > { %13888 = vmatpush3.bf16.msra.mxu0 %v15983_v26  ;;  %11124 = vmatprep.subr.bf16.mxu1 %v15986_v32  ;;  %v16003_v11 = vld [vmem:[%s17795_s17 + $0x1c8] ss:$12 sps:$4 sm:$0xff]   ;;  %v16008_v54 = vld [vmem:[%s17795_s17 + $0x1e4] ss:$12 sps:$4 sm:$0xff]   ;;  %v16006_v44 = vld [vmem:[%s17795_s17 + $0x1e0] ss:$12 sps:$4 sm:$0xff]  }
0x1273   : > { %13889 = vmatprep.subr.bf16.mxu0 %v15987_v5  ;;  %v16034_v15 = vld [vmem:[%s17795_s17 + $0x350] ss:$12 sps:$4 sm:$0xff]   ;;  %v16043_v32 = vld [vmem:[%s17795_s17 + $0x440] ss:$12 sps:$4 sm:$0xff]   ;;  %v16009_v5 = vld [vmem:[%s17795_s17 + $0x1f8] ss:$12 sps:$4 sm:$0xff]  }
0x1274   : > { %v16011_v26 = vld [vmem:[%s17795_s17 + $0x1fc] ss:$12 sps:$4 sm:$0xff]  }
0x1275   : > { %11591 = vmatmul.mubr.bf16.gmra.mrb[196].mxu0 %v20520_v33  ;;  %11125 = vmatpush1.bf16.msra.mxu1 %v15984_v14  ;;  %v16014_v14 = vld [vmem:[%s17795_s17 + $0x214] ss:$12 sps:$4 sm:$0xff]  }
0x1276   : > { %13890 = vmatpush3.bf16.msra.mxu0 %v15988_v24  ;;  %11631 = vmatprep.mubr.bf16.mxu0 %v20451_v60  ;;  %v16044_v24 = vld [vmem:[%s17795_s17 + $0x380] ss:$12 sps:$4 sm:$0xff]  }
0x1277   : > { %11126 = vmatprep.subr.bf16.mxu1 %v15991_v49  ;;  %13891 = vmatprep.subr.bf16.mxu0 %v15992_v16  ;;  %v16012_v49 = vld [vmem:[%s17795_s17 + $0x210] ss:$12 sps:$4 sm:$0xff]   ;;  %v16017_v16 = vld [vmem:[%s17795_s17 + $0x22c] ss:$12 sps:$4 sm:$0xff]  }
0x1279   : > { %11127 = vmatpush1.bf16.msra.mxu1 %v15989_v21  ;;  %v16053_v21 = vld [vmem:[%s17795_s17 + $0x470] ss:$12 sps:$4 sm:$0xff]  }
0x127a   : > { %13892 = vmatpush3.bf16.msra.mxu0 %v15993_v61  ;;  %11169 = vmatprep.subr.bf16.mxu1 %v15996_v58  ;;  %v16015_v61 = vld [vmem:[%s17795_s17 + $0x228] ss:$12 sps:$4 sm:$0xff]   ;;  %v16022_v58 = vld [vmem:[%s17795_s17 + $0x244] ss:$12 sps:$4 sm:$0xff]  }
0x127b   : > { %13917 = vmatprep.subr.bf16.mxu0 %v16018_v27  ;;  %v16054_v27 = vld [vmem:[%s17795_s17 + $0x3b0] ss:$12 sps:$4 sm:$0xff]  }
0x127c   : > { %11129 = vmatmul.mubr.bf16.vlgmr.msra.gmra.mrb[152].mxu1 %v20445_v48  ;;  %v16000_v48 = vld [vmem:[%s17795_s17 + $0x1b0] ss:$12 sps:$4 sm:$0xff]  }
0x127d   : > { %11632 = vmatmul.mubr.bf16.vlgmr.msra.gmra.mrb[200].mxu0 %v20447_v12  ;;  %11138 = vmatprep.mubr.bf16.mxu1 %v20474_v56  ;;  %v16029_v56 = vld [vmem:[%s17795_s17 + $0x338] ss:$12 sps:$4 sm:$0xff]  }
0x127e   : > { %11170 = vmatpush1.bf16.msra.mxu1 %v15994_v4  ;;  %11639 = vmatprep.mubr.bf16.mxu0 %v20476_v53  ;;  %v16058_v4 = vld [vmem:[%s17795_s17 + $0x548] ss:$12 sps:$4 sm:$0xff]  }
0x127f   : > { %11171 = vmatprep.subr.bf16.mxu1 %v15999_v3  ;;  %13918 = vmatpush3.bf16.msra.mxu0 %v16019_v1  ;;  %v16027_v3 = vld [vmem:[%s17795_s17 + $0x25c] ss:$12 sps:$4 sm:$0xff]   ;;  %v16032_v1 = vld [vmem:[%s17795_s17 + $0x274] ss:$12 sps:$4 sm:$0xff]  }
0x1280   : > { %13919 = vmatprep.subr.bf16.mxu0 %v16023_v62  ;;  %v16030_v62 = vld [vmem:[%s17795_s17 + $0x270] ss:$12 sps:$4 sm:$0xff]  }
0x1282   : > { %11172 = vmatpush1.bf16.msra.mxu1 %v15997_v18  ;;  %v16037_v18 = vld [vmem:[%s17795_s17 + $0x28c] ss:$12 sps:$4 sm:$0xff]  }
0x1283   : > { %11173 = vmatprep.subr.bf16.mxu1 %v16002_v55  ;;  %13920 = vmatpush3.bf16.msra.mxu0 %v16024_v52  ;;  %v16035_v55 = vld [vmem:[%s17795_s17 + $0x288] ss:$12 sps:$4 sm:$0xff]   ;;  %v16042_v52 = vld [vmem:[%s17795_s17 + $0x2a4] ss:$12 sps:$4 sm:$0xff]  }
0x1284   : > { %11139 = vmatmul.mubr.bf16.gmra.mrb[156].mxu1 %v20468_v42  ;;  %13921 = vmatprep.subr.bf16.mxu0 %v16028_v37  ;;  %v16038_v42 = vld [vmem:[%s17795_s17 + $0x428] ss:$12 sps:$4 sm:$0xff]   ;;  %v7042_v37 = vsub.s32 4, %v21546_v57 }
0x1285   : > { %11640 = vmatmul.mubr.bf16.gmra.mrb[204].mxu0 %v20470_v43  ;;  %11148 = vmatprep.mubr.bf16.mxu1 %v20500_v22  ;;  %v16039_v22 = vld [vmem:[%s17795_s17 + $0x368] ss:$12 sps:$4 sm:$0xff]  }
0x1286   : > { %11174 = vmatpush1.bf16.msra.mxu1 %v16000_v48  ;;  %11647 = vmatprep.mubr.bf16.mxu0 %v20502_v30  ;;  %v7050_v48 = vsub.s32 6, %v21546_v57 }
0x1287   : > { %11175 = vmatprep.subr.bf16.mxu1 %v16005_v6  ;;  %13922 = vmatpush3.bf16.msra.mxu0 %v16029_v56  ;;  %v7046_v6 = vsub.s32 5, %v21546_v57  ;;  %v7054_v56 = vsub.s32 7, %v21546_v57 }
0x1288   : > { %13923 = vmatprep.subr.bf16.mxu0 %v16033_v51  ;;  %v16040_v51 = vld [vmem:[%s17795_s17 + $0x2a0] ss:$12 sps:$4 sm:$0xff]  }
0x128a   : > { %11176 = vmatpush1.bf16.msra.mxu1 %v16003_v11  ;;  %v20605_v11 = vrot.slane %v20400_v2, %v7042_v37 }
0x128b   : > { %11177 = vmatprep.subr.bf16.mxu1 %v16008_v54  ;;  %13924 = vmatpush3.bf16.msra.mxu0 %v16034_v15  ;;  %v16047_v54 = vld [vmem:[%s17795_s17 + $0x2bc] ss:$12 sps:$4 sm:$0xff]   ;;  %v20609_v15 = vrot.slane %v20400_v2, %v7050_v48 }
0x128c   : > { %11149 = vmatmul.mubr.bf16.gmra.mrb[160].mxu1 %v20494_v10  ;;  %13925 = vmatprep.subr.bf16.mxu0 %v16038_v42  ;;  %v16048_v10 = vld [vmem:[%s17795_s17 + $0x458] ss:$12 sps:$4 sm:$0xff]   ;;  %v20612_v42 = vrot.slane %v20400_v2, %v7046_v6 }
0x128d   : > { %11648 = vmatmul.mubr.bf16.gmra.mrb[208].mxu0 %v20496_v20  ;;  %11158 = vmatprep.mubr.bf16.mxu1 %v20526_v41  ;;  %v16049_v41 = vld [vmem:[%s17795_s17 + $0x398] ss:$12 sps:$4 sm:$0xff]  }
0x128e   : > { %11178 = vmatpush1.bf16.msra.mxu1 %v16006_v44  ;;  %11655 = vmatprep.mubr.bf16.mxu0 %v20528_v29  ;;  %v20615_v44 = vrot.slane %v20400_v2, %v7054_v56 }
0x128f   : > { %11179 = vmatprep.subr.bf16.mxu1 %v16011_v26  ;;  %13926 = vmatpush3.bf16.msra.mxu0 %v16039_v22  ;;  %v16045_v22 = vld [vmem:[%s17795_s17 + $0x2b8] ss:$12 sps:$4 sm:$0xff]  }
0x1290   : > { %13927 = vmatprep.subr.bf16.mxu0 %v16043_v32 }
0x1292   : > { %11180 = vmatpush1.bf16.msra.mxu1 %v16009_v5 }
0x1293   : > { %11181 = vmatprep.subr.bf16.mxu1 %v16014_v14  ;;  %13928 = vmatpush3.bf16.msra.mxu0 %v16044_v24  ;;  %v16052_v24 = vld [vmem:[%s17795_s17 + $0x2d4] ss:$12 sps:$4 sm:$0xff]  }
0x1294   : > { %11159 = vmatmul.mubr.bf16.gmra.mrb[164].mxu1 %v20520_v33  ;;  %13929 = vmatprep.subr.bf16.mxu0 %v16048_v10  ;;  %v16020_v33 = vld [vmem:[%s17795_s17 + $0x240] ss:$12 sps:$4 sm:$0xff]  }
0x1295   : > { %11656 = vmatmul.mubr.bf16.gmra.mrb[212].mxu0 %v20522_v34  ;;  %11201 = vmatprep.mubr.bf16.mxu1 %v20451_v60  ;;  %v16025_v60 = vld [vmem:[%s17795_s17 + $0x258] ss:$12 sps:$4 sm:$0xff]  }
0x1296   : > { %11182 = vmatpush1.bf16.msra.mxu1 %v16012_v49 }
0x1297   : > { %11183 = vmatprep.subr.bf16.mxu1 %v16017_v16  ;;  %13930 = vmatpush3.bf16.msra.mxu0 %v16049_v41 }
0x1298   : > { %13931 = vmatprep.subr.bf16.mxu0 %v16053_v21 }
0x129a   : > { %11184 = vmatpush1.bf16.msra.mxu1 %v16015_v61 }
0x129b   : > { %11185 = vmatprep.subr.bf16.mxu1 %v16022_v58  ;;  %13932 = vmatpush3.bf16.msra.mxu0 %v16054_v27 }
0x129c   : > { %13957 = vmatprep.subr.bf16.mxu0 %v16058_v4 }
0x129e   : > { %11186 = vmatpush1.bf16.msra.mxu1 %v16020_v33 }
0x129f   : > { %11187 = vmatprep.subr.bf16.mxu1 %v16027_v3  ;;  %v16050_v3 = vld [vmem:[%s17795_s17 + $0x2d0] ss:$12 sps:$4 sm:$0xff]  }
0x12a2   : > { %11188 = vmatpush1.bf16.msra.mxu1 %v16025_v60 }
0x12a3   : > { %11189 = vmatprep.subr.bf16.mxu1 %v16032_v1 }
0x12a6   : > { %11190 = vmatpush1.bf16.msra.mxu1 %v16030_v62 }
0x12a7   : > { %11191 = vmatprep.subr.bf16.mxu1 %v16037_v18  ;;  %v16057_v18 = vld [vmem:[%s17795_s17 + $0x2ec] ss:$12 sps:$4 sm:$0xff]  }
0x12aa   : > { %11192 = vmatpush1.bf16.msra.mxu1 %v16035_v55 }
0x12ab   : > { %11193 = vmatprep.subr.bf16.mxu1 %v16042_v52 }
0x12ae   : > { %11194 = vmatpush1.bf16.msra.mxu1 %v16040_v51  ;;  %v8923_v26 = vpop.f32.mrb[120].mxu1 }
0x12af   : > { %v14457_v32 = vadd.f32 %v8923_v26, %v20605_v11  ;;  %v9069_v5 = vpop.f32.mrb[152].mxu0  ;;  %v8925_v14 = vpop.f32.mrb[121].mxu1  ;;  %11195 = vmatprep.subr.bf16.mxu1 %v16047_v54 }
0x12b0   : > { %v14473_v10 = vadd.f32 %v9069_v5, %v20609_v15  ;;  %v14458_v49 = vadd.f32 %v8925_v14, %v20612_v42  ;;  %v9071_v16 = vpop.f32.mrb[153].mxu0  ;;  %v8927_v41 = vpop.f32.mrb[122].mxu1  ;;  %v16059_v5 = vld [vmem:[%s17795_s17 + $0x488] ss:$12 sps:$4 sm:$0xff]  }
0x12b1   : > { %v14474_v2 = vadd.f32 %v9071_v16, %v20615_v44  ;;  %v14459_v21 = vadd.f32 %v8927_v41, %v20605_v11  ;;  %v9073_v61 = vpop.f32.mrb[154].mxu0  ;;  %v8929_v58 = vpop.f32.mrb[123].mxu1  ;;  %v9404_v60 = vmax.f32 %v14457_v32, 0.0  ;;  %v16055_v32 = vld [vmem:[%s17795_s17 + $0x2e8] ss:$12 sps:$4 sm:$0xff]  }
0x12b2   : > { %v14475_v27 = vadd.f32 %v9073_v61, %v20609_v15  ;;  %11196 = vmatpush1.bf16.msra.mxu1 %v16045_v22  ;;  %v14460_v4 = vadd.f32 %v8929_v58, %v20612_v42  ;;  %v9075_v33 = vpop.f32.mrb[155].mxu0  ;;  %v9406_v55 = vmax.f32 %v14473_v10, 0.0  ;;  %v9405_v52 = vmax.f32 %v14458_v49, 0.0  ;;  %v16062_v16 = vld [vmem:[%s17795_s17 + $0x304] ss:$12 sps:$4 sm:$0xff]  }
0x12b3   : > { %v9416_v1 = vmax.f32 %v14459_v21, 0.0  ;;  %v14476_v62 = vadd.f32 %v9075_v33, %v20615_v44  ;;  %11197 = vmatprep.subr.bf16.mxu1 %v16052_v24  ;;  %v9407_v6 = vmax.f32 %v14474_v2, 0.0  ;;  %v16063_v41 = vld [vmem:[%s17795_s17 + $0x560] ss:$12 sps:$4 sm:$0xff]  }
0x12b4   : > { %v9418_v37 = vmax.f32 %v14475_v27, 0.0  ;;  %v9417_v48 = vmax.f32 %v14460_v4, 0.0 }
0x12b5   : > { %v20629_v56 = vpack.c.bf16 %v9416_v1, %v9404_v60  ;;  %v9419_v51 = vmax.f32 %v14476_v62, 0.0 }
0x12b6   : > { %v20631_v54 = vpack.c.bf16 %v9418_v37, %v9406_v55  ;;  %v20633_v26 = vpack.c.bf16 %v9417_v48, %v9405_v52  ;;  %11198 = vmatpush1.bf16.msra.mxu1 %v16050_v3  ;;  %v8933_v22 = vpop.f32.mrb[124].mxu1  ;;  %v16064_v48 = vld [vmem:[%s17795_s17 + $0x4a0] ss:$12 sps:$4 sm:$0xff]  }
0x12b7   : > { %v20637_v14 = vpack.c.bf16 %v9419_v51, %v9407_v6  ;;  %v14461_v24 = vadd.f32 %v8933_v22, %v20605_v11  ;;  %v9079_v10 = vpop.f32.mrb[156].mxu0  ;;  %v8935_v49 = vpop.f32.mrb[125].mxu1  ;;  %11199 = vmatprep.subr.bf16.mxu1 %v16057_v18  ;;  %v16060_v18 = vld [vmem:[%s17795_s17 + $0x300] ss:$12 sps:$4 sm:$0xff]   ;;  %v16067_v6 = vld [vmem:[%s17795_s17 + $0x31c] ss:$12 sps:$4 sm:$0xff]  }
0x12b8   : > { %v14477_v2 = vadd.f32 %v9079_v10, %v20609_v15  ;;  %v14462_v21 = vadd.f32 %v8935_v49, %v20612_v42  ;;  %v9081_v61 = vpop.f32.mrb[157].mxu0  ;;  %v8937_v58 = vpop.f32.mrb[126].mxu1  ;;  %11696 = vmatprep.mubr.bf16.mxu0 %v20633_v26 }
0x12b9   : > { %v14478_v27 = vadd.f32 %v9081_v61, %v20615_v44  ;;  %v14463_v4 = vadd.f32 %v8937_v58, %v20605_v11  ;;  %v9083_v33 = vpop.f32.mrb[158].mxu0  ;;  %v8939_v3 = vpop.f32.mrb[127].mxu1  ;;  %11697 = vmatmul.mubr.bf16.vlgmr.msra.gmra.mrb[216].mxu0 %v20629_v56  ;;  %v9428_v55 = vmax.f32 %v14461_v24, 0.0 }
0x12ba   : > { %v14479_v60 = vadd.f32 %v9083_v33, %v20609_v15  ;;  %11200 = vmatpush1.bf16.msra.mxu1 %v16055_v32  ;;  %v14464_v1 = vadd.f32 %v8939_v3, %v20612_v42  ;;  %v9085_v62 = vpop.f32.mrb[159].mxu0  ;;  %13958 = vmatpush3.bf16.msra.mxu0 %v16059_v5  ;;  %v9430_v51 = vmax.f32 %v14477_v2, 0.0  ;;  %v9429_v22 = vmax.f32 %v14462_v21, 0.0  ;;  %v16068_v32 = vld [vmem:[%s17795_s17 + $0x578] ss:$12 sps:$4 sm:$0xff]  }
0x12bb   : > { %v9440_v52 = vmax.f32 %v14463_v4, 0.0  ;;  %v14480_v37 = vadd.f32 %v9085_v62, %v20615_v44  ;;  %11242 = vmatprep.subr.bf16.mxu1 %v16062_v16  ;;  %13959 = vmatprep.subr.bf16.mxu0 %v16063_v41  ;;  %v9431_v61 = vmax.f32 %v14478_v27, 0.0  ;;  %v16065_v2 = vld [vmem:[%s17795_s17 + $0x318] ss:$12 sps:$4 sm:$0xff]  }
0x12bc   : > { %v9442_v10 = vmax.f32 %v14479_v60, 0.0  ;;  %v9441_v49 = vmax.f32 %v14464_v1, 0.0  ;;  %v16069_v3 = vld [vmem:[%s17795_s17 + $0x4b8] ss:$12 sps:$4 sm:$0xff]  }
0x12bd   : > { %v20655_v58 = vpack.c.bf16 %v9440_v52, %v9428_v55  ;;  %v9443_v5 = vmax.f32 %v14480_v37, 0.0  ;;  %11202 = vmatmul.mubr.bf16.vlgmr.msra.gmra.mrb[152].mxu1 %v20447_v12  ;;  %v16072_v12 = vld [vmem:[%s17795_s17 + $0x334] ss:$12 sps:$4 sm:$0xff]  }
0x12be   : > { %v20658_v24 = vpack.c.bf16 %v9442_v10, %v9430_v51  ;;  %v20660_v16 = vpack.c.bf16 %v9441_v49, %v9429_v22  ;;  %11211 = vmatprep.mubr.bf16.mxu1 %v20476_v53  ;;  %11243 = vmatpush1.bf16.msra.mxu1 %v16060_v18  ;;  %v8943_v41 = vpop.f32.mrb[128].mxu1  ;;  %v16073_v18 = vld [vmem:[%s17795_s17 + $0x590] ss:$12 sps:$4 sm:$0xff]  }
0x12bf   : > { %v20664_v21 = vpack.c.bf16 %v9443_v5, %v9431_v61  ;;  %v14465_v27 = vadd.f32 %v8943_v41, %v20605_v11  ;;  %v9089_v4 = vpop.f32.mrb[160].mxu0  ;;  %13960 = vmatpush3.bf16.msra.mxu0 %v16064_v48  ;;  %v8945_v33 = vpop.f32.mrb[129].mxu1  ;;  %11244 = vmatprep.subr.bf16.mxu1 %v16067_v6  ;;  %v16070_v10 = vld [vmem:[%s17795_s17 + $0x330] ss:$12 sps:$4 sm:$0xff]   ;;  %v16077_v41 = vld [vmem:[%s17795_s17 + $0x34c] ss:$12 sps:$4 sm:$0xff]  }
0x12c0   : > { %v14481_v60 = vadd.f32 %v9089_v4, %v20609_v15  ;;  %v14466_v1 = vadd.f32 %v8945_v33, %v20612_v42  ;;  %v9091_v53 = vpop.f32.mrb[161].mxu0  ;;  %v8947_v62 = vpop.f32.mrb[130].mxu1  ;;  %11704 = vmatprep.mubr.bf16.mxu0 %v20660_v16  ;;  %13961 = vmatprep.subr.bf16.mxu0 %v16068_v32  ;;  %v16074_v5 = vld [vmem:[%s17795_s17 + $0x4d0] ss:$12 sps:$4 sm:$0xff]  }
0x12c1   : > { %v14482_v55 = vadd.f32 %v9091_v53, %v20615_v44  ;;  %v14467_v52 = vadd.f32 %v8947_v62, %v20605_v11  ;;  %v9093_v37 = vpop.f32.mrb[162].mxu0  ;;  %v8949_v48 = vpop.f32.mrb[131].mxu1  ;;  %11705 = vmatmul.mubr.bf16.gmra.mrb[220].mxu0 %v20655_v58  ;;  %v9452_v49 = vmax.f32 %v14465_v27, 0.0 }
0x12c2   : > { %v14483_v6 = vadd.f32 %v9093_v37, %v20609_v15  ;;  %11245 = vmatpush1.bf16.msra.mxu1 %v16065_v2  ;;  %v14468_v51 = vadd.f32 %v8949_v48, %v20612_v42  ;;  %v9095_v22 = vpop.f32.mrb[163].mxu0  ;;  %v9454_v4 = vmax.f32 %v14481_v60, 0.0  ;;  %v9453_v33 = vmax.f32 %v14466_v1, 0.0  ;;  %v16078_v2 = vld [vmem:[%s17795_s17 + $0x5a8] ss:$12 sps:$4 sm:$0xff]  }
0x12c3   : > { %v9464_v32 = vmax.f32 %v14467_v52, 0.0  ;;  %v14484_v61 = vadd.f32 %v9095_v22, %v20615_v44  ;;  %13962 = vmatpush3.bf16.msra.mxu0 %v16069_v3  ;;  %11246 = vmatprep.subr.bf16.mxu1 %v16072_v12  ;;  %v9455_v37 = vmax.f32 %v14482_v55, 0.0  ;;  %v16075_v60 = vld [vmem:[%s17795_s17 + $0x348] ss:$12 sps:$4 sm:$0xff]  }
0x12c4   : > { %v9466_v53 = vmax.f32 %v14483_v6, 0.0  ;;  %v9465_v62 = vmax.f32 %v14468_v51, 0.0  ;;  %13963 = vmatprep.subr.bf16.mxu0 %v16073_v18  ;;  %v16079_v51 = vld [vmem:[%s17795_s17 + $0x4e8] ss:$12 sps:$4 sm:$0xff]  }
0x12c5   : > { %v20683_v48 = vpack.c.bf16 %v9464_v32, %v9452_v49  ;;  %v9467_v27 = vmax.f32 %v14484_v61, 0.0  ;;  %11212 = vmatmul.mubr.bf16.gmra.mrb[156].mxu1 %v20470_v43  ;;  %v16082_v43 = vld [vmem:[%s17795_s17 + $0x364] ss:$12 sps:$4 sm:$0xff]   ;;  %v16083_v32 = vld [vmem:[%s17795_s17 + $0x5c0] ss:$12 sps:$4 sm:$0xff]  }
0x12c6   : > { %v20686_v52 = vpack.c.bf16 %v9466_v53, %v9454_v4  ;;  %v20688_v3 = vpack.c.bf16 %v9465_v62, %v9453_v33  ;;  %11221 = vmatprep.mubr.bf16.mxu1 %v20502_v30  ;;  %11247 = vmatpush1.bf16.msra.mxu1 %v16070_v10  ;;  %v8953_v12 = vpop.f32.mrb[132].mxu1 }
0x12c7   : > { %v20692_v1 = vpack.c.bf16 %v9467_v27, %v9455_v37  ;;  %v14469_v18 = vadd.f32 %v8953_v12, %v20605_v11  ;;  %v9099_v55 = vpop.f32.mrb[164].mxu0  ;;  %13964 = vmatpush3.bf16.msra.mxu0 %v16074_v5  ;;  %v8955_v6 = vpop.f32.mrb[133].mxu1  ;;  %11248 = vmatprep.subr.bf16.mxu1 %v16077_v41  ;;  %v16080_v37 = vld [vmem:[%s17795_s17 + $0x360] ss:$12 sps:$4 sm:$0xff]  }
0x12c8   : > { %v14485_v22 = vadd.f32 %v9099_v55, %v20609_v15  ;;  %v14470_v49 = vadd.f32 %v8955_v6, %v20612_v42  ;;  %v9101_v30 = vpop.f32.mrb[165].mxu0  ;;  %v8957_v10 = vpop.f32.mrb[134].mxu1  ;;  %11712 = vmatprep.mubr.bf16.mxu0 %v20688_v3  ;;  %13965 = vmatprep.subr.bf16.mxu0 %v16078_v2  ;;  %v16084_v55 = vld [vmem:[%s17795_s17 + $0x500] ss:$12 sps:$4 sm:$0xff]  }
0x12c9   : > { %v14486_v61 = vadd.f32 %v9101_v30, %v20615_v44  ;;  %v14471_v5 = vadd.f32 %v8957_v10, %v20605_v11  ;;  %v9103_v41 = vpop.f32.mrb[166].mxu0  ;;  %v8959_v4 = vpop.f32.mrb[135].mxu1  ;;  %11713 = vmatmul.mubr.bf16.gmra.mrb[224].mxu0 %v20683_v48  ;;  %v9476_v2 = vmax.f32 %v14469_v18, 0.0  ;;  %v16087_v11 = vld [vmem:[%s17795_s17 + $0x37c] ss:$12 sps:$4 sm:$0xff]  }
0x12ca   : > { %v14487_v33 = vadd.f32 %v9103_v41, %v20609_v15  ;;  %11249 = vmatpush1.bf16.msra.mxu1 %v16075_v60  ;;  %v14472_v53 = vadd.f32 %v8959_v4, %v20612_v42  ;;  %v9105_v62 = vpop.f32.mrb[167].mxu0  ;;  %v9478_v6 = vmax.f32 %v14485_v22, 0.0  ;;  %v9477_v30 = vmax.f32 %v14470_v49, 0.0  ;;  %v16088_v60 = vld [vmem:[%s17795_s17 + $0x5d8] ss:$12 sps:$4 sm:$0xff]  }
0x12cb   : > { %v9488_v27 = vmax.f32 %v14471_v5, 0.0  ;;  %v14488_v12 = vadd.f32 %v9105_v62, %v20615_v44  ;;  %13966 = vmatpush3.bf16.msra.mxu0 %v16079_v51  ;;  %11250 = vmatprep.subr.bf16.mxu1 %v16082_v43  ;;  %v9479_v42 = vmax.f32 %v14486_v61, 0.0  ;;  %v16085_v43 = vld [vmem:[%s17795_s17 + $0x378] ss:$12 sps:$4 sm:$0xff]   ;;  %v16094_v61 = vld [vmem:[%s17795_s17 + $0x530] ss:$12 sps:$4 sm:$0xff]  }
0x12cc   : > { %v9490_v10 = vmax.f32 %v14487_v33, 0.0  ;;  %v9489_v15 = vmax.f32 %v14472_v53, 0.0  ;;  %13967 = vmatprep.subr.bf16.mxu0 %v16083_v32  ;;  %v16089_v49 = vld [vmem:[%s17795_s17 + $0x518] ss:$12 sps:$4 sm:$0xff]   ;;  %v16092_v32 = vld [vmem:[%s17795_s17 + $0x394] ss:$12 sps:$4 sm:$0xff]  }
0x12cd   : > { %v20711_v41 = vpack.c.bf16 %v9488_v27, %v9476_v2  ;;  %v9491_v18 = vmax.f32 %v14488_v12, 0.0  ;;  %11222 = vmatmul.mubr.bf16.gmra.mrb[160].mxu1 %v20496_v20  ;;  %v16093_v20 = vld [vmem:[%s17795_s17 + $0x5f0] ss:$12 sps:$4 sm:$0xff]   ;;  %v16097_v5 = vld [vmem:[%s17795_s17 + $0x3ac] ss:$12 sps:$4 sm:$0xff]  }
0x12ce   : > { %v20714_v44 = vpack.c.bf16 %v9490_v10, %v9478_v6  ;;  %v20716_v51 = vpack.c.bf16 %v9489_v15, %v9477_v30  ;;  %11231 = vmatprep.mubr.bf16.mxu1 %v20528_v29  ;;  %11251 = vmatpush1.bf16.msra.mxu1 %v16080_v37  ;;  %v16090_v29 = vld [vmem:[%s17795_s17 + $0x390] ss:$12 sps:$4 sm:$0xff]   ;;  %v16122_v4 = vld [vmem:[%s17795_s17 + $0x6c8] ss:$12 sps:$4 sm:$0xff]   ;;  %v16127_v37 = vld [vmem:[%s17795_s17 + $0x6e0] ss:$12 sps:$4 sm:$0xff]  }
0x12cf   : > { %v20720_v22 = vpack.c.bf16 %v9491_v18, %v9479_v42  ;;  %13968 = vmatpush3.bf16.msra.mxu0 %v16084_v55  ;;  %11252 = vmatprep.subr.bf16.mxu1 %v16087_v11  ;;  %v16095_v33 = vld [vmem:[%s17795_s17 + $0x3a8] ss:$12 sps:$4 sm:$0xff]   ;;  %v16100_v53 = vld [vmem:[%s17795_s17 + $0x3c4] ss:$12 sps:$4 sm:$0xff]   ;;  %v16128_v2 = vld [vmem:[%s17795_s17 + $0x620] ss:$12 sps:$4 sm:$0xff]  }
0x12d0   : > { %11720 = vmatprep.mubr.bf16.mxu0 %v20716_v51  ;;  %13969 = vmatprep.subr.bf16.mxu0 %v16088_v60  ;;  %v16123_v62 = vld [vmem:[%s17795_s17 + $0x608] ss:$12 sps:$4 sm:$0xff]   ;;  %v16132_v27 = vld [vmem:[%s17795_s17 + $0x6f8] ss:$12 sps:$4 sm:$0xff]   ;;  %v16137_v6 = vld [vmem:[%s17795_s17 + $0x710] ss:$12 sps:$4 sm:$0xff]  }
0x12d1   : > { %11721 = vmatmul.mubr.bf16.gmra.mrb[228].mxu0 %v20711_v41  ;;  %v16101_v12 = vld [vmem:[%s17795_s17 + $0x3d8] ss:$12 sps:$4 sm:$0xff]   ;;  %v16106_v55 = vld [vmem:[%s17795_s17 + $0x3f4] ss:$12 sps:$4 sm:$0xff]   ;;  %v16104_v30 = vld [vmem:[%s17795_s17 + $0x3f0] ss:$12 sps:$4 sm:$0xff]  }
0x12d2   : > { %11253 = vmatpush1.bf16.msra.mxu1 %v16085_v43  ;;  %11761 = vmatprep.mubr.bf16.mxu0 %v20637_v14  ;;  %v16133_v11 = vld [vmem:[%s17795_s17 + $0x638] ss:$12 sps:$4 sm:$0xff]   ;;  %v16138_v15 = vld [vmem:[%s17795_s17 + $0x650] ss:$12 sps:$4 sm:$0xff]   ;;  %v16142_v60 = vld [vmem:[%s17795_s17 + $0x728] ss:$12 sps:$4 sm:$0xff]  }
0x12d3   : > { %13970 = vmatpush3.bf16.msra.mxu0 %v16089_v49  ;;  %11254 = vmatprep.subr.bf16.mxu1 %v16092_v32  ;;  %v16109_v10 = vld [vmem:[%s17795_s17 + $0x40c] ss:$12 sps:$4 sm:$0xff]   ;;  %v16107_v42 = vld [vmem:[%s17795_s17 + $0x408] ss:$12 sps:$4 sm:$0xff]   ;;  %v16112_v18 = vld [vmem:[%s17795_s17 + $0x424] ss:$12 sps:$4 sm:$0xff]  }
0x12d4   : > { %13971 = vmatprep.subr.bf16.mxu0 %v16093_v20  ;;  %v16143_v43 = vld [vmem:[%s17795_s17 + $0x668] ss:$12 sps:$4 sm:$0xff]   ;;  %v16147_v49 = vld [vmem:[%s17795_s17 + $0x740] ss:$12 sps:$4 sm:$0xff]  }
0x12d5   : > { %11232 = vmatmul.mubr.bf16.gmra.mrb[164].mxu1 %v20522_v34  ;;  %v16098_v34 = vld [vmem:[%s17795_s17 + $0x3c0] ss:$12 sps:$4 sm:$0xff]   ;;  %v16115_v20 = vld [vmem:[%s17795_s17 + $0x43c] ss:$12 sps:$4 sm:$0xff]  }
0x12d6   : > { %11255 = vmatpush1.bf16.msra.mxu1 %v16090_v29  ;;  %11274 = vmatprep.mubr.bf16.mxu1 %v20633_v26  ;;  %v16103_v26 = vld [vmem:[%s17795_s17 + $0x3dc] ss:$12 sps:$4 sm:$0xff]   ;;  %v16110_v32 = vld [vmem:[%s17795_s17 + $0x420] ss:$12 sps:$4 sm:$0xff]  }
0x12d7   : > { %13972 = vmatpush3.bf16.msra.mxu0 %v16094_v61  ;;  %11256 = vmatprep.subr.bf16.mxu1 %v16097_v5  ;;  %v16148_v29 = vld [vmem:[%s17795_s17 + $0x680] ss:$12 sps:$4 sm:$0xff]   ;;  %v16152_v61 = vld [vmem:[%s17795_s17 + $0x758] ss:$12 sps:$4 sm:$0xff]  }
0x12d8   : > { %13997 = vmatprep.subr.bf16.mxu0 %v16122_v4  ;;  %v16113_v5 = vld [vmem:[%s17795_s17 + $0x438] ss:$12 sps:$4 sm:$0xff]   ;;  %v16118_v4 = vld [vmem:[%s17795_s17 + $0x454] ss:$12 sps:$4 sm:$0xff]  }
0x12da   : > { %11257 = vmatpush1.bf16.msra.mxu1 %v16095_v33  ;;  %11762 = vmatmul.mubr.bf16.vlgmr.msra.gmra.mrb[232].mxu0 %v20631_v54  ;;  %v16153_v33 = vld [vmem:[%s17795_s17 + $0x698] ss:$12 sps:$4 sm:$0xff]  }
0x12db   : > { %11769 = vmatprep.mubr.bf16.mxu0 %v20664_v21  ;;  %11258 = vmatprep.subr.bf16.mxu1 %v16100_v53  ;;  %v16157_v53 = vld [vmem:[%s17795_s17 + $0x770] ss:$12 sps:$4 sm:$0xff]  }
0x12dc   : > { %13998 = vmatpush3.bf16.msra.mxu0 %v16123_v62  ;;  %v16116_v62 = vld [vmem:[%s17795_s17 + $0x450] ss:$12 sps:$4 sm:$0xff]  }
0x12dd   : > { %13999 = vmatprep.subr.bf16.mxu0 %v16127_v37  ;;  %v16121_v37 = vld [vmem:[%s17795_s17 + $0x46c] ss:$12 sps:$4 sm:$0xff]  }
0x12de   : > { %11259 = vmatpush1.bf16.msra.mxu1 %v16098_v34  ;;  %v16158_v34 = vld [vmem:[%s17795_s17 + $0x6b0] ss:$12 sps:$4 sm:$0xff]  }
0x12df   : > { %11260 = vmatprep.subr.bf16.mxu1 %v16103_v26  ;;  %v16162_v26 = vld [vmem:[%s17795_s17 + $0x848] ss:$12 sps:$4 sm:$0xff]  }
0x12e0   : > { %14000 = vmatpush3.bf16.msra.mxu0 %v16128_v2  ;;  %v16119_v2 = vld [vmem:[%s17795_s17 + $0x468] ss:$12 sps:$4 sm:$0xff]  }
0x12e1   : > { %14001 = vmatprep.subr.bf16.mxu0 %v16132_v27  ;;  %v16126_v27 = vld [vmem:[%s17795_s17 + $0x484] ss:$12 sps:$4 sm:$0xff]  }
0x12e2   : > { %11261 = vmatpush1.bf16.msra.mxu1 %v16101_v12  ;;  %11770 = vmatmul.mubr.bf16.gmra.mrb[236].mxu0 %v20658_v24  ;;  %v16124_v12 = vld [vmem:[%s17795_s17 + $0x480] ss:$12 sps:$4 sm:$0xff]  }
0x12e3   : > { %11777 = vmatprep.mubr.bf16.mxu0 %v20692_v1  ;;  %11262 = vmatprep.subr.bf16.mxu1 %v16106_v55  ;;  %v16131_v55 = vld [vmem:[%s17795_s17 + $0x49c] ss:$12 sps:$4 sm:$0xff]  }
0x12e4   : > { %14002 = vmatpush3.bf16.msra.mxu0 %v16133_v11  ;;  %v16129_v11 = vld [vmem:[%s17795_s17 + $0x498] ss:$12 sps:$4 sm:$0xff]  }
0x12e5   : > { %14003 = vmatprep.subr.bf16.mxu0 %v16137_v6  ;;  %v16136_v6 = vld [vmem:[%s17795_s17 + $0x4b4] ss:$12 sps:$4 sm:$0xff]  }
0x12e6   : > { %11263 = vmatpush1.bf16.msra.mxu1 %v16104_v30  ;;  %v16134_v30 = vld [vmem:[%s17795_s17 + $0x4b0] ss:$12 sps:$4 sm:$0xff]  }
0x12e7   : > { %11264 = vmatprep.subr.bf16.mxu1 %v16109_v10  ;;  %v16141_v10 = vld [vmem:[%s17795_s17 + $0x4cc] ss:$12 sps:$4 sm:$0xff]  }
0x12e8   : > { %14004 = vmatpush3.bf16.msra.mxu0 %v16138_v15  ;;  %v16146_v15 = vld [vmem:[%s17795_s17 + $0x4e4] ss:$12 sps:$4 sm:$0xff]  }
0x12e9   : > { %14005 = vmatprep.subr.bf16.mxu0 %v16142_v60  ;;  %v16144_v60 = vld [vmem:[%s17795_s17 + $0x4e0] ss:$12 sps:$4 sm:$0xff]  }
0x12ea   : > { %11265 = vmatpush1.bf16.msra.mxu1 %v16107_v42  ;;  %11778 = vmatmul.mubr.bf16.gmra.mrb[240].mxu0 %v20686_v52  ;;  %v16151_v42 = vld [vmem:[%s17795_s17 + $0x4fc] ss:$12 sps:$4 sm:$0xff]  }
0x12eb   : > { %11785 = vmatprep.mubr.bf16.mxu0 %v20720_v22  ;;  %11266 = vmatprep.subr.bf16.mxu1 %v16112_v18 }
0x12ec   : > { %14006 = vmatpush3.bf16.msra.mxu0 %v16143_v43 }
0x12ed   : > { %14007 = vmatprep.subr.bf16.mxu0 %v16147_v49  ;;  %v16149_v49 = vld [vmem:[%s17795_s17 + $0x4f8] ss:$12 sps:$4 sm:$0xff]  }
0x12ee   : > { %11267 = vmatpush1.bf16.msra.mxu1 %v16110_v32 }
0x12ef   : > { %11268 = vmatprep.subr.bf16.mxu1 %v16115_v20  ;;  %v16156_v20 = vld [vmem:[%s17795_s17 + $0x514] ss:$12 sps:$4 sm:$0xff]  }
0x12f0   : > { %14008 = vmatpush3.bf16.msra.mxu0 %v16148_v29 }
0x12f1   : > { %14009 = vmatprep.subr.bf16.mxu0 %v16152_v61 }
0x12f2   : > { %11269 = vmatpush1.bf16.msra.mxu1 %v16113_v5  ;;  %11786 = vmatmul.mubr.bf16.gmra.mrb[244].mxu0 %v20714_v44 }
0x12f3   : > { %11270 = vmatprep.subr.bf16.mxu1 %v16118_v4 }
0x12f4   : > { %14010 = vmatpush3.bf16.msra.mxu0 %v16153_v33 }
0x12f5   : > { %14011 = vmatprep.subr.bf16.mxu0 %v16157_v53 }
0x12f6   : > { %11271 = vmatpush1.bf16.msra.mxu1 %v16116_v62 }
0x12f7   : > { %11272 = vmatprep.subr.bf16.mxu1 %v16121_v37  ;;  %v16154_v37 = vld [vmem:[%s17795_s17 + $0x510] ss:$12 sps:$4 sm:$0xff]  }
0x12f8   : > { %14012 = vmatpush3.bf16.msra.mxu0 %v16158_v34 }
0x12f9   : > { %14037 = vmatprep.subr.bf16.mxu0 %v16162_v26 }
0x12fa   : > { %11273 = vmatpush1.bf16.msra.mxu1 %v16119_v2 }
0x12fb   : > { %11315 = vmatprep.subr.bf16.mxu1 %v16126_v27  ;;  %v16161_v27 = vld [vmem:[%s17795_s17 + $0x52c] ss:$12 sps:$4 sm:$0xff]  }
0x12fd   : > { %11275 = vmatmul.mubr.bf16.vlgmr.msra.gmra.mrb[152].mxu1 %v20629_v56  ;;  %v16139_v56 = vld [vmem:[%s17795_s17 + $0x4c8] ss:$12 sps:$4 sm:$0xff]  }
0x12fe   : > { %11284 = vmatprep.mubr.bf16.mxu1 %v20660_v16  ;;  %11316 = vmatpush1.bf16.msra.mxu1 %v16124_v12  ;;  %v1645_v16 = vld [vmem:[%s17793_s2 + $0x8] sm:$0xf] }
0x12ff   : > { %11317 = vmatprep.subr.bf16.mxu1 %v16131_v55  ;;  %v20791_v18 = vrot.slane %v1645_v16, %v21533_v13  ;;  %v20803_v43 = vrot.slane %v1645_v16, %v7038_v7 }
0x1302   : > { %11318 = vmatpush1.bf16.msra.mxu1 %v16129_v11 }
0x1303   : > { %11319 = vmatprep.subr.bf16.mxu1 %v16136_v6 }
0x1305   : > { %11285 = vmatmul.mubr.bf16.gmra.mrb[156].mxu1 %v20655_v58  ;;  %v20795_v58 = vrot.slane %v1645_v16, %v21535_v25 }
0x1306   : > { %11294 = vmatprep.mubr.bf16.mxu1 %v20688_v3  ;;  %11320 = vmatpush1.bf16.msra.mxu1 %v16134_v30  ;;  %v20798_v3 = vrot.slane %v1645_v16, %v21534_v46 }
0x1307   : > { %11321 = vmatprep.subr.bf16.mxu1 %v16141_v10 }
0x130a   : > { %11322 = vmatpush1.bf16.msra.mxu1 %v16139_v56 }
0x130b   : > { %11323 = vmatprep.subr.bf16.mxu1 %v16146_v15 }
0x130d   : > { %11295 = vmatmul.mubr.bf16.gmra.mrb[160].mxu1 %v20683_v48 }
0x130e   : > { %11304 = vmatprep.mubr.bf16.mxu1 %v20716_v51  ;;  %11324 = vmatpush1.bf16.msra.mxu1 %v16144_v60 }
0x130f   : > { %v9215_v32 = vpop.f32.mrb[136].mxu1  ;;  %11325 = vmatprep.subr.bf16.mxu1 %v16151_v42  ;;  %v16159_v42 = vld [vmem:[%s17795_s17 + $0x528] ss:$12 sps:$4 sm:$0xff]  }
0x1310   : > { %v14489_v48 = vadd.f32 %v9215_v32, %v20791_v18  ;;  %v9361_v29 = vpop.f32.mrb[168].mxu0  ;;  %v9217_v61 = vpop.f32.mrb[137].mxu1 }
0x1311   : > { %v14505_v5 = vadd.f32 %v9361_v29, %v20795_v58  ;;  %v14490_v4 = vadd.f32 %v9217_v61, %v20798_v3  ;;  %v9363_v51 = vpop.f32.mrb[169].mxu0  ;;  %v9219_v33 = vpop.f32.mrb[138].mxu1  ;;  %v16166_v29 = vld [vmem:[%s17795_s17 + $0x544] ss:$12 sps:$4 sm:$0xff]  }
0x1312   : > { %v14506_v57 = vadd.f32 %v9363_v51, %v20803_v43  ;;  %v14491_v7 = vadd.f32 %v9219_v33, %v20791_v18  ;;  %v9365_v53 = vpop.f32.mrb[170].mxu0  ;;  %11326 = vmatpush1.bf16.msra.mxu1 %v16149_v49  ;;  %v9221_v62 = vpop.f32.mrb[139].mxu1  ;;  %v9408_v12 = vmax.f32 %v14489_v48, 0.0  ;;  %v16163_v48 = vld [vmem:[%s17795_s17 + $0x788] ss:$12 sps:$4 sm:$0xff]  }
0x1313   : > { %v14507_v34 = vadd.f32 %v9365_v53, %v20795_v58  ;;  %v14492_v26 = vadd.f32 %v9221_v62, %v20798_v3  ;;  %v9367_v2 = vpop.f32.mrb[171].mxu0  ;;  %11327 = vmatprep.subr.bf16.mxu1 %v16156_v20  ;;  %v9410_v6 = vmax.f32 %v14505_v5, 0.0  ;;  %v9409_v30 = vmax.f32 %v14490_v4, 0.0  ;;  %v16167_v51 = vld [vmem:[%s17795_s17 + $0x860] ss:$12 sps:$4 sm:$0xff]  }
0x1314   : > { %v9420_v55 = vmax.f32 %v14491_v7, 0.0  ;;  %v14508_v11 = vadd.f32 %v9367_v2, %v20803_v43  ;;  %v9411_v15 = vmax.f32 %v14506_v57, 0.0 }
0x1315   : > { %v9422_v10 = vmax.f32 %v14507_v34, 0.0  ;;  %v9421_v56 = vmax.f32 %v14492_v26, 0.0  ;;  %11305 = vmatmul.mubr.bf16.gmra.mrb[164].mxu1 %v20711_v41  ;;  %v16164_v26 = vld [vmem:[%s17795_s17 + $0x540] ss:$12 sps:$4 sm:$0xff]  }
0x1316   : > { %v20818_v16 = vpack.c.bf16 %v9420_v55, %v9408_v12  ;;  %v9423_v60 = vmax.f32 %v14508_v11, 0.0  ;;  %11328 = vmatpush1.bf16.msra.mxu1 %v16154_v37  ;;  %11347 = vmatprep.mubr.bf16.mxu1 %v20637_v14  ;;  %v16168_v55 = vld [vmem:[%s17795_s17 + $0x7a0] ss:$12 sps:$4 sm:$0xff]   ;;  %v16171_v11 = vld [vmem:[%s17795_s17 + $0x55c] ss:$12 sps:$4 sm:$0xff]  }
0x1317   : > { %v20822_v49 = vpack.c.bf16 %v9422_v10, %v9410_v6  ;;  %v20824_v32 = vpack.c.bf16 %v9421_v56, %v9409_v30  ;;  %v9225_v20 = vpop.f32.mrb[140].mxu1  ;;  %11329 = vmatprep.subr.bf16.mxu1 %v16161_v27  ;;  %v16172_v56 = vld [vmem:[%s17795_s17 + $0x878] ss:$12 sps:$4 sm:$0xff]  }
0x1318   : > { %v20828_v61 = vpack.c.bf16 %v9423_v60, %v9411_v15  ;;  %v14493_v41 = vadd.f32 %v9225_v20, %v20791_v18  ;;  %v9371_v5 = vpop.f32.mrb[172].mxu0  ;;  %v9227_v4 = vpop.f32.mrb[141].mxu1 }
0x1319   : > { %v14509_v33 = vadd.f32 %v9371_v5, %v20795_v58  ;;  %v14494_v14 = vadd.f32 %v9227_v4, %v20798_v3  ;;  %v9373_v57 = vpop.f32.mrb[173].mxu0  ;;  %v9229_v7 = vpop.f32.mrb[142].mxu1  ;;  %11826 = vmatprep.mubr.bf16.mxu0 %v20824_v32 }
0x131a   : > { %v14510_v53 = vadd.f32 %v9373_v57, %v20803_v43  ;;  %v14495_v62 = vadd.f32 %v9229_v7, %v20791_v18  ;;  %v9375_v37 = vpop.f32.mrb[174].mxu0  ;;  %11330 = vmatpush1.bf16.msra.mxu1 %v16159_v42  ;;  %v9231_v34 = vpop.f32.mrb[143].mxu1  ;;  %11827 = vmatmul.mubr.bf16.vlgmr.msra.gmra.mrb[248].mxu0 %v20818_v16  ;;  %v9432_v6 = vmax.f32 %v14493_v41, 0.0 }
0x131b   : > { %v14511_v2 = vadd.f32 %v9375_v37, %v20795_v58  ;;  %v14496_v27 = vadd.f32 %v9231_v34, %v20798_v3  ;;  %v9377_v12 = vpop.f32.mrb[175].mxu0  ;;  %14038 = vmatpush3.bf16.msra.mxu0 %v16163_v48  ;;  %11331 = vmatprep.subr.bf16.mxu1 %v16166_v29  ;;  %v9434_v15 = vmax.f32 %v14509_v33, 0.0  ;;  %v9433_v60 = vmax.f32 %v14494_v14, 0.0  ;;  %v16169_v29 = vld [vmem:[%s17795_s17 + $0x558] ss:$12 sps:$4 sm:$0xff]  }
0x131c   : > { %v9444_v30 = vmax.f32 %v14495_v62, 0.0  ;;  %v14512_v10 = vadd.f32 %v9377_v12, %v20803_v43  ;;  %14039 = vmatprep.subr.bf16.mxu0 %v16167_v51  ;;  %v9435_v5 = vmax.f32 %v14510_v53, 0.0  ;;  %v16173_v51 = vld [vmem:[%s17795_s17 + $0x7b8] ss:$12 sps:$4 sm:$0xff]   ;;  %v16176_v62 = vld [vmem:[%s17795_s17 + $0x574] ss:$12 sps:$4 sm:$0xff]  }
0x131d   : > { %v9446_v42 = vmax.f32 %v14511_v2, 0.0  ;;  %v9445_v20 = vmax.f32 %v14496_v27, 0.0  ;;  %v16177_v34 = vld [vmem:[%s17795_s17 + $0x890] ss:$12 sps:$4 sm:$0xff]  }
0x131e   : > { %v20845_v4 = vpack.c.bf16 %v9444_v30, %v9432_v6  ;;  %v9447_v48 = vmax.f32 %v14512_v10, 0.0  ;;  %11332 = vmatpush1.bf16.msra.mxu1 %v16164_v26  ;;  %v16174_v10 = vld [vmem:[%s17795_s17 + $0x570] ss:$12 sps:$4 sm:$0xff]  }
0x131f   : > { %v20848_v57 = vpack.c.bf16 %v9446_v42, %v9434_v15  ;;  %v20850_v41 = vpack.c.bf16 %v9445_v20, %v9433_v60  ;;  %v9235_v7 = vpop.f32.mrb[144].mxu1  ;;  %14040 = vmatpush3.bf16.msra.mxu0 %v16168_v55  ;;  %11333 = vmatprep.subr.bf16.mxu1 %v16171_v11  ;;  %v16178_v42 = vld [vmem:[%s17795_s17 + $0x7d0] ss:$12 sps:$4 sm:$0xff]   ;;  %v16181_v20 = vld [vmem:[%s17795_s17 + $0x58c] ss:$12 sps:$4 sm:$0xff]  }
0x1320   : > { %v20854_v33 = vpack.c.bf16 %v9447_v48, %v9435_v5  ;;  %v14497_v14 = vadd.f32 %v9235_v7, %v20791_v18  ;;  %v9381_v53 = vpop.f32.mrb[176].mxu0  ;;  %v9237_v37 = vpop.f32.mrb[145].mxu1  ;;  %14041 = vmatprep.subr.bf16.mxu0 %v16172_v56 }
0x1321   : > { %v14513_v26 = vadd.f32 %v9381_v53, %v20795_v58  ;;  %v14498_v2 = vadd.f32 %v9237_v37, %v20798_v3  ;;  %v9383_v27 = vpop.f32.mrb[177].mxu0  ;;  %v9239_v12 = vpop.f32.mrb[146].mxu1  ;;  %11834 = vmatprep.mubr.bf16.mxu0 %v20850_v41 }
0x1322   : > { %v14514_v55 = vadd.f32 %v9383_v27, %v20803_v43  ;;  %v14499_v11 = vadd.f32 %v9239_v12, %v20791_v18  ;;  %v9385_v6 = vpop.f32.mrb[178].mxu0  ;;  %11334 = vmatpush1.bf16.msra.mxu1 %v16169_v29  ;;  %v9241_v30 = vpop.f32.mrb[147].mxu1  ;;  %11835 = vmatmul.mubr.bf16.gmra.mrb[252].mxu0 %v20845_v4  ;;  %v9456_v5 = vmax.f32 %v14497_v14, 0.0  ;;  %v16182_v29 = vld [vmem:[%s17795_s17 + $0x8a8] ss:$12 sps:$4 sm:$0xff]  }
0x1323   : > { %v14515_v56 = vadd.f32 %v9385_v6, %v20795_v58  ;;  %v14500_v15 = vadd.f32 %v9241_v30, %v20798_v3  ;;  %v9387_v60 = vpop.f32.mrb[179].mxu0  ;;  %14042 = vmatpush3.bf16.msra.mxu0 %v16173_v51  ;;  %11335 = vmatprep.subr.bf16.mxu1 %v16176_v62  ;;  %v9458_v53 = vmax.f32 %v14513_v26, 0.0  ;;  %v9457_v37 = vmax.f32 %v14498_v2, 0.0  ;;  %v16179_v62 = vld [vmem:[%s17795_s17 + $0x588] ss:$12 sps:$4 sm:$0xff]  }
0x1324   : > { %v9468_v48 = vmax.f32 %v14499_v11, 0.0  ;;  %v14516_v7 = vadd.f32 %v9387_v60, %v20803_v43  ;;  %14043 = vmatprep.subr.bf16.mxu0 %v16177_v34  ;;  %v9459_v6 = vmax.f32 %v14514_v55, 0.0  ;;  %v16183_v34 = vld [vmem:[%s17795_s17 + $0x7e8] ss:$12 sps:$4 sm:$0xff]   ;;  %v16186_v60 = vld [vmem:[%s17795_s17 + $0x5a4] ss:$12 sps:$4 sm:$0xff]  }
0x1325   : > { %v9470_v27 = vmax.f32 %v14515_v56, 0.0  ;;  %v9469_v12 = vmax.f32 %v14500_v15, 0.0  ;;  %v16187_v15 = vld [vmem:[%s17795_s17 + $0x8c0] ss:$12 sps:$4 sm:$0xff]  }
0x1326   : > { %v20871_v30 = vpack.c.bf16 %v9468_v48, %v9456_v5  ;;  %v9471_v51 = vmax.f32 %v14516_v7, 0.0  ;;  %11336 = vmatpush1.bf16.msra.mxu1 %v16174_v10 }
0x1327   : > { %v20874_v39 = vpack.c.bf16 %v9470_v27, %v9458_v53  ;;  %v20876_v14 = vpack.c.bf16 %v9469_v12, %v9457_v37  ;;  %v9245_v11 = vpop.f32.mrb[148].mxu1  ;;  %14044 = vmatpush3.bf16.msra.mxu0 %v16178_v42  ;;  %11337 = vmatprep.subr.bf16.mxu1 %v16181_v20 }
0x1328   : > { %v20880_v26 = vpack.c.bf16 %v9471_v51, %v9459_v6  ;;  %v14501_v2 = vadd.f32 %v9245_v11, %v20791_v18  ;;  %v9391_v55 = vpop.f32.mrb[180].mxu0  ;;  %v9247_v56 = vpop.f32.mrb[149].mxu1  ;;  %14045 = vmatprep.subr.bf16.mxu0 %v16182_v29  ;;  %v16184_v29 = vld [vmem:[%s17795_s17 + $0x5a0] ss:$12 sps:$4 sm:$0xff]   ;;  %v16191_v11 = vld [vmem:[%s17795_s17 + $0x5bc] ss:$12 sps:$4 sm:$0xff]  }
0x1329   : > { %v14517_v10 = vadd.f32 %v9391_v55, %v20795_v58  ;;  %v14502_v5 = vadd.f32 %v9247_v56, %v20798_v3  ;;  %v9393_v48 = vpop.f32.mrb[181].mxu0  ;;  %v9249_v42 = vpop.f32.mrb[150].mxu1  ;;  %11842 = vmatprep.mubr.bf16.mxu0 %v20876_v14  ;;  %v16188_v51 = vld [vmem:[%s17795_s17 + $0x800] ss:$12 sps:$4 sm:$0xff]  }
0x132a   : > { %v14518_v20 = vadd.f32 %v9393_v48, %v20803_v43  ;;  %v14503_v7 = vadd.f32 %v9249_v42, %v20791_v18  ;;  %v9395_v53 = vpop.f32.mrb[182].mxu0  ;;  %11338 = vmatpush1.bf16.msra.mxu1 %v16179_v62  ;;  %v9251_v37 = vpop.f32.mrb[151].mxu1  ;;  %11843 = vmatmul.mubr.bf16.gmra.mrb[0].mxu0 %v20871_v30  ;;  %v9480_v55 = vmax.f32 %v14501_v2, 0.0  ;;  %v16192_v62 = vld [vmem:[%s17795_s17 + $0x8d8] ss:$12 sps:$4 sm:$0xff]  }
0x132b   : > { %v14519_v27 = vadd.f32 %v9395_v53, %v20795_v58  ;;  %v14504_v12 = vadd.f32 %v9251_v37, %v20798_v3  ;;  %v9397_v6 = vpop.f32.mrb[183].mxu0  ;;  %14046 = vmatpush3.bf16.msra.mxu0 %v16183_v34  ;;  %11339 = vmatprep.subr.bf16.mxu1 %v16186_v60  ;;  %v9482_v48 = vmax.f32 %v14517_v10, 0.0  ;;  %v9481_v42 = vmax.f32 %v14502_v5, 0.0  ;;  %v16189_v60 = vld [vmem:[%s17795_s17 + $0x5b8] ss:$12 sps:$4 sm:$0xff]  }
0x132c   : > { %v9492_v56 = vmax.f32 %v14503_v7, 0.0  ;;  %v14520_v18 = vadd.f32 %v9397_v6, %v20803_v43  ;;  %14047 = vmatprep.subr.bf16.mxu0 %v16187_v15  ;;  %v9483_v3 = vmax.f32 %v14518_v20, 0.0  ;;  %v16193_v43 = vld [vmem:[%s17795_s17 + $0x818] ss:$12 sps:$4 sm:$0xff]   ;;  %v16196_v5 = vld [vmem:[%s17795_s17 + $0x5d4] ss:$12 sps:$4 sm:$0xff]  }
0x132d   : > { %v9494_v63 = vmax.f32 %v14519_v27, 0.0  ;;  %v9493_v58 = vmax.f32 %v14504_v12, 0.0  ;;  %v16197_v20 = vld [vmem:[%s17795_s17 + $0x8f0] ss:$12 sps:$4 sm:$0xff]  }
0x132e   : > { %v20897_v53 = vpack.c.bf16 %v9492_v56, %v9480_v55  ;;  %v9495_v34 = vmax.f32 %v14520_v18, 0.0  ;;  %11340 = vmatpush1.bf16.msra.mxu1 %v16184_v29  ;;  %v16194_v27 = vld [vmem:[%s17795_s17 + $0x5d0] ss:$12 sps:$4 sm:$0xff]   ;;  %v16199_v55 = vld [vmem:[%s17795_s17 + $0x5e8] ss:$12 sps:$4 sm:$0xff]  }
0x132f   : > { %v20900_v37 = vpack.c.bf16 %v9494_v63, %v9482_v48  ;;  %v20902_v2 = vpack.c.bf16 %v9493_v58, %v9481_v42  ;;  %14048 = vmatpush3.bf16.msra.mxu0 %v16188_v51  ;;  %11341 = vmatprep.subr.bf16.mxu1 %v16191_v11  ;;  %v16198_v6 = vld [vmem:[%s17795_s17 + $0x830] ss:$12 sps:$4 sm:$0xff]   ;;  %v16201_v51 = vld [vmem:[%s17795_s17 + $0x5ec] ss:$12 sps:$4 sm:$0xff]  }
0x1330   : > { %v20905_v15 = vpack.c.bf16 %v9495_v34, %v9483_v3  ;;  %v13853_v10 = vpop.f32.mrb[184].mxu0  ;;  %14049 = vmatprep.subr.bf16.mxu0 %v16192_v62  ;;  %v16204_v56 = vld [vmem:[%s17795_s17 + $0x604] ss:$12 sps:$4 sm:$0xff]   ;;  %v16202_v58 = vld [vmem:[%s17795_s17 + $0x600] ss:$12 sps:$4 sm:$0xff]  }
0x1331   : > { %v13854_v7 = vpop.f32.mrb[185].mxu0  ;;  %11850 = vmatprep.mubr.bf16.mxu0 %v20902_v2  ;;  %v16207_v34 = vld [vmem:[%s17795_s17 + $0x61c] ss:$12 sps:$4 sm:$0xff]  }
0x1332   : > { %v20910_v63 = vadd.f32 %v13854_v7, %v13853_v10  ;;  %11342 = vmatpush1.bf16.msra.mxu1 %v16189_v60  ;;  %v13856_v29 = vpop.f32.mrb[186].mxu0  ;;  %11851 = vmatmul.mubr.bf16.gmra.mrb[4].mxu0 %v20897_v53  ;;  %v16210_v10 = vld [vmem:[%s17795_s17 + $0x634] ss:$12 sps:$4 sm:$0xff]  }
0x1333   : > { %v13857_v12 = vpop.f32.mrb[187].mxu0  ;;  %14050 = vmatpush3.bf16.msra.mxu0 %v16193_v43  ;;  %11891 = vmatprep.mubr.bf16.mxu0 %v20828_v61  ;;  %v16205_v43 = vld [vmem:[%s17795_s17 + $0x618] ss:$12 sps:$4 sm:$0xff]  }
0x1334   : > { %v20917_v11 = vadd.f32 %v13857_v12, %v13856_v29  ;;  %11343 = vmatprep.subr.bf16.mxu1 %v16196_v5  ;;  %14051 = vmatprep.subr.bf16.mxu0 %v16197_v20 }
0x1336   : > { %11344 = vmatpush1.bf16.msra.mxu1 %v16194_v27  ;;  %v16208_v27 = vld [vmem:[%s17795_s17 + $0x630] ss:$12 sps:$4 sm:$0xff]  }
0x1337   : > { %14052 = vmatpush3.bf16.msra.mxu0 %v16198_v6  ;;  %11345 = vmatprep.subr.bf16.mxu1 %v16201_v51  ;;  %v16211_v6 = vld [vmem:[%s17795_s17 + $0x648] ss:$12 sps:$4 sm:$0xff]   ;;  %v16216_v51 = vld [vmem:[%s17795_s17 + $0x664] ss:$12 sps:$4 sm:$0xff]  }
0x1338   : > { %v13859_v18 = vpop.f32.mrb[188].mxu0 }
0x1339   : > { %v13860_v62 = vpop.f32.mrb[189].mxu0 }
0x133a   : > { %v20921_v48 = vadd.f32 %v13860_v62, %v13859_v18  ;;  %11346 = vmatpush1.bf16.msra.mxu1 %v16199_v55  ;;  %v13862_v42 = vpop.f32.mrb[190].mxu0  ;;  %11892 = vmatmul.mubr.bf16.vlgmr.msra.gmra.mrb[8].mxu0 %v20822_v49 }
0x133b   : > { %v13863_v3 = vpop.f32.mrb[191].mxu0  ;;  %11899 = vmatprep.mubr.bf16.mxu0 %v20854_v33  ;;  %11388 = vmatprep.subr.bf16.mxu1 %v16204_v56 }
0x133c   : > { %v20927_v60 = vadd.f32 %v13863_v3, %v13862_v42  ;;  %v16214_v42 = vld [vmem:[%s17795_s17 + $0x660] ss:$12 sps:$4 sm:$0xff]  }
0x133d   : > { %11348 = vmatmul.mubr.bf16.vlgmr.msra.gmra.mrb[152].mxu1 %v20631_v54  ;;  %v16213_v54 = vld [vmem:[%s17795_s17 + $0x64c] ss:$12 sps:$4 sm:$0xff]  }
0x133e   : > { %11357 = vmatprep.mubr.bf16.mxu1 %v20664_v21  ;;  %11389 = vmatpush1.bf16.msra.mxu1 %v16202_v58  ;;  %v16219_v58 = vld [vmem:[%s17795_s17 + $0x67c] ss:$12 sps:$4 sm:$0xff]  }
0x133f   : > { %11390 = vmatprep.subr.bf16.mxu1 %v16207_v34 }
0x1340   : > { %v13865_v5 = vpop.f32.mrb[192].mxu0 }
0x1341   : > { %v13866_v20 = vpop.f32.mrb[193].mxu0 }
0x1342   : > { %v20933_v7 = vadd.f32 %v13866_v20, %v13865_v5  ;;  %11391 = vmatpush1.bf16.msra.mxu1 %v16205_v43  ;;  %v13868_v29 = vpop.f32.mrb[194].mxu0  ;;  %11900 = vmatmul.mubr.bf16.gmra.mrb[12].mxu0 %v20848_v57  ;;  %v16217_v43 = vld [vmem:[%s17795_s17 + $0x678] ss:$12 sps:$4 sm:$0xff]  }
0x1343   : > { %v13869_v12 = vpop.f32.mrb[195].mxu0  ;;  %11907 = vmatprep.mubr.bf16.mxu0 %v20880_v26  ;;  %11392 = vmatprep.subr.bf16.mxu1 %v16210_v10  ;;  %v16222_v10 = vld [vmem:[%s17795_s17 + $0x694] ss:$12 sps:$4 sm:$0xff]  }
0x1344   : > { %v20939_v21 = vadd.f32 %v13869_v12, %v13868_v29 }
0x1345   : > { %11358 = vmatmul.mubr.bf16.gmra.mrb[156].mxu1 %v20658_v24  ;;  %v20951_v24 = vld [vmem:[%s21547_s11] sm:$0x7] }
0x1346   : > { %11367 = vmatprep.mubr.bf16.mxu1 %v20692_v1  ;;  %11393 = vmatpush1.bf16.msra.mxu1 %v16208_v27  ;;  %v20960_v34 = vrot.slane %v20951_v24, %v21535_v25  ;;  %v16220_v25 = vld [vmem:[%s17795_s17 + $0x690] ss:$12 sps:$4 sm:$0xff]  }
0x1347   : > { %11394 = vmatprep.subr.bf16.mxu1 %v16213_v54 }
0x1348   : > { %v13871_v55 = vpop.f32.mrb[196].mxu0  ;;  %v11569_v29 = vadd.f32 %v20910_v63, %v20960_v34  ;;  %v11572_v54 = vadd.f32 %v20917_v11, %v20960_v34  ;;  %v11577_v11 = vadd.f32 %v20921_v48, %v20960_v34  ;;  %v16234_v48 = vld [vmem:[%s17795_s17 + $0x6f4] ss:$12 sps:$4 sm:$0xff]  }
0x1349   : > { %v13872_v56 = vpop.f32.mrb[197].mxu0 }
0x134a   : > { %v20945_v18 = vadd.f32 %v13872_v56, %v13871_v55  ;;  %11395 = vmatpush1.bf16.msra.mxu1 %v16211_v6  ;;  %v13874_v62 = vpop.f32.mrb[198].mxu0  ;;  %11908 = vmatmul.mubr.bf16.gmra.mrb[16].mxu0 %v20874_v39  ;;  %v16223_v55 = vld [vmem:[%s17795_s17 + $0x6a8] ss:$12 sps:$4 sm:$0xff]   ;;  %v16228_v56 = vld [vmem:[%s17795_s17 + $0x6c4] ss:$12 sps:$4 sm:$0xff]  }
0x134b   : > { %v13875_v1 = vpop.f32.mrb[199].mxu0  ;;  %11915 = vmatprep.mubr.bf16.mxu0 %v20905_v15  ;;  %11396 = vmatprep.subr.bf16.mxu1 %v16216_v51 }
0x134c   : > { %v20955_v3 = vadd.f32 %v13875_v1, %v13874_v62 }
0x134d   : > { %11368 = vmatmul.mubr.bf16.gmra.mrb[160].mxu1 %v20686_v52 }
0x134e   : > { %11377 = vmatprep.mubr.bf16.mxu1 %v20720_v22  ;;  %11397 = vmatpush1.bf16.msra.mxu1 %v16214_v42  ;;  %v16225_v22 = vld [vmem:[%s17795_s17 + $0x6ac] ss:$12 sps:$4 sm:$0xff]  }
0x134f   : > { %11398 = vmatprep.subr.bf16.mxu1 %v16219_v58 }
0x1350   : > { %v13893_v5 = vpop.f32.mrb[200].mxu0 }
0x1351   : > { %v13894_v20 = vpop.f32.mrb[201].mxu0 }
0x1352   : > { %v13895_v27 = vadd.f32 %v13894_v20, %v13893_v5  ;;  %11399 = vmatpush1.bf16.msra.mxu1 %v16217_v43  ;;  %v13896_v52 = vpop.f32.mrb[202].mxu0  ;;  %11916 = vmatmul.mubr.bf16.gmra.mrb[20].mxu0 %v20900_v37 }
0x1353   : > { %v13897_v12 = vpop.f32.mrb[203].mxu0  ;;  %11400 = vmatprep.subr.bf16.mxu1 %v16222_v10  ;;  %v16231_v10 = vld [vmem:[%s17795_s17 + $0x6dc] ss:$12 sps:$4 sm:$0xff]  }
0x1354   : > { %v20972_v6 = vadd.f32 %v13895_v27, %v11569_v29  ;;  %v13898_v51 = vadd.f32 %v13897_v12, %v13896_v52  ;;  %v16229_v27 = vld [vmem:[%s17795_s17 + $0x6d8] ss:$12 sps:$4 sm:$0xff]   ;;  %v11585_v12 = vadd.f32 %v20933_v7, %v20960_v34 }
0x1355   : > { %11378 = vmatmul.mubr.bf16.gmra.mrb[164].mxu1 %v20714_v44  ;;  %v16226_v44 = vld [vmem:[%s17795_s17 + $0x6c0] ss:$12 sps:$4 sm:$0xff]   ;;  %v16240_v7 = vld [vmem:[%s17795_s17 + $0x724] ss:$12 sps:$4 sm:$0xff]  }
0x1356   : > { %v20975_v63 = vadd.f32 %v13898_v51, %v11572_v54  ;;  %11401 = vmatpush1.bf16.msra.mxu1 %v16220_v25  ;;  %11420 = vmatprep.mubr.bf16.mxu1 %v20824_v32  ;;  %v11580_v32 = vadd.f32 %v20927_v60, %v20960_v34  ;;  %v16232_v54 = vld [vmem:[%s17795_s17 + $0x6f0] ss:$12 sps:$4 sm:$0xff]  }
0x1357   : > { %11402 = vmatprep.subr.bf16.mxu1 %v16225_v22 }
0x1358   : > { %v13899_v62 = vpop.f32.mrb[204].mxu0 }
0x1359   : > { %v13900_v42 = vpop.f32.mrb[205].mxu0 }
0x135a   : > { %v13901_v1 = vadd.f32 %v13900_v42, %v13899_v62  ;;  %11403 = vmatpush1.bf16.msra.mxu1 %v16223_v55  ;;  %v13902_v58 = vpop.f32.mrb[206].mxu0  ;;  %v16237_v55 = vld [vmem:[%s17795_s17 + $0x70c] ss:$12 sps:$4 sm:$0xff]  }
0x135b   : > { %v13903_v43 = vpop.f32.mrb[207].mxu0  ;;  %11404 = vmatprep.subr.bf16.mxu1 %v16228_v56  ;;  %v11588_v56 = vadd.f32 %v20939_v21, %v20960_v34 }
0x135c   : > { %v20986_v5 = vadd.f32 %v13901_v1, %v11577_v11  ;;  %v13904_v20 = vadd.f32 %v13903_v43, %v13902_v58  ;;  %v16235_v1 = vld [vmem:[%s17795_s17 + $0x708] ss:$12 sps:$4 sm:$0xff]   ;;  %v11593_v43 = vadd.f32 %v20945_v18, %v20960_v34  ;;  %v16241_v18 = vld [vmem:[%s17795_s17 + $0x738] ss:$12 sps:$4 sm:$0xff]  }
0x135e   : > { %v20988_v29 = vadd.f32 %v13904_v20, %v11580_v32  ;;  %11405 = vmatpush1.bf16.msra.mxu1 %v16226_v44  ;;  %v16238_v32 = vld [vmem:[%s17795_s17 + $0x720] ss:$12 sps:$4 sm:$0xff]  }
0x135f   : > { %11406 = vmatprep.subr.bf16.mxu1 %v16231_v10 }
0x1360   : > { %v13905_v52 = vpop.f32.mrb[208].mxu0 }
0x1361   : > { %v13906_v25 = vpop.f32.mrb[209].mxu0 }
0x1362   : > { %v13907_v22 = vadd.f32 %v13906_v25, %v13905_v52  ;;  %11407 = vmatpush1.bf16.msra.mxu1 %v16229_v27  ;;  %v13908_v60 = vpop.f32.mrb[210].mxu0  ;;  %v16243_v27 = vld [vmem:[%s17795_s17 + $0x73c] ss:$12 sps:$4 sm:$0xff]  }
0x1363   : > { %v13909_v51 = vpop.f32.mrb[211].mxu0  ;;  %11408 = vmatprep.subr.bf16.mxu1 %v16234_v48  ;;  %v11596_v48 = vadd.f32 %v20955_v3, %v20960_v34  ;;  %v16247_v3 = vld [vmem:[%s17795_s17 + $0x768] ss:$12 sps:$4 sm:$0xff]   ;;  %v16252_v34 = vld [vmem:[%s17795_s17 + $0x784] ss:$12 sps:$4 sm:$0xff]  }
0x1364   : > { %v20998_v62 = vadd.f32 %v13907_v22, %v11585_v12  ;;  %v13910_v42 = vadd.f32 %v13909_v51, %v13908_v60  ;;  %v16246_v22 = vld [vmem:[%s17795_s17 + $0x754] ss:$12 sps:$4 sm:$0xff]   ;;  %v16244_v60 = vld [vmem:[%s17795_s17 + $0x750] ss:$12 sps:$4 sm:$0xff]  }
0x1365   : > { %v16250_v51 = vld [vmem:[%s17795_s17 + $0x780] ss:$12 sps:$4 sm:$0xff]  }
0x1366   : > { %v21000_v11 = vadd.f32 %v13910_v42, %v11588_v56  ;;  %11409 = vmatpush1.bf16.msra.mxu1 %v16232_v54  ;;  %v16249_v54 = vld [vmem:[%s17795_s17 + $0x76c] ss:$12 sps:$4 sm:$0xff]   ;;  %v16258_v42 = vld [vmem:[%s17795_s17 + $0x7b4] ss:$12 sps:$4 sm:$0xff]  }
0x1367   : > { %11410 = vmatprep.subr.bf16.mxu1 %v16237_v55  ;;  %v16255_v55 = vld [vmem:[%s17795_s17 + $0x79c] ss:$12 sps:$4 sm:$0xff]   ;;  %v16253_v56 = vld [vmem:[%s17795_s17 + $0x798] ss:$12 sps:$4 sm:$0xff]  }
0x1368   : > { %v13911_v58 = vpop.f32.mrb[212].mxu0 }
0x1369   : > { %v13912_v44 = vpop.f32.mrb[213].mxu0 }
0x136a   : > { %v13913_v10 = vadd.f32 %v13912_v44, %v13911_v58  ;;  %11411 = vmatpush1.bf16.msra.mxu1 %v16235_v1  ;;  %v13914_v21 = vpop.f32.mrb[214].mxu0  ;;  %v16256_v1 = vld [vmem:[%s17795_s17 + $0x7b0] ss:$12 sps:$4 sm:$0xff]   ;;  %v16259_v58 = vld [vmem:[%s17795_s17 + $0x7c8] ss:$12 sps:$4 sm:$0xff]  }
0x136b   : > { %v13915_v20 = vpop.f32.mrb[215].mxu0  ;;  %11412 = vmatprep.subr.bf16.mxu1 %v16240_v7  ;;  %v16261_v7 = vld [vmem:[%s17795_s17 + $0x7cc] ss:$12 sps:$4 sm:$0xff]   ;;  %v16267_v44 = vld [vmem:[%s17795_s17 + $0x7fc] ss:$12 sps:$4 sm:$0xff]  }
0x136c   : > { %v21010_v52 = vadd.f32 %v13913_v10, %v11593_v43  ;;  %v13916_v25 = vadd.f32 %v13915_v20, %v13914_v21  ;;  %v16265_v21 = vld [vmem:[%s17795_s17 + $0x7f8] ss:$12 sps:$4 sm:$0xff]   ;;  %v16270_v20 = vld [vmem:[%s17795_s17 + $0x814] ss:$12 sps:$4 sm:$0xff]  }
0x136e   : > { %v21012_v12 = vadd.f32 %v13916_v25, %v11596_v48  ;;  %11413 = vmatpush1.bf16.msra.mxu1 %v16238_v32 }
0x136f   : > { %11414 = vmatprep.subr.bf16.mxu1 %v16243_v27 }
0x1372   : > { %11415 = vmatpush1.bf16.msra.mxu1 %v16241_v18 }
0x1373   : > { %11416 = vmatprep.subr.bf16.mxu1 %v16246_v22 }
0x1376   : > { %11417 = vmatpush1.bf16.msra.mxu1 %v16244_v60 }
0x1377   : > { %11418 = vmatprep.subr.bf16.mxu1 %v16249_v54  ;;  %v16271_v54 = vld [vmem:[%s17795_s17 + $0x828] ss:$12 sps:$4 sm:$0xff]  }
0x137a   : > { %11419 = vmatpush1.bf16.msra.mxu1 %v16247_v3  ;;  %v16276_v3 = vld [vmem:[%s17795_s17 + $0x844] ss:$12 sps:$4 sm:$0xff]  }
0x137b   : > { %11461 = vmatprep.subr.bf16.mxu1 %v16252_v34 }
0x137d   : > { %11421 = vmatmul.mubr.bf16.vlgmr.msra.gmra.mrb[152].mxu1 %v20818_v16  ;;  %v16264_v16 = vld [vmem:[%s17795_s17 + $0x7e4] ss:$12 sps:$4 sm:$0xff]  }
0x137e   : > { %11430 = vmatprep.mubr.bf16.mxu1 %v20850_v41  ;;  %11462 = vmatpush1.bf16.msra.mxu1 %v16250_v51  ;;  %v16262_v41 = vld [vmem:[%s17795_s17 + $0x7e0] ss:$12 sps:$4 sm:$0xff]  }
0x137f   : > { %11463 = vmatprep.subr.bf16.mxu1 %v16255_v55 }
0x1382   : > { %11464 = vmatpush1.bf16.msra.mxu1 %v16253_v56 }
0x1383   : > { %11465 = vmatprep.subr.bf16.mxu1 %v16258_v42 }
0x1385   : > { %11431 = vmatmul.mubr.bf16.gmra.mrb[156].mxu1 %v20845_v4 }
0x1386   : > { %11440 = vmatprep.mubr.bf16.mxu1 %v20876_v14  ;;  %11466 = vmatpush1.bf16.msra.mxu1 %v16256_v1 }
0x1387   : > { %11467 = vmatprep.subr.bf16.mxu1 %v16261_v7 }
0x138a   : > { %11468 = vmatpush1.bf16.msra.mxu1 %v16259_v58  ;;  %v16277_v58 = vld [vmem:[%s17795_s17 + $0x858] ss:$12 sps:$4 sm:$0xff]  }
0x138b   : > { %11469 = vmatprep.subr.bf16.mxu1 %v16264_v16  ;;  %v16282_v16 = vld [vmem:[%s17795_s17 + $0x874] ss:$12 sps:$4 sm:$0xff]  }
0x138c   : > { %v13933_v43 = vpop.f32.mrb[216].mxu0 }
0x138d   : > { %11441 = vmatmul.mubr.bf16.gmra.mrb[160].mxu1 %v20871_v30  ;;  %v13934_v10 = vpop.f32.mrb[217].mxu0  ;;  %v16268_v30 = vld [vmem:[%s17795_s17 + $0x810] ss:$12 sps:$4 sm:$0xff]  }
0x138e   : > { %11450 = vmatprep.mubr.bf16.mxu1 %v20902_v2  ;;  %11470 = vmatpush1.bf16.msra.mxu1 %v16262_v41  ;;  %v13935_v4 = vadd.f32 %v13934_v10, %v13933_v43  ;;  %v13936_v14 = vpop.f32.mrb[218].mxu0  ;;  %v16273_v2 = vld [vmem:[%s17795_s17 + $0x82c] ss:$12 sps:$4 sm:$0xff]   ;;  %v16280_v43 = vld [vmem:[%s17795_s17 + $0x870] ss:$12 sps:$4 sm:$0xff]  }
0x138f   : > { %11471 = vmatprep.subr.bf16.mxu1 %v16267_v44  ;;  %v13937_v32 = vpop.f32.mrb[219].mxu0  ;;  %v16285_v10 = vld [vmem:[%s17795_s17 + $0x88c] ss:$12 sps:$4 sm:$0xff]  }
0x1390   : > { %v21039_v27 = vadd.f32 %v13935_v4, %v20972_v6  ;;  %v13938_v48 = vadd.f32 %v13937_v32, %v13936_v14 }
0x1392   : > { %v21042_v25 = vadd.f32 %v13938_v48, %v20975_v63  ;;  %11472 = vmatpush1.bf16.msra.mxu1 %v16265_v21 }
0x1393   : > { %11473 = vmatprep.subr.bf16.mxu1 %v16270_v20  ;;  %v16283_v20 = vld [vmem:[%s17795_s17 + $0x888] ss:$12 sps:$4 sm:$0xff]  }
0x1394   : > { %v13939_v18 = vpop.f32.mrb[220].mxu0 }
0x1395   : > { %11451 = vmatmul.mubr.bf16.gmra.mrb[164].mxu1 %v20897_v53  ;;  %v13940_v22 = vpop.f32.mrb[221].mxu0  ;;  %v16274_v53 = vld [vmem:[%s17795_s17 + $0x840] ss:$12 sps:$4 sm:$0xff]  }
0x1396   : > { %11474 = vmatpush1.bf16.msra.mxu1 %v16268_v30  ;;  %11493 = vmatprep.mubr.bf16.mxu1 %v20828_v61  ;;  %v13941_v6 = vadd.f32 %v13940_v22, %v13939_v18  ;;  %v13942_v60 = vpop.f32.mrb[222].mxu0  ;;  %v16279_v61 = vld [vmem:[%s17795_s17 + $0x85c] ss:$12 sps:$4 sm:$0xff]   ;;  %v16286_v18 = vld [vmem:[%s17795_s17 + $0x8a0] ss:$12 sps:$4 sm:$0xff]  }
0x1397   : > { %11475 = vmatprep.subr.bf16.mxu1 %v16273_v2  ;;  %v13943_v63 = vpop.f32.mrb[223].mxu0  ;;  %v16291_v22 = vld [vmem:[%s17795_s17 + $0x8bc] ss:$12 sps:$4 sm:$0xff]  }
0x1398   : > { %v21051_v34 = vadd.f32 %v13941_v6, %v20986_v5  ;;  %v13944_v51 = vadd.f32 %v13943_v63, %v13942_v60 }
0x139a   : > { %v21054_v55 = vadd.f32 %v13944_v51, %v20988_v29  ;;  %11476 = vmatpush1.bf16.msra.mxu1 %v16271_v54  ;;  %v16289_v54 = vld [vmem:[%s17795_s17 + $0x8b8] ss:$12 sps:$4 sm:$0xff]   ;;  %v16294_v51 = vld [vmem:[%s17795_s17 + $0x8d4] ss:$12 sps:$4 sm:$0xff]  }
0x139b   : > { %11477 = vmatprep.subr.bf16.mxu1 %v16276_v3 }
0x139c   : > { %v13945_v56 = vpop.f32.mrb[224].mxu0 }
0x139d   : > { %v13946_v42 = vpop.f32.mrb[225].mxu0 }
0x139e   : > { %11478 = vmatpush1.bf16.msra.mxu1 %v16274_v53  ;;  %v13947_v1 = vadd.f32 %v13946_v42, %v13945_v56  ;;  %v13948_v7 = vpop.f32.mrb[226].mxu0  ;;  %v16297_v42 = vld [vmem:[%s17795_s17 + $0x8ec] ss:$12 sps:$4 sm:$0xff]  }
0x139f   : > { %11479 = vmatprep.subr.bf16.mxu1 %v16279_v61  ;;  %v13949_v5 = vpop.f32.mrb[227].mxu0 }
0x13a0   : > { %v11715_v29 = vadd.f32 %v13947_v1, %v20998_v62  ;;  %v13950_v41 = vadd.f32 %v13949_v5, %v13948_v7  ;;  %v16288_v62 = vld [vmem:[%s17795_s17 + $0x8a4] ss:$12 sps:$4 sm:$0xff]  }
0x13a2   : > { %v11718_v44 = vadd.f32 %v13950_v41, %v21000_v11  ;;  %11480 = vmatpush1.bf16.msra.mxu1 %v16277_v58  ;;  %v16295_v58 = vld [vmem:[%s17795_s17 + $0x8e8] ss:$12 sps:$4 sm:$0xff]  }
0x13a3   : > { %11481 = vmatprep.subr.bf16.mxu1 %v16282_v16 }
0x13a4   : > { %v13951_v4 = vpop.f32.mrb[228].mxu0 }
0x13a5   : > { %v13952_v14 = vpop.f32.mrb[229].mxu0 }
0x13a6   : > { %11482 = vmatpush1.bf16.msra.mxu1 %v16280_v43  ;;  %v13953_v21 = vadd.f32 %v13952_v14, %v13951_v4  ;;  %v13954_v32 = vpop.f32.mrb[230].mxu0 }
0x13a7   : > { %11483 = vmatprep.subr.bf16.mxu1 %v16285_v10  ;;  %v13955_v48 = vpop.f32.mrb[231].mxu0 }
0x13a8   : > { %v11723_v30 = vadd.f32 %v13953_v21, %v21010_v52  ;;  %v13956_v11 = vadd.f32 %v13955_v48, %v13954_v32 }
0x13aa   : > { %v11726_v2 = vadd.f32 %v13956_v11, %v21012_v12  ;;  %11484 = vmatpush1.bf16.msra.mxu1 %v16283_v20  ;;  %v16292_v12 = vld [vmem:[%s17795_s17 + $0x8d0] ss:$12 sps:$4 sm:$0xff]  }
0x13ab   : > { %11485 = vmatprep.subr.bf16.mxu1 %v16288_v62 }
0x13ad   : > { %v13973_v6 = vpop.f32.mrb[232].mxu0 }
0x13ae   : > { %11486 = vmatpush1.bf16.msra.mxu1 %v16286_v18  ;;  %v13974_v60 = vpop.f32.mrb[233].mxu0 }
0x13af   : > { %v13975_v63 = vadd.f32 %v13974_v60, %v13973_v6  ;;  %v13976_v3 = vpop.f32.mrb[234].mxu0  ;;  %11487 = vmatprep.subr.bf16.mxu1 %v16291_v22 }
0x13b0   : > { %v13977_v53 = vpop.f32.mrb[235].mxu0 }
0x13b1   : > { %v11764_v52 = vadd.f32 %v13975_v63, %v21039_v27  ;;  %v13978_v61 = vadd.f32 %v13977_v53, %v13976_v3 }
0x13b2   : > { %11488 = vmatpush1.bf16.msra.mxu1 %v16289_v54 }
0x13b3   : > { %v11767_v56 = vadd.f32 %v13978_v61, %v21042_v25  ;;  %11489 = vmatprep.subr.bf16.mxu1 %v16294_v51 }
0x13b5   : > { %v13979_v1 = vpop.f32.mrb[236].mxu0 }
0x13b6   : > { %11490 = vmatpush1.bf16.msra.mxu1 %v16292_v12  ;;  %v13980_v7 = vpop.f32.mrb[237].mxu0 }
0x13b7   : > { %v13981_v5 = vadd.f32 %v13980_v7, %v13979_v1  ;;  %v13982_v16 = vpop.f32.mrb[238].mxu0  ;;  %11491 = vmatprep.subr.bf16.mxu1 %v16297_v42 }
0x13b8   : > { %v13983_v41 = vpop.f32.mrb[239].mxu0 }
0x13b9   : > { %v11772_v43 = vadd.f32 %v13981_v5, %v21051_v34  ;;  %v13984_v10 = vadd.f32 %v13983_v41, %v13982_v16 }
0x13ba   : > { %11492 = vmatpush1.bf16.msra.mxu1 %v16295_v58 }
0x13bb   : > { %v11775_v27 = vadd.f32 %v13984_v10, %v21054_v55 }
0x13bd   : > { %11494 = vmatmul.mubr.bf16.vlgmr.msra.gmra.mrb[152].mxu1 %v20822_v49  ;;  %v13985_v4 = vpop.f32.mrb[240].mxu0 }
0x13be   : > { %11503 = vmatprep.mubr.bf16.mxu1 %v20854_v33  ;;  %v13986_v25 = vpop.f32.mrb[241].mxu0 }
0x13bf   : > { %v13987_v14 = vadd.f32 %v13986_v25, %v13985_v4  ;;  %v13988_v21 = vpop.f32.mrb[242].mxu0 }
0x13c0   : > { %v13989_v32 = vpop.f32.mrb[243].mxu0 }
0x13c1   : > { %v11780_v20 = vadd.f32 %v13987_v14, %v11715_v29  ;;  %v13990_v48 = vadd.f32 %v13989_v32, %v13988_v21 }
0x13c3   : > { %v11783_v62 = vadd.f32 %v13990_v48, %v11718_v44 }
0x13c5   : > { %11504 = vmatmul.mubr.bf16.gmra.mrb[156].mxu1 %v20848_v57  ;;  %v13991_v11 = vpop.f32.mrb[244].mxu0 }
0x13c6   : > { %11513 = vmatprep.mubr.bf16.mxu1 %v20880_v26  ;;  %v13992_v34 = vpop.f32.mrb[245].mxu0 }
0x13c7   : > { %v13993_v18 = vadd.f32 %v13992_v34, %v13991_v11  ;;  %v13994_v55 = vpop.f32.mrb[246].mxu0 }
0x13c8   : > { %v13995_v22 = vpop.f32.mrb[247].mxu0 }
0x13c9   : > { %v11788_v49 = vadd.f32 %v13993_v18, %v11723_v30  ;;  %v13996_v6 = vadd.f32 %v13995_v22, %v13994_v55 }
0x13cb   : > { %v11791_v60 = vadd.f32 %v13996_v6, %v11726_v2 }
0x13cd   : > { %11514 = vmatmul.mubr.bf16.gmra.mrb[160].mxu1 %v20874_v39 }
0x13ce   : > { %11523 = vmatprep.mubr.bf16.mxu1 %v20905_v15 }
0x13d5   : > { %11524 = vmatmul.mubr.bf16.gmra.mrb[164].mxu1 %v20900_v37 }
0x13ed   : > { %v14013_v33 = vpop.f32.mrb[248].mxu0 }
0x13ee   : > { %v14014_v29 = vpop.f32.mrb[249].mxu0 }
0x13ef   : > { %v14015_v44 = vadd.f32 %v14014_v29, %v14013_v33  ;;  %v14016_v57 = vpop.f32.mrb[250].mxu0 }
0x13f0   : > { %v14017_v54 = vpop.f32.mrb[251].mxu0 }
0x13f1   : > { %v11829_v63 = vadd.f32 %v14015_v44, %v11764_v52  ;;  %v14018_v26 = vadd.f32 %v14017_v54, %v14016_v57 }
0x13f3   : > { %v11832_v3 = vadd.f32 %v14018_v26, %v11767_v56 }
0x13f5   : > { %v14019_v51 = vpop.f32.mrb[252].mxu0 }
0x13f6   : > { %v14020_v53 = vpop.f32.mrb[253].mxu0 }
0x13f7   : > { %v14021_v61 = vadd.f32 %v14020_v53, %v14019_v51  ;;  %v14022_v30 = vpop.f32.mrb[254].mxu0 }
0x13f8   : > { %v14023_v12 = vpop.f32.mrb[255].mxu0 }
0x13f9   : > { %v11837_v2 = vadd.f32 %v14021_v61, %v11772_v43  ;;  %v14024_v42 = vadd.f32 %v14023_v12, %v14022_v30 }
0x13fb   : > { %v11840_v39 = vadd.f32 %v14024_v42, %v11775_v27 }
0x13fd   : > { %v14025_v1 = vpop.f32.mrb[0].mxu0 }
0x13fe   : > { %v14026_v15 = vpop.f32.mrb[1].mxu0 }
0x13ff   : > { %v14027_v7 = vadd.f32 %v14026_v15, %v14025_v1  ;;  %v14028_v37 = vpop.f32.mrb[2].mxu0 }
0x1400   : > { %v14029_v58 = vpop.f32.mrb[3].mxu0 }
0x1401   : > { %v11845_v5 = vadd.f32 %v14027_v7, %v11780_v20  ;;  %v14030_v16 = vadd.f32 %v14029_v58, %v14028_v37 }
0x1403   : > { %v11848_v41 = vadd.f32 %v14030_v16, %v11783_v62  ;;  %v9552_v16 = vrot.slane %v20951_v24, %v21534_v46 }
0x1405   : > { %v14031_v10 = vpop.f32.mrb[4].mxu0 }
0x1406   : > { %v14032_v52 = vpop.f32.mrb[5].mxu0 }
0x1407   : > { %v14033_v4 = vadd.f32 %v14032_v52, %v14031_v10  ;;  %v14034_v56 = vpop.f32.mrb[6].mxu0 }
0x1408   : > { %v14035_v25 = vpop.f32.mrb[7].mxu0 }
0x1409   : > { %v11853_v14 = vadd.f32 %v14033_v4, %v11788_v49  ;;  %v14036_v21 = vadd.f32 %v14035_v25, %v14034_v56 }
0x140b   : > { %v11856_v32 = vadd.f32 %v14036_v21, %v11791_v60 }
0x140d   : > { %v14053_v48 = vpop.f32.mrb[8].mxu0 }
0x140e   : > { %v14054_v43 = vpop.f32.mrb[9].mxu0 }
0x140f   : > { %v14055_v11 = vadd.f32 %v14054_v43, %v14053_v48  ;;  %v14056_v27 = vpop.f32.mrb[10].mxu0 }
0x1410   : > { %v14057_v34 = vpop.f32.mrb[11].mxu0 }
0x1411   : > { %v11894_v18 = vadd.f32 %v14055_v11, %v11829_v63  ;;  %v14058_v55 = vadd.f32 %v14057_v34, %v14056_v27 }
0x1413   : > { %v21087_v22 = vadd.f32 %v11894_v18, %v19681_v47  ;;  %v11897_v20 = vadd.f32 %v14058_v55, %v11832_v3 }
0x1415   : > { %11950 = vst [vmem:[#allocation2 + $0x10] sm:$0xff] %v21087_v22  ;;  %v21091_v62 = vadd.f32 %v11897_v20, %v19686_v40  ;;  %v14059_v6 = vpop.f32.mrb[12].mxu0 }
0x1416   : > { %v14060_v49 = vpop.f32.mrb[13].mxu0 }
0x1417   : > { %11953 = vst [vmem:[#allocation2 + $0x28] sm:$0xff] %v21091_v62  ;;  %v14061_v60 = vadd.f32 %v14060_v49, %v14059_v6  ;;  %v14062_v33 = vpop.f32.mrb[14].mxu0  ;;  %v21548_v49 = vld [vmem:[#allocation72_spill] sm:$0xff] }
0x1418   : > { %v14063_v29 = vpop.f32.mrb[15].mxu0 }
0x1419   : > { %v11902_v44 = vadd.f32 %v14061_v60, %v11837_v2  ;;  %v14064_v57 = vadd.f32 %v14063_v29, %v14062_v33  ;;  %v21549_v29 = vld [vmem:[#allocation73_spill] sm:$0xff] }
0x141b   : > { %v21095_v54 = vadd.f32 %v11902_v44, %v19701_v23  ;;  %v11905_v47 = vadd.f32 %v14064_v57, %v11840_v39 }
0x141d   : > { %11956 = vst [vmem:[#allocation2 + $0x40] sm:$0xff] %v21095_v54  ;;  %v21099_v63 = vadd.f32 %v11905_v47, %v19710_v38  ;;  %v14065_v40 = vpop.f32.mrb[16].mxu0 }
0x141e   : > { %v14066_v26 = vpop.f32.mrb[17].mxu0 }
0x141f   : > { %11959 = vst [vmem:[#allocation2 + $0x58] sm:$0xff] %v21099_v63  ;;  %v14067_v3 = vadd.f32 %v14066_v26, %v14065_v40  ;;  %v14068_v51 = vpop.f32.mrb[18].mxu0  ;;  %v21551_v40 = vld [vmem:[#allocation54_spill] sm:$0xff] }
0x1420   : > { %v14069_v53 = vpop.f32.mrb[19].mxu0 }
0x1421   : > { %v11910_v61 = vadd.f32 %v14067_v3, %v11845_v5  ;;  %v14070_v30 = vadd.f32 %v14069_v53, %v14068_v51 }
0x1423   : > { %v21103_v12 = vadd.f32 %v11910_v61, %v19731_v31  ;;  %v11913_v23 = vadd.f32 %v14070_v30, %v11848_v41 }
0x1425   : > { %11962 = vst [vmem:[#allocation2 + $0x70] sm:$0xff] %v21103_v12  ;;  %v21107_v2 = vadd.f32 %v11913_v23, %v19737_v19  ;;  %v14071_v38 = vpop.f32.mrb[20].mxu0  ;;  %v9548_v19 = vrot.slane %v20951_v24, %v21533_v13  ;;  %v21552_v23 = vld [vmem:[#allocation84_spill] sm:$0xff] }
0x1426   : > { %v14072_v42 = vpop.f32.mrb[21].mxu0 }
0x1427   : > { %11965 = vst [vmem:[#allocation2 + $0x88] sm:$0xff] %v21107_v2  ;;  %v14073_v39 = vadd.f32 %v14072_v42, %v14071_v38  ;;  %v14074_v1 = vpop.f32.mrb[22].mxu0 }
0x1428   : > { %v14075_v15 = vpop.f32.mrb[23].mxu0 }
0x1429   : > { %v11918_v7 = vadd.f32 %v14073_v39, %v11853_v14  ;;  %v14076_v37 = vadd.f32 %v14075_v15, %v14074_v1  ;;  %v21553_v1 = vld [vmem:[#allocation65_spill] sm:$0xff] }
0x142b   : > { %v21111_v58 = vadd.f32 %v11918_v7, %v19753_v17  ;;  %v11921_v31 = vadd.f32 %v14076_v37, %v11856_v32  ;;  %v21554_v37 = vld [vmem:[#allocation67_spill] sm:$0xff] }
0x142d   : > { %11968 = vst [vmem:[#allocation2 + $0xa0] sm:$0xff] %v21111_v58  ;;  %v21115_v5 = vadd.f32 %v11921_v31, %v19759_v35 }
0x142f   : > { %11971 = vst [vmem:[#allocation2 + $0xb8] sm:$0xff] %v21115_v5 }
0x1490   : > { %v11495_v41 = vpop.f32.mrb[152].mxu1 }
0x1491   : > { %v14521_v10 = vadd.f32 %v11495_v41, %v9548_v19  ;;  %v11497_v52 = vpop.f32.mrb[153].mxu1  ;;  %v21555_v41 = vld [vmem:[#allocation82_spill] sm:$0xff] }
0x1492   : > { %v14522_v4 = vadd.f32 %v11497_v52, %v9552_v16  ;;  %v11499_v17 = vpop.f32.mrb[154].mxu1  ;;  %v11978_v52 = vpack.c.bf16 (!%p13605_p3), %v21091_v62, %v21087_v22  ;;  %v16574_v22 = vld [vmem:[#allocation21 + $0x18] sm:$0xff] (!%p13605_p3)   ;;  %v16575_v62 = vld [vmem:[#allocation21 + $0x60] sm:$0xff] (!%p13605_p3)  }
0x1493   : > { %v21123_v56 = vadd.f32 %v14521_v10, %v19668_v45  ;;  %v14523_v25 = vadd.f32 %v11499_v17, %v9548_v19  ;;  %v11501_v14 = vpop.f32.mrb[155].mxu1  ;;  %v16566_v17 = vld [vmem:[#allocation21 + $0x48] sm:$0xff] (!%p13605_p3)  }
0x1494   : > { %v21126_v35 = vadd.f32 %v14522_v4, %v19670_v50  ;;  %v14524_v21 = vadd.f32 %v11501_v14, %v9552_v16  ;;  %v16565_v4 = vld [vmem:[#allocation21] sm:$0xff] (!%p13605_p3)   ;;  %14385 = vmatprep.mubr.bf16.mxu1 (!%p13605_p3), %v11978_v52  ;;  %v16568_v14 = vld [vmem:[#allocation21 + $0x8] sm:$0xff] (!%p13605_p3)  }
0x1495   : > { %11948 = vst [vmem:[#allocation2] sm:$0xff] %v21123_v56  ;;  %v21130_v13 = vadd.f32 %v14523_v25, %v19675_v28  ;;  %v16567_v25 = vld [vmem:[#allocation21 + $0x80] sm:$0xff] (!%p13605_p3)  }
0x1496   : > { %11949 = vst [vmem:[#allocation2 + $0x8] sm:$0xff] %v21126_v35  ;;  %v11928_v46 = vadd.f32 %v14524_v21, %v19677_v9  ;;  %14369 = vmatprep.subr.bf16.mxu1 (!%p13605_p3), %v16567_v25  ;;  %v16569_v21 = vld [vmem:[#allocation21 + $0x50] sm:$0xff] (!%p13605_p3)  }
0x1497   : > { %11951 = vst [vmem:[#allocation2 + $0x18] sm:$0xff] %v21130_v13  ;;  %14370 = vmatpush3.bf16.msra.mxu1 (!%p13605_p3), %v16567_v25 }
0x1498   : > { %11952 = vst [vmem:[#allocation2 + $0x20] sm:$0xff] %v11928_v46  ;;  %v11505_v45 = vpop.f32.mrb[156].mxu1 }
0x1499   : > { %v14525_v24 = vadd.f32 %v11505_v45, %v9548_v19  ;;  %v11507_v32 = vpop.f32.mrb[157].mxu1  ;;  %v16570_v45 = vld [vmem:[#allocation21 + $0x88] sm:$0xff] (!%p13605_p3)  }
0x149a   : > { %v14526_v48 = vadd.f32 %v11507_v32, %v9552_v16  ;;  %v11509_v43 = vpop.f32.mrb[158].mxu1  ;;  %14371 = vmatprep.subr.bf16.mxu1 (!%p13605_p3), %v16570_v45  ;;  %v16576_v32 = vld [vmem:[#allocation21 + $0x98] sm:$0xff] (!%p13605_p3)  }
0x149b   : > { %v21136_v50 = vadd.f32 %v14525_v24, %v19692_v36  ;;  %v14527_v11 = vadd.f32 %v11509_v43, %v9548_v19  ;;  %v11511_v27 = vpop.f32.mrb[159].mxu1  ;;  %v16571_v24 = vld [vmem:[#allocation21 + $0x10] sm:$0xff] (!%p13605_p3)   ;;  %14372 = vmatpush3.bf16.msra.mxu1 (!%p13605_p3), %v16570_v45  ;;  %v16579_v43 = vld [vmem:[#allocation21 + $0xa0] sm:$0xff] (!%p13605_p3)  }
0x149c   : > { %v21139_v28 = vadd.f32 %v14526_v48, %v19695_v8  ;;  %v14528_v34 = vadd.f32 %v11511_v27, %v9552_v16  ;;  %v16577_v48 = vld [vmem:[#allocation21 + $0x20] sm:$0xff] (!%p13605_p3)   ;;  %v16580_v27 = vld [vmem:[#allocation21 + $0x28] sm:$0xff] (!%p13605_p3)  }
0x149d   : > { %11954 = vst [vmem:[#allocation2 + $0x30] sm:$0xff] %v21136_v50  ;;  %v21143_v9 = vadd.f32 %v14527_v11, %v19699_v59  ;;  %v16578_v11 = vld [vmem:[#allocation21 + $0x68] sm:$0xff] (!%p13605_p3)  }
0x149e   : > { %11955 = vst [vmem:[#allocation2 + $0x38] sm:$0xff] %v21139_v28  ;;  %v21147_v18 = vadd.f32 %v14528_v34, %v19703_v0  ;;  %v21550_v0 = vld [vmem:[#allocation55_spill] sm:$0xff] }
0x149f   : > { %11957 = vst [vmem:[#allocation2 + $0x48] sm:$0xff] %v21143_v9  ;;  %v16582_v34 = vld [vmem:[#allocation21 + $0xa8] sm:$0xff] (!%p13605_p3)  }
0x14a0   : > { %11958 = vst [vmem:[#allocation2 + $0x50] sm:$0xff] %v21147_v18  ;;  %v11515_v36 = vpop.f32.mrb[160].mxu1 }
0x14a1   : > { %v14529_v55 = vadd.f32 %v11515_v36, %v9548_v19  ;;  %v11517_v20 = vpop.f32.mrb[161].mxu1  ;;  %v16581_v36 = vld [vmem:[#allocation21 + $0x70] sm:$0xff] (!%p13605_p3)  }
0x14a2   : > { %v14530_v8 = vadd.f32 %v11517_v20, %v9552_v16  ;;  %v11519_v6 = vpop.f32.mrb[162].mxu1  ;;  %v16585_v20 = vld [vmem:[#allocation21 + $0xb0] sm:$0xff] (!%p13605_p3)  }
0x14a3   : > { %v21152_v60 = vadd.f32 %v14529_v55, %v21548_v49  ;;  %v14531_v33 = vadd.f32 %v11519_v6, %v9548_v19  ;;  %v11521_v59 = vpop.f32.mrb[163].mxu1  ;;  %v16583_v55 = vld [vmem:[#allocation21 + $0x30] sm:$0xff] (!%p13605_p3)   ;;  %v16586_v6 = vld [vmem:[#allocation21 + $0x38] sm:$0xff] (!%p13605_p3)  }
0x14a4   : > { %v21155_v44 = vadd.f32 %v14530_v8, %v21549_v29  ;;  %v14532_v57 = vadd.f32 %v11521_v59, %v9552_v16  ;;  %v16584_v8 = vld [vmem:[#allocation21 + $0x78] sm:$0xff] (!%p13605_p3)   ;;  %v11980_v59 = vpack.c.bf16 (!%p13605_p3), %v21147_v18, %v21139_v28  ;;  %v11981_v29 = vpack.c.bf16 (!%p13605_p3), %v21099_v63, %v21095_v54  ;;  %v13606_v28 = vld [vmem:[#allocation23] ss:$0 sm:$0xff] (!%p13605_p3) }
0x14a5   : > { %11960 = vst [vmem:[#allocation2 + $0x60] sm:$0xff] %v21152_v60  ;;  %v21159_v47 = vadd.f32 %v14531_v33, %v21550_v0  ;;  %v16587_v49 = vld [vmem:[#allocation21 + $0xb8] sm:$0xff] (!%p13605_p3)   ;;  %v11976_v33 = vpack.c.bf16 (!%p13605_p3), %v21130_v13, %v21123_v56  ;;  %v11979_v0 = vpack.c.bf16 (!%p13605_p3), %v21143_v9, %v21136_v50  ;;  %v11987_v13 = vpack.c.bf16 (!%p13605_p3), %v21115_v5, %v21111_v58 }
0x14a6   : > { %11961 = vst [vmem:[#allocation2 + $0x68] sm:$0xff] %v21155_v44  ;;  %v21163_v26 = vadd.f32 %v14532_v57, %v21551_v40  ;;  %v11984_v57 = vpack.c.bf16 (!%p13605_p3), %v21107_v2, %v21103_v12 }
0x14a7   : > { %11963 = vst [vmem:[#allocation2 + $0x78] sm:$0xff] %v21159_v47  ;;  %v11982_v54 = vpack.c.bf16 (!%p13605_p3), %v21159_v47, %v21152_v60 }
0x14a8   : > { %11964 = vst [vmem:[#allocation2 + $0x80] sm:$0xff] %v21163_v26  ;;  %v11525_v3 = vpop.f32.mrb[164].mxu1  ;;  %v11983_v56 = vpack.c.bf16 (!%p13605_p3), %v21163_v26, %v21155_v44 }
0x14a9   : > { %v14533_v51 = vadd.f32 %v11525_v3, %v9548_v19  ;;  %v11527_v53 = vpop.f32.mrb[165].mxu1 }
0x14aa   : > { %v14534_v61 = vadd.f32 %v11527_v53, %v9552_v16  ;;  %v11529_v30 = vpop.f32.mrb[166].mxu1  ;;  %11975 = sbr.rel (%p13605_p3) target bundleno = 5570 (0x15c2), region = 136 }
0x14ab   : > { %v21168_v38 = vadd.f32 %v14533_v51, %v21552_v23  ;;  %v14535_v42 = vadd.f32 %v11529_v30, %v9548_v19  ;;  %v11531_v39 = vpop.f32.mrb[167].mxu1  ;;  %v16564_v19 = vld [vmem:[#allocation21 + $0x40] sm:$0xff] (!%p13605_p3)  }
0x14ac   : > { %v21171_v15 = vadd.f32 %v14534_v61, %v21553_v1  ;;  %v14536_v7 = vadd.f32 %v11531_v39, %v9552_v16  ;;  %v11977_v16 = vpack.c.bf16 (!%p13605_p3), %v11928_v46, %v21126_v35  ;;  %14077 = vmatprep.subr.bf16.mxu0 (!%p13605_p3), %v16564_v19  ;;  %v16572_v35 = vld [vmem:[#allocation21 + $0x58] sm:$0xff] (!%p13605_p3)   ;;  %v16573_v46 = vld [vmem:[#allocation21 + $0x90] sm:$0xff] (!%p13605_p3)  }
0x14ad   : > { %11966 = vst [vmem:[#allocation2 + $0x90] sm:$0xff] %v21168_v38  ;;  %v21175_v31 = vadd.f32 %v14535_v42, %v21554_v37  ;;  %14078 = vmatpush3.bf16.msra.mxu0 (!%p13605_p3), %v16565_v4  ;;  %14373 = vmatprep.subr.bf16.mxu1 (!%p13605_p3), %v16573_v46 }
0x14ae   : > { %11967 = vst [vmem:[#allocation2 + $0x98] sm:$0xff] %v21171_v15  ;;  %v21179_v10 = vadd.f32 %v14536_v7, %v21555_v41  ;;  %12219 = vmatprep.mubr.bf16.mxu0 (!%p13605_p3), %v11977_v16  ;;  %14079 = vmatprep.subr.bf16.mxu0 (!%p13605_p3), %v16566_v17 }
0x14af   : > { %11969 = vst [vmem:[#allocation2 + $0xa8] sm:$0xff] %v21175_v31  ;;  %14374 = vmatpush3.bf16.msra.mxu1 (!%p13605_p3), %v16573_v46  ;;  %v11985_v12 = vpack.c.bf16 (!%p13605_p3), %v21175_v31, %v21168_v38 }
0x14b0   : > { %11970 = vst [vmem:[#allocation2 + $0xb0] sm:$0xff] %v21179_v10  ;;  %14375 = vmatprep.subr.bf16.mxu1 (!%p13605_p3), %v16576_v32  ;;  %v11986_v63 = vpack.c.bf16 (!%p13605_p3), %v21179_v10, %v21171_v15 }
0x14b1   : > { %14080 = vmatpush3.bf16.msra.mxu0 %v16568_v14 }
0x14b2   : > { %14081 = vmatprep.subr.bf16.mxu0 %v16569_v21 }
0x14b3   : > { %14376 = vmatpush3.bf16.msra.mxu1 %v16576_v32 }
0x14b4   : > { %14377 = vmatprep.subr.bf16.mxu1 %v16579_v43 }
0x14b5   : > { %14082 = vmatpush3.bf16.msra.mxu0 %v16571_v24 }
0x14b6   : > { %14083 = vmatprep.subr.bf16.mxu0 %v16572_v35 }
0x14b7   : > { %14378 = vmatpush3.bf16.msra.mxu1 %v16579_v43 }
0x14b8   : > { %14379 = vmatprep.subr.bf16.mxu1 %v16582_v34 }
0x14b9   : > { %14084 = vmatpush3.bf16.msra.mxu0 %v16574_v22 }
0x14ba   : > { %14085 = vmatprep.subr.bf16.mxu0 %v16575_v62 }
0x14bb   : > { %14380 = vmatpush3.bf16.msra.mxu1 %v16582_v34 }
0x14bc   : > { %14381 = vmatprep.subr.bf16.mxu1 %v16585_v20 }
0x14bd   : > { %14086 = vmatpush3.bf16.msra.mxu0 %v16577_v48 }
0x14be   : > { %14087 = vmatprep.subr.bf16.mxu0 %v16578_v11 }
0x14bf   : > { %14382 = vmatpush3.bf16.msra.mxu1 %v16585_v20 }
0x14c0   : > { %14383 = vmatprep.subr.bf16.mxu1 %v16587_v49 }
0x14c1   : > { %14088 = vmatpush3.bf16.msra.mxu0 %v16580_v27 }
0x14c2   : > { %14089 = vmatprep.subr.bf16.mxu0 %v16581_v36 }
0x14c3   : > { %14384 = vmatpush3.bf16.msra.mxu1 %v16587_v49 }
0x14c5   : > { %14090 = vmatpush3.bf16.msra.mxu0 %v16583_v55 }
0x14c6   : > { %14091 = vmatprep.subr.bf16.mxu0 %v16584_v8  ;;  %14386 = vmatmul.mubr.bf16.vlgmr.msra.gmra.mrb[0].mxu1 %v11981_v29 }
0x14c7   : > { %14389 = vmatprep.mubr.bf16.mxu1 %v11984_v57 }
0x14c9   : > { %14092 = vmatpush3.bf16.msra.mxu0 %v16586_v6 }
0x14cc   : > { %12220 = vmatmul.mubr.bf16.vlgmr.msra.gmra.mrb[0].mxu0 %v11976_v33 }
0x14cd   : > { %12227 = vmatprep.mubr.bf16.mxu0 %v11980_v59 }
0x14ce   : > { %14390 = vmatmul.mubr.bf16.gmra.mrb[4].mxu1 %v11987_v13 }
0x14d4   : > { %12228 = vmatmul.mubr.bf16.gmra.mrb[4].mxu0 %v11979_v0 }
0x14d5   : > { %12235 = vmatprep.mubr.bf16.mxu0 %v11983_v56 }
0x14dc   : > { %12236 = vmatmul.mubr.bf16.gmra.mrb[8].mxu0 %v11982_v54 }
0x14dd   : > { %12243 = vmatprep.mubr.bf16.mxu0 %v11986_v63 }
0x14e4   : > { %12244 = vmatmul.mubr.bf16.gmra.mrb[12].mxu0 %v11985_v12 }
0x1599   : > { %v14387_v18 = vpop.f32.mrb[0].mxu1 }
0x159a   : > { %v12286_v47 = vpop.f32.mrb[1].mxu1 }
0x159b   : > { %v14388_v40 = vpop.f32.mrb[2].mxu1 }
0x159c   : > { %v12289_v51 = vpop.f32.mrb[3].mxu1 }
0x159f   : > { %v14093_v2 = vpop.f32.mrb[0].mxu0 }
0x15a0   : > { %v14094_v50 = vpop.f32.mrb[1].mxu0 }
0x15a1   : > { %v14095_v58 = vadd.f32 %v14094_v50, %v14093_v2  ;;  %v14096_v5 = vpop.f32.mrb[2].mxu0  ;;  %v14391_v39 = vpop.f32.mrb[4].mxu1 }
0x15a2   : > { %v14097_v9 = vpop.f32.mrb[3].mxu0  ;;  %v12302_v7 = vpop.f32.mrb[5].mxu1 }
0x15a3   : > { %v14098_v44 = vadd.f32 %v14097_v9, %v14096_v5  ;;  %v12222_v60 = vadd.f32 %v14095_v58, %v13606_v28  ;;  %v14392_v37 = vpop.f32.mrb[6].mxu1 }
0x15a4   : > { %v12305_v10 = vpop.f32.mrb[7].mxu1 }
0x15a5   : > { %v12287_v26 = vadd.f32 %v12286_v47, %v12222_v60  ;;  %v12225_v3 = vadd.f32 %v14098_v44, %v13606_v28 }
0x15a7   : > { %12317 = vst [vmem:[%s17815_s6] sm:$0xff] %v12287_v26  ;;  %v12290_v53 = vadd.f32 %v12289_v51, %v12225_v3  ;;  %v14099_v61 = vpop.f32.mrb[4].mxu0 }
0x15a8   : > { %v14100_v30 = vpop.f32.mrb[5].mxu0 }
0x15a9   : > { %12318 = vst [vmem:[%s17815_s6 + $0x8] sm:$0xff] %v12290_v53  ;;  %v14101_v23 = vadd.f32 %v14100_v30, %v14099_v61  ;;  %v14102_v38 = vpop.f32.mrb[6].mxu0 }
0x15aa   : > { %v14103_v42 = vpop.f32.mrb[7].mxu0 }
0x15ab   : > { %v12230_v1 = vadd.f32 %v14101_v23, %v13606_v28  ;;  %v14104_v15 = vadd.f32 %v14103_v42, %v14102_v38 }
0x15ad   : > { %v12295_v31 = vadd.f32 %v14387_v18, %v12230_v1  ;;  %v12233_v41 = vadd.f32 %v14104_v15, %v13606_v28 }
0x15af   : > { %12319 = vst [vmem:[%s17815_s6 + $0x10] sm:$0xff] %v12295_v31  ;;  %v12298_v19 = vadd.f32 %v14388_v40, %v12233_v41  ;;  %v14105_v16 = vpop.f32.mrb[8].mxu0 }
0x15b0   : > { %v14106_v52 = vpop.f32.mrb[9].mxu0 }
0x15b1   : > { %12320 = vst [vmem:[%s17815_s6 + $0x18] sm:$0xff] %v12298_v19  ;;  %v14107_v4 = vadd.f32 %v14106_v52, %v14105_v16  ;;  %v14108_v17 = vpop.f32.mrb[10].mxu0 }
0x15b2   : > { %v14109_v25 = vpop.f32.mrb[11].mxu0 }
0x15b3   : > { %v14110_v14 = vadd.f32 %v14109_v25, %v14108_v17  ;;  %v12238_v21 = vadd.f32 %v14107_v4, %v13606_v28 }
0x15b5   : > { %v12303_v45 = vadd.f32 %v12302_v7, %v12238_v21  ;;  %v12241_v24 = vadd.f32 %v14110_v14, %v13606_v28 }
0x15b7   : > { %12321 = vst [vmem:[%s17815_s6 + $0x20] sm:$0xff] %v12303_v45  ;;  %v12306_v35 = vadd.f32 %v12305_v10, %v12241_v24  ;;  %v14111_v46 = vpop.f32.mrb[12].mxu0 }
0x15b8   : > { %v14112_v22 = vpop.f32.mrb[13].mxu0 }
0x15b9   : > { %12322 = vst [vmem:[%s17815_s6 + $0x28] sm:$0xff] %v12306_v35  ;;  %v14113_v62 = vadd.f32 %v14112_v22, %v14111_v46  ;;  %v14114_v32 = vpop.f32.mrb[14].mxu0 }
0x15ba   : > { %v14115_v48 = vpop.f32.mrb[15].mxu0 }
0x15bb   : > { %v12246_v43 = vadd.f32 %v14113_v62, %v13606_v28  ;;  %v14116_v11 = vadd.f32 %v14115_v48, %v14114_v32 }
0x15bd   : > { %v12311_v27 = vadd.f32 %v14391_v39, %v12246_v43  ;;  %v12249_v34 = vadd.f32 %v14116_v11, %v13606_v28 }
0x15bf   : > { %12323 = vst [vmem:[%s17815_s6 + $0x30] sm:$0xff] %v12311_v27  ;;  %v12314_v36 = vadd.f32 %v14392_v37, %v12249_v34 }
0x15c1   : > { %12324 = vst [vmem:[%s17815_s6 + $0x38] sm:$0xff] %v12314_v36 }
0x15c2 PF: > { %s21557_s26 = sld [smem:[#allocation39_spill]]  ;;  %s21559_s25 = sld [smem:[#allocation47_spill]] }
0x15c3   : > { %s21560_s29 = sld [smem:[#allocation99_spill]]  ;;  %s12339_s9 = sshll.u32 %s17815_s6, 4  ;;  %s21222_s9 = int_to_ptr.vmem [resolvable:$true] %s12339_s9 }
0x15c4   : > { %s21226_s18 = scalar_lea.sflag [#allocation5], %s911_s30  ;;  %s16974_s19 = scalar_lea.vmem %s21222_s9, 1024 }
0x15c5   : > { %p16975_p8 = scmp.ne.s32.totalorder %s21222_s9, %s16974_s19  ;;  %s17145_s0 = smov [#allocation24]  }
0x15c6   : > { %s16978_s4 = sshll.u32 %s17145_s0, 4  ;;  %s16979_s4 = int_to_ptr.vmem [resolvable:$false] %s16978_s4 }
0x15c7   : > { %s16980_s15 = scalar_lea.vmem %s16979_s4, 2048  ;;  %p16981_p11 = scmp.lt.s32.totalorder %s21222_s9, %s16979_s4 }
0x15c8   : > { %s13636_s2 = sshll.u32 %s21557_s26, 10  ;;  %p21562_p9 = scmp.ne.s32.totalorder %s21559_s25, 0 }
0x15c9   : > { %s21561_s1 = smov %s21560_s29  ;;  %s21219_s20 = scalar_lea.hbm %s21560_s29, %s13636_s2 }
0x15ca   : > { %p16976_p2 = pnand %p16975_p8, %p21562_p9  ;;  %p16982_p1 = scmp.lt.s32.totalorder %s16980_s15, %s16974_s19 }
0x15cc   : > { %p16977_p10 = pneg %p16976_p2  ;;  %p16983_p5 = por %p16982_p1, %p16981_p11 }
0x15ce   : > { %p16984_p12 = pnand %p16983_p5, %p16977_p10 }
0x15d0   : > { %16987 = shalt.err (!%p16984_p12)
}
0x15d1   : > { %s16988_s6 = scalar_lea.hbm %s21219_s20, 1024  ;;  %s16992_s11 = scalar_lea.hbm %s21561_s1, 2048 }
0x15d2   : > { %p16989_p7 = scmp.ne.s32.totalorder %s21219_s20, %s16988_s6  ;;  %p16993_p0 = scmp.lt.u32.totalorder %s21219_s20, %s21561_s1 }
0x15d3   : > { %p16994_p4 = scmp.lt.u32.totalorder %s16992_s11, %s16988_s6  ;;  %p16996_p8 = scmp.lt.u32.totalorder %s16988_s6, %s21219_s20 }
0x15d4   : > { %p16990_p13 = pnand %p16989_p7, %p21562_p9 }
0x15d5   : > { %p16995_p3 = por %p16994_p4, %p16993_p0 }
0x15d6   : > { %p16991_p6 = pneg %p16990_p13 }
0x15d7   : > { %p16997_p2 = por %p16996_p8, %p16995_p3 }
0x15d9   : > { %p16998_p10 = pnand %p16997_p2, %p16991_p6 }
0x15db   : > { %17001 = shalt.err (!%p16998_p10)
}
0x15dc   : > { %s17146_s16 = smov 128   ;;  %s17147_s2 = smov 8  }
0x15dd   : > { %14859 = dma.vmem_to_hbm [thread:$0]  (%p21562_p9), %s21222_s9, 1024, %s21219_s20, %s21226_s18, %s17146_s16, %s17146_s16, %s17147_s2  }
0x15de PF: > { %s21563_s17 = sld [smem:[#allocation33_spill]]  ;;  %s21564_s27 = sld [smem:[#allocation48_spill]] }
0x15df   : > { %p14911_p11 = scmp.ge.s32.totalorder %s17120_s23, 2 }
0x15e4   : > { %s12354_s29 = sand.u32 1, %s21563_s17   ;;  %p21565_p1 = scmp.ne.s32.totalorder %s21564_s27, 0 }
0x15e5   : > { %s12355_s19 = scalar_lea.sflag [#allocation5], %s12354_s29 }
0x15e6   : > { %p14903_p5 = pnand %p14911_p11, %p21565_p1 }
0x15e8   : > { %17075 = dma.done.wait (!%p14903_p5), %s12355_s19, 1024  }
0x15e9   : > { %17077 = vsyncadd (!%p14903_p5), %s12355_s19, 4294966272  ;;  %s46_s23 = sadd.s32 1, %s17120_s23   ;;  %s21566_s29 = sld [smem:[#allocation34_spill]] }
0x15ea   : > { %p43_p12 = scmp.ge.s32.totalorder %s46_s23, 14   ;;  %s21567_s30 = sld [smem:[#allocation35_spill]] }
0x15eb   : > { %s21568_s15 = sld [smem:[#allocation46_spill]]  ;;  %s21569_s16 = sld [smem:[#allocation36_spill]] }
0x15ec   : > { %s21570_s17 = sld [smem:[#allocation37_spill]]  ;;  %s21571_s18 = sld [smem:[#allocation44_spill]] }
0x15ed   : > { %s21572_s20 = sld [smem:[#allocation40_spill]]  ;;  %s21573_s25 = sld [smem:[#allocation42_spill]] }
0x15ee   : > { %s21574_s22 = sld [smem:[#allocation43_spill]]  ;;  %s21575_s19 = smov %s17112_s21 }
0x15ef   :  { %45 = sbr.rel (!%p43_p12) target bundleno = 29 (0x1d), region = 260 }
0x15f3   : > { %s21576_s21 = smov %s21573_s25 }
0x15f6   :  { %12360 = vsyncpa [#allocation4], 1 }
0x15f7   :  { %12362 = vsyncpa [#allocation4 + $0x1], 1 }
0x15f8   :  { %12363 = vsyncpa [#allocation7], 1 }
0x15f9   :  { %12365 = vsyncpa [#allocation7 + $0x1], 1 }
0x15fa   :  { %12366 = vsyncpa [#allocation10], 1 }
0x15fb   :  { %12368 = vsyncpa [#allocation10 + $0x1], 1 }
0x15fc   :  { %12369 = vsyncpa [#allocation13], 1 }
0x15fd   :  { %12371 = vsyncpa [#allocation13 + $0x1], 1 }
0x15fe   :  { %12372 = vsyncpa [#allocation16], 1 }
0x15ff   :  { %12374 = vsyncpa [#allocation16 + $0x1], 1 }
0x1600   :  { %12375 = vsyncpa [#allocation19], 1 }
0x1601   :  { %12377 = vsyncpa [#allocation19 + $0x1], 1 }
0x1602   :  { %12378 = vsyncpa [#allocation22], 1 }
0x1603   :  { %12379 = vsyncpa [#allocation5], 1 }
0x1604   :  { %12381 = vsyncpa [#allocation5 + $0x1], 1 }

</bundles_post_ra>
